<compile_context>
chip_gen: v5e
topology: v5e:2x2
jax: 0.10.0
libtpu: 0.0.40
codegen_flags: <defaults>
</compile_context>

<pallas_src>
import math

import jax
import jax.numpy as jnp
import numpy as np
from jax.experimental import pallas as pl
from jax.experimental.pallas import tpu as pltpu

BN_EPS = 1e-5


# ----------------------------------------------------------------------------
# Pallas kernel
# ----------------------------------------------------------------------------
def _make_deform_conv_kernel(*, K, pad, dil, H, W, Ho, Wo, c_in, c_out,
                             use_sub, apply_relu, shortcut):
    """Fused: offset/modulator convs (in-kernel patches) + separable
    deformable bilinear sampling + single main-conv matmul + BN
    [+ shortcut add] [+ ReLU]."""
    KK = K * K
    HWi = H * W
    HWo = Ho * Wo

    def _shift_lanes(v, d):
        # out[:, p] = v[:, p + d]  (zero fill at the ends; d is a Python int).
        if d == 0:
            return v
        n = v.shape[-1]
        z = jnp.zeros((v.shape[0], abs(d)), v.dtype)
        if d > 0:
            return jnp.concatenate([v[:, d:], z], axis=1)
        return jnp.concatenate([z, v[:, :n + d]], axis=1)

    def kernel(*refs):
        it = iter(refs)
        xrows_ref = next(it)          # (1, Cin*H, W)   sampling layout
        xflat_ref = next(it)          # (1, Cin, HWi)   patch layout
        mask_ref = next(it)           # (KK, HWi)       0/1 tap validity
        base_ref = next(it)           # (2, HWo)        oi*s - pad, oj*s - pad
        wom_ref = next(it)            # (3*KK, KK*Cin)  offset|modulator weights
        bom_ref = next(it)            # (3*KK, 1)
        ssub_ref = next(it) if use_sub else None   # (HWi, HWo) 0/1 selection
        wmain_ref = next(it)          # (Cout, KK*Cin)
        bn_ref = next(it)             # (Cout, 2)  [scale, shift (+bias folded)]
        if shortcut == 'proj':
            scx_ref = next(it)        # (1, Cin0, HWo)  strided input
            scw_ref = next(it)        # (Cout, Cin0)
            scbn_ref = next(it)       # (Cout, 2)
        elif shortcut == 'identity':
            ident_ref = next(it)      # (1, Cout, HWo)
        o_ref = next(it)              # (1, Cout, HWo)

        xrows = xrows_ref[0].astype(jnp.float32)    # (Cin*H, W)
        xflat = xflat_ref[0].astype(jnp.float32)    # (Cin, HWi)

        # ---- offset + modulator 3x3 convs: in-kernel patches, ONE matmul ----
        cols = []
        for kh in range(K):
            for kw in range(K):
                t = kh * K + kw
                d = (kh - pad) * W + (kw - pad)
                cols.append(_shift_lanes(xflat, d) * mask_ref[t:t + 1, :])
        patches = jnp.concatenate(cols, axis=0)                   # (KK*Cin, HWi)
        om = jnp.dot(wom_ref[...], patches,
                     preferred_element_type=jnp.float32) + bom_ref[...]
        if use_sub:
            # stride > 1: pick the strided output positions (0/1 selection).
            om = jnp.dot(om, ssub_ref[...],
                         preferred_element_type=jnp.float32)      # (3KK, HWo)
        mod = 2.0 * jax.nn.sigmoid(om[2 * KK:3 * KK, :])           # (KK, HWo)

        # ---- deformable bilinear sampling, separable per tap ----
        base_py = base_ref[0:1, :]                                 # (1, HWo)
        base_px = base_ref[1:2, :]
        ygrid = jax.lax.broadcasted_iota(jnp.int32, (H, HWo), 0).astype(jnp.float32)
        xgrid = jax.lax.broadcasted_iota(jnp.int32, (W, HWo), 0).astype(jnp.float32)

        samples = []
        for kh in range(K):
            for kw in range(K):
                t = kh * K + kw
                py = base_py + float(kh * dil) + om[2 * t:2 * t + 1, :]
                px = base_px + float(kw * dil) + om[2 * t + 1:2 * t + 2, :]
                wy = jnp.maximum(1.0 - jnp.abs(ygrid - py), 0.0)   # (H, HWo)
                wx = jnp.maximum(1.0 - jnp.abs(xgrid - px), 0.0)   # (W, HWo)
                # x-contraction on the MXU, then wy-weighted reduce over H.
                tmp = jnp.dot(xrows, wx,
                              preferred_element_type=jnp.float32)  # (Cin*H, HWo)
                tmp = tmp.reshape(c_in, H, HWo) * wy[None, :, :]
                samp = jnp.sum(tmp, axis=1)                        # (Cin, HWo)
                samples.append(samp * mod[t:t + 1, :])
        sampcat = jnp.concatenate(samples, axis=0)                 # (KK*Cin, HWo)

        # ---- main conv: ONE MXU matmul + fused (bias+BN) affine ----
        out = jnp.dot(wmain_ref[...], sampcat,
                      preferred_element_type=jnp.float32)          # (Cout, HWo)
        out = out * bn_ref[:, 0:1] + bn_ref[:, 1:2]

        if shortcut == 'proj':
            ident = jnp.dot(scw_ref[...], scx_ref[0].astype(jnp.float32),
                            preferred_element_type=jnp.float32)
            out = out + (ident * scbn_ref[:, 0:1] + scbn_ref[:, 1:2])
        elif shortcut == 'identity':
            out = out + ident_ref[0].astype(jnp.float32)

        if apply_relu:
            out = jnp.maximum(out, 0.0)
        o_ref[0] = out.astype(o_ref.dtype)

    return kernel


# ----------------------------------------------------------------------------
# Wrappers (layout plumbing + pallas_call)
# ----------------------------------------------------------------------------
def _bn_fold(bn, conv_bias=None):
    """Fold inference BatchNorm (and optional conv bias) into scale/shift."""
    scale = bn['gamma'] / jnp.sqrt(bn['var'] + BN_EPS)
    shift = bn['beta'] - bn['mean'] * scale
    if conv_bias is not None:
        shift = shift + conv_bias * scale
    return jnp.stack([scale, shift], axis=1)               # (C, 2)


def deformable_conv2d_bn(x, p, bn, *, stride=1, pad=1, dil=1,
                         apply_relu=False, shortcut=None):
    """Fused DeformableConv2d + BatchNorm [+ shortcut add] [+ ReLU].

    shortcut: None | ('identity', ident_flat) | ('proj', xs_flat, w_sc, sc_bn)
    """
    B, Cin, H, W = x.shape
    Cout, _, K, _ = p['weight'].shape
    KK = K * K
    Ho = (H + 2 * pad - dil * (K - 1) - 1) // stride + 1
    Wo = (W + 2 * pad - dil * (K - 1) - 1) // stride + 1
    HWi, HWo = H * W, Ho * Wo
    use_sub = (stride != 1) or (HWo != HWi)

    # ---- exact integer grid geometry, computed once on the host ----
    yi, xi = np.meshgrid(np.arange(H), np.arange(W), indexing='ij')
    yi, xi = yi.reshape(-1), xi.reshape(-1)
    masks = np.zeros((KK, HWi), np.float32)
    for kh in range(K):
        for kw in range(K):
            yy, xx = yi + kh - pad, xi + kw - pad
            masks[kh * K + kw] = ((yy >= 0) & (yy < H) &
                                  (xx >= 0) & (xx < W)).astype(np.float32)
    oi, oj = np.meshgrid(np.arange(Ho), np.arange(Wo), indexing='ij')
    base = np.stack([oi.reshape(-1) * stride - pad,
                     oj.reshape(-1) * stride - pad]).astype(np.float32)
    if use_sub:
        sel = np.zeros((HWi, HWo), np.float32)
        for i in range(Ho):
            for j in range(Wo):
                sel[i * stride * W + j * stride, i * Wo + j] = 1.0

    # ---- layout plumbing (free row-major reshapes) ----
    x_rows = x.reshape(B, Cin * H, W)
    x_flat = x.reshape(B, Cin, HWi)
    w_off = jnp.transpose(p['w_off'], (0, 2, 3, 1)).reshape(2 * KK, KK * Cin)
    w_mod = jnp.transpose(p['w_mod'], (0, 2, 3, 1)).reshape(KK, KK * Cin)
    w_om = jnp.concatenate([w_off, w_mod], axis=0)          # (3KK, KK*Cin)
    b_om = jnp.concatenate([p['b_off'], p['b_mod']])[:, None]
    w_main = jnp.transpose(p['weight'], (0, 2, 3, 1)).reshape(Cout, KK * Cin)
    bn_pack = _bn_fold(bn, p['bias'])

    kernel = _make_deform_conv_kernel(
        K=K, pad=pad, dil=dil, H=H, W=W, Ho=Ho, Wo=Wo, c_in=Cin, c_out=Cout,
        use_sub=use_sub, apply_relu=apply_relu,
        shortcut=None if shortcut is None else shortcut[0])

    in_specs = [
        pl.BlockSpec((1, Cin * H, W), lambda b: (b, 0, 0)),
        pl.BlockSpec((1, Cin, HWi), lambda b: (b, 0, 0)),
        pl.BlockSpec((KK, HWi), lambda b: (0, 0)),
        pl.BlockSpec((2, HWo), lambda b: (0, 0)),
        pl.BlockSpec((3 * KK, KK * Cin), lambda b: (0, 0)),
        pl.BlockSpec((3 * KK, 1), lambda b: (0, 0)),
    ]
    args = [x_rows, x_flat, jnp.asarray(masks), jnp.asarray(base), w_om, b_om]
    if use_sub:
        in_specs.append(pl.BlockSpec((HWi, HWo), lambda b: (0, 0)))
        args.append(jnp.asarray(sel))
    in_specs += [pl.BlockSpec((Cout, KK * Cin), lambda b: (0, 0)),
                 pl.BlockSpec((Cout, 2), lambda b: (0, 0))]
    args += [w_main, bn_pack]
    if shortcut is not None and shortcut[0] == 'proj':
        _, xs_flat, w_sc, sc_bn = shortcut
        Cin0 = xs_flat.shape[1]
        in_specs += [pl.BlockSpec((1, Cin0, HWo), lambda b: (b, 0, 0)),
                     pl.BlockSpec((Cout, Cin0), lambda b: (0, 0)),
                     pl.BlockSpec((Cout, 2), lambda b: (0, 0))]
        args += [xs_flat, w_sc, sc_bn]
    elif shortcut is not None and shortcut[0] == 'identity':
        in_specs.append(pl.BlockSpec((1, Cout, HWo), lambda b: (b, 0, 0)))
        args.append(shortcut[1])

    out = pl.pallas_call(
        kernel,
        out_shape=jax.ShapeDtypeStruct((B, Cout, HWo), x.dtype),
        grid_spec=pltpu.PrefetchScalarGridSpec(
            num_scalar_prefetch=0,
            grid=(B,),
            in_specs=in_specs,
            out_specs=pl.BlockSpec((1, Cout, HWo), lambda b: (b, 0, 0)),
        ),
        compiler_params=pltpu.CompilerParams(
            dimension_semantics=("parallel",)),
    )(*args)
    return out.reshape(B, Cout, Ho, Wo)


def deformable_residual_block(x, params, *, stride=1):
    """Forward pass of DeformableResidualBlock (two fused Pallas kernels)."""
    B, Cin, H, W = x.shape
    Cout = params['conv1']['weight'].shape[0]
    out1 = deformable_conv2d_bn(x, params['conv1'], params['bn1'],
                                stride=stride, apply_relu=True)
    Ho, Wo = out1.shape[2], out1.shape[3]
    if stride != 1 or Cin != Cout:
        # 1x1 projection shortcut + BN is fused into the conv2 kernel.
        xs_flat = x[:, :, ::stride, ::stride].reshape(B, Cin, Ho * Wo)
        w_sc = params['shortcut']['weight'].reshape(Cout, Cin)
        shortcut = ('proj', xs_flat, w_sc, _bn_fold(params['bn_sc']))
    else:
        shortcut = ('identity', x.reshape(B, Cin, H * W))
    out2 = deformable_conv2d_bn(out1, params['conv2'], params['bn2'],
                                stride=1, apply_relu=True, shortcut=shortcut)
    return out2


# ----------------------------------------------------------------------------
# Pure-JAX reference (independent gather-based deform_conv2d)
# ----------------------------------------------------------------------------
def _conv2d_ref(x, w, b, stride, pad, dil=1):
    out = jax.lax.conv_general_dilated(
        x, w, window_strides=(stride, stride),
        padding=((pad, pad), (pad, pad)), rhs_dilation=(dil, dil),
        dimension_numbers=('NCHW', 'OIHW', 'NCHW'))
    if b is not None:
        out = out + b[None, :, None, None]
    return out


def _deform_conv2d_ref(x, offset, mask, weight, bias, stride, pad, dil=1):
    B, Cin, H, W = x.shape
    Cout, _, KH, KW = weight.shape
    Ho = (H + 2 * pad - dil * (KH - 1) - 1) // stride + 1
    Wo = (W + 2 * pad - dil * (KW - 1) - 1) // stride + 1
    oi = jnp.arange(Ho, dtype=jnp.float32)[None, :, None]
    oj = jnp.arange(Wo, dtype=jnp.float32)[None, None, :]
    xf = x.reshape(B, Cin, H * W)
    out = jnp.zeros((B, Cout, Ho, Wo), jnp.float32)
    for kh in range(KH):
        for kw in range(KW):
            t = kh * KW + kw
            py = oi * stride - pad + kh * dil + offset[:, 2 * t]
            px = oj * stride - pad + kw * dil + offset[:, 2 * t + 1]
            y0, x0 = jnp.floor(py), jnp.floor(px)
            val = jnp.zeros((B, Cin, Ho, Wo), jnp.float32)
            for yy, wy in ((y0, 1.0 - (py - y0)), (y0 + 1.0, py - y0)):
                for xx, wx in ((x0, 1.0 - (px - x0)), (x0 + 1.0, px - x0)):
                    valid = ((yy >= 0) & (yy <= H - 1) &
                             (xx >= 0) & (xx <= W - 1)).astype(jnp.float32)
                    yi = jnp.clip(yy, 0, H - 1).astype(jnp.int32)
                    xi = jnp.clip(xx, 0, W - 1).astype(jnp.int32)
                    flat = (yi * W + xi).reshape(B, 1, Ho * Wo)
                    g = jnp.take_along_axis(
                        xf, jnp.broadcast_to(flat, (B, Cin, Ho * Wo)), axis=2)
                    val = val + g.reshape(B, Cin, Ho, Wo) * \
                        (wy * wx * valid)[:, None]
            val = val * mask[:, t][:, None]
            out = out + jnp.einsum('oc,bchw->bohw', weight[:, :, kh, kw], val)
    return out + bias[None, :, None, None]


def _bn_ref(x, bn):
    scale = bn['gamma'] / jnp.sqrt(bn['var'] + BN_EPS)
    return (x - bn['mean'][None, :, None, None]) * scale[None, :, None, None] \
        + bn['beta'][None, :, None, None]


def deformable_residual_block_ref(x, params, *, stride=1):
    def dconv(xx, p, s):
        off = _conv2d_ref(xx, p['w_off'], p['b_off'], s, 1)
        m = 2.0 * jax.nn.sigmoid(_conv2d_ref(xx, p['w_mod'], p['b_mod'], s, 1))
        return _deform_conv2d_ref(xx, off, m, p['weight'], p['bias'], s, 1)

    B, Cin, H, W = x.shape
    Cout = params['conv1']['weight'].shape[0]
    if stride != 1 or Cin != Cout:
        ident = _bn_ref(_conv2d_ref(x, params['shortcut']['weight'], None,
                                    stride, 0), params['bn_sc'])
    else:
        ident = x
    out = jax.nn.relu(_bn_ref(dconv(x, params['conv1'], stride), params['bn1']))
    out = _bn_ref(dconv(out, params['conv2'], 1), params['bn2'])
    return jax.nn.relu(out + ident)


# ----------------------------------------------------------------------------
# Parameter init (random, to exercise every path; PyTorch zero-inits the
# offset/modulator convs, which would degenerate to a plain conv)
# ----------------------------------------------------------------------------
def _init_bn(key, c):
    k1, k2, k3, k4 = jax.random.split(key, 4)
    return {'gamma': 1.0 + 0.1 * jax.random.normal(k1, (c,), jnp.float32),
            'beta': 0.1 * jax.random.normal(k2, (c,), jnp.float32),
            'mean': 0.1 * jax.random.normal(k3, (c,), jnp.float32),
            'var': jax.random.uniform(k4, (c,), jnp.float32, 0.5, 1.5)}


def _init_deform_conv(key, c_in, c_out, k=3, offset_scale=0.5):
    kk = k * k
    k1, k2, k3, k4, k5, k6 = jax.random.split(key, 6)
    w_std = math.sqrt(2.0 / (c_in * kk))
    return {
        'weight': w_std * jax.random.normal(k1, (c_out, c_in, k, k), jnp.float32),
        'bias': 0.1 * jax.random.normal(k2, (c_out,), jnp.float32),
        'w_off': offset_scale * w_std *
                 jax.random.normal(k3, (2 * kk, c_in, k, k), jnp.float32),
        'b_off': offset_scale * 0.1 * jax.random.normal(k4, (2 * kk,), jnp.float32),
        'w_mod': offset_scale * w_std *
                 jax.random.normal(k5, (kk, c_in, k, k), jnp.float32),
        'b_mod': offset_scale * 0.1 * jax.random.normal(k6, (kk,), jnp.float32),
    }


def init_block_params(key, c_in, c_out, stride=1):
    k1, k2, k3, k4, k5, k6 = jax.random.split(key, 6)
    params = {'conv1': _init_deform_conv(k1, c_in, c_out),
              'bn1': _init_bn(k2, c_out),
              'conv2': _init_deform_conv(k3, c_out, c_out),
              'bn2': _init_bn(k4, c_out)}
    if stride != 1 or c_in != c_out:
        params['shortcut'] = {
            'weight': math.sqrt(2.0 / c_in) *
                      jax.random.normal(k5, (c_out, c_in, 1, 1), jnp.float32)}
        params['bn_sc'] = _init_bn(k6, c_out)
    return params


# ----------------------------------------------------------------------------
if __name__ == "__main__":
    key = jax.random.PRNGKey(0)
    configs = [
        # (B, C_in, C_out, H, W, stride)
        (2, 4, 8, 16, 16, 1),   # projection shortcut (1x1 conv + BN, fused)
        (2, 8, 8, 16, 16, 1),   # identity shortcut (fused add)
        (2, 4, 8, 16, 16, 2),   # strided / downsampling path
    ]
    for idx, (B, Cin, Cout, H, W, stride) in enumerate(configs):
        kx, kp, key = jax.random.split(key, 3)
        x = jax.random.normal(kx, (B, Cin, H, W), jnp.float32)
        params = init_block_params(kp, Cin, Cout, stride)

        fwd = jax.jit(lambda xx, pp, s=stride:
                      deformable_residual_block(xx, pp, stride=s))
        out = jax.block_until_ready(fwd(x, params))
        with jax.default_matmul_precision("highest"):
            ref = deformable_residual_block_ref(x, params, stride=stride)

        Ho = (H - 1) // stride + 1
        assert out.shape == (B, Cout, Ho, Ho), (idx, out.shape)
        max_err = float(jnp.max(jnp.abs(out - ref)))
        assert jnp.allclose(out, ref, atol=2e-3, rtol=2e-3), (idx, max_err)
    print("KERNEL_OK")
</pallas_src>

<mosaic_0001>
module attributes {stable_mosaic.version = 11 : i64} {
  func.func @kernel(%arg0: i32, %arg1: memref<1x64x16xf32, #tpu.memory_space<vmem>>, %arg2: memref<1x4x256xf32, #tpu.memory_space<vmem>>, %arg3: memref<9x256xf32, #tpu.memory_space<vmem>>, %arg4: memref<2x256xf32, #tpu.memory_space<vmem>>, %arg5: memref<27x36xf32, #tpu.memory_space<vmem>>, %arg6: memref<27x1xf32, #tpu.memory_space<vmem>>, %arg7: memref<8x36xf32, #tpu.memory_space<vmem>>, %arg8: memref<8x2xf32, #tpu.memory_space<vmem>>, %arg9: memref<1x8x256xf32, #tpu.memory_space<vmem>>) attributes {dimension_semantics = [#tpu.dimension_semantics<parallel>], iteration_bounds = array<i64: 2>, scalar_prefetch = 0 : i64, scratch_operands = 0 : i64, tpu.core_type = #tpu.core_type<tc>, window_params = [{transform_indices = @transform_0, window_bounds = array<i64: 1, 64, 16>}, {transform_indices = @transform_1, window_bounds = array<i64: 1, 4, 256>}, {pipeline_mode = #tpu.pipeline_mode<synchronous>, transform_indices = @transform_2, window_bounds = array<i64: 9, 256>}, {pipeline_mode = #tpu.pipeline_mode<synchronous>, transform_indices = @transform_3, window_bounds = array<i64: 2, 256>}, {pipeline_mode = #tpu.pipeline_mode<synchronous>, transform_indices = @transform_4, window_bounds = array<i64: 27, 36>}, {pipeline_mode = #tpu.pipeline_mode<synchronous>, transform_indices = @transform_5, window_bounds = array<i64: 27, 1>}, {pipeline_mode = #tpu.pipeline_mode<synchronous>, transform_indices = @transform_6, window_bounds = array<i64: 8, 36>}, {pipeline_mode = #tpu.pipeline_mode<synchronous>, transform_indices = @transform_7, window_bounds = array<i64: 8, 2>}, {transform_indices = @transform_8, window_bounds = array<i64: 1, 8, 256>}]} {
    %c0 = arith.constant 0 : index
    %c0_0 = arith.constant 0 : index
    %c0_1 = arith.constant 0 : index
    %0 = vector.load %arg1[%c0, %c0_0, %c0_1] : memref<1x64x16xf32, #tpu.memory_space<vmem>>, vector<1x64x16xf32>
    %1 = vector.shape_cast %0 : vector<1x64x16xf32> to vector<64x16xf32>
    %c0_2 = arith.constant 0 : index
    %c0_3 = arith.constant 0 : index
    %c0_4 = arith.constant 0 : index
    %2 = vector.load %arg2[%c0_2, %c0_3, %c0_4] : memref<1x4x256xf32, #tpu.memory_space<vmem>>, vector<1x4x256xf32>
    %3 = vector.shape_cast %2 : vector<1x4x256xf32> to vector<4x256xf32>
    %cst = arith.constant 0.000000e+00 : f32
    %4 = vector.broadcast %cst : f32 to vector<4x17xf32>
    %5 = vector.extract_strided_slice %3 {offsets = [0, 0], sizes = [4, 239], strides = [1, 1]} : vector<4x256xf32> to vector<4x239xf32>
    %6 = tpu.concatenate %4, %5 in 1 : vector<4x17xf32>, vector<4x239xf32> -> vector<4x256xf32>
    %c0_5 = arith.constant 0 : index
    %c0_6 = arith.constant 0 : index
    %7 = vector.load %arg3[%c0_5, %c0_6] : memref<9x256xf32, #tpu.memory_space<vmem>>, vector<1x256xf32>
    %8 = vector.broadcast %7 : vector<1x256xf32> to vector<4x256xf32>
    %9 = arith.mulf %6, %8 : vector<4x256xf32>
    %cst_7 = arith.constant 0.000000e+00 : f32
    %10 = vector.broadcast %cst_7 : f32 to vector<4x16xf32>
    %11 = vector.extract_strided_slice %3 {offsets = [0, 0], sizes = [4, 240], strides = [1, 1]} : vector<4x256xf32> to vector<4x240xf32>
    %12 = tpu.concatenate %10, %11 in 1 : vector<4x16xf32>, vector<4x240xf32> -> vector<4x256xf32>
    %c1 = arith.constant 1 : index
    %c0_8 = arith.constant 0 : index
    %13 = vector.load %arg3[%c1, %c0_8] : memref<9x256xf32, #tpu.memory_space<vmem>>, vector<1x256xf32>
    %14 = vector.broadcast %13 : vector<1x256xf32> to vector<4x256xf32>
    %15 = arith.mulf %12, %14 : vector<4x256xf32>
    %cst_9 = arith.constant 0.000000e+00 : f32
    %16 = vector.broadcast %cst_9 : f32 to vector<4x15xf32>
    %17 = vector.extract_strided_slice %3 {offsets = [0, 0], sizes = [4, 241], strides = [1, 1]} : vector<4x256xf32> to vector<4x241xf32>
    %18 = tpu.concatenate %16, %17 in 1 : vector<4x15xf32>, vector<4x241xf32> -> vector<4x256xf32>
    %c2 = arith.constant 2 : index
    %c0_10 = arith.constant 0 : index
    %19 = vector.load %arg3[%c2, %c0_10] : memref<9x256xf32, #tpu.memory_space<vmem>>, vector<1x256xf32>
    %20 = vector.broadcast %19 : vector<1x256xf32> to vector<4x256xf32>
    %21 = arith.mulf %18, %20 : vector<4x256xf32>
    %cst_11 = arith.constant 0.000000e+00 : f32
    %22 = vector.broadcast %cst_11 : f32 to vector<4x1xf32>
    %23 = vector.extract_strided_slice %3 {offsets = [0, 0], sizes = [4, 255], strides = [1, 1]} : vector<4x256xf32> to vector<4x255xf32>
    %24 = tpu.concatenate %22, %23 in 1 : vector<4x1xf32>, vector<4x255xf32> -> vector<4x256xf32>
    %c3 = arith.constant 3 : index
    %c0_12 = arith.constant 0 : index
    %25 = vector.load %arg3[%c3, %c0_12] : memref<9x256xf32, #tpu.memory_space<vmem>>, vector<1x256xf32>
    %26 = vector.broadcast %25 : vector<1x256xf32> to vector<4x256xf32>
    %27 = arith.mulf %24, %26 : vector<4x256xf32>
    %c4 = arith.constant 4 : index
    %c0_13 = arith.constant 0 : index
    %28 = vector.load %arg3[%c4, %c0_13] : memref<9x256xf32, #tpu.memory_space<vmem>>, vector<1x256xf32>
    %29 = vector.broadcast %28 : vector<1x256xf32> to vector<4x256xf32>
    %30 = arith.mulf %3, %29 : vector<4x256xf32>
    %cst_14 = arith.constant 0.000000e+00 : f32
    %31 = vector.broadcast %cst_14 : f32 to vector<4x1xf32>
    %32 = vector.extract_strided_slice %3 {offsets = [0, 1], sizes = [4, 255], strides = [1, 1]} : vector<4x256xf32> to vector<4x255xf32>
    %33 = tpu.concatenate %32, %31 in 1 : vector<4x255xf32>, vector<4x1xf32> -> vector<4x256xf32>
    %c5 = arith.constant 5 : index
    %c0_15 = arith.constant 0 : index
    %34 = vector.load %arg3[%c5, %c0_15] : memref<9x256xf32, #tpu.memory_space<vmem>>, vector<1x256xf32>
    %35 = vector.broadcast %34 : vector<1x256xf32> to vector<4x256xf32>
    %36 = arith.mulf %33, %35 : vector<4x256xf32>
    %cst_16 = arith.constant 0.000000e+00 : f32
    %37 = vector.broadcast %cst_16 : f32 to vector<4x15xf32>
    %38 = vector.extract_strided_slice %3 {offsets = [0, 15], sizes = [4, 241], strides = [1, 1]} : vector<4x256xf32> to vector<4x241xf32>
    %39 = tpu.concatenate %38, %37 in 1 : vector<4x241xf32>, vector<4x15xf32> -> vector<4x256xf32>
    %c6 = arith.constant 6 : index
    %c0_17 = arith.constant 0 : index
    %40 = vector.load %arg3[%c6, %c0_17] : memref<9x256xf32, #tpu.memory_space<vmem>>, vector<1x256xf32>
    %41 = vector.broadcast %40 : vector<1x256xf32> to vector<4x256xf32>
    %42 = arith.mulf %39, %41 : vector<4x256xf32>
    %cst_18 = arith.constant 0.000000e+00 : f32
    %43 = vector.broadcast %cst_18 : f32 to vector<4x16xf32>
    %44 = vector.extract_strided_slice %3 {offsets = [0, 16], sizes = [4, 240], strides = [1, 1]} : vector<4x256xf32> to vector<4x240xf32>
    %45 = tpu.concatenate %44, %43 in 1 : vector<4x240xf32>, vector<4x16xf32> -> vector<4x256xf32>
    %c7 = arith.constant 7 : index
    %c0_19 = arith.constant 0 : index
    %46 = vector.load %arg3[%c7, %c0_19] : memref<9x256xf32, #tpu.memory_space<vmem>>, vector<1x256xf32>
    %47 = vector.broadcast %46 : vector<1x256xf32> to vector<4x256xf32>
    %48 = arith.mulf %45, %47 : vector<4x256xf32>
    %cst_20 = arith.constant 0.000000e+00 : f32
    %49 = vector.broadcast %cst_20 : f32 to vector<4x17xf32>
    %50 = vector.extract_strided_slice %3 {offsets = [0, 17], sizes = [4, 239], strides = [1, 1]} : vector<4x256xf32> to vector<4x239xf32>
    %51 = tpu.concatenate %50, %49 in 1 : vector<4x239xf32>, vector<4x17xf32> -> vector<4x256xf32>
    %c8 = arith.constant 8 : index
    %c0_21 = arith.constant 0 : index
    %52 = vector.load %arg3[%c8, %c0_21] : memref<9x256xf32, #tpu.memory_space<vmem>>, vector<1x256xf32>
    %53 = vector.broadcast %52 : vector<1x256xf32> to vector<4x256xf32>
    %54 = arith.mulf %51, %53 : vector<4x256xf32>
    %55 = tpu.concatenate %9, %15, %21, %27, %30, %36, %42, %48, %54 in 0 : vector<4x256xf32>, vector<4x256xf32>, vector<4x256xf32>, vector<4x256xf32>, vector<4x256xf32>, vector<4x256xf32>, vector<4x256xf32>, vector<4x256xf32>, vector<4x256xf32> -> vector<36x256xf32>
    %c0_22 = arith.constant 0 : index
    %c0_23 = arith.constant 0 : index
    %56 = vector.load %arg5[%c0_22, %c0_23] : memref<27x36xf32, #tpu.memory_space<vmem>>, vector<27x36xf32>
    %cst_24 = arith.constant dense<0.000000e+00> : vector<27x256xf32>
    %57 = tpu.matmul %56, %55, %cst_24 {dimension_numbers = #tpu.dot_dimension_numbers<[1], [0], [0], [1], [0, 0, 1, 1], [], []>} : vector<27x36xf32>, vector<36x256xf32>, vector<27x256xf32> -> vector<27x256xf32>
    %c0_25 = arith.constant 0 : index
    %c0_26 = arith.constant 0 : index
    %58 = vector.load %arg6[%c0_25, %c0_26] : memref<27x1xf32, #tpu.memory_space<vmem>>, vector<27x1xf32>
    %59 = vector.broadcast %58 : vector<27x1xf32> to vector<27x256xf32>
    %60 = arith.addf %57, %59 : vector<27x256xf32>
    %61 = vector.extract_strided_slice %60 {offsets = [18, 0], sizes = [9, 256], strides = [1, 1]} : vector<27x256xf32> to vector<9x256xf32>
    %62 = arith.negf %61 : vector<9x256xf32>
    %63 = math.exp %62 : vector<9x256xf32>
    %cst_27 = arith.constant 1.000000e+00 : f32
    %64 = vector.broadcast %cst_27 : f32 to vector<9x256xf32>
    %65 = arith.addf %64, %63 : vector<9x256xf32>
    %66 = arith.divf %64, %65 : vector<9x256xf32>
    %cst_28 = arith.constant 2.000000e+00 : f32
    %67 = vector.broadcast %cst_28 : f32 to vector<9x256xf32>
    %68 = arith.mulf %67, %66 : vector<9x256xf32>
    %c0_29 = arith.constant 0 : index
    %c0_30 = arith.constant 0 : index
    %69 = vector.load %arg4[%c0_29, %c0_30] : memref<2x256xf32, #tpu.memory_space<vmem>>, vector<1x256xf32>
    %c1_31 = arith.constant 1 : index
    %c0_32 = arith.constant 0 : index
    %70 = vector.load %arg4[%c1_31, %c0_32] : memref<2x256xf32, #tpu.memory_space<vmem>>, vector<1x256xf32>
    %71 = tpu.iota {dimensions = array<i32: 0>} : vector<16x256xi32>
    %72 = arith.sitofp %71 : vector<16x256xi32> to vector<16x256xf32>
    %73 = tpu.iota {dimensions = array<i32: 0>} : vector<16x256xi32>
    %74 = arith.sitofp %73 : vector<16x256xi32> to vector<16x256xf32>
    %cst_33 = arith.constant 0.000000e+00 : f32
    %75 = vector.broadcast %cst_33 : f32 to vector<1x256xf32>
    %76 = arith.addf %69, %75 : vector<1x256xf32>
    %77 = vector.extract_strided_slice %60 {offsets = [0, 0], sizes = [1, 256], strides = [1, 1]} : vector<27x256xf32> to vector<1x256xf32>
    %78 = arith.addf %76, %77 : vector<1x256xf32>
    %cst_34 = arith.constant 0.000000e+00 : f32
    %79 = vector.broadcast %cst_34 : f32 to vector<1x256xf32>
    %80 = arith.addf %70, %79 : vector<1x256xf32>
    %81 = vector.extract_strided_slice %60 {offsets = [1, 0], sizes = [1, 256], strides = [1, 1]} : vector<27x256xf32> to vector<1x256xf32>
    %82 = arith.addf %80, %81 : vector<1x256xf32>
    %83 = vector.broadcast %78 : vector<1x256xf32> to vector<16x256xf32>
    %84 = arith.subf %72, %83 : vector<16x256xf32>
    %85 = math.absf %84 : vector<16x256xf32>
    %cst_35 = arith.constant 1.000000e+00 : f32
    %86 = vector.broadcast %cst_35 : f32 to vector<16x256xf32>
    %87 = arith.subf %86, %85 : vector<16x256xf32>
    %cst_36 = arith.constant 0.000000e+00 : f32
    %88 = vector.broadcast %cst_36 : f32 to vector<16x256xf32>
    %89 = arith.maximumf %87, %88 : vector<16x256xf32>
    %90 = vector.broadcast %82 : vector<1x256xf32> to vector<16x256xf32>
    %91 = arith.subf %74, %90 : vector<16x256xf32>
    %92 = math.absf %91 : vector<16x256xf32>
    %cst_37 = arith.constant 1.000000e+00 : f32
    %93 = vector.broadcast %cst_37 : f32 to vector<16x256xf32>
    %94 = arith.subf %93, %92 : vector<16x256xf32>
    %cst_38 = arith.constant 0.000000e+00 : f32
    %95 = vector.broadcast %cst_38 : f32 to vector<16x256xf32>
    %96 = arith.maximumf %94, %95 : vector<16x256xf32>
    %cst_39 = arith.constant dense<0.000000e+00> : vector<64x256xf32>
    %97 = tpu.matmul %1, %96, %cst_39 {dimension_numbers = #tpu.dot_dimension_numbers<[1], [0], [0], [1], [0, 0, 1, 1], [], []>} : vector<64x16xf32>, vector<16x256xf32>, vector<64x256xf32> -> vector<64x256xf32>
    %98 = vector.shape_cast %97 : vector<64x256xf32> to vector<4x16x256xf32>
    %99 = vector.shape_cast %89 : vector<16x256xf32> to vector<1x16x256xf32>
    %100 = vector.broadcast %99 : vector<1x16x256xf32> to vector<4x16x256xf32>
    %101 = arith.mulf %98, %100 : vector<4x16x256xf32>
    %cst_40 = arith.constant dense<0.000000e+00> : vector<4x256xf32>
    %102 = vector.multi_reduction <add>, %101, %cst_40 [1] : vector<4x16x256xf32> to vector<4x256xf32>
    %103 = vector.extract_strided_slice %68 {offsets = [0, 0], sizes = [1, 256], strides = [1, 1]} : vector<9x256xf32> to vector<1x256xf32>
    %104 = vector.broadcast %103 : vector<1x256xf32> to vector<4x256xf32>
    %105 = arith.mulf %102, %104 : vector<4x256xf32>
    %cst_41 = arith.constant 0.000000e+00 : f32
    %106 = vector.broadcast %cst_41 : f32 to vector<1x256xf32>
    %107 = arith.addf %69, %106 : vector<1x256xf32>
    %108 = vector.extract_strided_slice %60 {offsets = [2, 0], sizes = [1, 256], strides = [1, 1]} : vector<27x256xf32> to vector<1x256xf32>
    %109 = arith.addf %107, %108 : vector<1x256xf32>
    %cst_42 = arith.constant 1.000000e+00 : f32
    %110 = vector.broadcast %cst_42 : f32 to vector<1x256xf32>
    %111 = arith.addf %70, %110 : vector<1x256xf32>
    %112 = vector.extract_strided_slice %60 {offsets = [3, 0], sizes = [1, 256], strides = [1, 1]} : vector<27x256xf32> to vector<1x256xf32>
    %113 = arith.addf %111, %112 : vector<1x256xf32>
    %114 = vector.broadcast %109 : vector<1x256xf32> to vector<16x256xf32>
    %115 = arith.subf %72, %114 : vector<16x256xf32>
    %116 = math.absf %115 : vector<16x256xf32>
    %cst_43 = arith.constant 1.000000e+00 : f32
    %117 = vector.broadcast %cst_43 : f32 to vector<16x256xf32>
    %118 = arith.subf %117, %116 : vector<16x256xf32>
    %cst_44 = arith.constant 0.000000e+00 : f32
    %119 = vector.broadcast %cst_44 : f32 to vector<16x256xf32>
    %120 = arith.maximumf %118, %119 : vector<16x256xf32>
    %121 = vector.broadcast %113 : vector<1x256xf32> to vector<16x256xf32>
    %122 = arith.subf %74, %121 : vector<16x256xf32>
    %123 = math.absf %122 : vector<16x256xf32>
    %cst_45 = arith.constant 1.000000e+00 : f32
    %124 = vector.broadcast %cst_45 : f32 to vector<16x256xf32>
    %125 = arith.subf %124, %123 : vector<16x256xf32>
    %cst_46 = arith.constant 0.000000e+00 : f32
    %126 = vector.broadcast %cst_46 : f32 to vector<16x256xf32>
    %127 = arith.maximumf %125, %126 : vector<16x256xf32>
    %cst_47 = arith.constant dense<0.000000e+00> : vector<64x256xf32>
    %128 = tpu.matmul %1, %127, %cst_47 {dimension_numbers = #tpu.dot_dimension_numbers<[1], [0], [0], [1], [0, 0, 1, 1], [], []>} : vector<64x16xf32>, vector<16x256xf32>, vector<64x256xf32> -> vector<64x256xf32>
    %129 = vector.shape_cast %128 : vector<64x256xf32> to vector<4x16x256xf32>
    %130 = vector.shape_cast %120 : vector<16x256xf32> to vector<1x16x256xf32>
    %131 = vector.broadcast %130 : vector<1x16x256xf32> to vector<4x16x256xf32>
    %132 = arith.mulf %129, %131 : vector<4x16x256xf32>
    %cst_48 = arith.constant dense<0.000000e+00> : vector<4x256xf32>
    %133 = vector.multi_reduction <add>, %132, %cst_48 [1] : vector<4x16x256xf32> to vector<4x256xf32>
    %134 = vector.extract_strided_slice %68 {offsets = [1, 0], sizes = [1, 256], strides = [1, 1]} : vector<9x256xf32> to vector<1x256xf32>
    %135 = vector.broadcast %134 : vector<1x256xf32> to vector<4x256xf32>
    %136 = arith.mulf %133, %135 : vector<4x256xf32>
    %cst_49 = arith.constant 0.000000e+00 : f32
    %137 = vector.broadcast %cst_49 : f32 to vector<1x256xf32>
    %138 = arith.addf %69, %137 : vector<1x256xf32>
    %139 = vector.extract_strided_slice %60 {offsets = [4, 0], sizes = [1, 256], strides = [1, 1]} : vector<27x256xf32> to vector<1x256xf32>
    %140 = arith.addf %138, %139 : vector<1x256xf32>
    %cst_50 = arith.constant 2.000000e+00 : f32
    %141 = vector.broadcast %cst_50 : f32 to vector<1x256xf32>
    %142 = arith.addf %70, %141 : vector<1x256xf32>
    %143 = vector.extract_strided_slice %60 {offsets = [5, 0], sizes = [1, 256], strides = [1, 1]} : vector<27x256xf32> to vector<1x256xf32>
    %144 = arith.addf %142, %143 : vector<1x256xf32>
    %145 = vector.broadcast %140 : vector<1x256xf32> to vector<16x256xf32>
    %146 = arith.subf %72, %145 : vector<16x256xf32>
    %147 = math.absf %146 : vector<16x256xf32>
    %cst_51 = arith.constant 1.000000e+00 : f32
    %148 = vector.broadcast %cst_51 : f32 to vector<16x256xf32>
    %149 = arith.subf %148, %147 : vector<16x256xf32>
    %cst_52 = arith.constant 0.000000e+00 : f32
    %150 = vector.broadcast %cst_52 : f32 to vector<16x256xf32>
    %151 = arith.maximumf %149, %150 : vector<16x256xf32>
    %152 = vector.broadcast %144 : vector<1x256xf32> to vector<16x256xf32>
    %153 = arith.subf %74, %152 : vector<16x256xf32>
    %154 = math.absf %153 : vector<16x256xf32>
    %cst_53 = arith.constant 1.000000e+00 : f32
    %155 = vector.broadcast %cst_53 : f32 to vector<16x256xf32>
    %156 = arith.subf %155, %154 : vector<16x256xf32>
    %cst_54 = arith.constant 0.000000e+00 : f32
    %157 = vector.broadcast %cst_54 : f32 to vector<16x256xf32>
    %158 = arith.maximumf %156, %157 : vector<16x256xf32>
    %cst_55 = arith.constant dense<0.000000e+00> : vector<64x256xf32>
    %159 = tpu.matmul %1, %158, %cst_55 {dimension_numbers = #tpu.dot_dimension_numbers<[1], [0], [0], [1], [0, 0, 1, 1], [], []>} : vector<64x16xf32>, vector<16x256xf32>, vector<64x256xf32> -> vector<64x256xf32>
    %160 = vector.shape_cast %159 : vector<64x256xf32> to vector<4x16x256xf32>
    %161 = vector.shape_cast %151 : vector<16x256xf32> to vector<1x16x256xf32>
    %162 = vector.broadcast %161 : vector<1x16x256xf32> to vector<4x16x256xf32>
    %163 = arith.mulf %160, %162 : vector<4x16x256xf32>
    %cst_56 = arith.constant dense<0.000000e+00> : vector<4x256xf32>
    %164 = vector.multi_reduction <add>, %163, %cst_56 [1] : vector<4x16x256xf32> to vector<4x256xf32>
    %165 = vector.extract_strided_slice %68 {offsets = [2, 0], sizes = [1, 256], strides = [1, 1]} : vector<9x256xf32> to vector<1x256xf32>
    %166 = vector.broadcast %165 : vector<1x256xf32> to vector<4x256xf32>
    %167 = arith.mulf %164, %166 : vector<4x256xf32>
    %cst_57 = arith.constant 1.000000e+00 : f32
    %168 = vector.broadcast %cst_57 : f32 to vector<1x256xf32>
    %169 = arith.addf %69, %168 : vector<1x256xf32>
    %170 = vector.extract_strided_slice %60 {offsets = [6, 0], sizes = [1, 256], strides = [1, 1]} : vector<27x256xf32> to vector<1x256xf32>
    %171 = arith.addf %169, %170 : vector<1x256xf32>
    %cst_58 = arith.constant 0.000000e+00 : f32
    %172 = vector.broadcast %cst_58 : f32 to vector<1x256xf32>
    %173 = arith.addf %70, %172 : vector<1x256xf32>
    %174 = vector.extract_strided_slice %60 {offsets = [7, 0], sizes = [1, 256], strides = [1, 1]} : vector<27x256xf32> to vector<1x256xf32>
    %175 = arith.addf %173, %174 : vector<1x256xf32>
    %176 = vector.broadcast %171 : vector<1x256xf32> to vector<16x256xf32>
    %177 = arith.subf %72, %176 : vector<16x256xf32>
    %178 = math.absf %177 : vector<16x256xf32>
    %cst_59 = arith.constant 1.000000e+00 : f32
    %179 = vector.broadcast %cst_59 : f32 to vector<16x256xf32>
    %180 = arith.subf %179, %178 : vector<16x256xf32>
    %cst_60 = arith.constant 0.000000e+00 : f32
    %181 = vector.broadcast %cst_60 : f32 to vector<16x256xf32>
    %182 = arith.maximumf %180, %181 : vector<16x256xf32>
    %183 = vector.broadcast %175 : vector<1x256xf32> to vector<16x256xf32>
    %184 = arith.subf %74, %183 : vector<16x256xf32>
    %185 = math.absf %184 : vector<16x256xf32>
    %cst_61 = arith.constant 1.000000e+00 : f32
    %186 = vector.broadcast %cst_61 : f32 to vector<16x256xf32>
    %187 = arith.subf %186, %185 : vector<16x256xf32>
    %cst_62 = arith.constant 0.000000e+00 : f32
    %188 = vector.broadcast %cst_62 : f32 to vector<16x256xf32>
    %189 = arith.maximumf %187, %188 : vector<16x256xf32>
    %cst_63 = arith.constant dense<0.000000e+00> : vector<64x256xf32>
    %190 = tpu.matmul %1, %189, %cst_63 {dimension_numbers = #tpu.dot_dimension_numbers<[1], [0], [0], [1], [0, 0, 1, 1], [], []>} : vector<64x16xf32>, vector<16x256xf32>, vector<64x256xf32> -> vector<64x256xf32>
    %191 = vector.shape_cast %190 : vector<64x256xf32> to vector<4x16x256xf32>
    %192 = vector.shape_cast %182 : vector<16x256xf32> to vector<1x16x256xf32>
    %193 = vector.broadcast %192 : vector<1x16x256xf32> to vector<4x16x256xf32>
    %194 = arith.mulf %191, %193 : vector<4x16x256xf32>
    %cst_64 = arith.constant dense<0.000000e+00> : vector<4x256xf32>
    %195 = vector.multi_reduction <add>, %194, %cst_64 [1] : vector<4x16x256xf32> to vector<4x256xf32>
    %196 = vector.extract_strided_slice %68 {offsets = [3, 0], sizes = [1, 256], strides = [1, 1]} : vector<9x256xf32> to vector<1x256xf32>
    %197 = vector.broadcast %196 : vector<1x256xf32> to vector<4x256xf32>
    %198 = arith.mulf %195, %197 : vector<4x256xf32>
    %cst_65 = arith.constant 1.000000e+00 : f32
    %199 = vector.broadcast %cst_65 : f32 to vector<1x256xf32>
    %200 = arith.addf %69, %199 : vector<1x256xf32>
    %201 = vector.extract_strided_slice %60 {offsets = [8, 0], sizes = [1, 256], strides = [1, 1]} : vector<27x256xf32> to vector<1x256xf32>
    %202 = arith.addf %200, %201 : vector<1x256xf32>
    %cst_66 = arith.constant 1.000000e+00 : f32
    %203 = vector.broadcast %cst_66 : f32 to vector<1x256xf32>
    %204 = arith.addf %70, %203 : vector<1x256xf32>
    %205 = vector.extract_strided_slice %60 {offsets = [9, 0], sizes = [1, 256], strides = [1, 1]} : vector<27x256xf32> to vector<1x256xf32>
    %206 = arith.addf %204, %205 : vector<1x256xf32>
    %207 = vector.broadcast %202 : vector<1x256xf32> to vector<16x256xf32>
    %208 = arith.subf %72, %207 : vector<16x256xf32>
    %209 = math.absf %208 : vector<16x256xf32>
    %cst_67 = arith.constant 1.000000e+00 : f32
    %210 = vector.broadcast %cst_67 : f32 to vector<16x256xf32>
    %211 = arith.subf %210, %209 : vector<16x256xf32>
    %cst_68 = arith.constant 0.000000e+00 : f32
    %212 = vector.broadcast %cst_68 : f32 to vector<16x256xf32>
    %213 = arith.maximumf %211, %212 : vector<16x256xf32>
    %214 = vector.broadcast %206 : vector<1x256xf32> to vector<16x256xf32>
    %215 = arith.subf %74, %214 : vector<16x256xf32>
    %216 = math.absf %215 : vector<16x256xf32>
    %cst_69 = arith.constant 1.000000e+00 : f32
    %217 = vector.broadcast %cst_69 : f32 to vector<16x256xf32>
    %218 = arith.subf %217, %216 : vector<16x256xf32>
    %cst_70 = arith.constant 0.000000e+00 : f32
    %219 = vector.broadcast %cst_70 : f32 to vector<16x256xf32>
    %220 = arith.maximumf %218, %219 : vector<16x256xf32>
    %cst_71 = arith.constant dense<0.000000e+00> : vector<64x256xf32>
    %221 = tpu.matmul %1, %220, %cst_71 {dimension_numbers = #tpu.dot_dimension_numbers<[1], [0], [0], [1], [0, 0, 1, 1], [], []>} : vector<64x16xf32>, vector<16x256xf32>, vector<64x256xf32> -> vector<64x256xf32>
    %222 = vector.shape_cast %221 : vector<64x256xf32> to vector<4x16x256xf32>
    %223 = vector.shape_cast %213 : vector<16x256xf32> to vector<1x16x256xf32>
    %224 = vector.broadcast %223 : vector<1x16x256xf32> to vector<4x16x256xf32>
    %225 = arith.mulf %222, %224 : vector<4x16x256xf32>
    %cst_72 = arith.constant dense<0.000000e+00> : vector<4x256xf32>
    %226 = vector.multi_reduction <add>, %225, %cst_72 [1] : vector<4x16x256xf32> to vector<4x256xf32>
    %227 = vector.extract_strided_slice %68 {offsets = [4, 0], sizes = [1, 256], strides = [1, 1]} : vector<9x256xf32> to vector<1x256xf32>
    %228 = vector.broadcast %227 : vector<1x256xf32> to vector<4x256xf32>
    %229 = arith.mulf %226, %228 : vector<4x256xf32>
    %cst_73 = arith.constant 1.000000e+00 : f32
    %230 = vector.broadcast %cst_73 : f32 to vector<1x256xf32>
    %231 = arith.addf %69, %230 : vector<1x256xf32>
    %232 = vector.extract_strided_slice %60 {offsets = [10, 0], sizes = [1, 256], strides = [1, 1]} : vector<27x256xf32> to vector<1x256xf32>
    %233 = arith.addf %231, %232 : vector<1x256xf32>
    %cst_74 = arith.constant 2.000000e+00 : f32
    %234 = vector.broadcast %cst_74 : f32 to vector<1x256xf32>
    %235 = arith.addf %70, %234 : vector<1x256xf32>
    %236 = vector.extract_strided_slice %60 {offsets = [11, 0], sizes = [1, 256], strides = [1, 1]} : vector<27x256xf32> to vector<1x256xf32>
    %237 = arith.addf %235, %236 : vector<1x256xf32>
    %238 = vector.broadcast %233 : vector<1x256xf32> to vector<16x256xf32>
    %239 = arith.subf %72, %238 : vector<16x256xf32>
    %240 = math.absf %239 : vector<16x256xf32>
    %cst_75 = arith.constant 1.000000e+00 : f32
    %241 = vector.broadcast %cst_75 : f32 to vector<16x256xf32>
    %242 = arith.subf %241, %240 : vector<16x256xf32>
    %cst_76 = arith.constant 0.000000e+00 : f32
    %243 = vector.broadcast %cst_76 : f32 to vector<16x256xf32>
    %244 = arith.maximumf %242, %243 : vector<16x256xf32>
    %245 = vector.broadcast %237 : vector<1x256xf32> to vector<16x256xf32>
    %246 = arith.subf %74, %245 : vector<16x256xf32>
    %247 = math.absf %246 : vector<16x256xf32>
    %cst_77 = arith.constant 1.000000e+00 : f32
    %248 = vector.broadcast %cst_77 : f32 to vector<16x256xf32>
    %249 = arith.subf %248, %247 : vector<16x256xf32>
    %cst_78 = arith.constant 0.000000e+00 : f32
    %250 = vector.broadcast %cst_78 : f32 to vector<16x256xf32>
    %251 = arith.maximumf %249, %250 : vector<16x256xf32>
    %cst_79 = arith.constant dense<0.000000e+00> : vector<64x256xf32>
    %252 = tpu.matmul %1, %251, %cst_79 {dimension_numbers = #tpu.dot_dimension_numbers<[1], [0], [0], [1], [0, 0, 1, 1], [], []>} : vector<64x16xf32>, vector<16x256xf32>, vector<64x256xf32> -> vector<64x256xf32>
    %253 = vector.shape_cast %252 : vector<64x256xf32> to vector<4x16x256xf32>
    %254 = vector.shape_cast %244 : vector<16x256xf32> to vector<1x16x256xf32>
    %255 = vector.broadcast %254 : vector<1x16x256xf32> to vector<4x16x256xf32>
    %256 = arith.mulf %253, %255 : vector<4x16x256xf32>
    %cst_80 = arith.constant dense<0.000000e+00> : vector<4x256xf32>
    %257 = vector.multi_reduction <add>, %256, %cst_80 [1] : vector<4x16x256xf32> to vector<4x256xf32>
    %258 = vector.extract_strided_slice %68 {offsets = [5, 0], sizes = [1, 256], strides = [1, 1]} : vector<9x256xf32> to vector<1x256xf32>
    %259 = vector.broadcast %258 : vector<1x256xf32> to vector<4x256xf32>
    %260 = arith.mulf %257, %259 : vector<4x256xf32>
    %cst_81 = arith.constant 2.000000e+00 : f32
    %261 = vector.broadcast %cst_81 : f32 to vector<1x256xf32>
    %262 = arith.addf %69, %261 : vector<1x256xf32>
    %263 = vector.extract_strided_slice %60 {offsets = [12, 0], sizes = [1, 256], strides = [1, 1]} : vector<27x256xf32> to vector<1x256xf32>
    %264 = arith.addf %262, %263 : vector<1x256xf32>
    %cst_82 = arith.constant 0.000000e+00 : f32
    %265 = vector.broadcast %cst_82 : f32 to vector<1x256xf32>
    %266 = arith.addf %70, %265 : vector<1x256xf32>
    %267 = vector.extract_strided_slice %60 {offsets = [13, 0], sizes = [1, 256], strides = [1, 1]} : vector<27x256xf32> to vector<1x256xf32>
    %268 = arith.addf %266, %267 : vector<1x256xf32>
    %269 = vector.broadcast %264 : vector<1x256xf32> to vector<16x256xf32>
    %270 = arith.subf %72, %269 : vector<16x256xf32>
    %271 = math.absf %270 : vector<16x256xf32>
    %cst_83 = arith.constant 1.000000e+00 : f32
    %272 = vector.broadcast %cst_83 : f32 to vector<16x256xf32>
    %273 = arith.subf %272, %271 : vector<16x256xf32>
    %cst_84 = arith.constant 0.000000e+00 : f32
    %274 = vector.broadcast %cst_84 : f32 to vector<16x256xf32>
    %275 = arith.maximumf %273, %274 : vector<16x256xf32>
    %276 = vector.broadcast %268 : vector<1x256xf32> to vector<16x256xf32>
    %277 = arith.subf %74, %276 : vector<16x256xf32>
    %278 = math.absf %277 : vector<16x256xf32>
    %cst_85 = arith.constant 1.000000e+00 : f32
    %279 = vector.broadcast %cst_85 : f32 to vector<16x256xf32>
    %280 = arith.subf %279, %278 : vector<16x256xf32>
    %cst_86 = arith.constant 0.000000e+00 : f32
    %281 = vector.broadcast %cst_86 : f32 to vector<16x256xf32>
    %282 = arith.maximumf %280, %281 : vector<16x256xf32>
    %cst_87 = arith.constant dense<0.000000e+00> : vector<64x256xf32>
    %283 = tpu.matmul %1, %282, %cst_87 {dimension_numbers = #tpu.dot_dimension_numbers<[1], [0], [0], [1], [0, 0, 1, 1], [], []>} : vector<64x16xf32>, vector<16x256xf32>, vector<64x256xf32> -> vector<64x256xf32>
    %284 = vector.shape_cast %283 : vector<64x256xf32> to vector<4x16x256xf32>
    %285 = vector.shape_cast %275 : vector<16x256xf32> to vector<1x16x256xf32>
    %286 = vector.broadcast %285 : vector<1x16x256xf32> to vector<4x16x256xf32>
    %287 = arith.mulf %284, %286 : vector<4x16x256xf32>
    %cst_88 = arith.constant dense<0.000000e+00> : vector<4x256xf32>
    %288 = vector.multi_reduction <add>, %287, %cst_88 [1] : vector<4x16x256xf32> to vector<4x256xf32>
    %289 = vector.extract_strided_slice %68 {offsets = [6, 0], sizes = [1, 256], strides = [1, 1]} : vector<9x256xf32> to vector<1x256xf32>
    %290 = vector.broadcast %289 : vector<1x256xf32> to vector<4x256xf32>
    %291 = arith.mulf %288, %290 : vector<4x256xf32>
    %cst_89 = arith.constant 2.000000e+00 : f32
    %292 = vector.broadcast %cst_89 : f32 to vector<1x256xf32>
    %293 = arith.addf %69, %292 : vector<1x256xf32>
    %294 = vector.extract_strided_slice %60 {offsets = [14, 0], sizes = [1, 256], strides = [1, 1]} : vector<27x256xf32> to vector<1x256xf32>
    %295 = arith.addf %293, %294 : vector<1x256xf32>
    %cst_90 = arith.constant 1.000000e+00 : f32
    %296 = vector.broadcast %cst_90 : f32 to vector<1x256xf32>
    %297 = arith.addf %70, %296 : vector<1x256xf32>
    %298 = vector.extract_strided_slice %60 {offsets = [15, 0], sizes = [1, 256], strides = [1, 1]} : vector<27x256xf32> to vector<1x256xf32>
    %299 = arith.addf %297, %298 : vector<1x256xf32>
    %300 = vector.broadcast %295 : vector<1x256xf32> to vector<16x256xf32>
    %301 = arith.subf %72, %300 : vector<16x256xf32>
    %302 = math.absf %301 : vector<16x256xf32>
    %cst_91 = arith.constant 1.000000e+00 : f32
    %303 = vector.broadcast %cst_91 : f32 to vector<16x256xf32>
    %304 = arith.subf %303, %302 : vector<16x256xf32>
    %cst_92 = arith.constant 0.000000e+00 : f32
    %305 = vector.broadcast %cst_92 : f32 to vector<16x256xf32>
    %306 = arith.maximumf %304, %305 : vector<16x256xf32>
    %307 = vector.broadcast %299 : vector<1x256xf32> to vector<16x256xf32>
    %308 = arith.subf %74, %307 : vector<16x256xf32>
    %309 = math.absf %308 : vector<16x256xf32>
    %cst_93 = arith.constant 1.000000e+00 : f32
    %310 = vector.broadcast %cst_93 : f32 to vector<16x256xf32>
    %311 = arith.subf %310, %309 : vector<16x256xf32>
    %cst_94 = arith.constant 0.000000e+00 : f32
    %312 = vector.broadcast %cst_94 : f32 to vector<16x256xf32>
    %313 = arith.maximumf %311, %312 : vector<16x256xf32>
    %cst_95 = arith.constant dense<0.000000e+00> : vector<64x256xf32>
    %314 = tpu.matmul %1, %313, %cst_95 {dimension_numbers = #tpu.dot_dimension_numbers<[1], [0], [0], [1], [0, 0, 1, 1], [], []>} : vector<64x16xf32>, vector<16x256xf32>, vector<64x256xf32> -> vector<64x256xf32>
    %315 = vector.shape_cast %314 : vector<64x256xf32> to vector<4x16x256xf32>
    %316 = vector.shape_cast %306 : vector<16x256xf32> to vector<1x16x256xf32>
    %317 = vector.broadcast %316 : vector<1x16x256xf32> to vector<4x16x256xf32>
    %318 = arith.mulf %315, %317 : vector<4x16x256xf32>
    %cst_96 = arith.constant dense<0.000000e+00> : vector<4x256xf32>
    %319 = vector.multi_reduction <add>, %318, %cst_96 [1] : vector<4x16x256xf32> to vector<4x256xf32>
    %320 = vector.extract_strided_slice %68 {offsets = [7, 0], sizes = [1, 256], strides = [1, 1]} : vector<9x256xf32> to vector<1x256xf32>
    %321 = vector.broadcast %320 : vector<1x256xf32> to vector<4x256xf32>
    %322 = arith.mulf %319, %321 : vector<4x256xf32>
    %cst_97 = arith.constant 2.000000e+00 : f32
    %323 = vector.broadcast %cst_97 : f32 to vector<1x256xf32>
    %324 = arith.addf %69, %323 : vector<1x256xf32>
    %325 = vector.extract_strided_slice %60 {offsets = [16, 0], sizes = [1, 256], strides = [1, 1]} : vector<27x256xf32> to vector<1x256xf32>
    %326 = arith.addf %324, %325 : vector<1x256xf32>
    %cst_98 = arith.constant 2.000000e+00 : f32
    %327 = vector.broadcast %cst_98 : f32 to vector<1x256xf32>
    %328 = arith.addf %70, %327 : vector<1x256xf32>
    %329 = vector.extract_strided_slice %60 {offsets = [17, 0], sizes = [1, 256], strides = [1, 1]} : vector<27x256xf32> to vector<1x256xf32>
    %330 = arith.addf %328, %329 : vector<1x256xf32>
    %331 = vector.broadcast %326 : vector<1x256xf32> to vector<16x256xf32>
    %332 = arith.subf %72, %331 : vector<16x256xf32>
    %333 = math.absf %332 : vector<16x256xf32>
    %cst_99 = arith.constant 1.000000e+00 : f32
    %334 = vector.broadcast %cst_99 : f32 to vector<16x256xf32>
    %335 = arith.subf %334, %333 : vector<16x256xf32>
    %cst_100 = arith.constant 0.000000e+00 : f32
    %336 = vector.broadcast %cst_100 : f32 to vector<16x256xf32>
    %337 = arith.maximumf %335, %336 : vector<16x256xf32>
    %338 = vector.broadcast %330 : vector<1x256xf32> to vector<16x256xf32>
    %339 = arith.subf %74, %338 : vector<16x256xf32>
    %340 = math.absf %339 : vector<16x256xf32>
    %cst_101 = arith.constant 1.000000e+00 : f32
    %341 = vector.broadcast %cst_101 : f32 to vector<16x256xf32>
    %342 = arith.subf %341, %340 : vector<16x256xf32>
    %cst_102 = arith.constant 0.000000e+00 : f32
    %343 = vector.broadcast %cst_102 : f32 to vector<16x256xf32>
    %344 = arith.maximumf %342, %343 : vector<16x256xf32>
    %cst_103 = arith.constant dense<0.000000e+00> : vector<64x256xf32>
    %345 = tpu.matmul %1, %344, %cst_103 {dimension_numbers = #tpu.dot_dimension_numbers<[1], [0], [0], [1], [0, 0, 1, 1], [], []>} : vector<64x16xf32>, vector<16x256xf32>, vector<64x256xf32> -> vector<64x256xf32>
    %346 = vector.shape_cast %345 : vector<64x256xf32> to vector<4x16x256xf32>
    %347 = vector.shape_cast %337 : vector<16x256xf32> to vector<1x16x256xf32>
    %348 = vector.broadcast %347 : vector<1x16x256xf32> to vector<4x16x256xf32>
    %349 = arith.mulf %346, %348 : vector<4x16x256xf32>
    %cst_104 = arith.constant dense<0.000000e+00> : vector<4x256xf32>
    %350 = vector.multi_reduction <add>, %349, %cst_104 [1] : vector<4x16x256xf32> to vector<4x256xf32>
    %351 = vector.extract_strided_slice %68 {offsets = [8, 0], sizes = [1, 256], strides = [1, 1]} : vector<9x256xf32> to vector<1x256xf32>
    %352 = vector.broadcast %351 : vector<1x256xf32> to vector<4x256xf32>
    %353 = arith.mulf %350, %352 : vector<4x256xf32>
    %354 = tpu.concatenate %105, %136, %167, %198, %229, %260, %291, %322, %353 in 0 : vector<4x256xf32>, vector<4x256xf32>, vector<4x256xf32>, vector<4x256xf32>, vector<4x256xf32>, vector<4x256xf32>, vector<4x256xf32>, vector<4x256xf32>, vector<4x256xf32> -> vector<36x256xf32>
    %c0_105 = arith.constant 0 : index
    %c0_106 = arith.constant 0 : index
    %355 = vector.load %arg7[%c0_105, %c0_106] : memref<8x36xf32, #tpu.memory_space<vmem>>, vector<8x36xf32>
    %cst_107 = arith.constant dense<0.000000e+00> : vector<8x256xf32>
    %356 = tpu.matmul %355, %354, %cst_107 {dimension_numbers = #tpu.dot_dimension_numbers<[1], [0], [0], [1], [0, 0, 1, 1], [], []>} : vector<8x36xf32>, vector<36x256xf32>, vector<8x256xf32> -> vector<8x256xf32>
    %c0_108 = arith.constant 0 : index
    %c0_109 = arith.constant 0 : index
    %357 = vector.load %arg8[%c0_108, %c0_109] : memref<8x2xf32, #tpu.memory_space<vmem>>, vector<8x1xf32>
    %358 = vector.broadcast %357 : vector<8x1xf32> to vector<8x256xf32>
    %359 = arith.mulf %356, %358 : vector<8x256xf32>
    %c0_110 = arith.constant 0 : index
    %c1_111 = arith.constant 1 : index
    %360 = vector.load %arg8[%c0_110, %c1_111] : memref<8x2xf32, #tpu.memory_space<vmem>>, vector<8x1xf32>
    %361 = vector.broadcast %360 : vector<8x1xf32> to vector<8x256xf32>
    %362 = arith.addf %359, %361 : vector<8x256xf32>
    %cst_112 = arith.constant 0.000000e+00 : f32
    %363 = vector.broadcast %cst_112 : f32 to vector<8x256xf32>
    %364 = arith.maximumf %362, %363 : vector<8x256xf32>
    %c0_113 = arith.constant 0 : index
    %c0_114 = arith.constant 0 : index
    %c0_115 = arith.constant 0 : index
    %365 = vector.load %arg9[%c0_113, %c0_114, %c0_115] : memref<1x8x256xf32, #tpu.memory_space<vmem>>, vector<1x8x256xf32>
    %366 = vector.shape_cast %365 : vector<1x8x256xf32> to vector<8x256xf32>
    %367 = vector.shape_cast %364 : vector<8x256xf32> to vector<1x8x256xf32>
    tpu.vector_store %arg9[%c0_113, %c0_114, %c0_115], %367 {strides = array<i32>} : memref<1x8x256xf32, #tpu.memory_space<vmem>>, vector<1x8x256xf32>,
    return
  }
  func.func @transform_0(%arg0: i32) -> (i32, i32, i32) {
    %c0_i32 = arith.constant 0 : i32
    %c0_i32_0 = arith.constant 0 : i32
    %c0_i32_1 = arith.constant 0 : i32
    return %arg0, %c0_i32, %c0_i32_0 : i32, i32, i32
  }
  func.func @transform_1(%arg0: i32) -> (i32, i32, i32) {
    %c0_i32 = arith.constant 0 : i32
    %c0_i32_0 = arith.constant 0 : i32
    %c0_i32_1 = arith.constant 0 : i32
    return %arg0, %c0_i32, %c0_i32_0 : i32, i32, i32
  }
  func.func @transform_2(%arg0: i32) -> (i32, i32) {
    %c0_i32 = arith.constant 0 : i32
    %c0_i32_0 = arith.constant 0 : i32
    %c0_i32_1 = arith.constant 0 : i32
    return %c0_i32, %c0_i32_0 : i32, i32
  }
  func.func @transform_3(%arg0: i32) -> (i32, i32) {
    %c0_i32 = arith.constant 0 : i32
    %c0_i32_0 = arith.constant 0 : i32
    %c0_i32_1 = arith.constant 0 : i32
    return %c0_i32, %c0_i32_0 : i32, i32
  }
  func.func @transform_4(%arg0: i32) -> (i32, i32) {
    %c0_i32 = arith.constant 0 : i32
    %c0_i32_0 = arith.constant 0 : i32
    %c0_i32_1 = arith.constant 0 : i32
    return %c0_i32, %c0_i32_0 : i32, i32
  }
  func.func @transform_5(%arg0: i32) -> (i32, i32) {
    %c0_i32 = arith.constant 0 : i32
    %c0_i32_0 = arith.constant 0 : i32
    %c0_i32_1 = arith.constant 0 : i32
    return %c0_i32, %c0_i32_0 : i32, i32
  }
  func.func @transform_6(%arg0: i32) -> (i32, i32) {
    %c0_i32 = arith.constant 0 : i32
    %c0_i32_0 = arith.constant 0 : i32
    %c0_i32_1 = arith.constant 0 : i32
    return %c0_i32, %c0_i32_0 : i32, i32
  }
  func.func @transform_7(%arg0: i32) -> (i32, i32) {
    %c0_i32 = arith.constant 0 : i32
    %c0_i32_0 = arith.constant 0 : i32
    %c0_i32_1 = arith.constant 0 : i32
    return %c0_i32, %c0_i32_0 : i32, i32
  }
  func.func @transform_8(%arg0: i32) -> (i32, i32, i32) {
    %c0_i32 = arith.constant 0 : i32
    %c0_i32_0 = arith.constant 0 : i32
    %c0_i32_1 = arith.constant 0 : i32
    return %arg0, %c0_i32, %c0_i32_0 : i32, i32, i32
  }
}

module attributes {stable_mosaic.version = 11 : i64} {
  func.func @kernel(%arg0: i32, %arg1: memref<1x128x16xf32, #tpu.memory_space<vmem>>, %arg2: memref<1x8x256xf32, #tpu.memory_space<vmem>>, %arg3: memref<9x256xf32, #tpu.memory_space<vmem>>, %arg4: memref<2x256xf32, #tpu.memory_space<vmem>>, %arg5: memref<27x72xf32, #tpu.memory_space<vmem>>, %arg6: memref<27x1xf32, #tpu.memory_space<vmem>>, %arg7: memref<8x72xf32, #tpu.memory_space<vmem>>, %arg8: memref<8x2xf32, #tpu.memory_space<vmem>>, %arg9: memref<1x4x256xf32, #tpu.memory_space<vmem>>, %arg10: memref<8x4xf32, #tpu.memory_space<vmem>>, %arg11: memref<8x2xf32, #tpu.memory_space<vmem>>, %arg12: memref<1x8x256xf32, #tpu.memory_space<vmem>>) attributes {dimension_semantics = [#tpu.dimension_semantics<parallel>], iteration_bounds = array<i64: 2>, scalar_prefetch = 0 : i64, scratch_operands = 0 : i64, tpu.core_type = #tpu.core_type<tc>, window_params = [{transform_indices = @transform_0, window_bounds = array<i64: 1, 128, 16>}, {transform_indices = @transform_1, window_bounds = array<i64: 1, 8, 256>}, {pipeline_mode = #tpu.pipeline_mode<synchronous>, transform_indices = @transform_2, window_bounds = array<i64: 9, 256>}, {pipeline_mode = #tpu.pipeline_mode<synchronous>, transform_indices = @transform_3, window_bounds = array<i64: 2, 256>}, {pipeline_mode = #tpu.pipeline_mode<synchronous>, transform_indices = @transform_4, window_bounds = array<i64: 27, 72>}, {pipeline_mode = #tpu.pipeline_mode<synchronous>, transform_indices = @transform_5, window_bounds = array<i64: 27, 1>}, {pipeline_mode = #tpu.pipeline_mode<synchronous>, transform_indices = @transform_6, window_bounds = array<i64: 8, 72>}, {pipeline_mode = #tpu.pipeline_mode<synchronous>, transform_indices = @transform_7, window_bounds = array<i64: 8, 2>}, {transform_indices = @transform_8, window_bounds = array<i64: 1, 4, 256>}, {pipeline_mode = #tpu.pipeline_mode<synchronous>, transform_indices = @transform_9, window_bounds = array<i64: 8, 4>}, {pipeline_mode = #tpu.pipeline_mode<synchronous>, transform_indices = @transform_10, window_bounds = array<i64: 8, 2>}, {transform_indices = @transform_11, window_bounds = array<i64: 1, 8, 256>}]} {
    %c0 = arith.constant 0 : index
    %c0_0 = arith.constant 0 : index
    %c0_1 = arith.constant 0 : index
    %0 = vector.load %arg1[%c0, %c0_0, %c0_1] : memref<1x128x16xf32, #tpu.memory_space<vmem>>, vector<1x128x16xf32>
    %1 = vector.shape_cast %0 : vector<1x128x16xf32> to vector<128x16xf32>
    %c0_2 = arith.constant 0 : index
    %c0_3 = arith.constant 0 : index
    %c0_4 = arith.constant 0 : index
    %2 = vector.load %arg2[%c0_2, %c0_3, %c0_4] : memref<1x8x256xf32, #tpu.memory_space<vmem>>, vector<1x8x256xf32>
    %3 = vector.shape_cast %2 : vector<1x8x256xf32> to vector<8x256xf32>
    %cst = arith.constant 0.000000e+00 : f32
    %4 = vector.broadcast %cst : f32 to vector<8x17xf32>
    %5 = vector.extract_strided_slice %3 {offsets = [0, 0], sizes = [8, 239], strides = [1, 1]} : vector<8x256xf32> to vector<8x239xf32>
    %6 = tpu.concatenate %4, %5 in 1 : vector<8x17xf32>, vector<8x239xf32> -> vector<8x256xf32>
    %c0_5 = arith.constant 0 : index
    %c0_6 = arith.constant 0 : index
    %7 = vector.load %arg3[%c0_5, %c0_6] : memref<9x256xf32, #tpu.memory_space<vmem>>, vector<1x256xf32>
    %8 = vector.broadcast %7 : vector<1x256xf32> to vector<8x256xf32>
    %9 = arith.mulf %6, %8 : vector<8x256xf32>
    %cst_7 = arith.constant 0.000000e+00 : f32
    %10 = vector.broadcast %cst_7 : f32 to vector<8x16xf32>
    %11 = vector.extract_strided_slice %3 {offsets = [0, 0], sizes = [8, 240], strides = [1, 1]} : vector<8x256xf32> to vector<8x240xf32>
    %12 = tpu.concatenate %10, %11 in 1 : vector<8x16xf32>, vector<8x240xf32> -> vector<8x256xf32>
    %c1 = arith.constant 1 : index
    %c0_8 = arith.constant 0 : index
    %13 = vector.load %arg3[%c1, %c0_8] : memref<9x256xf32, #tpu.memory_space<vmem>>, vector<1x256xf32>
    %14 = vector.broadcast %13 : vector<1x256xf32> to vector<8x256xf32>
    %15 = arith.mulf %12, %14 : vector<8x256xf32>
    %cst_9 = arith.constant 0.000000e+00 : f32
    %16 = vector.broadcast %cst_9 : f32 to vector<8x15xf32>
    %17 = vector.extract_strided_slice %3 {offsets = [0, 0], sizes = [8, 241], strides = [1, 1]} : vector<8x256xf32> to vector<8x241xf32>
    %18 = tpu.concatenate %16, %17 in 1 : vector<8x15xf32>, vector<8x241xf32> -> vector<8x256xf32>
    %c2 = arith.constant 2 : index
    %c0_10 = arith.constant 0 : index
    %19 = vector.load %arg3[%c2, %c0_10] : memref<9x256xf32, #tpu.memory_space<vmem>>, vector<1x256xf32>
    %20 = vector.broadcast %19 : vector<1x256xf32> to vector<8x256xf32>
    %21 = arith.mulf %18, %20 : vector<8x256xf32>
    %cst_11 = arith.constant 0.000000e+00 : f32
    %22 = vector.broadcast %cst_11 : f32 to vector<8x1xf32>
    %23 = vector.extract_strided_slice %3 {offsets = [0, 0], sizes = [8, 255], strides = [1, 1]} : vector<8x256xf32> to vector<8x255xf32>
    %24 = tpu.concatenate %22, %23 in 1 : vector<8x1xf32>, vector<8x255xf32> -> vector<8x256xf32>
    %c3 = arith.constant 3 : index
    %c0_12 = arith.constant 0 : index
    %25 = vector.load %arg3[%c3, %c0_12] : memref<9x256xf32, #tpu.memory_space<vmem>>, vector<1x256xf32>
    %26 = vector.broadcast %25 : vector<1x256xf32> to vector<8x256xf32>
    %27 = arith.mulf %24, %26 : vector<8x256xf32>
    %c4 = arith.constant 4 : index
    %c0_13 = arith.constant 0 : index
    %28 = vector.load %arg3[%c4, %c0_13] : memref<9x256xf32, #tpu.memory_space<vmem>>, vector<1x256xf32>
    %29 = vector.broadcast %28 : vector<1x256xf32> to vector<8x256xf32>
    %30 = arith.mulf %3, %29 : vector<8x256xf32>
    %cst_14 = arith.constant 0.000000e+00 : f32
    %31 = vector.broadcast %cst_14 : f32 to vector<8x1xf32>
    %32 = vector.extract_strided_slice %3 {offsets = [0, 1], sizes = [8, 255], strides = [1, 1]} : vector<8x256xf32> to vector<8x255xf32>
    %33 = tpu.concatenate %32, %31 in 1 : vector<8x255xf32>, vector<8x1xf32> -> vector<8x256xf32>
    %c5 = arith.constant 5 : index
    %c0_15 = arith.constant 0 : index
    %34 = vector.load %arg3[%c5, %c0_15] : memref<9x256xf32, #tpu.memory_space<vmem>>, vector<1x256xf32>
    %35 = vector.broadcast %34 : vector<1x256xf32> to vector<8x256xf32>
    %36 = arith.mulf %33, %35 : vector<8x256xf32>
    %cst_16 = arith.constant 0.000000e+00 : f32
    %37 = vector.broadcast %cst_16 : f32 to vector<8x15xf32>
    %38 = vector.extract_strided_slice %3 {offsets = [0, 15], sizes = [8, 241], strides = [1, 1]} : vector<8x256xf32> to vector<8x241xf32>
    %39 = tpu.concatenate %38, %37 in 1 : vector<8x241xf32>, vector<8x15xf32> -> vector<8x256xf32>
    %c6 = arith.constant 6 : index
    %c0_17 = arith.constant 0 : index
    %40 = vector.load %arg3[%c6, %c0_17] : memref<9x256xf32, #tpu.memory_space<vmem>>, vector<1x256xf32>
    %41 = vector.broadcast %40 : vector<1x256xf32> to vector<8x256xf32>
    %42 = arith.mulf %39, %41 : vector<8x256xf32>
    %cst_18 = arith.constant 0.000000e+00 : f32
    %43 = vector.broadcast %cst_18 : f32 to vector<8x16xf32>
    %44 = vector.extract_strided_slice %3 {offsets = [0, 16], sizes = [8, 240], strides = [1, 1]} : vector<8x256xf32> to vector<8x240xf32>
    %45 = tpu.concatenate %44, %43 in 1 : vector<8x240xf32>, vector<8x16xf32> -> vector<8x256xf32>
    %c7 = arith.constant 7 : index
    %c0_19 = arith.constant 0 : index
    %46 = vector.load %arg3[%c7, %c0_19] : memref<9x256xf32, #tpu.memory_space<vmem>>, vector<1x256xf32>
    %47 = vector.broadcast %46 : vector<1x256xf32> to vector<8x256xf32>
    %48 = arith.mulf %45, %47 : vector<8x256xf32>
    %cst_20 = arith.constant 0.000000e+00 : f32
    %49 = vector.broadcast %cst_20 : f32 to vector<8x17xf32>
    %50 = vector.extract_strided_slice %3 {offsets = [0, 17], sizes = [8, 239], strides = [1, 1]} : vector<8x256xf32> to vector<8x239xf32>
    %51 = tpu.concatenate %50, %49 in 1 : vector<8x239xf32>, vector<8x17xf32> -> vector<8x256xf32>
    %c8 = arith.constant 8 : index
    %c0_21 = arith.constant 0 : index
    %52 = vector.load %arg3[%c8, %c0_21] : memref<9x256xf32, #tpu.memory_space<vmem>>, vector<1x256xf32>
    %53 = vector.broadcast %52 : vector<1x256xf32> to vector<8x256xf32>
    %54 = arith.mulf %51, %53 : vector<8x256xf32>
    %55 = tpu.concatenate %9, %15, %21, %27, %30, %36, %42, %48, %54 in 0 : vector<8x256xf32>, vector<8x256xf32>, vector<8x256xf32>, vector<8x256xf32>, vector<8x256xf32>, vector<8x256xf32>, vector<8x256xf32>, vector<8x256xf32>, vector<8x256xf32> -> vector<72x256xf32>
    %c0_22 = arith.constant 0 : index
    %c0_23 = arith.constant 0 : index
    %56 = vector.load %arg5[%c0_22, %c0_23] : memref<27x72xf32, #tpu.memory_space<vmem>>, vector<27x72xf32>
    %cst_24 = arith.constant dense<0.000000e+00> : vector<27x256xf32>
    %57 = tpu.matmul %56, %55, %cst_24 {dimension_numbers = #tpu.dot_dimension_numbers<[1], [0], [0], [1], [0, 0, 1, 1], [], []>} : vector<27x72xf32>, vector<72x256xf32>, vector<27x256xf32> -> vector<27x256xf32>
    %c0_25 = arith.constant 0 : index
    %c0_26 = arith.constant 0 : index
    %58 = vector.load %arg6[%c0_25, %c0_26] : memref<27x1xf32, #tpu.memory_space<vmem>>, vector<27x1xf32>
    %59 = vector.broadcast %58 : vector<27x1xf32> to vector<27x256xf32>
    %60 = arith.addf %57, %59 : vector<27x256xf32>
    %61 = vector.extract_strided_slice %60 {offsets = [18, 0], sizes = [9, 256], strides = [1, 1]} : vector<27x256xf32> to vector<9x256xf32>
    %62 = arith.negf %61 : vector<9x256xf32>
    %63 = math.exp %62 : vector<9x256xf32>
    %cst_27 = arith.constant 1.000000e+00 : f32
    %64 = vector.broadcast %cst_27 : f32 to vector<9x256xf32>
    %65 = arith.addf %64, %63 : vector<9x256xf32>
    %66 = arith.divf %64, %65 : vector<9x256xf32>
    %cst_28 = arith.constant 2.000000e+00 : f32
    %67 = vector.broadcast %cst_28 : f32 to vector<9x256xf32>
    %68 = arith.mulf %67, %66 : vector<9x256xf32>
    %c0_29 = arith.constant 0 : index
    %c0_30 = arith.constant 0 : index
    %69 = vector.load %arg4[%c0_29, %c0_30] : memref<2x256xf32, #tpu.memory_space<vmem>>, vector<1x256xf32>
    %c1_31 = arith.constant 1 : index
    %c0_32 = arith.constant 0 : index
    %70 = vector.load %arg4[%c1_31, %c0_32] : memref<2x256xf32, #tpu.memory_space<vmem>>, vector<1x256xf32>
    %71 = tpu.iota {dimensions = array<i32: 0>} : vector<16x256xi32>
    %72 = arith.sitofp %71 : vector<16x256xi32> to vector<16x256xf32>
    %73 = tpu.iota {dimensions = array<i32: 0>} : vector<16x256xi32>
    %74 = arith.sitofp %73 : vector<16x256xi32> to vector<16x256xf32>
    %cst_33 = arith.constant 0.000000e+00 : f32
    %75 = vector.broadcast %cst_33 : f32 to vector<1x256xf32>
    %76 = arith.addf %69, %75 : vector<1x256xf32>
    %77 = vector.extract_strided_slice %60 {offsets = [0, 0], sizes = [1, 256], strides = [1, 1]} : vector<27x256xf32> to vector<1x256xf32>
    %78 = arith.addf %76, %77 : vector<1x256xf32>
    %cst_34 = arith.constant 0.000000e+00 : f32
    %79 = vector.broadcast %cst_34 : f32 to vector<1x256xf32>
    %80 = arith.addf %70, %79 : vector<1x256xf32>
    %81 = vector.extract_strided_slice %60 {offsets = [1, 0], sizes = [1, 256], strides = [1, 1]} : vector<27x256xf32> to vector<1x256xf32>
    %82 = arith.addf %80, %81 : vector<1x256xf32>
    %83 = vector.broadcast %78 : vector<1x256xf32> to vector<16x256xf32>
    %84 = arith.subf %72, %83 : vector<16x256xf32>
    %85 = math.absf %84 : vector<16x256xf32>
    %cst_35 = arith.constant 1.000000e+00 : f32
    %86 = vector.broadcast %cst_35 : f32 to vector<16x256xf32>
    %87 = arith.subf %86, %85 : vector<16x256xf32>
    %cst_36 = arith.constant 0.000000e+00 : f32
    %88 = vector.broadcast %cst_36 : f32 to vector<16x256xf32>
    %89 = arith.maximumf %87, %88 : vector<16x256xf32>
    %90 = vector.broadcast %82 : vector<1x256xf32> to vector<16x256xf32>
    %91 = arith.subf %74, %90 : vector<16x256xf32>
    %92 = math.absf %91 : vector<16x256xf32>
    %cst_37 = arith.constant 1.000000e+00 : f32
    %93 = vector.broadcast %cst_37 : f32 to vector<16x256xf32>
    %94 = arith.subf %93, %92 : vector<16x256xf32>
    %cst_38 = arith.constant 0.000000e+00 : f32
    %95 = vector.broadcast %cst_38 : f32 to vector<16x256xf32>
    %96 = arith.maximumf %94, %95 : vector<16x256xf32>
    %cst_39 = arith.constant dense<0.000000e+00> : vector<128x256xf32>
    %97 = tpu.matmul %1, %96, %cst_39 {dimension_numbers = #tpu.dot_dimension_numbers<[1], [0], [0], [1], [0, 0, 1, 1], [], []>} : vector<128x16xf32>, vector<16x256xf32>, vector<128x256xf32> -> vector<128x256xf32>
    %98 = vector.shape_cast %97 : vector<128x256xf32> to vector<8x16x256xf32>
    %99 = vector.shape_cast %89 : vector<16x256xf32> to vector<1x16x256xf32>
    %100 = vector.broadcast %99 : vector<1x16x256xf32> to vector<8x16x256xf32>
    %101 = arith.mulf %98, %100 : vector<8x16x256xf32>
    %cst_40 = arith.constant dense<0.000000e+00> : vector<8x256xf32>
    %102 = vector.multi_reduction <add>, %101, %cst_40 [1] : vector<8x16x256xf32> to vector<8x256xf32>
    %103 = vector.extract_strided_slice %68 {offsets = [0, 0], sizes = [1, 256], strides = [1, 1]} : vector<9x256xf32> to vector<1x256xf32>
    %104 = vector.broadcast %103 : vector<1x256xf32> to vector<8x256xf32>
    %105 = arith.mulf %102, %104 : vector<8x256xf32>
    %cst_41 = arith.constant 0.000000e+00 : f32
    %106 = vector.broadcast %cst_41 : f32 to vector<1x256xf32>
    %107 = arith.addf %69, %106 : vector<1x256xf32>
    %108 = vector.extract_strided_slice %60 {offsets = [2, 0], sizes = [1, 256], strides = [1, 1]} : vector<27x256xf32> to vector<1x256xf32>
    %109 = arith.addf %107, %108 : vector<1x256xf32>
    %cst_42 = arith.constant 1.000000e+00 : f32
    %110 = vector.broadcast %cst_42 : f32 to vector<1x256xf32>
    %111 = arith.addf %70, %110 : vector<1x256xf32>
    %112 = vector.extract_strided_slice %60 {offsets = [3, 0], sizes = [1, 256], strides = [1, 1]} : vector<27x256xf32> to vector<1x256xf32>
    %113 = arith.addf %111, %112 : vector<1x256xf32>
    %114 = vector.broadcast %109 : vector<1x256xf32> to vector<16x256xf32>
    %115 = arith.subf %72, %114 : vector<16x256xf32>
    %116 = math.absf %115 : vector<16x256xf32>
    %cst_43 = arith.constant 1.000000e+00 : f32
    %117 = vector.broadcast %cst_43 : f32 to vector<16x256xf32>
    %118 = arith.subf %117, %116 : vector<16x256xf32>
    %cst_44 = arith.constant 0.000000e+00 : f32
    %119 = vector.broadcast %cst_44 : f32 to vector<16x256xf32>
    %120 = arith.maximumf %118, %119 : vector<16x256xf32>
    %121 = vector.broadcast %113 : vector<1x256xf32> to vector<16x256xf32>
    %122 = arith.subf %74, %121 : vector<16x256xf32>
    %123 = math.absf %122 : vector<16x256xf32>
    %cst_45 = arith.constant 1.000000e+00 : f32
    %124 = vector.broadcast %cst_45 : f32 to vector<16x256xf32>
    %125 = arith.subf %124, %123 : vector<16x256xf32>
    %cst_46 = arith.constant 0.000000e+00 : f32
    %126 = vector.broadcast %cst_46 : f32 to vector<16x256xf32>
    %127 = arith.maximumf %125, %126 : vector<16x256xf32>
    %cst_47 = arith.constant dense<0.000000e+00> : vector<128x256xf32>
    %128 = tpu.matmul %1, %127, %cst_47 {dimension_numbers = #tpu.dot_dimension_numbers<[1], [0], [0], [1], [0, 0, 1, 1], [], []>} : vector<128x16xf32>, vector<16x256xf32>, vector<128x256xf32> -> vector<128x256xf32>
    %129 = vector.shape_cast %128 : vector<128x256xf32> to vector<8x16x256xf32>
    %130 = vector.shape_cast %120 : vector<16x256xf32> to vector<1x16x256xf32>
    %131 = vector.broadcast %130 : vector<1x16x256xf32> to vector<8x16x256xf32>
    %132 = arith.mulf %129, %131 : vector<8x16x256xf32>
    %cst_48 = arith.constant dense<0.000000e+00> : vector<8x256xf32>
    %133 = vector.multi_reduction <add>, %132, %cst_48 [1] : vector<8x16x256xf32> to vector<8x256xf32>
    %134 = vector.extract_strided_slice %68 {offsets = [1, 0], sizes = [1, 256], strides = [1, 1]} : vector<9x256xf32> to vector<1x256xf32>
    %135 = vector.broadcast %134 : vector<1x256xf32> to vector<8x256xf32>
    %136 = arith.mulf %133, %135 : vector<8x256xf32>
    %cst_49 = arith.constant 0.000000e+00 : f32
    %137 = vector.broadcast %cst_49 : f32 to vector<1x256xf32>
    %138 = arith.addf %69, %137 : vector<1x256xf32>
    %139 = vector.extract_strided_slice %60 {offsets = [4, 0], sizes = [1, 256], strides = [1, 1]} : vector<27x256xf32> to vector<1x256xf32>
    %140 = arith.addf %138, %139 : vector<1x256xf32>
    %cst_50 = arith.constant 2.000000e+00 : f32
    %141 = vector.broadcast %cst_50 : f32 to vector<1x256xf32>
    %142 = arith.addf %70, %141 : vector<1x256xf32>
    %143 = vector.extract_strided_slice %60 {offsets = [5, 0], sizes = [1, 256], strides = [1, 1]} : vector<27x256xf32> to vector<1x256xf32>
    %144 = arith.addf %142, %143 : vector<1x256xf32>
    %145 = vector.broadcast %140 : vector<1x256xf32> to vector<16x256xf32>
    %146 = arith.subf %72, %145 : vector<16x256xf32>
    %147 = math.absf %146 : vector<16x256xf32>
    %cst_51 = arith.constant 1.000000e+00 : f32
    %148 = vector.broadcast %cst_51 : f32 to vector<16x256xf32>
    %149 = arith.subf %148, %147 : vector<16x256xf32>
    %cst_52 = arith.constant 0.000000e+00 : f32
    %150 = vector.broadcast %cst_52 : f32 to vector<16x256xf32>
    %151 = arith.maximumf %149, %150 : vector<16x256xf32>
    %152 = vector.broadcast %144 : vector<1x256xf32> to vector<16x256xf32>
    %153 = arith.subf %74, %152 : vector<16x256xf32>
    %154 = math.absf %153 : vector<16x256xf32>
    %cst_53 = arith.constant 1.000000e+00 : f32
    %155 = vector.broadcast %cst_53 : f32 to vector<16x256xf32>
    %156 = arith.subf %155, %154 : vector<16x256xf32>
    %cst_54 = arith.constant 0.000000e+00 : f32
    %157 = vector.broadcast %cst_54 : f32 to vector<16x256xf32>
    %158 = arith.maximumf %156, %157 : vector<16x256xf32>
    %cst_55 = arith.constant dense<0.000000e+00> : vector<128x256xf32>
    %159 = tpu.matmul %1, %158, %cst_55 {dimension_numbers = #tpu.dot_dimension_numbers<[1], [0], [0], [1], [0, 0, 1, 1], [], []>} : vector<128x16xf32>, vector<16x256xf32>, vector<128x256xf32> -> vector<128x256xf32>
    %160 = vector.shape_cast %159 : vector<128x256xf32> to vector<8x16x256xf32>
    %161 = vector.shape_cast %151 : vector<16x256xf32> to vector<1x16x256xf32>
    %162 = vector.broadcast %161 : vector<1x16x256xf32> to vector<8x16x256xf32>
    %163 = arith.mulf %160, %162 : vector<8x16x256xf32>
    %cst_56 = arith.constant dense<0.000000e+00> : vector<8x256xf32>
    %164 = vector.multi_reduction <add>, %163, %cst_56 [1] : vector<8x16x256xf32> to vector<8x256xf32>
    %165 = vector.extract_strided_slice %68 {offsets = [2, 0], sizes = [1, 256], strides = [1, 1]} : vector<9x256xf32> to vector<1x256xf32>
    %166 = vector.broadcast %165 : vector<1x256xf32> to vector<8x256xf32>
    %167 = arith.mulf %164, %166 : vector<8x256xf32>
    %cst_57 = arith.constant 1.000000e+00 : f32
    %168 = vector.broadcast %cst_57 : f32 to vector<1x256xf32>
    %169 = arith.addf %69, %168 : vector<1x256xf32>
    %170 = vector.extract_strided_slice %60 {offsets = [6, 0], sizes = [1, 256], strides = [1, 1]} : vector<27x256xf32> to vector<1x256xf32>
    %171 = arith.addf %169, %170 : vector<1x256xf32>
    %cst_58 = arith.constant 0.000000e+00 : f32
    %172 = vector.broadcast %cst_58 : f32 to vector<1x256xf32>
    %173 = arith.addf %70, %172 : vector<1x256xf32>
    %174 = vector.extract_strided_slice %60 {offsets = [7, 0], sizes = [1, 256], strides = [1, 1]} : vector<27x256xf32> to vector<1x256xf32>
    %175 = arith.addf %173, %174 : vector<1x256xf32>
    %176 = vector.broadcast %171 : vector<1x256xf32> to vector<16x256xf32>
    %177 = arith.subf %72, %176 : vector<16x256xf32>
    %178 = math.absf %177 : vector<16x256xf32>
    %cst_59 = arith.constant 1.000000e+00 : f32
    %179 = vector.broadcast %cst_59 : f32 to vector<16x256xf32>
    %180 = arith.subf %179, %178 : vector<16x256xf32>
    %cst_60 = arith.constant 0.000000e+00 : f32
    %181 = vector.broadcast %cst_60 : f32 to vector<16x256xf32>
    %182 = arith.maximumf %180, %181 : vector<16x256xf32>
    %183 = vector.broadcast %175 : vector<1x256xf32> to vector<16x256xf32>
    %184 = arith.subf %74, %183 : vector<16x256xf32>
    %185 = math.absf %184 : vector<16x256xf32>
    %cst_61 = arith.constant 1.000000e+00 : f32
    %186 = vector.broadcast %cst_61 : f32 to vector<16x256xf32>
    %187 = arith.subf %186, %185 : vector<16x256xf32>
    %cst_62 = arith.constant 0.000000e+00 : f32
    %188 = vector.broadcast %cst_62 : f32 to vector<16x256xf32>
    %189 = arith.maximumf %187, %188 : vector<16x256xf32>
    %cst_63 = arith.constant dense<0.000000e+00> : vector<128x256xf32>
    %190 = tpu.matmul %1, %189, %cst_63 {dimension_numbers = #tpu.dot_dimension_numbers<[1], [0], [0], [1], [0, 0, 1, 1], [], []>} : vector<128x16xf32>, vector<16x256xf32>, vector<128x256xf32> -> vector<128x256xf32>
    %191 = vector.shape_cast %190 : vector<128x256xf32> to vector<8x16x256xf32>
    %192 = vector.shape_cast %182 : vector<16x256xf32> to vector<1x16x256xf32>
    %193 = vector.broadcast %192 : vector<1x16x256xf32> to vector<8x16x256xf32>
    %194 = arith.mulf %191, %193 : vector<8x16x256xf32>
    %cst_64 = arith.constant dense<0.000000e+00> : vector<8x256xf32>
    %195 = vector.multi_reduction <add>, %194, %cst_64 [1] : vector<8x16x256xf32> to vector<8x256xf32>
    %196 = vector.extract_strided_slice %68 {offsets = [3, 0], sizes = [1, 256], strides = [1, 1]} : vector<9x256xf32> to vector<1x256xf32>
    %197 = vector.broadcast %196 : vector<1x256xf32> to vector<8x256xf32>
    %198 = arith.mulf %195, %197 : vector<8x256xf32>
    %cst_65 = arith.constant 1.000000e+00 : f32
    %199 = vector.broadcast %cst_65 : f32 to vector<1x256xf32>
    %200 = arith.addf %69, %199 : vector<1x256xf32>
    %201 = vector.extract_strided_slice %60 {offsets = [8, 0], sizes = [1, 256], strides = [1, 1]} : vector<27x256xf32> to vector<1x256xf32>
    %202 = arith.addf %200, %201 : vector<1x256xf32>
    %cst_66 = arith.constant 1.000000e+00 : f32
    %203 = vector.broadcast %cst_66 : f32 to vector<1x256xf32>
    %204 = arith.addf %70, %203 : vector<1x256xf32>
    %205 = vector.extract_strided_slice %60 {offsets = [9, 0], sizes = [1, 256], strides = [1, 1]} : vector<27x256xf32> to vector<1x256xf32>
    %206 = arith.addf %204, %205 : vector<1x256xf32>
    %207 = vector.broadcast %202 : vector<1x256xf32> to vector<16x256xf32>
    %208 = arith.subf %72, %207 : vector<16x256xf32>
    %209 = math.absf %208 : vector<16x256xf32>
    %cst_67 = arith.constant 1.000000e+00 : f32
    %210 = vector.broadcast %cst_67 : f32 to vector<16x256xf32>
    %211 = arith.subf %210, %209 : vector<16x256xf32>
    %cst_68 = arith.constant 0.000000e+00 : f32
    %212 = vector.broadcast %cst_68 : f32 to vector<16x256xf32>
    %213 = arith.maximumf %211, %212 : vector<16x256xf32>
    %214 = vector.broadcast %206 : vector<1x256xf32> to vector<16x256xf32>
    %215 = arith.subf %74, %214 : vector<16x256xf32>
    %216 = math.absf %215 : vector<16x256xf32>
    %cst_69 = arith.constant 1.000000e+00 : f32
    %217 = vector.broadcast %cst_69 : f32 to vector<16x256xf32>
    %218 = arith.subf %217, %216 : vector<16x256xf32>
    %cst_70 = arith.constant 0.000000e+00 : f32
    %219 = vector.broadcast %cst_70 : f32 to vector<16x256xf32>
    %220 = arith.maximumf %218, %219 : vector<16x256xf32>
    %cst_71 = arith.constant dense<0.000000e+00> : vector<128x256xf32>
    %221 = tpu.matmul %1, %220, %cst_71 {dimension_numbers = #tpu.dot_dimension_numbers<[1], [0], [0], [1], [0, 0, 1, 1], [], []>} : vector<128x16xf32>, vector<16x256xf32>, vector<128x256xf32> -> vector<128x256xf32>
    %222 = vector.shape_cast %221 : vector<128x256xf32> to vector<8x16x256xf32>
    %223 = vector.shape_cast %213 : vector<16x256xf32> to vector<1x16x256xf32>
    %224 = vector.broadcast %223 : vector<1x16x256xf32> to vector<8x16x256xf32>
    %225 = arith.mulf %222, %224 : vector<8x16x256xf32>
    %cst_72 = arith.constant dense<0.000000e+00> : vector<8x256xf32>
    %226 = vector.multi_reduction <add>, %225, %cst_72 [1] : vector<8x16x256xf32> to vector<8x256xf32>
    %227 = vector.extract_strided_slice %68 {offsets = [4, 0], sizes = [1, 256], strides = [1, 1]} : vector<9x256xf32> to vector<1x256xf32>
    %228 = vector.broadcast %227 : vector<1x256xf32> to vector<8x256xf32>
    %229 = arith.mulf %226, %228 : vector<8x256xf32>
    %cst_73 = arith.constant 1.000000e+00 : f32
    %230 = vector.broadcast %cst_73 : f32 to vector<1x256xf32>
    %231 = arith.addf %69, %230 : vector<1x256xf32>
    %232 = vector.extract_strided_slice %60 {offsets = [10, 0], sizes = [1, 256], strides = [1, 1]} : vector<27x256xf32> to vector<1x256xf32>
    %233 = arith.addf %231, %232 : vector<1x256xf32>
    %cst_74 = arith.constant 2.000000e+00 : f32
    %234 = vector.broadcast %cst_74 : f32 to vector<1x256xf32>
    %235 = arith.addf %70, %234 : vector<1x256xf32>
    %236 = vector.extract_strided_slice %60 {offsets = [11, 0], sizes = [1, 256], strides = [1, 1]} : vector<27x256xf32> to vector<1x256xf32>
    %237 = arith.addf %235, %236 : vector<1x256xf32>
    %238 = vector.broadcast %233 : vector<1x256xf32> to vector<16x256xf32>
    %239 = arith.subf %72, %238 : vector<16x256xf32>
    %240 = math.absf %239 : vector<16x256xf32>
    %cst_75 = arith.constant 1.000000e+00 : f32
    %241 = vector.broadcast %cst_75 : f32 to vector<16x256xf32>
    %242 = arith.subf %241, %240 : vector<16x256xf32>
    %cst_76 = arith.constant 0.000000e+00 : f32
    %243 = vector.broadcast %cst_76 : f32 to vector<16x256xf32>
    %244 = arith.maximumf %242, %243 : vector<16x256xf32>
    %245 = vector.broadcast %237 : vector<1x256xf32> to vector<16x256xf32>
    %246 = arith.subf %74, %245 : vector<16x256xf32>
    %247 = math.absf %246 : vector<16x256xf32>
    %cst_77 = arith.constant 1.000000e+00 : f32
    %248 = vector.broadcast %cst_77 : f32 to vector<16x256xf32>
    %249 = arith.subf %248, %247 : vector<16x256xf32>
    %cst_78 = arith.constant 0.000000e+00 : f32
    %250 = vector.broadcast %cst_78 : f32 to vector<16x256xf32>
    %251 = arith.maximumf %249, %250 : vector<16x256xf32>
    %cst_79 = arith.constant dense<0.000000e+00> : vector<128x256xf32>
    %252 = tpu.matmul %1, %251, %cst_79 {dimension_numbers = #tpu.dot_dimension_numbers<[1], [0], [0], [1], [0, 0, 1, 1], [], []>} : vector<128x16xf32>, vector<16x256xf32>, vector<128x256xf32> -> vector<128x256xf32>
    %253 = vector.shape_cast %252 : vector<128x256xf32> to vector<8x16x256xf32>
    %254 = vector.shape_cast %244 : vector<16x256xf32> to vector<1x16x256xf32>
    %255 = vector.broadcast %254 : vector<1x16x256xf32> to vector<8x16x256xf32>
    %256 = arith.mulf %253, %255 : vector<8x16x256xf32>
    %cst_80 = arith.constant dense<0.000000e+00> : vector<8x256xf32>
    %257 = vector.multi_reduction <add>, %256, %cst_80 [1] : vector<8x16x256xf32> to vector<8x256xf32>
    %258 = vector.extract_strided_slice %68 {offsets = [5, 0], sizes = [1, 256], strides = [1, 1]} : vector<9x256xf32> to vector<1x256xf32>
    %259 = vector.broadcast %258 : vector<1x256xf32> to vector<8x256xf32>
    %260 = arith.mulf %257, %259 : vector<8x256xf32>
    %cst_81 = arith.constant 2.000000e+00 : f32
    %261 = vector.broadcast %cst_81 : f32 to vector<1x256xf32>
    %262 = arith.addf %69, %261 : vector<1x256xf32>
    %263 = vector.extract_strided_slice %60 {offsets = [12, 0], sizes = [1, 256], strides = [1, 1]} : vector<27x256xf32> to vector<1x256xf32>
    %264 = arith.addf %262, %263 : vector<1x256xf32>
    %cst_82 = arith.constant 0.000000e+00 : f32
    %265 = vector.broadcast %cst_82 : f32 to vector<1x256xf32>
    %266 = arith.addf %70, %265 : vector<1x256xf32>
    %267 = vector.extract_strided_slice %60 {offsets = [13, 0], sizes = [1, 256], strides = [1, 1]} : vector<27x256xf32> to vector<1x256xf32>
    %268 = arith.addf %266, %267 : vector<1x256xf32>
    %269 = vector.broadcast %264 : vector<1x256xf32> to vector<16x256xf32>
    %270 = arith.subf %72, %269 : vector<16x256xf32>
    %271 = math.absf %270 : vector<16x256xf32>
    %cst_83 = arith.constant 1.000000e+00 : f32
    %272 = vector.broadcast %cst_83 : f32 to vector<16x256xf32>
    %273 = arith.subf %272, %271 : vector<16x256xf32>
    %cst_84 = arith.constant 0.000000e+00 : f32
    %274 = vector.broadcast %cst_84 : f32 to vector<16x256xf32>
    %275 = arith.maximumf %273, %274 : vector<16x256xf32>
    %276 = vector.broadcast %268 : vector<1x256xf32> to vector<16x256xf32>
    %277 = arith.subf %74, %276 : vector<16x256xf32>
    %278 = math.absf %277 : vector<16x256xf32>
    %cst_85 = arith.constant 1.000000e+00 : f32
    %279 = vector.broadcast %cst_85 : f32 to vector<16x256xf32>
    %280 = arith.subf %279, %278 : vector<16x256xf32>
    %cst_86 = arith.constant 0.000000e+00 : f32
    %281 = vector.broadcast %cst_86 : f32 to vector<16x256xf32>
    %282 = arith.maximumf %280, %281 : vector<16x256xf32>
    %cst_87 = arith.constant dense<0.000000e+00> : vector<128x256xf32>
    %283 = tpu.matmul %1, %282, %cst_87 {dimension_numbers = #tpu.dot_dimension_numbers<[1], [0], [0], [1], [0, 0, 1, 1], [], []>} : vector<128x16xf32>, vector<16x256xf32>, vector<128x256xf32> -> vector<128x256xf32>
    %284 = vector.shape_cast %283 : vector<128x256xf32> to vector<8x16x256xf32>
    %285 = vector.shape_cast %275 : vector<16x256xf32> to vector<1x16x256xf32>
    %286 = vector.broadcast %285 : vector<1x16x256xf32> to vector<8x16x256xf32>
    %287 = arith.mulf %284, %286 : vector<8x16x256xf32>
    %cst_88 = arith.constant dense<0.000000e+00> : vector<8x256xf32>
    %288 = vector.multi_reduction <add>, %287, %cst_88 [1] : vector<8x16x256xf32> to vector<8x256xf32>
    %289 = vector.extract_strided_slice %68 {offsets = [6, 0], sizes = [1, 256], strides = [1, 1]} : vector<9x256xf32> to vector<1x256xf32>
    %290 = vector.broadcast %289 : vector<1x256xf32> to vector<8x256xf32>
    %291 = arith.mulf %288, %290 : vector<8x256xf32>
    %cst_89 = arith.constant 2.000000e+00 : f32
    %292 = vector.broadcast %cst_89 : f32 to vector<1x256xf32>
    %293 = arith.addf %69, %292 : vector<1x256xf32>
    %294 = vector.extract_strided_slice %60 {offsets = [14, 0], sizes = [1, 256], strides = [1, 1]} : vector<27x256xf32> to vector<1x256xf32>
    %295 = arith.addf %293, %294 : vector<1x256xf32>
    %cst_90 = arith.constant 1.000000e+00 : f32
    %296 = vector.broadcast %cst_90 : f32 to vector<1x256xf32>
    %297 = arith.addf %70, %296 : vector<1x256xf32>
    %298 = vector.extract_strided_slice %60 {offsets = [15, 0], sizes = [1, 256], strides = [1, 1]} : vector<27x256xf32> to vector<1x256xf32>
    %299 = arith.addf %297, %298 : vector<1x256xf32>
    %300 = vector.broadcast %295 : vector<1x256xf32> to vector<16x256xf32>
    %301 = arith.subf %72, %300 : vector<16x256xf32>
    %302 = math.absf %301 : vector<16x256xf32>
    %cst_91 = arith.constant 1.000000e+00 : f32
    %303 = vector.broadcast %cst_91 : f32 to vector<16x256xf32>
    %304 = arith.subf %303, %302 : vector<16x256xf32>
    %cst_92 = arith.constant 0.000000e+00 : f32
    %305 = vector.broadcast %cst_92 : f32 to vector<16x256xf32>
    %306 = arith.maximumf %304, %305 : vector<16x256xf32>
    %307 = vector.broadcast %299 : vector<1x256xf32> to vector<16x256xf32>
    %308 = arith.subf %74, %307 : vector<16x256xf32>
    %309 = math.absf %308 : vector<16x256xf32>
    %cst_93 = arith.constant 1.000000e+00 : f32
    %310 = vector.broadcast %cst_93 : f32 to vector<16x256xf32>
    %311 = arith.subf %310, %309 : vector<16x256xf32>
    %cst_94 = arith.constant 0.000000e+00 : f32
    %312 = vector.broadcast %cst_94 : f32 to vector<16x256xf32>
    %313 = arith.maximumf %311, %312 : vector<16x256xf32>
    %cst_95 = arith.constant dense<0.000000e+00> : vector<128x256xf32>
    %314 = tpu.matmul %1, %313, %cst_95 {dimension_numbers = #tpu.dot_dimension_numbers<[1], [0], [0], [1], [0, 0, 1, 1], [], []>} : vector<128x16xf32>, vector<16x256xf32>, vector<128x256xf32> -> vector<128x256xf32>
    %315 = vector.shape_cast %314 : vector<128x256xf32> to vector<8x16x256xf32>
    %316 = vector.shape_cast %306 : vector<16x256xf32> to vector<1x16x256xf32>
    %317 = vector.broadcast %316 : vector<1x16x256xf32> to vector<8x16x256xf32>
    %318 = arith.mulf %315, %317 : vector<8x16x256xf32>
    %cst_96 = arith.constant dense<0.000000e+00> : vector<8x256xf32>
    %319 = vector.multi_reduction <add>, %318, %cst_96 [1] : vector<8x16x256xf32> to vector<8x256xf32>
    %320 = vector.extract_strided_slice %68 {offsets = [7, 0], sizes = [1, 256], strides = [1, 1]} : vector<9x256xf32> to vector<1x256xf32>
    %321 = vector.broadcast %320 : vector<1x256xf32> to vector<8x256xf32>
    %322 = arith.mulf %319, %321 : vector<8x256xf32>
    %cst_97 = arith.constant 2.000000e+00 : f32
    %323 = vector.broadcast %cst_97 : f32 to vector<1x256xf32>
    %324 = arith.addf %69, %323 : vector<1x256xf32>
    %325 = vector.extract_strided_slice %60 {offsets = [16, 0], sizes = [1, 256], strides = [1, 1]} : vector<27x256xf32> to vector<1x256xf32>
    %326 = arith.addf %324, %325 : vector<1x256xf32>
    %cst_98 = arith.constant 2.000000e+00 : f32
    %327 = vector.broadcast %cst_98 : f32 to vector<1x256xf32>
    %328 = arith.addf %70, %327 : vector<1x256xf32>
    %329 = vector.extract_strided_slice %60 {offsets = [17, 0], sizes = [1, 256], strides = [1, 1]} : vector<27x256xf32> to vector<1x256xf32>
    %330 = arith.addf %328, %329 : vector<1x256xf32>
    %331 = vector.broadcast %326 : vector<1x256xf32> to vector<16x256xf32>
    %332 = arith.subf %72, %331 : vector<16x256xf32>
    %333 = math.absf %332 : vector<16x256xf32>
    %cst_99 = arith.constant 1.000000e+00 : f32
    %334 = vector.broadcast %cst_99 : f32 to vector<16x256xf32>
    %335 = arith.subf %334, %333 : vector<16x256xf32>
    %cst_100 = arith.constant 0.000000e+00 : f32
    %336 = vector.broadcast %cst_100 : f32 to vector<16x256xf32>
    %337 = arith.maximumf %335, %336 : vector<16x256xf32>
    %338 = vector.broadcast %330 : vector<1x256xf32> to vector<16x256xf32>
    %339 = arith.subf %74, %338 : vector<16x256xf32>
    %340 = math.absf %339 : vector<16x256xf32>
    %cst_101 = arith.constant 1.000000e+00 : f32
    %341 = vector.broadcast %cst_101 : f32 to vector<16x256xf32>
    %342 = arith.subf %341, %340 : vector<16x256xf32>
    %cst_102 = arith.constant 0.000000e+00 : f32
    %343 = vector.broadcast %cst_102 : f32 to vector<16x256xf32>
    %344 = arith.maximumf %342, %343 : vector<16x256xf32>
    %cst_103 = arith.constant dense<0.000000e+00> : vector<128x256xf32>
    %345 = tpu.matmul %1, %344, %cst_103 {dimension_numbers = #tpu.dot_dimension_numbers<[1], [0], [0], [1], [0, 0, 1, 1], [], []>} : vector<128x16xf32>, vector<16x256xf32>, vector<128x256xf32> -> vector<128x256xf32>
    %346 = vector.shape_cast %345 : vector<128x256xf32> to vector<8x16x256xf32>
    %347 = vector.shape_cast %337 : vector<16x256xf32> to vector<1x16x256xf32>
    %348 = vector.broadcast %347 : vector<1x16x256xf32> to vector<8x16x256xf32>
    %349 = arith.mulf %346, %348 : vector<8x16x256xf32>
    %cst_104 = arith.constant dense<0.000000e+00> : vector<8x256xf32>
    %350 = vector.multi_reduction <add>, %349, %cst_104 [1] : vector<8x16x256xf32> to vector<8x256xf32>
    %351 = vector.extract_strided_slice %68 {offsets = [8, 0], sizes = [1, 256], strides = [1, 1]} : vector<9x256xf32> to vector<1x256xf32>
    %352 = vector.broadcast %351 : vector<1x256xf32> to vector<8x256xf32>
    %353 = arith.mulf %350, %352 : vector<8x256xf32>
    %354 = tpu.concatenate %105, %136, %167, %198, %229, %260, %291, %322, %353 in 0 : vector<8x256xf32>, vector<8x256xf32>, vector<8x256xf32>, vector<8x256xf32>, vector<8x256xf32>, vector<8x256xf32>, vector<8x256xf32>, vector<8x256xf32>, vector<8x256xf32> -> vector<72x256xf32>
    %c0_105 = arith.constant 0 : index
    %c0_106 = arith.constant 0 : index
    %355 = vector.load %arg7[%c0_105, %c0_106] : memref<8x72xf32, #tpu.memory_space<vmem>>, vector<8x72xf32>
    %cst_107 = arith.constant dense<0.000000e+00> : vector<8x256xf32>
    %356 = tpu.matmul %355, %354, %cst_107 {dimension_numbers = #tpu.dot_dimension_numbers<[1], [0], [0], [1], [0, 0, 1, 1], [], []>} : vector<8x72xf32>, vector<72x256xf32>, vector<8x256xf32> -> vector<8x256xf32>
    %c0_108 = arith.constant 0 : index
    %c0_109 = arith.constant 0 : index
    %357 = vector.load %arg8[%c0_108, %c0_109] : memref<8x2xf32, #tpu.memory_space<vmem>>, vector<8x1xf32>
    %358 = vector.broadcast %357 : vector<8x1xf32> to vector<8x256xf32>
    %359 = arith.mulf %356, %358 : vector<8x256xf32>
    %c0_110 = arith.constant 0 : index
    %c1_111 = arith.constant 1 : index
    %360 = vector.load %arg8[%c0_110, %c1_111] : memref<8x2xf32, #tpu.memory_space<vmem>>, vector<8x1xf32>
    %361 = vector.broadcast %360 : vector<8x1xf32> to vector<8x256xf32>
    %362 = arith.addf %359, %361 : vector<8x256xf32>
    %c0_112 = arith.constant 0 : index
    %c0_113 = arith.constant 0 : index
    %363 = vector.load %arg10[%c0_112, %c0_113] : memref<8x4xf32, #tpu.memory_space<vmem>>, vector<8x4xf32>
    %c0_114 = arith.constant 0 : index
    %c0_115 = arith.constant 0 : index
    %c0_116 = arith.constant 0 : index
    %364 = vector.load %arg9[%c0_114, %c0_115, %c0_116] : memref<1x4x256xf32, #tpu.memory_space<vmem>>, vector<1x4x256xf32>
    %365 = vector.shape_cast %364 : vector<1x4x256xf32> to vector<4x256xf32>
    %cst_117 = arith.constant dense<0.000000e+00> : vector<8x256xf32>
    %366 = tpu.matmul %363, %365, %cst_117 {dimension_numbers = #tpu.dot_dimension_numbers<[1], [0], [0], [1], [0, 0, 1, 1], [], []>} : vector<8x4xf32>, vector<4x256xf32>, vector<8x256xf32> -> vector<8x256xf32>
    %c0_118 = arith.constant 0 : index
    %c0_119 = arith.constant 0 : index
    %367 = vector.load %arg11[%c0_118, %c0_119] : memref<8x2xf32, #tpu.memory_space<vmem>>, vector<8x1xf32>
    %368 = vector.broadcast %367 : vector<8x1xf32> to vector<8x256xf32>
    %369 = arith.mulf %366, %368 : vector<8x256xf32>
    %c0_120 = arith.constant 0 : index
    %c1_121 = arith.constant 1 : index
    %370 = vector.load %arg11[%c0_120, %c1_121] : memref<8x2xf32, #tpu.memory_space<vmem>>, vector<8x1xf32>
    %371 = vector.broadcast %370 : vector<8x1xf32> to vector<8x256xf32>
    %372 = arith.addf %369, %371 : vector<8x256xf32>
    %373 = arith.addf %362, %372 : vector<8x256xf32>
    %cst_122 = arith.constant 0.000000e+00 : f32
    %374 = vector.broadcast %cst_122 : f32 to vector<8x256xf32>
    %375 = arith.maximumf %373, %374 : vector<8x256xf32>
    %c0_123 = arith.constant 0 : index
    %c0_124 = arith.constant 0 : index
    %c0_125 = arith.constant 0 : index
    %376 = vector.load %arg12[%c0_123, %c0_124, %c0_125] : memref<1x8x256xf32, #tpu.memory_space<vmem>>, vector<1x8x256xf32>
    %377 = vector.shape_cast %376 : vector<1x8x256xf32> to vector<8x256xf32>
    %378 = vector.shape_cast %375 : vector<8x256xf32> to vector<1x8x256xf32>
    tpu.vector_store %arg12[%c0_123, %c0_124, %c0_125], %378 {strides = array<i32>} : memref<1x8x256xf32, #tpu.memory_space<vmem>>, vector<1x8x256xf32>,
    return
  }
  func.func @transform_0(%arg0: i32) -> (i32, i32, i32) {
    %c0_i32 = arith.constant 0 : i32
    %c0_i32_0 = arith.constant 0 : i32
    %c0_i32_1 = arith.constant 0 : i32
    return %arg0, %c0_i32, %c0_i32_0 : i32, i32, i32
  }
  func.func @transform_1(%arg0: i32) -> (i32, i32, i32) {
    %c0_i32 = arith.constant 0 : i32
    %c0_i32_0 = arith.constant 0 : i32
    %c0_i32_1 = arith.constant 0 : i32
    return %arg0, %c0_i32, %c0_i32_0 : i32, i32, i32
  }
  func.func @transform_2(%arg0: i32) -> (i32, i32) {
    %c0_i32 = arith.constant 0 : i32
    %c0_i32_0 = arith.constant 0 : i32
    %c0_i32_1 = arith.constant 0 : i32
    return %c0_i32, %c0_i32_0 : i32, i32
  }
  func.func @transform_3(%arg0: i32) -> (i32, i32) {
    %c0_i32 = arith.constant 0 : i32
    %c0_i32_0 = arith.constant 0 : i32
    %c0_i32_1 = arith.constant 0 : i32
    return %c0_i32, %c0_i32_0 : i32, i32
  }
  func.func @transform_4(%arg0: i32) -> (i32, i32) {
    %c0_i32 = arith.constant 0 : i32
    %c0_i32_0 = arith.constant 0 : i32
    %c0_i32_1 = arith.constant 0 : i32
    return %c0_i32, %c0_i32_0 : i32, i32
  }
  func.func @transform_5(%arg0: i32) -> (i32, i32) {
    %c0_i32 = arith.constant 0 : i32
    %c0_i32_0 = arith.constant 0 : i32
    %c0_i32_1 = arith.constant 0 : i32
    return %c0_i32, %c0_i32_0 : i32, i32
  }
  func.func @transform_6(%arg0: i32) -> (i32, i32) {
    %c0_i32 = arith.constant 0 : i32
    %c0_i32_0 = arith.constant 0 : i32
    %c0_i32_1 = arith.constant 0 : i32
    return %c0_i32, %c0_i32_0 : i32, i32
  }
  func.func @transform_7(%arg0: i32) -> (i32, i32) {
    %c0_i32 = arith.constant 0 : i32
    %c0_i32_0 = arith.constant 0 : i32
    %c0_i32_1 = arith.constant 0 : i32
    return %c0_i32, %c0_i32_0 : i32, i32
  }
  func.func @transform_8(%arg0: i32) -> (i32, i32, i32) {
    %c0_i32 = arith.constant 0 : i32
    %c0_i32_0 = arith.constant 0 : i32
    %c0_i32_1 = arith.constant 0 : i32
    return %arg0, %c0_i32, %c0_i32_0 : i32, i32, i32
  }
  func.func @transform_9(%arg0: i32) -> (i32, i32) {
    %c0_i32 = arith.constant 0 : i32
    %c0_i32_0 = arith.constant 0 : i32
    %c0_i32_1 = arith.constant 0 : i32
    return %c0_i32, %c0_i32_0 : i32, i32
  }
  func.func @transform_10(%arg0: i32) -> (i32, i32) {
    %c0_i32 = arith.constant 0 : i32
    %c0_i32_0 = arith.constant 0 : i32
    %c0_i32_1 = arith.constant 0 : i32
    return %c0_i32, %c0_i32_0 : i32, i32
  }
  func.func @transform_11(%arg0: i32) -> (i32, i32, i32) {
    %c0_i32 = arith.constant 0 : i32
    %c0_i32_0 = arith.constant 0 : i32
    %c0_i32_1 = arith.constant 0 : i32
    return %arg0, %c0_i32, %c0_i32_0 : i32, i32, i32
  }
}

</mosaic_0001>

<bundles_post_ra>
// kernel: _lambda_.2
= control target key start
LH: loop header
LB: loop body
LE: loop exit
PB: predicated region body
PF: predicated region fallthrough
CT: control target
= control target key end

     0   :  { %s3391_s27 = smov 0   ;;  %s4787_s0 = inlined_call_operand.vmem [shape: f32[2,64,16], index: 0, kind: input, shape index: {}]   ;;  %s4788_s1 = inlined_call_operand.vmem [shape: f32[2,4,256], index: 1, kind: input, shape index: {}]   ;;  %s4789_s2 = inlined_call_operand.vmem [shape: f32[9,256], index: 2, kind: input, shape index: {}]   ;;  %s4790_s3 = inlined_call_operand.vmem [shape: f32[2,256], index: 3, kind: input, shape index: {}]   ;;  %s4791_s4 = inlined_call_operand.vmem [shape: f32[27,36], index: 4, kind: input, shape index: {}]   ;;  %s4792_s5 = inlined_call_operand.vmem [shape: f32[27,1], index: 5, kind: input, shape index: {}]   ;;  %s4793_s6 = inlined_call_operand.vmem [shape: f32[8,36], index: 6, kind: input, shape index: {}]   ;;  %s4794_s7 = inlined_call_operand.vmem [shape: f32[8,2], index: 7, kind: input, shape index: {}]   ;;  %s4795_s8 = inlined_call_operand.vmem [shape: f32[2,8,256], index: 8, kind: output, shape index: {}]  }
   0x1 LB: > { %s3088_s28 = sadd.s32 4294967295, %s3334_s27   ;;  %p3092_p0 = scmp.ge.s32.totalorder %s3334_s27, 1  ;;  %s3334_s27 = sphi %s3391_s27, %s18_s27  }
   0x2   : > { %p272_p1 = scmp.lt.s32.totalorder %s3334_s27, 3 }
   0x4   : > { %p273_p2 = pnand %p3092_p0, %p272_p1 }
   0x6   : > { %276 = sbr.rel (%p273_p2) target bundleno = 972 (0x3cc), region = 52 }
   0xb   : > { %p311_p3 = scmp.lt.s32.totalorder %s3088_s28, 1  ;;  %s3336_s11 = smov 16   ;;  %v3102_v11 = vld [vmem:[%s4789_s2 + $0x4] ss:$8 sm:$0x3]  ;;  %vm425_vm0 = vcmask 1043456  }
   0xc   : > { %s3337_s12 = smov 15   ;;  %s3338_s13 = smov 1   ;;  %v423_v14 = vperm.slane %v3102_v11, 1  ;;  %v422_v15 = vperm.slane %v3102_v11, 0  ;;  %v555_v32 = vld [vmem:[%s4792_s5] sm:$0xff]  ;;  %v3344_v33 = vmov 0  }
   0xd   : > { %s4813_s28 = smov (!%p311_p3, %s3088_s28), 1  ;;  %s3339_s14 = smov 127   ;;  %3297 = vset.pattern.permute.xlu1 %v3344_v33  ;;  %3298 = vset.pattern.permute.xlu2 %v3344_v33  ;;  %v3427_v34 = vld [vmem:[%s4789_s2 + $0x3] ss:$8 sm:$0x3]  ;;  %vm405_vm1 = vcmask 7168  }
   0xe   : > { %s3273_s29 = sshll.u32 %s4813_s28, 3  ;;  %s3340_s17 = smov 113   ;;  %v424_v16 = vrot.slane %v423_v14, 4  ;;  %3299 = vset.pattern.permute.xlu0 %v3344_v33  ;;  %v3432_v35 = vld [vmem:[%s4789_s2 + $0x2] ss:$8 sm:$0x3] }
   0xf   : > { %s320_s10 = scalar_lea.vmem %s4788_s1, %s3273_s29  ;;  %s3341_s18 = smov 112   ;;  %v3105_v36 = vld [vmem:[%s4789_s2 + $0x7] ss:$8 sm:$0x3]  ;;  %vm478_vm2 = vcmask 916480   ;;  %v413_v39 = vperm.slane %v3427_v34, 0 }
  0x10   : > { %v334_v0 = vld [vmem:[%s320_s10] sm:$0xff]  ;;  %v426_v19 = vsel %vm425_vm0, %v422_v15, %v424_v16  ;;  %s3342_s19 = smov 17   ;;  %s3343_s20 = smov 111   ;;  %vm436_vm3 = vcmask 1039360   ;;  %v558_v43 = vld [vmem:[%s4792_s5 + $0x18] sm:$0x7] }
  0x11   : > { %336 = vst [vmem:[#allocation1] ss:$2 sm:$0xff] %v334_v0  ;;  %v428_v20 = vmul.f32 %v426_v19, %v334_v0  ;;  %v3103_v37 = vld [vmem:[%s4789_s2 + $0x5] ss:$8 sm:$0x3]  ;;  %v486_v46 = vperm.slane %v3105_v36, 0 }
  0x12   : > { %v445_v40 = vperm.slane %v3103_v37, 1  ;;  %v3448_v45 = vld [vmem:[%s4789_s2 + $0x1] ss:$8 sm:$0x3]  ;;  %v487_v47 = vperm.slane %v3105_v36, 1  ;;  %vm384_vm4 = vcmask 121856  }
  0x13   : > { %v392_v51 = vperm.slane %v3432_v35, 0  ;;  %v414_v52 = vperm.slane %v3427_v34, 1  ;;  %v444_v53 = vperm.slane %v3103_v37, 0  ;;  %v3106_v54 = vld [vmem:[%s4789_s2 + $0x10] ss:$8 sm:$0x3] }
  0x14   : > { %vm363_vm5 = vcmask 130048   ;;  %v371_v57 = vperm.slane %v3448_v45, 0  ;;  %v3104_v58 = vld [vmem:[%s4789_s2 + $0x6] ss:$8 sm:$0x3]  ;;  %vm457_vm6 = vcmask 924672  }
  0x15   : > { %v348_v60 = vld [vmem:[%s4789_s2] ss:$8 sm:$0x3]  ;;  %vm343_vm7 = vcmask 138240   ;;  %vm499_vm8 = vcmask 908288   ;;  %v507_v63 = vperm.slane %v3106_v54, 0 }
  0x16   : > { %vm579_vm9 = vcmask 293888   ;;  %vm748_vm10 = vcmask 1040384   ;;  %s3274_s9 = sshll.u32 %s4813_s28, 4 }
  0x18   : > { %v337_v1 = vld.sshfl [vmem:[#allocation1] sm:$0xff pattern:$0x75316420]  ;;  %v338_v2 = vld.sshfl [vmem:[#allocation1 + $0x8] sm:$0xff pattern:$0x75316420] }
  0x19   : > { %356 = vst [vmem:[#allocation1] ss:$2 sm:$0xff] %v334_v0 }
  0x20   : > { %v357_v3 = vld.sshfl [vmem:[#allocation1] sm:$0xff pattern:$0x75316420]  ;;  %v358_v4 = vld.sshfl [vmem:[#allocation1 + $0x8] sm:$0xff pattern:$0x75316420] }
  0x21   : > { %377 = vst [vmem:[#allocation1] ss:$2 sm:$0xff] %v334_v0  ;;  %361 = vrot.lane.b32.xlu2 %v358_v4, %s3336_s11  ;;  %359 = vrot.lane.b32.xlu1 %v357_v3, %s3336_s11  ;;  %v465_v3 = vperm.slane %v3104_v58, 0  ;;  %v466_v4 = vperm.slane %v3104_v58, 1 }
  0x28   : > { %v378_v5 = vld.sshfl [vmem:[#allocation1] sm:$0xff pattern:$0x75316420]  ;;  %v379_v6 = vld.sshfl [vmem:[#allocation1 + $0x8] sm:$0xff pattern:$0x75316420] }
  0x29   : > { %380 = vrot.lane.b32.xlu0 %v378_v5, %s3337_s12  ;;  %398 = vst [vmem:[#allocation1] ss:$2 sm:$0xff] %v334_v0 }
  0x30   : > { %v399_v7 = vld.sshfl [vmem:[#allocation1] sm:$0xff pattern:$0x75316420]  ;;  %v400_v8 = vld.sshfl [vmem:[#allocation1 + $0x8] sm:$0xff pattern:$0x75316420] }
  0x31   : > { %429 = vst [vmem:[#allocation1] ss:$2 sm:$0xff] %v334_v0  ;;  %403 = vrot.lane.b32.xlu0 %v400_v8, %s3338_s13  ;;  %401 = vrot.lane.b32.xlu2 %v399_v7, %s3338_s13 }
  0x38   : > { %v430_v9 = vld.sshfl [vmem:[#allocation1] sm:$0xff pattern:$0x75316420]  ;;  %v431_v10 = vld.sshfl [vmem:[#allocation1 + $0x8] sm:$0xff pattern:$0x75316420] }
  0x39   : > { %450 = vst [vmem:[#allocation1] ss:$2 sm:$0xff] %v334_v0  ;;  %432 = vrot.lane.b32.xlu2 %v430_v9, %s3339_s14 }
  0x40   : > { %v451_v12 = vld.sshfl [vmem:[#allocation1] sm:$0xff pattern:$0x75316420]  ;;  %v452_v13 = vld.sshfl [vmem:[#allocation1 + $0x8] sm:$0xff pattern:$0x75316420] }
  0x41   : > { %453 = vrot.lane.b32.xlu0 %v451_v12, %s3340_s17  ;;  %471 = vst [vmem:[#allocation1] ss:$2 sm:$0xff] %v334_v0  ;;  %455 = vrot.lane.b32.xlu1 %v452_v13, %s3340_s17  ;;  %s3272_s17 = sshll.u32 %s4813_s28, 6 }
  0x42   : > { %434 = vrot.lane.b32.xlu2 %v431_v10, %s3339_s14 }
  0x48   : > { %v472_v17 = vld.sshfl [vmem:[#allocation1] sm:$0xff pattern:$0x75316420]  ;;  %v473_v18 = vld.sshfl [vmem:[#allocation1 + $0x8] sm:$0xff pattern:$0x75316420] }
  0x49   : > { %474 = vrot.lane.b32.xlu0 %v472_v17, %s3341_s18  ;;  %492 = vst [vmem:[#allocation1] ss:$2 sm:$0xff] %v334_v0  ;;  %v508_v0 = vperm.slane %v3106_v54, 1  ;;  %v552_v54 = vld [vmem:[%s4791_s4 + $0x8] sm:$0xff] }
  0x4a   : > { %339 = vrot.lane.b32.xlu2 %v337_v1, %s3342_s19 }
  0x50   : > { %v493_v21 = vld.sshfl [vmem:[#allocation1] sm:$0xff pattern:$0x75316420]  ;;  %v494_v22 = vld.sshfl [vmem:[#allocation1 + $0x8] sm:$0xff pattern:$0x75316420] }
  0x51   : > { %476 = vrot.lane.b32.xlu0 %v473_v18, %s3341_s18  ;;  %495 = vrot.lane.b32.xlu1 %v493_v21, %s3343_s20  ;;  %526 = vst [vmem:[#allocation1] ss:$2 sm:$0xff] %v428_v20 }
  0x58   : > { %v528_v19 = vld.sshfl [vmem:[#allocation1 + $0x8] sm:$0xff pattern:$0x75316420]  ;;  %v527_v34 = vld.sshfl [vmem:[#allocation1] sm:$0xff pattern:$0x75316420] }
  0x59   : > { %341 = vrot.lane.b32.xlu0 %v338_v2, %s3342_s19  ;;  %497 = vrot.lane.b32.xlu1 %v494_v22, %s3343_s20  ;;  %s3556_s20 = scalar_lea.vmem %s4787_s0, %s3272_s17 }
  0x61   : > { %382 = vrot.lane.b32.xlu1 %v379_v6, %s3337_s12  ;;  %v350_v6 = vperm.slane %v348_v60, 0  ;;  %s325_s12 = scalar_lea.vmem %s4795_s8, %s3274_s9 }
  0x69   : > { %561 = vperm.xlu1 %3297, %v555_v32  }
  0x71   : > { %576 = vperm.xlu1 %3297, %v558_v43  }
  0x7b   : > { %v3413_v24 = vpop.permute.xlu2 %361 }
  0x8b   : > { %v3417_v26 = vpop.permute.xlu2 %401 }
  0x8c   : > { %v409_v48 = vsel %vm405_vm1, 0.0, %v3417_v26 }
  0x8d   : > { %v417_v59 = vmul.f32 %v413_v39, %v409_v48  ;;  %v351_v39 = vperm.slane %v348_v60, 1 }
  0x93   : > { %v3419_v27 = vpop.permute.xlu1 %359  ;;  %v433_v29 = vpop.permute.xlu2 %432 }
  0x94   : > { %v367_v2 = vsel %vm363_vm5, 0.0, %v3419_v27 }
  0x95   : > { %v375_v16 = vmul.f32 %v371_v57, %v367_v2 }
  0x9b   : > { %v3411_v23 = vpop.permute.xlu0 %380 }
  0x9c   : > { %v435_v38 = vpop.permute.xlu2 %434  ;;  %v388_v15 = vsel %vm384_vm4, 0.0, %v3411_v23 }
  0x9d   : > { %v440_v44 = vsel %vm436_vm3, %v435_v38, 0.0  ;;  %v437_v55 = vsel %vm436_vm3, %v433_v29, %v435_v38  ;;  %v521_v29 = vrot.slane %v417_v59, 4  ;;  %v396_v36 = vmul.f32 %v392_v51, %v388_v15  ;;  %v557_v59 = vld [vmem:[%s4792_s5 + $0x10] sm:$0xff] }
  0x9e   : > { %v449_v56 = vmul.f32 %v445_v40, %v440_v44  ;;  %v448_v1 = vmul.f32 %v444_v53, %v437_v55  ;;  %v553_v55 = vld [vmem:[%s4791_s4 + $0x10] sm:$0xff]  ;;  %571 = vperm.xlu0 %3299, %v557_v59  }
  0xa0   : > { %v534_v5 = vrot.slane %v449_v56, 4  ;;  %v533_v21 = vrot.slane %v448_v1, 4  ;;  %v554_v56 = vld [vmem:[%s4791_s4 + $0x18] sm:$0x7] }
  0xa2   : > { %v548_v37 = vsel %vm425_vm0, %v528_v19, %v534_v5 }
  0xa3   : > { %v3415_v25 = vpop.permute.xlu0 %403 }
  0xa4   : > { %v340_v10 = vpop.permute.xlu2 %339  ;;  %v406_v20 = vsel %vm405_vm1, %v3417_v26, %v3415_v25 }
  0xa5   : > { %v347_v32 = vsel %vm343_vm7, 0.0, %v340_v10  ;;  %v418_v38 = vmul.f32 %v414_v52, %v406_v20 }
  0xa6   : > { %v354_v40 = vmul.f32 %v350_v6, %v347_v32 }
  0xb3   : > { %v454_v28 = vpop.permute.xlu0 %453  ;;  %v456_v30 = vpop.permute.xlu1 %455 }
  0xb4   : > { %v458_v7 = vsel %vm457_vm6, %v454_v28, %v456_v30  ;;  %v461_v8 = vsel %vm457_vm6, %v456_v30, 0.0  ;;  %v372_v30 = vperm.slane %v3448_v45, 1  ;;  %v556_v45 = vld [vmem:[%s4792_s5 + $0x8] sm:$0xff]  ;;  %vm2749_vm6 = vcmask 1042434  }
  0xb5   : > { %v469_v22 = vmul.f32 %v465_v3, %v458_v7  ;;  %v470_v28 = vmul.f32 %v466_v4, %v461_v8  ;;  %566 = vperm.xlu2 %3298, %v556_v45   ;;  %v3536_v4 = vld [vmem:[%s4790_s3 + $0x1] ss:$2 sm:$0x3] }
  0xbb   : > { %v475_v31 = vpop.permute.xlu0 %474 }
  0xc3   : > { %v477_v41 = vpop.permute.xlu0 %476  ;;  %v496_v42 = vpop.permute.xlu1 %495 }
  0xc4   : > { %v479_v49 = vsel %vm478_vm2, %v475_v31, %v477_v41  ;;  %v482_v50 = vsel %vm478_vm2, %v477_v41, 0.0  ;;  %v364_v31 = vsel %vm363_vm5, %v3419_v27, %v3413_v24  ;;  %v393_v24 = vperm.slane %v3432_v35, 1 }
  0xc5   : > { %v490_v61 = vmul.f32 %v486_v46, %v479_v49  ;;  %v491_v62 = vmul.f32 %v487_v47, %v482_v50  ;;  %v515_v27 = vrot.slane %v375_v16, 4  ;;  %v376_v43 = vmul.f32 %v372_v30, %v364_v31  ;;  %v551_v50 = vld [vmem:[%s4791_s4] sm:$0xff] }
  0xc6   : > { %v545_v47 = vsel %vm425_vm0, %v396_v36, %v521_v29  ;;  %v522_v35 = vrot.slane %v418_v38, 4 }
  0xc7   : > { %v539_v11 = vrot.slane %v490_v61, 4  ;;  %v540_v12 = vrot.slane %v491_v62, 4  ;;  %v543_v51 = vsel %vm425_vm0, %v354_v40, %v515_v27  ;;  %v516_v52 = vrot.slane %v376_v43, 4 }
  0xc9   : > { %v549_v25 = vsel %vm425_vm0, %v469_v22, %v539_v11  ;;  %v550_v26 = vsel %vm425_vm0, %v470_v28, %v540_v12 }
  0xcb   : > { %v498_v9 = vpop.permute.xlu1 %497  ;;  %v342_v33 = vpop.permute.xlu0 %341 }
  0xcc   : > { %v500_v13 = vsel %vm499_vm8, %v496_v42, %v498_v9  ;;  %v503_v14 = vsel %vm499_vm8, %v498_v9, 0.0  ;;  %v344_v41 = vsel %vm343_vm7, %v340_v10, %v342_v33  ;;  %v547_v42 = vsel %vm425_vm0, %v527_v34, %v533_v21  ;;  %v3560_v33 = vld [vmem:[%s3556_s20] sm:$0xff]  ;;  %v3563_v34 = vld [vmem:[%s3556_s20 + $0x8] sm:$0xff] }
  0xcd   : > { %v511_v17 = vmul.f32 %v507_v63, %v500_v13  ;;  %v512_v18 = vmul.f32 %v508_v0, %v503_v14  ;;  %v355_v48 = vmul.f32 %v351_v39, %v344_v41  ;;  %v739_v63 = vlaneseq  ;;  %v3003_v0 = vld [vmem:[%s4794_s7] sm:$0xff] }
  0xce   : > { %3006 = vperm.xlu2 %3298, %v3003_v0   ;;  %vm2752_vm7 = vcmask 1043459   ;;  %vm2772_vm8 = vcmask 1045509  }
  0xcf   : > { %3107 = vmatpush.msk.msra.mxu0 %vm425_vm0, %v511_v17  ;;  %3112 = vmatpush.msk.msra.mxu1 %vm425_vm0, %v512_v18  ;;  %v740_v2 = vshrl.u32 %v739_v63, 7 }
  0xd1   : > { %610 = vmatpush.msra.mxu0 %v549_v25  ;;  %639 = vmatpush.msra.mxu1 %v550_v26  ;;  %v741_v5 = vadd.s32 8, %v740_v2  ;;  %v3543_v11 = vcvt.s32.f32 %v740_v2  ;;  %v3566_v25 = vadd.f32 1.0, %v3536_v4 }
  0xd3   : > { %v383_v44 = vpop.permute.xlu1 %382  ;;  %611 = vmatpush.msra.mxu0 %v547_v42  ;;  %640 = vmatpush.msra.mxu1 %v548_v37  ;;  %v3541_v8 = vcvt.s32.f32 %v741_v5 }
  0xd4   : > { %v385_v46 = vsel %vm384_vm4, %v3411_v23, %v383_v44  ;;  %v544_v23 = vsel %vm425_vm0, %v355_v48, %v516_v52  ;;  %vm2746_vm4 = vcmask 1041409  }
  0xd5   : > { %v397_v49 = vmul.f32 %v393_v24, %v385_v46  ;;  %612 = vmatpush.msra.mxu0 %v545_v47  ;;  %v3580_v24 = vld [vmem:[%s3556_s20 + $0x10] sm:$0xff] }
  0xd7   : > { %613 = vmatpush.msra.mxu0 %v543_v51  ;;  %v546_v53 = vsel %vm425_vm0, %v397_v49, %v522_v35 }
  0xd8   : > { %3108 = vmatmul.msk.f32.vlgmr.msra.gmra.mxu0 %vm579_vm9, %v551_v50  ;;  %641 = vmatpush.msra.mxu1 %v546_v53 }
  0xda   : > { %642 = vmatpush.msra.mxu1 %v544_v23 }
  0xdb   : > { %3113 = vmatmul.msk.f32.vlgmr.msra.gmra.mxu1 %vm579_vm9, %v551_v50  ;;  %v562_v57 = vpop.permute.xlu1 %561  ;;  %v3595_v50 = vld [vmem:[%s3556_s20 + $0x18] sm:$0xff] }
  0xe0   : > { %3109 = vmatmul.msk.f32.gmra.mxu0 %vm579_vm9, %v552_v54 }
  0xe3   : > { %3114 = vmatmul.msk.f32.gmra.mxu1 %vm579_vm9, %v552_v54 }
  0xe8   : > { %3110 = vmatmul.msk.f32.gmra.mxu0 %vm579_vm9, %v553_v55 }
  0xeb   : > { %3115 = vmatmul.msk.f32.gmra.mxu1 %vm579_vm9, %v553_v55  ;;  %v3598_v55 = vadd.f32 2.0, %v3536_v4 }
  0xf0   : > { %3111 = vmatmul.msk.f32.gmra.mxu0 %vm579_vm9, %v554_v56 }
  0xf3   : > { %3116 = vmatmul.msk.f32.gmra.mxu1 %vm579_vm9, %v554_v56 }
 0x155   : > { %v615_v58 = vpop.f32.mrf.mxu0 }
 0x156   : > { %v3519_v60 = vadd.f32 %v615_v58, %v562_v57  ;;  %v3612_v58 = vld [vmem:[%s3556_s20 + $0x20] sm:$0xff] }
 0x158   : > { %753 = vst [vmem:[#allocation1] sm:$0xff] %v3519_v60  ;;  %v644_v61 = vpop.f32.mrf.mxu1 }
 0x159   : > { %v3522_v62 = vadd.f32 %v644_v61, %v562_v57 }
 0x15b   : > { %754 = vst [vmem:[#allocation1 + $0x9] sm:$0xff] %v3522_v62  ;;  %v747_v1 = vrot.slane %v3522_v62, 7 }
 0x15d   : > { %v3531_v3 = vsel %vm748_vm10, %v3519_v60, %v747_v1 }
 0x162   : > { %v756_v6 = vld [vmem:[#allocation1 + $0x1] ss:$9 sm:$0xff] }
 0x163   : > { %989 = vst [vmem:[#allocation1] sm:$0xff] %v3519_v60  ;;  %v758_v7 = vadd.f32 %v3536_v4, %v756_v6 }
 0x164   : > { %990 = vst [vmem:[#allocation1 + $0x9] sm:$0xff] %v3522_v62 }
 0x165   : > { %v781_v9 = vperm.slane %v758_v7, 0  ;;  %v782_v10 = vperm.slane %v758_v7, 1 }
 0x167   : > { %v787_v12 = vsub.f32 %v3541_v8, %v781_v9  ;;  %v788_v13 = vsub.f32 %v3541_v8, %v782_v10  ;;  %v785_v14 = vsub.f32 %v3543_v11, %v781_v9  ;;  %v786_v15 = vsub.f32 %v3543_v11, %v782_v10 }
 0x169   : > { %v791_v16 = vand.u32 2147483647, %v787_v12  ;;  %v792_v17 = vand.u32 2147483647, %v788_v13  ;;  %v789_v18 = vand.u32 2147483647, %v785_v14 }
 0x16a   : > { %v790_v19 = vand.u32 2147483647, %v786_v15 }
 0x16b   : > { %v3550_v20 = vld [vmem:[#allocation1 + $0x2] ss:$9 sm:$0xff]  ;;  %v795_v21 = vsub.f32 1.0, %v791_v16  ;;  %v796_v22 = vsub.f32 1.0, %v792_v17  ;;  %v793_v28 = vsub.f32 1.0, %v789_v18 }
 0x16c   : > { %996 = vst [vmem:[#allocation1] sm:$0xff] %v3519_v60  ;;  %v794_v29 = vsub.f32 1.0, %v790_v19  ;;  %v3630_v16 = vld [vmem:[%s3556_s20 + $0x28] sm:$0xff]  ;;  %v567_v19 = vpop.permute.xlu2 %566 }
 0x16d   : > { %997 = vst [vmem:[#allocation1 + $0x9] sm:$0xff] %v3522_v62  ;;  %v799_v30 = vmax.f32 %v795_v21, 0.0  ;;  %v800_v31 = vmax.f32 %v796_v22, 0.0  ;;  %v797_v32 = vmax.f32 %v793_v28, 0.0  ;;  %v618_v28 = vpop.f32.mrf.mxu0 }
 0x16e   : > { %v798_v36 = vmax.f32 %v794_v29, 0.0  ;;  %v3637_v29 = vadd.f32 %v618_v28, %v567_v19 }
 0x16f   : > { %839 = vmatpush.msrb.mxu0 %v799_v30  ;;  %3275 = vmatpush.msra.mxu2 %v799_v30 }
 0x170   : > { %880 = vmatpush.msrb.mxu1 %v800_v31  ;;  %3277 = vmatpush.msra.mxu3 %v800_v31  ;;  %v3646_v31 = vld [vmem:[%s3556_s20 + $0x30] sm:$0xff] }
 0x171   : > { %840 = vmatpush.msrb.mxu0 %v797_v32  ;;  %3276 = vmatpush.msra.mxu2 %v797_v32 }
 0x172   : > { %881 = vmatpush.msrb.mxu1 %v798_v36  ;;  %3278 = vmatpush.msra.mxu3 %v798_v36 }
 0x173   : > { %3122 = vmatmul.msk.f32.vlgmr.msrb.gmra.mxu0 %vm363_vm5, %v3560_v33  ;;  %3123 = vmatmul.msk.f32.vlgmr.msra.gmra.mxu2 %vm363_vm5, %v3563_v34 }
 0x174   : > { %v999_v26 = vld [vmem:[#allocation1 + $0x3] ss:$9 sm:$0xff]  ;;  %3130 = vmatmul.msk.f32.vlgmr.msrb.gmra.mxu1 %vm363_vm5, %v3560_v33  ;;  %3131 = vmatmul.msk.f32.vlgmr.msra.gmra.mxu3 %vm363_vm5, %v3563_v34 }
 0x175   : > { %1208 = vst [vmem:[#allocation1] sm:$0xff] %v3519_v60  ;;  %v1001_v37 = vadd.f32 %v999_v26, %v3566_v25 }
 0x176   : > { %1209 = vst [vmem:[#allocation1 + $0x9] sm:$0xff] %v3522_v62 }
 0x177   : > { %v1024_v38 = vperm.slane %v1001_v37, 0  ;;  %v1025_v39 = vperm.slane %v1001_v37, 1 }
 0x179   : > { %v1030_v27 = vsub.f32 %v3541_v8, %v1024_v38  ;;  %v1031_v40 = vsub.f32 %v3541_v8, %v1025_v39  ;;  %v1028_v41 = vsub.f32 %v3543_v11, %v1024_v38  ;;  %v1029_v42 = vsub.f32 %v3543_v11, %v1025_v39 }
 0x17b   : > { %3124 = vmatmul.msk.f32.gmra.mxu2 %vm363_vm5, %v3580_v24  ;;  %v1034_v43 = vand.u32 2147483647, %v1030_v27  ;;  %v1035_v44 = vand.u32 2147483647, %v1031_v40  ;;  %v1032_v46 = vand.u32 2147483647, %v1028_v41 }
 0x17c   : > { %3132 = vmatmul.msk.f32.gmra.mxu3 %vm363_vm5, %v3580_v24  ;;  %v1033_v49 = vand.u32 2147483647, %v1029_v42 }
 0x17d   : > { %v3590_v45 = vld [vmem:[#allocation1 + $0x4] ss:$9 sm:$0xff]  ;;  %v1038_v47 = vsub.f32 1.0, %v1034_v43  ;;  %v1039_v35 = vsub.f32 1.0, %v1035_v44  ;;  %v1036_v48 = vsub.f32 1.0, %v1032_v46 }
 0x17e   : > { %1215 = vst [vmem:[#allocation1] sm:$0xff] %v3519_v60  ;;  %v1037_v53 = vsub.f32 1.0, %v1033_v49  ;;  %v3664_v44 = vld [vmem:[%s3556_s20 + $0x38] sm:$0xff] }
 0x17f   : > { %1216 = vst [vmem:[#allocation1 + $0x9] sm:$0xff] %v3522_v62  ;;  %v1042_v51 = vmax.f32 %v1038_v47, 0.0  ;;  %v1043_v52 = vmax.f32 %v1039_v35, 0.0  ;;  %v1040_v23 = vmax.f32 %v1036_v48, 0.0 }
 0x180   : > { %v1041_v54 = vmax.f32 %v1037_v53, 0.0 }
 0x181   : > { %1058 = vmatpush.msra.mxu0 %v1042_v51  ;;  %1099 = vmatpush.msra.mxu1 %v1043_v52 }
 0x183   : > { %3125 = vmatmul.msk.f32.gmra.mxu2 %vm363_vm5, %v3595_v50  ;;  %1059 = vmatpush.msra.mxu0 %v1040_v23 }
 0x184   : > { %3133 = vmatmul.msk.f32.gmra.mxu3 %vm363_vm5, %v3595_v50  ;;  %1100 = vmatpush.msra.mxu1 %v1041_v54 }
 0x185   : > { %3138 = vmatmul.msk.f32.vlgmr.msra.gmra.mxu0 %vm363_vm5, %v3560_v33  ;;  %3146 = vmatmul.msk.f32.vlgmr.msra.gmra.mxu1 %vm363_vm5, %v3560_v33 }
 0x186   : > { %v1218_v56 = vld [vmem:[#allocation1 + $0x5] ss:$9 sm:$0xff] }
 0x187   : > { %1429 = vst [vmem:[#allocation1 + $0x9] sm:$0xff] %v3522_v62  ;;  %v1220_v57 = vadd.f32 %v1218_v56, %v3598_v55 }
 0x188   : > { %1428 = vst [vmem:[#allocation1] sm:$0xff] %v3519_v60 }
 0x189   : > { %v1243_v59 = vperm.slane %v1220_v57, 0  ;;  %v1244_v61 = vperm.slane %v1220_v57, 1 }
 0x18b   : > { %v1249_v63 = vsub.f32 %v3541_v8, %v1243_v59  ;;  %v1250_v0 = vsub.f32 %v3541_v8, %v1244_v61  ;;  %3126 = vmatmul.msk.f32.gmra.mxu2 %vm363_vm5, %v3612_v58  ;;  %v1247_v1 = vsub.f32 %v3543_v11, %v1243_v59  ;;  %v1248_v2 = vsub.f32 %v3543_v11, %v1244_v61 }
 0x18c   : > { %3134 = vmatmul.msk.f32.gmra.mxu3 %vm363_vm5, %v3612_v58 }
 0x18d   : > { %v1253_v5 = vand.u32 2147483647, %v1249_v63  ;;  %v1254_v6 = vand.u32 2147483647, %v1250_v0  ;;  %3139 = vmatmul.msk.f32.gmra.mxu0 %vm363_vm5, %v3563_v34  ;;  %3147 = vmatmul.msk.f32.gmra.mxu1 %vm363_vm5, %v3563_v34  ;;  %v1251_v7 = vand.u32 2147483647, %v1247_v1 }
 0x18e   : > { %v1252_v9 = vand.u32 2147483647, %v1248_v2 }
 0x18f   : > { %v1257_v10 = vsub.f32 1.0, %v1253_v5  ;;  %v1258_v12 = vsub.f32 1.0, %v1254_v6  ;;  %v3626_v13 = vld [vmem:[#allocation1 + $0x6] ss:$9 sm:$0xff]  ;;  %v1255_v14 = vsub.f32 1.0, %v1251_v7 }
 0x190   : > { %v1256_v15 = vsub.f32 1.0, %v1252_v9  ;;  %1434 = vst [vmem:[#allocation1] sm:$0xff] %v3519_v60  ;;  %v647_v60 = vpop.f32.mrf.mxu1 }
 0x191   : > { %v1261_v17 = vmax.f32 %v1257_v10, 0.0  ;;  %v1262_v18 = vmax.f32 %v1258_v12, 0.0  ;;  %1435 = vst [vmem:[#allocation1 + $0x9] sm:$0xff] %v3522_v62  ;;  %v1259_v21 = vmax.f32 %v1255_v14, 0.0  ;;  %v3643_v62 = vadd.f32 %v647_v60, %v567_v19 }
 0x192   : > { %v1260_v22 = vmax.f32 %v1256_v15, 0.0 }
 0x193   : > { %1277 = vmatpush.msrb.mxu2 %v1261_v17  ;;  %1318 = vmatpush.msrb.mxu3 %v1262_v18  ;;  %v1648_v57 = vrot.slane %v3643_v62, 7 }
 0x194   : > { %3127 = vmatmul.msk.f32.gmra.mxu2 %vm363_vm5, %v3630_v16  ;;  %3135 = vmatmul.msk.f32.gmra.mxu3 %vm363_vm5, %v3630_v16 }
 0x195   : > { %1278 = vmatpush.msrb.mxu2 %v1259_v21  ;;  %1319 = vmatpush.msrb.mxu3 %v1260_v22  ;;  %v3701_v59 = vsel %vm748_vm10, %v3637_v29, %v1648_v57 }
 0x196   : > { %3140 = vmatmul.msk.f32.gmra.mxu0 %vm363_vm5, %v3580_v24  ;;  %3148 = vmatmul.msk.f32.gmra.mxu1 %vm363_vm5, %v3580_v24 }
 0x198   : > { %v1437_v30 = vld [vmem:[#allocation1 + $0x7] ss:$9 sm:$0xff] }
 0x199   : > { %1652 = vst [vmem:[#allocation1] sm:$0xff] %v3637_v29  ;;  %v1439_v32 = vadd.f32 %v3536_v4, %v1437_v30 }
 0x19a   : > { %1653 = vst [vmem:[#allocation1 + $0x9] sm:$0xff] %v3643_v62 }
 0x19b   : > { %v1462_v36 = vperm.slane %v1439_v32, 0  ;;  %v1463_v26 = vperm.slane %v1439_v32, 1 }
 0x19c   : > { %3128 = vmatmul.msk.f32.gmra.mxu2 %vm363_vm5, %v3646_v31  ;;  %3136 = vmatmul.msk.f32.gmra.mxu3 %vm363_vm5, %v3646_v31 }
 0x19d   : > { %v1468_v37 = vsub.f32 %v3541_v8, %v1462_v36  ;;  %v1469_v38 = vsub.f32 %v3541_v8, %v1463_v26  ;;  %v1466_v39 = vsub.f32 %v3543_v11, %v1462_v36  ;;  %v1467_v27 = vsub.f32 %v3543_v11, %v1463_v26 }
 0x19e   : > { %3141 = vmatmul.msk.f32.gmra.mxu0 %vm363_vm5, %v3595_v50  ;;  %3149 = vmatmul.msk.f32.gmra.mxu1 %vm363_vm5, %v3595_v50 }
 0x19f   : > { %v1472_v40 = vand.u32 2147483647, %v1468_v37  ;;  %v1473_v41 = vand.u32 2147483647, %v1469_v38  ;;  %v1470_v42 = vand.u32 2147483647, %v1466_v39 }
 0x1a0   : > { %v1471_v43 = vand.u32 2147483647, %v1467_v27 }
 0x1a1   : > { %v1655_v46 = vld [vmem:[#allocation1 + $0x1] ss:$9 sm:$0xff]  ;;  %v1476_v47 = vsub.f32 1.0, %v1472_v40  ;;  %v1477_v35 = vsub.f32 1.0, %v1473_v41  ;;  %v1474_v48 = vsub.f32 1.0, %v1470_v42 }
 0x1a2   : > { %1864 = vst [vmem:[#allocation1] sm:$0xff] %v3637_v29  ;;  %v1475_v49 = vsub.f32 1.0, %v1471_v43  ;;  %v1657_v63 = vadd.f32 %v1655_v46, %v3566_v25 }
 0x1a3   : > { %1865 = vst [vmem:[#allocation1 + $0x9] sm:$0xff] %v3643_v62  ;;  %v1480_v51 = vmax.f32 %v1476_v47, 0.0  ;;  %v1481_v52 = vmax.f32 %v1477_v35, 0.0  ;;  %v1478_v53 = vmax.f32 %v1474_v48, 0.0 }
 0x1a4   : > { %3129 = vmatmul.msk.f32.gmra.mxu2 %vm363_vm5, %v3664_v44  ;;  %3137 = vmatmul.msk.f32.gmra.mxu3 %vm363_vm5, %v3664_v44  ;;  %v1479_v23 = vmax.f32 %v1475_v49, 0.0  ;;  %v1680_v1 = vperm.slane %v1657_v63, 0  ;;  %v1681_v2 = vperm.slane %v1657_v63, 1 }
 0x1a5   : > { %1496 = vmatpush.msrb.mxu0 %v1480_v51  ;;  %1537 = vmatpush.msrb.mxu1 %v1481_v52  ;;  %v572_v52 = vpop.permute.xlu0 %571 }
 0x1a6   : > { %3142 = vmatmul.msk.f32.gmra.mxu0 %vm363_vm5, %v3612_v58  ;;  %3150 = vmatmul.msk.f32.gmra.mxu1 %vm363_vm5, %v3612_v58  ;;  %v1686_v7 = vsub.f32 %v3541_v8, %v1680_v1  ;;  %v1687_v9 = vsub.f32 %v3541_v8, %v1681_v2  ;;  %v1684_v14 = vsub.f32 %v3543_v11, %v1680_v1 }
 0x1a7   : > { %1497 = vmatpush.msrb.mxu0 %v1478_v53  ;;  %1538 = vmatpush.msrb.mxu1 %v1479_v23  ;;  %v1685_v15 = vsub.f32 %v3543_v11, %v1681_v2  ;;  %v621_v53 = vpop.f32.mrf.mxu0  ;;  %v650_v23 = vpop.f32.mrf.mxu1 }
 0x1a8   : > { %v1690_v19 = vand.u32 2147483647, %v1686_v7  ;;  %v1691_v21 = vand.u32 2147483647, %v1687_v9  ;;  %v1688_v60 = vand.u32 2147483647, %v1684_v14  ;;  %v651_v1 = vadd.f32 %v650_v23, %v572_v52 }
 0x1a9   : > { %v1689_v30 = vand.u32 2147483647, %v1685_v15 }
 0x1aa   : > { %v3676_v54 = vld [vmem:[#allocation1 + $0x2] ss:$9 sm:$0xff]  ;;  %v1694_v32 = vsub.f32 1.0, %v1690_v19  ;;  %v1695_v36 = vsub.f32 1.0, %v1691_v21  ;;  %v1692_v39 = vsub.f32 1.0, %v1688_v60 }
 0x1ab   : > { %1870 = vst [vmem:[#allocation1] sm:$0xff] %v3637_v29  ;;  %v1693_v27 = vsub.f32 1.0, %v1689_v30 }
 0x1ac   : > { %1871 = vst [vmem:[#allocation1 + $0x9] sm:$0xff] %v3643_v62  ;;  %3154 = vmatmul.msk.f32.vlgmr.msrb.gmra.mxu2 %vm363_vm5, %v3560_v33  ;;  %3162 = vmatmul.msk.f32.vlgmr.msrb.gmra.mxu3 %vm363_vm5, %v3560_v33  ;;  %v1698_v41 = vmax.f32 %v1694_v32, 0.0  ;;  %v1699_v42 = vmax.f32 %v1695_v36, 0.0  ;;  %v1696_v48 = vmax.f32 %v1692_v39, 0.0 }
 0x1ad   : > { %v1697_v49 = vmax.f32 %v1693_v27, 0.0 }
 0x1ae   : > { %3143 = vmatmul.msk.f32.gmra.mxu0 %vm363_vm5, %v3630_v16  ;;  %3151 = vmatmul.msk.f32.gmra.mxu1 %vm363_vm5, %v3630_v16 }
 0x1af   : > { %1714 = vmatpush.msra.mxu2 %v1698_v41  ;;  %1755 = vmatpush.msra.mxu3 %v1699_v42  ;;  %v3771_v42 = vld [vmem:[%s4790_s3] ss:$2 sm:$0x3] }
 0x1b1   : > { %1715 = vmatpush.msra.mxu2 %v1696_v48  ;;  %1756 = vmatpush.msra.mxu3 %v1697_v49  ;;  %v751_v49 = vadd.f32 %v3531_v3, %v3771_v42 }
 0x1b3   : > { %v1873_v56 = vld [vmem:[#allocation1 + $0x3] ss:$9 sm:$0xff]  ;;  %v760_v3 = vperm.slane %v751_v49, 0 }
 0x1b4   : > { %3155 = vmatmul.msk.f32.gmra.mxu2 %vm363_vm5, %v3563_v34  ;;  %3163 = vmatmul.msk.f32.gmra.mxu3 %vm363_vm5, %v3563_v34  ;;  %2083 = vst [vmem:[#allocation1] sm:$0xff] %v3637_v29  ;;  %v1875_v0 = vadd.f32 %v1873_v56, %v3598_v55 }
 0x1b5   : > { %2084 = vst [vmem:[#allocation1 + $0x9] sm:$0xff] %v3643_v62 }
 0x1b6   : > { %3144 = vmatmul.msk.f32.gmra.mxu0 %vm363_vm5, %v3646_v31  ;;  %3152 = vmatmul.msk.f32.gmra.mxu1 %vm363_vm5, %v3646_v31  ;;  %v1898_v5 = vperm.slane %v1875_v0, 0  ;;  %v1899_v6 = vperm.slane %v1875_v0, 1  ;;  %v622_v0 = vadd.f32 %v621_v53, %v572_v52 }
 0x1b8   : > { %v1904_v10 = vsub.f32 %v3541_v8, %v1898_v5  ;;  %v1905_v12 = vsub.f32 %v3541_v8, %v1899_v6  ;;  %v1902_v17 = vsub.f32 %v3543_v11, %v1898_v5  ;;  %v1903_v18 = vsub.f32 %v3543_v11, %v1899_v6 }
 0x1b9   : > { %v2521_v6 = vrot.slane %v651_v1, 7 }
 0x1ba   : > { %v1908_v22 = vand.u32 2147483647, %v1904_v10  ;;  %v1909_v28 = vand.u32 2147483647, %v1905_v12  ;;  %v1906_v37 = vand.u32 2147483647, %v1902_v17 }
 0x1bb   : > { %v1907_v40 = vand.u32 2147483647, %v1903_v18  ;;  %v3117_v12 = vmul.f32 -1.442695, %v622_v0  ;;  %v3749_v14 = vsel %vm748_vm10, %v622_v0, %v2521_v6  ;;  %vm2775_vm10 = vcmask 1046534  }
 0x1bc   : > { %3156 = vmatmul.msk.f32.gmra.mxu2 %vm363_vm5, %v3580_v24  ;;  %3164 = vmatmul.msk.f32.gmra.mxu3 %vm363_vm5, %v3580_v24  ;;  %v3707_v61 = vld [vmem:[#allocation1 + $0x4] ss:$9 sm:$0xff]  ;;  %v1912_v26 = vsub.f32 1.0, %v1908_v22  ;;  %v1913_v38 = vsub.f32 1.0, %v1909_v28  ;;  %v1910_v46 = vsub.f32 1.0, %v1906_v37  ;;  %4796 = vst [vmem:[#allocation2_spill] sm:$0xff] %v3749_v14 }
 0x1bd   : > { %2089 = vst [vmem:[#allocation1] sm:$0xff] %v3637_v29  ;;  %v1911_v51 = vsub.f32 1.0, %v1907_v40  ;;  %v3118_v22 = vmul.f32 -1.442695, %v651_v1  ;;  %3302 = vpow2.f32 %v3117_v12 }
 0x1be   : > { %3145 = vmatmul.msk.f32.gmra.mxu0 %vm363_vm5, %v3664_v44  ;;  %3153 = vmatmul.msk.f32.gmra.mxu1 %vm363_vm5, %v3664_v44  ;;  %2090 = vst [vmem:[#allocation1 + $0x9] sm:$0xff] %v3643_v62  ;;  %v1916_v43 = vmax.f32 %v1912_v26, 0.0  ;;  %v1917_v35 = vmax.f32 %v1913_v38, 0.0  ;;  %v1914_v56 = vmax.f32 %v1910_v46, 0.0 }
 0x1bf   : > { %v1915_v63 = vmax.f32 %v1911_v51, 0.0  ;;  %3304 = vpow2.f32 %v3118_v22  ;;  %v3809_v22 = vpop.f32.mrf.mxu0 }
 0x1c0   : > { %1932 = vmatpush.msra.mxu0 %v1916_v43  ;;  %1973 = vmatpush.msra.mxu1 %v1917_v35 }
 0x1c2   : > { %1933 = vmatpush.msra.mxu0 %v1914_v56  ;;  %1974 = vmatpush.msra.mxu1 %v1915_v63 }
 0x1c4   : > { %3157 = vmatmul.msk.f32.gmra.mxu2 %vm363_vm5, %v3595_v50  ;;  %3165 = vmatmul.msk.f32.gmra.mxu3 %vm363_vm5, %v3595_v50 }
 0x1c5   : > { %v2092_v47 = vld [vmem:[#allocation1 + $0x5] ss:$9 sm:$0xff] }
 0x1c6   : > { %3170 = vmatmul.msk.f32.vlgmr.msrb.gmra.mxu0 %vm363_vm5, %v3560_v33  ;;  %3178 = vmatmul.msk.f32.vlgmr.msrb.gmra.mxu1 %vm363_vm5, %v3560_v33  ;;  %2301 = vst [vmem:[#allocation1] sm:$0xff] %v3637_v29  ;;  %v2094_v57 = vadd.f32 %v3536_v4, %v2092_v47 }
 0x1c7   : > { %2302 = vst [vmem:[#allocation1 + $0x9] sm:$0xff] %v3643_v62 }
 0x1c8   : > { %v2117_v2 = vperm.slane %v2094_v57, 0  ;;  %v2118_v5 = vperm.slane %v2094_v57, 1 }
 0x1ca   : > { %v2123_v4 = vsub.f32 %v3541_v8, %v2117_v2  ;;  %v2124_v7 = vsub.f32 %v3541_v8, %v2118_v5  ;;  %v2121_v9 = vsub.f32 %v3543_v11, %v2117_v2  ;;  %v2122_v10 = vsub.f32 %v3543_v11, %v2118_v5 }
 0x1cc   : > { %3158 = vmatmul.msk.f32.gmra.mxu2 %vm363_vm5, %v3612_v58  ;;  %3166 = vmatmul.msk.f32.gmra.mxu3 %vm363_vm5, %v3612_v58  ;;  %v2127_v15 = vand.u32 2147483647, %v2123_v4  ;;  %v2128_v17 = vand.u32 2147483647, %v2124_v7  ;;  %v2125_v18 = vand.u32 2147483647, %v2121_v9 }
 0x1cd   : > { %v2126_v21 = vand.u32 2147483647, %v2122_v10  ;;  %v761_v7 = vperm.slane %v751_v49, 1  ;;  %v764_v10 = vsub.f32 %v3543_v11, %v760_v3 }
 0x1ce   : > { %3171 = vmatmul.msk.f32.gmra.mxu0 %vm363_vm5, %v3563_v34  ;;  %3179 = vmatmul.msk.f32.gmra.mxu1 %vm363_vm5, %v3563_v34  ;;  %v3751_v19 = vld [vmem:[#allocation1 + $0x6] ss:$9 sm:$0xff]  ;;  %v2131_v28 = vsub.f32 1.0, %v2127_v15  ;;  %v2132_v60 = vsub.f32 1.0, %v2128_v17  ;;  %v2129_v30 = vsub.f32 1.0, %v2125_v18  ;;  %v766_v15 = vsub.f32 %v3541_v8, %v760_v3 }
 0x1cf   : > { %4797 = vst [vmem:[#allocation3_spill] sm:$0xff] %v3751_v19  ;;  %v2130_v32 = vsub.f32 1.0, %v2126_v21  ;;  %v765_v18 = vsub.f32 %v3543_v11, %v761_v7  ;;  %v767_v21 = vsub.f32 %v3541_v8, %v761_v7 }
 0x1d0   : > { %2307 = vst [vmem:[#allocation1] sm:$0xff] %v3637_v29  ;;  %v2135_v36 = vmax.f32 %v2131_v28, 0.0  ;;  %v2136_v26 = vmax.f32 %v2132_v60, 0.0  ;;  %v2133_v37 = vmax.f32 %v2129_v30, 0.0  ;;  %v3303_v29 = vpop.eup %3302  ;;  %v768_v28 = vand.u32 2147483647, %v764_v10  ;;  %v3815_v60 = vpop.f32.mrf.mxu1 }
 0x1d1   : > { %2308 = vst [vmem:[#allocation1 + $0x9] sm:$0xff] %v3643_v62  ;;  %v2134_v38 = vmax.f32 %v2130_v32, 0.0  ;;  %v3305_v39 = vpop.eup %3304  ;;  %v3773_v43 = vadd.f32 1.0, %v3303_v29  ;;  %v770_v32 = vand.u32 2147483647, %v766_v15 }
 0x1d2   : > { %2151 = vmatpush.msrb.mxu2 %v2135_v36  ;;  %2192 = vmatpush.msrb.mxu3 %v2136_v26  ;;  %v3775_v46 = vadd.f32 1.0, %v3305_v39  ;;  %v769_v26 = vand.u32 2147483647, %v765_v18 }
 0x1d3   : > { %3306 = vrcp.f32 %v3773_v43  ;;  %vm677_vm11 = vweird.f32 %v3773_v43 }
 0x1d4   : > { %3159 = vmatmul.msk.f32.gmra.mxu2 %vm363_vm5, %v3630_v16  ;;  %3167 = vmatmul.msk.f32.gmra.mxu3 %vm363_vm5, %v3630_v16  ;;  %3308 = vrcp.f32 %v3775_v46  ;;  %vm692_vm13 = vweird.f32 %v3775_v46  ;;  %v698_v49 = vand.u32 2147483648, %v3775_v46 }
 0x1d5   : > { %2152 = vmatpush.msrb.mxu2 %v2133_v37  ;;  %2193 = vmatpush.msrb.mxu3 %v2134_v38  ;;  %v771_v37 = vand.u32 2147483647, %v767_v21  ;;  %v772_v38 = vsub.f32 1.0, %v768_v28 }
 0x1d6   : > { %3172 = vmatmul.msk.f32.gmra.mxu0 %vm363_vm5, %v3580_v24  ;;  %3180 = vmatmul.msk.f32.gmra.mxu1 %vm363_vm5, %v3580_v24  ;;  %v699_v10 = vor.u32 1.1754944e-38, %v698_v49 }
 0x1d8   : > { %v2310_v62 = vld [vmem:[#allocation1 + $0x7] ss:$9 sm:$0xff] }
 0x1d9   : > { %v2312_v27 = vadd.f32 %v2310_v62, %v3566_v25  ;;  %2525 = vst [vmem:[#allocation1] sm:$0xff] %v622_v0  ;;  %v3793_v4 = vpop.eup %3306  ;;  %v774_v62 = vsub.f32 1.0, %v770_v32 }
 0x1da   : > { %2526 = vst [vmem:[#allocation1 + $0x9] sm:$0xff] %v651_v1  ;;  %v3795_v9 = vpop.eup %3308  ;;  %v673_v12 = vmul.f32 %v3793_v4, %v3773_v43  ;;  %vm678_vm12 = vweird.f32 %v3793_v4 }
 0x1db   : > { %v2335_v40 = vperm.slane %v2312_v27, 0  ;;  %v2336_v41 = vperm.slane %v2312_v27, 1  ;;  %v688_v17 = vmul.f32 %v3795_v9, %v3775_v46  ;;  %v773_v27 = vsub.f32 1.0, %v769_v26  ;;  %vm3839_vm15 = vmor %vm677_vm11, %vm678_vm12 }
 0x1dc   : > { %3160 = vmatmul.msk.f32.gmra.mxu2 %vm363_vm5, %v3646_v31  ;;  %3168 = vmatmul.msk.f32.gmra.mxu3 %vm363_vm5, %v3646_v31  ;;  %v674_v30 = vsub.f32 1.0, %v673_v12  ;;  %vm693_vm14 = vweird.f32 %v3795_v9  ;;  %v994_v26 = vadd.f32 %v3550_v20, %v3771_v42  ;;  %vm2778_vm11 = vcmask 1047559  }
 0x1dd   : > { %v2341_v25 = vsub.f32 %v3541_v8, %v2335_v40  ;;  %v2342_v47 = vsub.f32 %v3541_v8, %v2336_v41  ;;  %v2339_v35 = vsub.f32 %v3543_v11, %v2335_v40  ;;  %v2340_v48 = vsub.f32 %v3543_v11, %v2336_v41  ;;  %vm3853_vm1 = vmor %vm692_vm13, %vm693_vm14 }
 0x1de   : > { %3173 = vmatmul.msk.f32.gmra.mxu0 %vm363_vm5, %v3595_v50  ;;  %3181 = vmatmul.msk.f32.gmra.mxu1 %vm363_vm5, %v3595_v50  ;;  %v689_v36 = vsub.f32 1.0, %v688_v17  ;;  %v675_v29 = vmul.f32 %v3793_v4, %v674_v30  ;;  %v775_v40 = vsub.f32 1.0, %v771_v37  ;;  %v683_v41 = vand.u32 2147483648, %v3773_v43 }
 0x1df   : > { %v2345_v51 = vand.u32 2147483647, %v2341_v25  ;;  %v2346_v52 = vand.u32 2147483647, %v2342_v47  ;;  %v2343_v53 = vand.u32 2147483647, %v2339_v35 }
 0x1e0   : > { %v2344_v23 = vand.u32 2147483647, %v2340_v48  ;;  %v690_v39 = vmul.f32 %v3795_v9, %v689_v36  ;;  %v3828_v25 = vmax.f32 %v772_v38, 0.0  ;;  %v676_v35 = vadd.f32 %v3793_v4, %v675_v29 }
 0x1e1   : > { %v2349_v56 = vsub.f32 1.0, %v2345_v51  ;;  %v2350_v57 = vsub.f32 1.0, %v2346_v52  ;;  %v2347_v63 = vsub.f32 1.0, %v2343_v53  ;;  %v681_v48 = vand.u32 2147483647, %v3773_v43 }
 0x1e2   : > { %v2348_v0 = vsub.f32 1.0, %v2344_v23  ;;  %v3837_v52 = vmax.f32 %v774_v62, 0.0  ;;  %v691_v23 = vadd.f32 %v3795_v9, %v690_v39  ;;  %v684_v3 = vor.u32 1.1754944e-38, %v683_v41 }
 0x1e3   : > { %v2353_v1 = vmax.f32 %v2349_v56, 0.0  ;;  %v2354_v2 = vmax.f32 %v2350_v57, 0.0  ;;  %v2351_v5 = vmax.f32 %v2347_v63, 0.0  ;;  %v696_v56 = vand.u32 2147483647, %v3775_v46 }
 0x1e4   : > { %3161 = vmatmul.msk.f32.gmra.mxu2 %vm363_vm5, %v3664_v44  ;;  %3169 = vmatmul.msk.f32.gmra.mxu3 %vm363_vm5, %v3664_v44  ;;  %v2352_v6 = vmax.f32 %v2348_v0, 0.0  ;;  %v3845_v57 = vmax.f32 %v773_v27, 0.0  ;;  %v3847_v0 = vmax.f32 %v775_v40, 0.0  ;;  %v680_v7 = vsel %vm3839_vm15, %v3793_v4, %v676_v35 }
 0x1e5   : > { %2369 = vmatpush.msrb.mxu0 %v2353_v1  ;;  %2410 = vmatpush.msrb.mxu1 %v2354_v2  ;;  %vm682_vm2 = vcmp.eq.f32.partialorder %v681_v48, 8.507059e+37  ;;  %v695_v15 = vsel %vm3853_vm1, %v3795_v9, %v691_v23  ;;  %vm697_vm3 = vcmp.eq.f32.partialorder %v696_v56, 8.507059e+37  ;;  %v1003_v20 = vperm.slane %v994_v26, 0 }
 0x1e6   : > { %3174 = vmatmul.msk.f32.gmra.mxu0 %vm363_vm5, %v3612_v58  ;;  %3182 = vmatmul.msk.f32.gmra.mxu1 %vm363_vm5, %v3612_v58  ;;  %v685_v21 = vsel %vm682_vm2, %v684_v3, %v680_v7  ;;  %v700_v30 = vsel %vm697_vm3, %v699_v10, %v695_v15  ;;  %v1004_v23 = vperm.slane %v994_v26, 1 }
 0x1e7   : > { %2370 = vmatpush.msrb.mxu0 %v2351_v5  ;;  %2411 = vmatpush.msrb.mxu1 %v2352_v6  ;;  %v3877_v37 = vmul.f32 2.0, %v685_v21  ;;  %v3884_v62 = vmul.f32 2.0, %v700_v30  ;;  %v3902_v43 = vsub.f32 %v3543_v11, %v1003_v20 }
 0x1e8   : > { %v1010_v15 = vsub.f32 %v3541_v8, %v1004_v23 }
 0x1e9   : > { %v3888_v35 = vperm.slane %v3877_v37, 2  ;;  %v3895_v53 = vperm.slane %v3884_v62, 2  ;;  %v1011_v30 = vand.u32 2147483647, %v3902_v43 }
 0x1ec   : > { %3186 = vmatmul.msk.f32.vlgmr.msra.gmra.mxu2 %vm363_vm5, %v3560_v33  ;;  %3194 = vmatmul.msk.f32.vlgmr.msra.gmra.mxu3 %vm363_vm5, %v3560_v33 }
 0x1ee   : > { %3175 = vmatmul.msk.f32.gmra.mxu0 %vm363_vm5, %v3630_v16  ;;  %3183 = vmatmul.msk.f32.gmra.mxu1 %vm363_vm5, %v3630_v16 }
 0x1f0   : > { %v842_v47 = vpop.f32.mrf.mxu0 }
 0x1f1   : > { %v883_v51 = vpop.f32.mrf.mxu1  ;;  %v907_v1 = vmul.f32 %v842_v47, %v3828_v25 }
 0x1f2   : > { %v908_v6 = vmul.f32 %v883_v51, %v3845_v57 }
 0x1f4   : > { %3187 = vmatmul.msk.f32.gmra.mxu2 %vm363_vm5, %v3563_v34  ;;  %3195 = vmatmul.msk.f32.gmra.mxu3 %vm363_vm5, %v3563_v34 }
 0x1f6   : > { %v845_v63 = vpop.f32.mrf.mxu2  ;;  %3176 = vmatmul.msk.f32.gmra.mxu0 %vm363_vm5, %v3646_v31  ;;  %3184 = vmatmul.msk.f32.gmra.mxu1 %vm363_vm5, %v3646_v31 }
 0x1f7   : > { %v909_v2 = vmul.f32 %v845_v63, %v3837_v52  ;;  %v886_v5 = vpop.f32.mrf.mxu3 }
 0x1f8   : > { %v910_v46 = vmul.f32 %v886_v5, %v3847_v0 }
 0x1f9   : > { %v923_v12 = vadd.f32 %v909_v2, %v907_v1  ;;  %v2528_v1 = vld [vmem:[#allocation1 + $0x1] ss:$9 sm:$0xff] }
 0x1fa   : > { %v930_v17 = vadd.f32 %v910_v46, %v908_v6  ;;  %v1009_v6 = vsub.f32 %v3541_v8, %v1003_v20  ;;  %v2530_v46 = vadd.f32 %v2528_v1, %v3598_v55  ;;  %v1008_v55 = vsub.f32 %v3543_v11, %v1004_v23 }
 0x1fb   : > { %v924_v18 = vrot.slane %v923_v12, 4 }
 0x1fc   : > { %v931_v28 = vrot.slane %v930_v17, 4  ;;  %3188 = vmatmul.msk.f32.gmra.mxu2 %vm363_vm5, %v3580_v24  ;;  %3196 = vmatmul.msk.f32.gmra.mxu3 %vm363_vm5, %v3580_v24 }
 0x1fd   : > { %v925_v4 = vadd.f32 %v924_v18, %v923_v12  ;;  %v2554_v18 = vperm.slane %v2530_v46, 1 }
 0x1fe   : > { %v932_v32 = vadd.f32 %v931_v28, %v930_v17  ;;  %v848_v36 = vpop.f32.mrf.mxu2  ;;  %3177 = vmatmul.msk.f32.gmra.mxu0 %vm363_vm5, %v3664_v44  ;;  %3185 = vmatmul.msk.f32.gmra.mxu1 %vm363_vm5, %v3664_v44  ;;  %v2553_v17 = vperm.slane %v2530_v46, 0 }
 0x1ff   : > { %v926_v9 = vrot.slane %v925_v4, 2  ;;  %v911_v38 = vmul.f32 %v848_v36, %v3828_v25  ;;  %v889_v29 = vpop.f32.mrf.mxu3  ;;  %v2560_v26 = vsub.f32 %v3541_v8, %v2554_v18 }
 0x200   : > { %v933_v39 = vrot.slane %v932_v32, 2  ;;  %v912_v27 = vmul.f32 %v889_v29, %v3845_v57  ;;  %v2559_v36 = vsub.f32 %v3541_v8, %v2553_v17 }
 0x201   : > { %v927_v40 = vadd.f32 %v926_v9, %v925_v4 }
 0x202   : > { %v934_v41 = vadd.f32 %v933_v39, %v932_v32  ;;  %v3890_v48 = vpop.f32.mrf.mxu0  ;;  %v3892_v49 = vpop.f32.mrf.mxu1  ;;  %v1013_v39 = vand.u32 2147483647, %v1009_v6  ;;  %v1012_v6 = vand.u32 2147483647, %v1008_v55 }
 0x203   : > { %v928_v47 = vrot.slane %v927_v40, 1 }
 0x204   : > { %v935_v51 = vrot.slane %v934_v41, 1  ;;  %3189 = vmatmul.msk.f32.gmra.mxu2 %vm363_vm5, %v3595_v50  ;;  %3197 = vmatmul.msk.f32.gmra.mxu3 %vm363_vm5, %v3595_v50 }
 0x205   : > { %v929_v56 = vadd.f32 %v928_v47, %v927_v40  ;;  %v2557_v40 = vsub.f32 %v3543_v11, %v2553_v17 }
 0x206   : > { %v936_v63 = vadd.f32 %v935_v51, %v934_v41  ;;  %3202 = vmatmul.msk.f32.vlgmr.msra.gmra.mxu0 %vm363_vm5, %v3560_v33  ;;  %3210 = vmatmul.msk.f32.vlgmr.msra.gmra.mxu1 %vm363_vm5, %v3560_v33  ;;  %v851_v5 = vpop.f32.mrf.mxu2  ;;  %v1213_v33 = vadd.f32 %v3590_v45, %v3771_v42  ;;  %v2563_v45 = vand.u32 2147483647, %v2559_v36  ;;  %v2558_v41 = vsub.f32 %v3543_v11, %v2554_v18 }
 0x207   : > { %v3905_v2 = vmul.f32 %v3888_v35, %v929_v56  ;;  %v892_v3 = vpop.f32.mrf.mxu3  ;;  %v913_v10 = vmul.f32 %v851_v5, %v3837_v52  ;;  %v2561_v5 = vand.u32 2147483647, %v2557_v40 }
 0x208   : > { %v3914_v7 = vmul.f32 %v3895_v53, %v936_v63  ;;  %v914_v12 = vmul.f32 %v892_v3, %v3847_v0  ;;  %v1222_v51 = vperm.slane %v1213_v33, 0  ;;  %v1223_v23 = vperm.slane %v1213_v33, 1 }
 0x209   : > { %v937_v21 = vadd.f32 %v913_v10, %v911_v38  ;;  %v1014_v38 = vand.u32 2147483647, %v1010_v15  ;;  %v2567_v43 = vsub.f32 1.0, %v2563_v45  ;;  %v2562_v3 = vand.u32 2147483647, %v2558_v41 }
 0x20a   : > { %v944_v28 = vadd.f32 %v914_v12, %v912_v27  ;;  %v3923_v4 = vpop.f32.mrf.mxu0  ;;  %v3925_v32 = vpop.f32.mrf.mxu1  ;;  %v2564_v27 = vand.u32 2147483647, %v2560_v26  ;;  %v1017_v12 = vsub.f32 1.0, %v1013_v39  ;;  %v1227_v36 = vsub.f32 %v3543_v11, %v1223_v23 }
 0x20b   : > { %v938_v9 = vrot.slane %v937_v21, 4  ;;  %v1018_v15 = vsub.f32 1.0, %v1014_v38  ;;  %v1228_v55 = vsub.f32 %v3541_v8, %v1222_v51  ;;  %v2565_v39 = vsub.f32 1.0, %v2561_v5 }
 0x20c   : > { %v945_v29 = vrot.slane %v944_v28, 4  ;;  %3190 = vmatmul.msk.f32.gmra.mxu2 %vm363_vm5, %v3612_v58  ;;  %3198 = vmatmul.msk.f32.gmra.mxu3 %vm363_vm5, %v3612_v58  ;;  %v2568_v1 = vsub.f32 1.0, %v2564_v27  ;;  %v2566_v38 = vsub.f32 1.0, %v2562_v3  ;;  %v1229_v40 = vsub.f32 %v3541_v8, %v1223_v23 }
 0x20d   : > { %v939_v20 = vadd.f32 %v938_v9, %v937_v21  ;;  %v2571_v21 = vmax.f32 %v2567_v43, 0.0  ;;  %v3954_v41 = vadd.f32 1.0, %v3771_v42  ;;  %v1231_v5 = vand.u32 2147483647, %v1227_v36 }
 0x20e   : > { %v946_v47 = vadd.f32 %v945_v29, %v944_v28  ;;  %3203 = vmatmul.msk.f32.gmra.mxu0 %vm363_vm5, %v3563_v34  ;;  %3211 = vmatmul.msk.f32.gmra.mxu1 %vm363_vm5, %v3563_v34  ;;  %v854_v56 = vpop.f32.mrf.mxu2  ;;  %v1226_v34 = vsub.f32 %v3543_v11, %v1222_v51  ;;  %v2572_v29 = vmax.f32 %v2568_v1, 0.0  ;;  %v2569_v51 = vmax.f32 %v2565_v39, 0.0 }
 0x20f   : > { %v895_v63 = vpop.f32.mrf.mxu3  ;;  %v940_v46 = vrot.slane %v939_v20, 2  ;;  %v915_v17 = vmul.f32 %v854_v56, %v3828_v25  ;;  %2587 = vmatpush.msra.mxu2 %v2571_v21  ;;  %v2570_v56 = vmax.f32 %v2566_v38, 0.0  ;;  %v3956_v3 = vmax.f32 %v1017_v12, 0.0 }
 0x210   : > { %v947_v10 = vrot.slane %v946_v47, 2  ;;  %v916_v18 = vmul.f32 %v895_v63, %v3845_v57  ;;  %2628 = vmatpush.msra.mxu3 %v2572_v29  ;;  %v1230_v1 = vand.u32 2147483647, %v1226_v34  ;;  %v1433_v12 = vadd.f32 %v3626_v13, %v3954_v41 }
 0x211   : > { %v941_v28 = vadd.f32 %v940_v46, %v939_v20  ;;  %v1015_v20 = vsub.f32 1.0, %v1011_v30  ;;  %v3958_v46 = vmax.f32 %v1018_v15, 0.0  ;;  %v1232_v30 = vand.u32 2147483647, %v1228_v55  ;;  %2588 = vmatpush.msra.mxu2 %v2569_v51 }
 0x212   : > { %v948_v33 = vadd.f32 %v947_v10, %v946_v47  ;;  %v1016_v47 = vsub.f32 1.0, %v1012_v6  ;;  %v1233_v10 = vand.u32 2147483647, %v1229_v40  ;;  %2629 = vmatpush.msra.mxu3 %v2570_v56  ;;  %v1234_v36 = vsub.f32 1.0, %v1230_v1 }
 0x213   : > { %v3943_v26 = vpop.f32.mrf.mxu0  ;;  %v3945_v9 = vpop.f32.mrf.mxu1  ;;  %v942_v45 = vrot.slane %v941_v28, 1  ;;  %v3972_v15 = vmax.f32 %v1015_v20, 0.0  ;;  %v1129_v34 = vmul.f32 %v3925_v32, %v3958_v46  ;;  %v1235_v55 = vsub.f32 1.0, %v1231_v5 }
 0x214   : > { %v949_v27 = vrot.slane %v948_v33, 1  ;;  %3191 = vmatmul.msk.f32.gmra.mxu2 %vm363_vm5, %v3630_v16  ;;  %3199 = vmatmul.msk.f32.gmra.mxu3 %vm363_vm5, %v3630_v16  ;;  %v1237_v40 = vsub.f32 1.0, %v1233_v10  ;;  %v1441_v20 = vperm.slane %v1433_v12, 0 }
 0x215   : > { %v943_v63 = vadd.f32 %v942_v45, %v941_v28  ;;  %v1126_v29 = vmul.f32 %v3890_v48, %v3972_v15  ;;  %v1442_v48 = vperm.slane %v1433_v12, 1  ;;  %v3996_v1 = vmax.f32 %v1235_v55, 0.0 }
 0x216   : > { %v950_v43 = vadd.f32 %v949_v27, %v948_v33  ;;  %3204 = vmatmul.msk.f32.gmra.mxu0 %vm363_vm5, %v3580_v24  ;;  %3212 = vmatmul.msk.f32.gmra.mxu1 %vm363_vm5, %v3580_v24  ;;  %v1128_v24 = vmul.f32 %v3923_v4, %v3956_v3  ;;  %v3978_v33 = vmax.f32 %v1016_v47, 0.0  ;;  %v1236_v27 = vsub.f32 1.0, %v1232_v30 }
 0x217   : > { %v857_v16 = vpop.f32.mrf.mxu2  ;;  %v898_v42 = vpop.f32.mrf.mxu3  ;;  %v3965_v23 = vmul.f32 %v3888_v35, %v943_v63  ;;  %v1445_v30 = vsub.f32 %v3543_v11, %v1441_v20 }
 0x218   : > { %v3968_v6 = vmul.f32 %v3895_v53, %v950_v43  ;;  %v917_v21 = vmul.f32 %v857_v16, %v3837_v52  ;;  %v918_v28 = vmul.f32 %v898_v42, %v3847_v0  ;;  %v1127_v4 = vmul.f32 %v3892_v49, %v3978_v33 }
 0x219   : > { %v1142_v47 = vadd.f32 %v1128_v24, %v1126_v29  ;;  %v3998_v5 = vmax.f32 %v1236_v27, 0.0  ;;  %v4002_v42 = vmax.f32 %v1237_v40, 0.0  ;;  %v1131_v27 = vmul.f32 %v3945_v9, %v3978_v33 }
 0x21a   : > { %v951_v13 = vadd.f32 %v917_v21, %v915_v17  ;;  %v958_v39 = vadd.f32 %v918_v28, %v916_v18  ;;  %v1149_v17 = vadd.f32 %v1129_v34, %v1127_v4  ;;  %v3990_v18 = vmax.f32 %v1234_v36, 0.0 }
 0x21b   : > { %v1070_v38 = vpop.f32.mrf.mxu0  ;;  %v1111_v45 = vpop.f32.mrf.mxu1  ;;  %v1143_v10 = vrot.slane %v1142_v47, 4  ;;  %v4006_v21 = vsub.f32 %v3543_v11, %v1442_v48  ;;  %v1449_v40 = vand.u32 2147483647, %v1445_v30 }
 0x21c   : > { %3192 = vmatmul.msk.f32.gmra.mxu2 %vm363_vm5, %v3646_v31  ;;  %v952_v32 = vrot.slane %v951_v13, 4  ;;  %v959_v51 = vrot.slane %v958_v39, 4  ;;  %3200 = vmatmul.msk.f32.gmra.mxu3 %vm363_vm5, %v3646_v31  ;;  %v1150_v28 = vrot.slane %v1149_v17, 4  ;;  %v1132_v34 = vmul.f32 %v1070_v38, %v3956_v3 }
 0x21d   : > { %v1133_v36 = vmul.f32 %v1111_v45, %v3958_v46  ;;  %v4022_v38 = vsub.f32 %v3541_v8, %v1442_v48  ;;  %v1450_v48 = vand.u32 2147483647, %v4006_v21 }
 0x21e   : > { %v953_v56 = vadd.f32 %v952_v32, %v951_v13  ;;  %v960_v63 = vadd.f32 %v959_v51, %v958_v39  ;;  %3205 = vmatmul.msk.f32.gmra.mxu0 %vm363_vm5, %v3595_v50  ;;  %3213 = vmatmul.msk.f32.gmra.mxu1 %vm363_vm5, %v3595_v50  ;;  %v2745_v50 = vrot.slane %v3965_v23, 7  ;;  %v1130_v39 = vmul.f32 %v3943_v26, %v3972_v15 }
 0x21f   : > { %v860_v49 = vpop.f32.mrf.mxu2  ;;  %v901_v43 = vpop.f32.mrf.mxu3  ;;  %v4019_v23 = vsub.f32 %v3541_v8, %v1441_v20  ;;  %v1151_v26 = vadd.f32 %v1150_v28, %v1149_v17  ;;  %v1163_v51 = vadd.f32 %v1133_v36, %v1131_v27  ;;  %v4044_v27 = vld [vmem:[%s3556_s20] sm:$0xff] }
 0x220   : > { %v919_v31 = vmul.f32 %v860_v49, %v3828_v25  ;;  %v920_v16 = vmul.f32 %v901_v43, %v3845_v57  ;;  %v954_v12 = vrot.slane %v953_v56, 2  ;;  %v961_v24 = vrot.slane %v960_v63, 2 }
 0x221   : > { %v2754_v25 = vrot.slane %v3968_v6, 7  ;;  %v1144_v6 = vadd.f32 %v1143_v10, %v1142_v47  ;;  %v1156_v32 = vadd.f32 %v1132_v34, %v1130_v39  ;;  %v2747_v9 = vsel %vm2746_vm4, %v2745_v50, %v3905_v2 }
 0x222   : > { %v955_v57 = vadd.f32 %v954_v12, %v953_v56  ;;  %v962_v55 = vadd.f32 %v961_v24, %v960_v63  ;;  %v1451_v2 = vand.u32 2147483647, %v4019_v23  ;;  %v1452_v43 = vand.u32 2147483647, %v4022_v38 }
 0x223   : > { %v1073_v29 = vpop.f32.mrf.mxu0  ;;  %v1114_v13 = vpop.f32.mrf.mxu1  ;;  %v1145_v30 = vrot.slane %v1144_v6, 2  ;;  %v1453_v10 = vsub.f32 1.0, %v1449_v40  ;;  %v1157_v24 = vrot.slane %v1156_v32, 4  ;;  %v1164_v28 = vrot.slane %v1163_v51, 4 }
 0x224   : > { %3193 = vmatmul.msk.f32.gmra.mxu2 %vm363_vm5, %v3664_v44  ;;  %v956_v45 = vrot.slane %v955_v57, 1  ;;  %v963_v4 = vrot.slane %v962_v55, 1  ;;  %3201 = vmatmul.msk.f32.gmra.mxu3 %vm363_vm5, %v3664_v44  ;;  %v2755_v44 = vsel %vm2746_vm4, %v2754_v25, %v3914_v7  ;;  %v1152_v7 = vrot.slane %v1151_v26, 2 }
 0x225   : > { %v1134_v25 = vmul.f32 %v1073_v29, %v3972_v15  ;;  %v1158_v38 = vadd.f32 %v1157_v24, %v1156_v32  ;;  %v1165_v40 = vadd.f32 %v1164_v28, %v1163_v51  ;;  %v4065_v32 = vsub.f32 1.0, %v1452_v43 }
 0x226   : > { %v957_v56 = vadd.f32 %v956_v45, %v955_v57  ;;  %v964_v63 = vadd.f32 %v963_v4, %v962_v55  ;;  %3206 = vmatmul.msk.f32.gmra.mxu0 %vm363_vm5, %v3612_v58  ;;  %3214 = vmatmul.msk.f32.gmra.mxu1 %vm363_vm5, %v3612_v58  ;;  %v1135_v57 = vmul.f32 %v1114_v13, %v3978_v33 }
 0x227   : > { %v863_v20 = vpop.f32.mrf.mxu2  ;;  %v904_v47 = vpop.f32.mrf.mxu3  ;;  %v1146_v13 = vadd.f32 %v1145_v30, %v1144_v6  ;;  %v1455_v6 = vsub.f32 1.0, %v1451_v2  ;;  %v1153_v30 = vadd.f32 %v1152_v7, %v1151_v26  ;;  %v4083_v7 = vperm.slane %v3877_v37, 3 }
 0x228   : > { %v921_v17 = vmul.f32 %v863_v20, %v3837_v52  ;;  %v922_v49 = vmul.f32 %v904_v47, %v3847_v0  ;;  %v985_v12 = vmul.f32 %v3888_v35, %v957_v56  ;;  %v986_v58 = vmul.f32 %v3895_v53, %v964_v63  ;;  %v4059_v20 = vld [vmem:[%s3556_s20 + $0x28] sm:$0xff] }
 0x229   : > { %v1147_v24 = vrot.slane %v1146_v13, 1  ;;  %v4076_v26 = vmax.f32 %v1455_v6, 0.0 }
 0x22a   : > { %v965_v21 = vadd.f32 %v921_v17, %v919_v31  ;;  %v972_v50 = vadd.f32 %v922_v49, %v920_v16  ;;  %v2748_v0 = vrot.slane %v985_v12, 6  ;;  %v2756_v36 = vrot.slane %v986_v58, 6 }
 0x22b   : > { %v1076_v52 = vpop.f32.mrf.mxu0  ;;  %v1117_v34 = vpop.f32.mrf.mxu1  ;;  %v1454_v17 = vsub.f32 1.0, %v1450_v48  ;;  %v4067_v58 = vmax.f32 %v1453_v10, 0.0  ;;  %v4080_v10 = vadd.f32 %v3701_v59, %v3954_v41 }
 0x22c   : > { %v966_v55 = vrot.slane %v965_v21, 4  ;;  %v973_v39 = vrot.slane %v972_v50, 4  ;;  %3218 = vmatmul.msk.f32.vlgmr.msrb.gmra.mxu2 %vm363_vm5, %v4044_v27  ;;  %v1136_v31 = vmul.f32 %v1076_v52, %v3956_v3  ;;  %v1137_v16 = vmul.f32 %v1117_v34, %v3958_v46  ;;  %3226 = vmatmul.msk.f32.vlgmr.msrb.gmra.mxu3 %vm363_vm5, %v4044_v27 }
 0x22d   : > { %v4053_v23 = vsel %vm2749_vm6, %v2748_v0, %v2747_v9  ;;  %v4056_v29 = vsel %vm2749_vm6, %v2756_v36, %v2755_v44  ;;  %v1166_v52 = vrot.slane %v1165_v40, 2 }
 0x22e   : > { %v967_v45 = vadd.f32 %v966_v55, %v965_v21  ;;  %v974_v4 = vadd.f32 %v973_v39, %v972_v50  ;;  %v1170_v56 = vadd.f32 %v1136_v31, %v1134_v25  ;;  %v1177_v63 = vadd.f32 %v1137_v16, %v1135_v57  ;;  %3207 = vmatmul.msk.f32.gmra.mxu0 %vm363_vm5, %v4059_v20  ;;  %v4072_v57 = vld [vmem:[%s3556_s20 + $0x8] sm:$0xff] }
 0x22f   : > { %3215 = vmatmul.msk.f32.gmra.mxu1 %vm363_vm5, %v4059_v20  ;;  %v1280_v9 = vpop.f32.mrf.mxu2  ;;  %v1321_v47 = vpop.f32.mrf.mxu3  ;;  %v1159_v21 = vrot.slane %v1158_v38, 2  ;;  %v4069_v25 = vmax.f32 %v1454_v17, 0.0  ;;  %v1154_v55 = vrot.slane %v1153_v30, 1  ;;  %v1148_v16 = vadd.f32 %v1147_v24, %v1146_v13 }
 0x230   : > { %v968_v44 = vrot.slane %v967_v45, 2  ;;  %v975_v49 = vrot.slane %v974_v4, 2  ;;  %v1171_v51 = vrot.slane %v1170_v56, 4  ;;  %v1178_v12 = vrot.slane %v1177_v63, 4 }
 0x231   : > { %v1167_v17 = vadd.f32 %v1166_v52, %v1165_v40  ;;  %v1345_v59 = vmul.f32 %v1280_v9, %v3990_v18 }
 0x232   : > { %v969_v50 = vadd.f32 %v968_v44, %v967_v45  ;;  %v976_v28 = vadd.f32 %v975_v49, %v974_v4  ;;  %v1172_v34 = vadd.f32 %v1171_v51, %v1170_v56  ;;  %v1179_v0 = vadd.f32 %v1178_v12, %v1177_v63  ;;  %v4093_v49 = vld [vmem:[%s3556_s20 + $0x30] sm:$0xff] }
 0x233   : > { %v1079_v36 = vpop.f32.mrf.mxu0  ;;  %v1120_v48 = vpop.f32.mrf.mxu1  ;;  %v1160_v45 = vadd.f32 %v1159_v21, %v1158_v38  ;;  %v4088_v63 = vperm.slane %v3884_v62, 3  ;;  %v1346_v44 = vmul.f32 %v1321_v47, %v3996_v1  ;;  %v1155_v12 = vadd.f32 %v1154_v55, %v1153_v30 }
 0x234   : > { %v970_v2 = vrot.slane %v969_v50, 1  ;;  %v977_v43 = vrot.slane %v976_v28, 1  ;;  %3219 = vmatmul.msk.f32.gmra.mxu2 %vm363_vm5, %v4072_v57  ;;  %v1173_v39 = vrot.slane %v1172_v34, 2  ;;  %v1180_v31 = vrot.slane %v1179_v0, 2  ;;  %3227 = vmatmul.msk.f32.gmra.mxu3 %vm363_vm5, %v4072_v57 }
 0x235   : > { %v1138_v14 = vmul.f32 %v1079_v36, %v3972_v15 }
 0x236   : > { %v971_v4 = vadd.f32 %v970_v2, %v969_v50  ;;  %v978_v56 = vadd.f32 %v977_v43, %v976_v28  ;;  %3208 = vmatmul.msk.f32.gmra.mxu0 %vm363_vm5, %v4093_v49  ;;  %v1174_v47 = vadd.f32 %v1173_v39, %v1172_v34  ;;  %v1181_v24 = vadd.f32 %v1180_v31, %v1179_v0  ;;  %v4108_v34 = vld [vmem:[%s3556_s20 + $0x10] sm:$0xff]  ;;  %v4123_v31 = vld [vmem:[%s3556_s20 + $0x38] sm:$0xff] }
 0x237   : > { %3216 = vmatmul.msk.f32.gmra.mxu1 %vm363_vm5, %v4093_v49  ;;  %v1283_v13 = vpop.f32.mrf.mxu2  ;;  %v1324_v38 = vpop.f32.mrf.mxu3  ;;  %v1161_v2 = vrot.slane %v1160_v45, 1  ;;  %v1168_v43 = vrot.slane %v1167_v17, 1 }
 0x238   : > { %v1347_v6 = vmul.f32 %v1283_v13, %v3998_v5  ;;  %v1348_v51 = vmul.f32 %v1324_v38, %v4002_v42  ;;  %v987_v40 = vmul.f32 %v3888_v35, %v971_v4  ;;  %v988_v9 = vmul.f32 %v3895_v53, %v978_v56 }
 0x239   : > { %v1139_v13 = vmul.f32 %v1120_v48, %v3978_v33  ;;  %v1175_v0 = vrot.slane %v1174_v47, 1  ;;  %v1182_v55 = vrot.slane %v1181_v24, 1  ;;  %v1162_v48 = vadd.f32 %v1161_v2, %v1160_v45 }
 0x23a   : > { %v1361_v21 = vadd.f32 %v1347_v6, %v1345_v59  ;;  %v1368_v50 = vadd.f32 %v1348_v51, %v1346_v44  ;;  %v2751_v28 = vrot.slane %v987_v40, 5  ;;  %v2758_v52 = vrot.slane %v988_v9, 5 }
 0x23b   : > { %v1082_v38 = vpop.f32.mrf.mxu0  ;;  %v1123_v19 = vpop.f32.mrf.mxu1  ;;  %v1169_v39 = vadd.f32 %v1168_v43, %v1167_v17  ;;  %v4130_v59 = vmax.f32 %v4065_v32, 0.0  ;;  %v4134_v17 = vmul.f32 %v4083_v7, %v1148_v16  ;;  %v4137_v51 = vmul.f32 %v4088_v63, %v1155_v12 }
 0x23c   : > { %v1362_v35 = vrot.slane %v1361_v21, 4  ;;  %v1369_v4 = vrot.slane %v1368_v50, 4  ;;  %v1140_v53 = vmul.f32 %v1082_v38, %v3956_v3  ;;  %v1141_v30 = vmul.f32 %v1123_v19, %v3958_v46  ;;  %3220 = vmatmul.msk.f32.gmra.mxu2 %vm363_vm5, %v4108_v34  ;;  %3228 = vmatmul.msk.f32.gmra.mxu3 %vm363_vm5, %v4108_v34 }
 0x23d   : > { %v4116_v15 = vsel %vm2752_vm7, %v2751_v28, %v4053_v23  ;;  %v4120_v33 = vsel %vm2752_vm7, %v2758_v52, %v4056_v29  ;;  %v1176_v40 = vadd.f32 %v1175_v0, %v1174_v47  ;;  %v1183_v9 = vadd.f32 %v1182_v55, %v1181_v24  ;;  %v4180_v29 = vld [vmem:[%s3556_s20 + $0x20] sm:$0xff] }
 0x23e   : > { %v1363_v3 = vadd.f32 %v1362_v35, %v1361_v21  ;;  %v1370_v19 = vadd.f32 %v1369_v4, %v1368_v50  ;;  %v1184_v46 = vadd.f32 %v1140_v53, %v1138_v14  ;;  %v1191_v36 = vadd.f32 %v1141_v30, %v1139_v13  ;;  %3209 = vmatmul.msk.f32.gmra.mxu0 %vm363_vm5, %v4123_v31  ;;  %v4150_v4 = vld [vmem:[%s3556_s20 + $0x18] sm:$0xff] }
 0x23f   : > { %3217 = vmatmul.msk.f32.gmra.mxu1 %vm363_vm5, %v4123_v31  ;;  %v1286_v23 = vpop.f32.mrf.mxu2  ;;  %v1327_v56 = vpop.f32.mrf.mxu3  ;;  %v1202_v52 = vmul.f32 %v4083_v7, %v1162_v48  ;;  %v4141_v2 = vmul.f32 %v4088_v63, %v1169_v39  ;;  %v4144_v43 = vperm.slane %v3877_v37, 4  ;;  %v4147_v16 = vperm.slane %v3884_v62, 4 }
 0x240   : > { %v1364_v44 = vrot.slane %v1363_v3, 2  ;;  %v1371_v14 = vrot.slane %v1370_v19, 2  ;;  %v1185_v6 = vrot.slane %v1184_v46, 4  ;;  %v1192_v45 = vrot.slane %v1191_v36, 4 }
 0x241   : > { %v2770_v53 = vrot.slane %v4134_v17, 4  ;;  %v2780_v30 = vrot.slane %v4137_v51, 4  ;;  %v1204_v0 = vmul.f32 %v4083_v7, %v1176_v40  ;;  %v1205_v55 = vmul.f32 %v4088_v63, %v1183_v9 }
 0x242   : > { %v1365_v21 = vadd.f32 %v1364_v44, %v1363_v3  ;;  %v1372_v50 = vadd.f32 %v1371_v14, %v1370_v19  ;;  %v1186_v28 = vadd.f32 %v1185_v6, %v1184_v46  ;;  %v1193_v32 = vadd.f32 %v1192_v45, %v1191_v36 }
 0x243   : > { %v1499_v12 = vpop.f32.mrf.mxu0  ;;  %v1540_v13 = vpop.f32.mrf.mxu1  ;;  %v2771_v48 = vrot.slane %v1202_v52, 3  ;;  %v2781_v39 = vrot.slane %v4141_v2, 3  ;;  %v1349_v40 = vmul.f32 %v1286_v23, %v3990_v18  ;;  %v1350_v9 = vmul.f32 %v1327_v56, %v3996_v1 }
 0x244   : > { %v1366_v47 = vrot.slane %v1365_v21, 1  ;;  %v1373_v38 = vrot.slane %v1372_v50, 1  ;;  %v1187_v24 = vrot.slane %v1186_v28, 2  ;;  %v1194_v35 = vrot.slane %v1193_v32, 2  ;;  %3221 = vmatmul.msk.f32.gmra.mxu2 %vm363_vm5, %v4150_v4  ;;  %3229 = vmatmul.msk.f32.gmra.mxu3 %vm363_vm5, %v4150_v4 }
 0x245   : > { %v2774_v52 = vrot.slane %v1204_v0, 2  ;;  %v2783_v2 = vrot.slane %v1205_v55, 2 }
 0x246   : > { %v1367_v3 = vadd.f32 %v1366_v47, %v1365_v21  ;;  %v1374_v19 = vadd.f32 %v1373_v38, %v1372_v50  ;;  %v1188_v46 = vadd.f32 %v1187_v24, %v1186_v28  ;;  %v1195_v36 = vadd.f32 %v1194_v35, %v1193_v32  ;;  %3234 = vmatmul.msk.f32.vlgmr.msrb.gmra.mxu0 %vm363_vm5, %v4044_v27 }
 0x247   : > { %3242 = vmatmul.msk.f32.vlgmr.msrb.gmra.mxu1 %vm363_vm5, %v4044_v27  ;;  %v1289_v44 = vpop.f32.mrf.mxu2  ;;  %v1330_v14 = vpop.f32.mrf.mxu3  ;;  %v1564_v47 = vmul.f32 %v1499_v12, %v4067_v58  ;;  %v1565_v38 = vmul.f32 %v1540_v13, %v4069_v25  ;;  %v2773_v13 = vsel %vm2772_vm8, %v2771_v48, %v2770_v53 }
 0x248   : > { %v4166_v6 = vmul.f32 %v4144_v43, %v1367_v3  ;;  %v4169_v45 = vmul.f32 %v4147_v16, %v1374_v19  ;;  %v1189_v17 = vrot.slane %v1188_v46, 1  ;;  %v1196_v51 = vrot.slane %v1195_v36, 1 }
 0x249   : > { %v1351_v21 = vmul.f32 %v1289_v44, %v3998_v5  ;;  %v1352_v50 = vmul.f32 %v1330_v14, %v4002_v42  ;;  %v2776_v48 = vsel %vm2775_vm10, %v2774_v52, %v2773_v13 }
 0x24a   : > { %v1190_v28 = vadd.f32 %v1189_v17, %v1188_v46  ;;  %v1197_v32 = vadd.f32 %v1196_v51, %v1195_v36 }
 0x24b   : > { %v1375_v24 = vadd.f32 %v1351_v21, %v1349_v40  ;;  %v1382_v35 = vadd.f32 %v1352_v50, %v1350_v9  ;;  %v1502_v3 = vpop.f32.mrf.mxu0  ;;  %v1543_v19 = vpop.f32.mrf.mxu1  ;;  %v1660_v9 = vperm.slane %v4080_v10, 1  ;;  %v2782_v21 = vsel %vm2772_vm8, %v2781_v39, %v2780_v30 }
 0x24c   : > { %v1566_v23 = vmul.f32 %v1502_v3, %v4076_v26  ;;  %v1567_v56 = vmul.f32 %v1543_v19, %v4130_v59  ;;  %3222 = vmatmul.msk.f32.gmra.mxu2 %vm363_vm5, %v4180_v29  ;;  %v1206_v0 = vmul.f32 %v4083_v7, %v1190_v28  ;;  %v1207_v55 = vmul.f32 %v4088_v63, %v1197_v32 }
 0x24d   : > { %v1376_v12 = vrot.slane %v1375_v24, 4  ;;  %v1383_v46 = vrot.slane %v1382_v35, 4  ;;  %3230 = vmatmul.msk.f32.gmra.mxu3 %vm363_vm5, %v4180_v29  ;;  %v2784_v28 = vsel %vm2775_vm10, %v2783_v2, %v2782_v21 }
 0x24e   : > { %v1580_v36 = vadd.f32 %v1566_v23, %v1564_v47  ;;  %v1587_v44 = vadd.f32 %v1567_v56, %v1565_v38  ;;  %v2777_v14 = vrot.slane %v1206_v0, 1  ;;  %v2785_v17 = vrot.slane %v1207_v55, 1  ;;  %3235 = vmatmul.msk.f32.gmra.mxu0 %vm363_vm5, %v4072_v57 }
 0x24f   : > { %v1377_v51 = vadd.f32 %v1376_v12, %v1375_v24  ;;  %v1384_v40 = vadd.f32 %v1383_v46, %v1382_v35  ;;  %3243 = vmatmul.msk.f32.gmra.mxu1 %vm363_vm5, %v4072_v57  ;;  %v1292_v7 = vpop.f32.mrf.mxu2  ;;  %v1333_v63 = vpop.f32.mrf.mxu3  ;;  %v4802_v56 = vperm.slane %v4080_v10, 0 }
 0x250   : > { %v1581_v50 = vrot.slane %v1580_v36, 4  ;;  %v1588_v53 = vrot.slane %v1587_v44, 4  ;;  %v2779_v38 = vsel %vm2778_vm11, %v2777_v14, %v2776_v48  ;;  %v2786_v24 = vsel %vm2778_vm11, %v2785_v17, %v2784_v28 }
 0x251   : > { %v1378_v32 = vrot.slane %v1377_v51, 2  ;;  %v1385_v47 = vrot.slane %v1384_v40, 2  ;;  %v4201_v19 = vsel %vm425_vm0, %v4116_v15, %v2779_v38  ;;  %v4205_v30 = vsel %vm425_vm0, %v4120_v33, %v2786_v24 }
 0x252   : > { %v1582_v35 = vadd.f32 %v1581_v50, %v1580_v36  ;;  %v1589_v3 = vadd.f32 %v1588_v53, %v1587_v44  ;;  %v1663_v0 = vsub.f32 %v3543_v11, %v4802_v56  ;;  %v1664_v33 = vsub.f32 %v3543_v11, %v1660_v9 }
 0x253   : > { %v1379_v39 = vadd.f32 %v1378_v32, %v1377_v51  ;;  %v1386_v52 = vadd.f32 %v1385_v47, %v1384_v40  ;;  %v1505_v23 = vpop.f32.mrf.mxu0  ;;  %v1546_v2 = vpop.f32.mrf.mxu1  ;;  %v1353_v44 = vmul.f32 %v1292_v7, %v3990_v18  ;;  %v4803_v14 = vmov %v4802_v56 }
 0x254   : > { %v1583_v55 = vrot.slane %v1582_v35, 2  ;;  %v1590_v12 = vrot.slane %v1589_v3, 2  ;;  %3223 = vmatmul.msk.f32.gmra.mxu2 %vm363_vm5, %v4059_v20  ;;  %v4221_v17 = vsub.f32 %v3541_v8, %v4803_v14  ;;  %v1354_v21 = vmul.f32 %v1333_v63, %v3996_v1 }
 0x255   : > { %v1380_v46 = vrot.slane %v1379_v39, 1  ;;  %v1387_v15 = vrot.slane %v1386_v52, 1  ;;  %3231 = vmatmul.msk.f32.gmra.mxu3 %vm363_vm5, %v4059_v20  ;;  %v1667_v48 = vand.u32 2147483647, %v1663_v0  ;;  %v4233_v63 = vperm.slane %v3877_v37, 5 }
 0x256   : > { %v1584_v13 = vadd.f32 %v1583_v55, %v1582_v35  ;;  %v1591_v36 = vadd.f32 %v1590_v12, %v1589_v3  ;;  %3236 = vmatmul.msk.f32.gmra.mxu0 %vm363_vm5, %v4108_v34  ;;  %v4236_v35 = vperm.slane %v3884_v62, 5  ;;  %v1568_v12 = vmul.f32 %v1505_v23, %v4067_v58 }
 0x257   : > { %v1381_v51 = vadd.f32 %v1380_v46, %v1379_v39  ;;  %v1388_v40 = vadd.f32 %v1387_v15, %v1386_v52  ;;  %3244 = vmatmul.msk.f32.gmra.mxu1 %vm363_vm5, %v4108_v34  ;;  %v1295_v50 = vpop.f32.mrf.mxu2  ;;  %v1336_v53 = vpop.f32.mrf.mxu3  ;;  %v1569_v46 = vmul.f32 %v1546_v2, %v4069_v25 }
 0x258   : > { %v1585_v28 = vrot.slane %v1584_v13, 1  ;;  %v1592_v7 = vrot.slane %v1591_v36, 1  ;;  %v1355_v32 = vmul.f32 %v1295_v50, %v3998_v5  ;;  %v1356_v47 = vmul.f32 %v1336_v53, %v4002_v42 }
 0x259   : > { %v1421_v38 = vmul.f32 %v4144_v43, %v1381_v51  ;;  %v1422_v24 = vmul.f32 %v4147_v16, %v1388_v40 }
 0x25a   : > { %v1586_v3 = vadd.f32 %v1585_v28, %v1584_v13  ;;  %v1593_v39 = vadd.f32 %v1592_v7, %v1591_v36  ;;  %v1389_v52 = vadd.f32 %v1355_v32, %v1353_v44  ;;  %v1396_v56 = vadd.f32 %v1356_v47, %v1354_v21 }
 0x25b   : > { %v2797_v0 = vrot.slane %v1421_v38, 7  ;;  %v2803_v55 = vrot.slane %v1422_v24, 7  ;;  %v1508_v15 = vpop.f32.mrf.mxu0  ;;  %v1549_v14 = vpop.f32.mrf.mxu1  ;;  %v1668_v28 = vand.u32 2147483647, %v1664_v33 }
 0x25c   : > { %v4241_v51 = vmul.f32 %v4233_v63, %v1586_v3  ;;  %v4244_v40 = vmul.f32 %v4236_v35, %v1593_v39  ;;  %v1390_v50 = vrot.slane %v1389_v52, 4  ;;  %v1397_v53 = vrot.slane %v1396_v56, 4  ;;  %3224 = vmatmul.msk.f32.gmra.mxu2 %vm363_vm5, %v4093_v49 }
 0x25d   : > { %v1570_v13 = vmul.f32 %v1508_v15, %v4076_v26  ;;  %v1571_v36 = vmul.f32 %v1549_v14, %v4130_v59  ;;  %3232 = vmatmul.msk.f32.gmra.mxu3 %vm363_vm5, %v4093_v49  ;;  %v4254_v23 = vsel %vm2746_vm4, %v2797_v0, %v4166_v6  ;;  %v4258_v2 = vsel %vm2746_vm4, %v2803_v55, %v4169_v45 }
 0x25e   : > { %v1391_v44 = vadd.f32 %v1390_v50, %v1389_v52  ;;  %v1398_v21 = vadd.f32 %v1397_v53, %v1396_v56  ;;  %3237 = vmatmul.msk.f32.gmra.mxu0 %vm363_vm5, %v4150_v4  ;;  %v1671_v0 = vsub.f32 1.0, %v1667_v48  ;;  %v1669_v45 = vand.u32 2147483647, %v4221_v17 }
 0x25f   : > { %v1594_v7 = vadd.f32 %v1570_v13, %v1568_v12  ;;  %v1601_v32 = vadd.f32 %v1571_v36, %v1569_v46  ;;  %3245 = vmatmul.msk.f32.gmra.mxu1 %vm363_vm5, %v4150_v4  ;;  %v1298_v47 = vpop.f32.mrf.mxu2  ;;  %v1339_v38 = vpop.f32.mrf.mxu3  ;;  %v1672_v33 = vsub.f32 1.0, %v1668_v28  ;;  %v4268_v46 = vsub.f32 %v3541_v8, %v1660_v9 }
 0x260   : > { %v1392_v24 = vrot.slane %v1391_v44, 2  ;;  %v1399_v6 = vrot.slane %v1398_v21, 2  ;;  %v4274_v17 = vadd.f32 %v3676_v54, %v3954_v41  ;;  %v4278_v10 = vmax.f32 %v1671_v0, 0.0 }
 0x261   : > { %v1595_v3 = vrot.slane %v1594_v7, 4  ;;  %v1602_v39 = vrot.slane %v1601_v32, 4  ;;  %v4280_v9 = vsub.f32 1.0, %v1669_v45  ;;  %v4283_v28 = vmax.f32 %v1672_v33, 0.0 }
 0x262   : > { %v1393_v52 = vadd.f32 %v1392_v24, %v1391_v44  ;;  %v1400_v56 = vadd.f32 %v1399_v6, %v1398_v21  ;;  %v1357_v21 = vmul.f32 %v1298_v47, %v3990_v18  ;;  %v1358_v54 = vmul.f32 %v1339_v38, %v3996_v1 }
 0x263   : > { %v1596_v55 = vadd.f32 %v1595_v3, %v1594_v7  ;;  %v1603_v12 = vadd.f32 %v1602_v39, %v1601_v32  ;;  %v1511_v50 = vpop.f32.mrf.mxu0  ;;  %v1552_v53 = vpop.f32.mrf.mxu1  ;;  %v1670_v6 = vand.u32 2147483647, %v4268_v46  ;;  %v1877_v38 = vperm.slane %v4274_v17, 0 }
 0x264   : > { %v1394_v15 = vrot.slane %v1393_v52, 1  ;;  %v1401_v14 = vrot.slane %v1400_v56, 1  ;;  %3225 = vmatmul.msk.f32.gmra.mxu2 %vm363_vm5, %v4123_v31  ;;  %v1878_v45 = vperm.slane %v4274_v17, 1 }
 0x265   : > { %v1597_v48 = vrot.slane %v1596_v55, 2  ;;  %v1604_v13 = vrot.slane %v1603_v12, 2  ;;  %3233 = vmatmul.msk.f32.gmra.mxu3 %vm363_vm5, %v4123_v31 }
 0x266   : > { %v1395_v36 = vadd.f32 %v1394_v15, %v1393_v52  ;;  %v1402_v44 = vadd.f32 %v1401_v14, %v1400_v56  ;;  %3238 = vmatmul.msk.f32.gmra.mxu0 %vm363_vm5, %v4180_v29 }
 0x267   : > { %v1598_v7 = vadd.f32 %v1597_v48, %v1596_v55  ;;  %v1605_v32 = vadd.f32 %v1604_v13, %v1603_v12  ;;  %3246 = vmatmul.msk.f32.gmra.mxu1 %vm363_vm5, %v4180_v29  ;;  %v1301_v41 = vpop.f32.mrf.mxu2  ;;  %v1342_v24 = vpop.f32.mrf.mxu3 }
 0x268   : > { %v1359_v3 = vmul.f32 %v1301_v41, %v3998_v5  ;;  %v1360_v18 = vmul.f32 %v1342_v24, %v4002_v42  ;;  %v1423_v47 = vmul.f32 %v4144_v43, %v1395_v36  ;;  %v1424_v39 = vmul.f32 %v4147_v16, %v1402_v44 }
 0x269   : > { %v1599_v0 = vrot.slane %v1598_v7, 1  ;;  %v1606_v1 = vrot.slane %v1605_v32, 1  ;;  %v1572_v5 = vmul.f32 %v1511_v50, %v4067_v58  ;;  %v1573_v42 = vmul.f32 %v1552_v53, %v4069_v25 }
 0x26a   : > { %v1403_v52 = vadd.f32 %v1359_v3, %v1357_v21  ;;  %v1410_v56 = vadd.f32 %v1360_v18, %v1358_v54  ;;  %v2799_v33 = vrot.slane %v1423_v47, 6  ;;  %v2805_v55 = vrot.slane %v1424_v39, 6 }
 0x26b   : > { %v1600_v12 = vadd.f32 %v1599_v0, %v1598_v7  ;;  %v1607_v46 = vadd.f32 %v1606_v1, %v1605_v32  ;;  %v1514_v48 = vpop.f32.mrf.mxu0  ;;  %v1555_v13 = vpop.f32.mrf.mxu1  ;;  %v2819_v32 = vrot.slane %v4241_v51, 4 }
 0x26c   : > { %v1404_v15 = vrot.slane %v1403_v52, 4  ;;  %v1411_v14 = vrot.slane %v1410_v56, 4  ;;  %3250 = vmatmul.msk.f32.vlgmr.msra.gmra.mxu2 %vm363_vm5, %v4044_v27  ;;  %v4303_v36 = vsel %vm2749_vm6, %v2799_v33, %v4254_v23  ;;  %v4307_v44 = vsel %vm2749_vm6, %v2805_v55, %v4258_v2 }
 0x26d   : > { %v1640_v21 = vmul.f32 %v4233_v63, %v1600_v12  ;;  %v1641_v50 = vmul.f32 %v4236_v35, %v1607_v46  ;;  %v1574_v53 = vmul.f32 %v1514_v48, %v4076_v26  ;;  %v1575_v7 = vmul.f32 %v1555_v13, %v4130_v59  ;;  %3258 = vmatmul.msk.f32.vlgmr.msra.gmra.mxu3 %vm363_vm5, %v4044_v27 }
 0x26e   : > { %v2826_v23 = vrot.slane %v4244_v40, 4  ;;  %v1405_v54 = vadd.f32 %v1404_v15, %v1403_v52  ;;  %v1412_v41 = vadd.f32 %v1411_v14, %v1410_v56  ;;  %3239 = vmatmul.msk.f32.gmra.mxu0 %vm363_vm5, %v4059_v20  ;;  %v1674_v46 = vsub.f32 1.0, %v1670_v6 }
 0x26f   : > { %v2820_v24 = vrot.slane %v1640_v21, 3  ;;  %v2827_v2 = vrot.slane %v1641_v50, 3  ;;  %v1608_v3 = vadd.f32 %v1574_v53, %v1572_v5  ;;  %v1615_v18 = vadd.f32 %v1575_v7, %v1573_v42  ;;  %3247 = vmatmul.msk.f32.gmra.mxu1 %vm363_vm5, %v4059_v20  ;;  %v1717_v47 = vpop.f32.mrf.mxu2  ;;  %v1758_v39 = vpop.f32.mrf.mxu3 }
 0x270   : > { %v1406_v0 = vrot.slane %v1405_v54, 2  ;;  %v1413_v27 = vrot.slane %v1412_v41, 2  ;;  %v1782_v51 = vmul.f32 %v1717_v47, %v4278_v10  ;;  %v1783_v40 = vmul.f32 %v1758_v39, %v4283_v28 }
 0x271   : > { %v1609_v1 = vrot.slane %v1608_v3, 4  ;;  %v1616_v52 = vrot.slane %v1615_v18, 4  ;;  %v4324_v56 = vsel %vm2772_vm8, %v2820_v24, %v2819_v32  ;;  %v4327_v33 = vsel %vm2772_vm8, %v2827_v2, %v2826_v23 }
 0x272   : > { %v1407_v55 = vadd.f32 %v1406_v0, %v1405_v54  ;;  %v1414_v12 = vadd.f32 %v1413_v27, %v1412_v41  ;;  %v4332_v21 = vmax.f32 %v4280_v9, 0.0  ;;  %v1881_v7 = vsub.f32 %v3543_v11, %v1877_v38 }
 0x273   : > { %v1610_v5 = vadd.f32 %v1609_v1, %v1608_v3  ;;  %v1617_v42 = vadd.f32 %v1616_v52, %v1615_v18  ;;  %v1517_v48 = vpop.f32.mrf.mxu0  ;;  %v1558_v13 = vpop.f32.mrf.mxu1  ;;  %v1882_v6 = vsub.f32 %v3543_v11, %v1878_v45  ;;  %v4340_v54 = vmax.f32 %v1674_v46, 0.0 }
 0x274   : > { %v1408_v15 = vrot.slane %v1407_v55, 1  ;;  %v1415_v14 = vrot.slane %v1414_v12, 1  ;;  %3251 = vmatmul.msk.f32.gmra.mxu2 %vm363_vm5, %v4072_v57  ;;  %v4343_v41 = vsub.f32 %v3541_v8, %v1877_v38  ;;  %v4352_v3 = vsub.f32 %v3541_v8, %v1878_v45 }
 0x275   : > { %v1611_v50 = vrot.slane %v1610_v5, 2  ;;  %v1618_v53 = vrot.slane %v1617_v42, 2  ;;  %3259 = vmatmul.msk.f32.gmra.mxu3 %vm363_vm5, %v4072_v57  ;;  %v1885_v1 = vand.u32 2147483647, %v1881_v7  ;;  %v1886_v52 = vand.u32 2147483647, %v1882_v6 }
 0x276   : > { %v1409_v32 = vadd.f32 %v1408_v15, %v1407_v55  ;;  %v1416_v23 = vadd.f32 %v1415_v14, %v1414_v12  ;;  %3240 = vmatmul.msk.f32.gmra.mxu0 %vm363_vm5, %v4093_v49  ;;  %v1576_v45 = vmul.f32 %v1517_v48, %v4067_v58  ;;  %v1577_v15 = vmul.f32 %v1558_v13, %v4069_v25 }
 0x277   : > { %v1612_v9 = vadd.f32 %v1611_v50, %v1610_v5  ;;  %v1619_v24 = vadd.f32 %v1618_v53, %v1617_v42  ;;  %3248 = vmatmul.msk.f32.gmra.mxu1 %vm363_vm5, %v4093_v49  ;;  %v1720_v57 = vpop.f32.mrf.mxu2  ;;  %v1761_v2 = vpop.f32.mrf.mxu3  ;;  %v1889_v6 = vsub.f32 1.0, %v1885_v1  ;;  %v1887_v1 = vand.u32 2147483647, %v4343_v41 }
 0x278   : > { %v1784_v18 = vmul.f32 %v1720_v57, %v4332_v21  ;;  %v1785_v38 = vmul.f32 %v1761_v2, %v4340_v54  ;;  %v1425_v47 = vmul.f32 %v4144_v43, %v1409_v32  ;;  %v1426_v39 = vmul.f32 %v4147_v16, %v1416_v23 }
 0x279   : > { %v1613_v0 = vrot.slane %v1612_v9, 1  ;;  %v1620_v27 = vrot.slane %v1619_v24, 1 }
 0x27a   : > { %v1798_v55 = vadd.f32 %v1784_v18, %v1782_v51  ;;  %v1805_v12 = vadd.f32 %v1785_v38, %v1783_v40  ;;  %v2801_v46 = vrot.slane %v1425_v47, 5  ;;  %v2807_v5 = vrot.slane %v1426_v39, 5 }
 0x27b   : > { %v1614_v17 = vadd.f32 %v1613_v0, %v1612_v9  ;;  %v1621_v42 = vadd.f32 %v1620_v27, %v1619_v24  ;;  %v1520_v53 = vpop.f32.mrf.mxu0  ;;  %v1561_v43 = vpop.f32.mrf.mxu1 }
 0x27c   : > { %v1799_v14 = vrot.slane %v1798_v55, 4  ;;  %v1806_v50 = vrot.slane %v1805_v12, 4  ;;  %3252 = vmatmul.msk.f32.gmra.mxu2 %vm363_vm5, %v4108_v34  ;;  %v4364_v16 = vsel %vm2752_vm7, %v2801_v46, %v4303_v36  ;;  %v4368_v51 = vsel %vm2752_vm7, %v2807_v5, %v4307_v44 }
 0x27d   : > { %v1642_v40 = vmul.f32 %v4233_v63, %v1614_v17  ;;  %v1643_v58 = vmul.f32 %v4236_v35, %v1621_v42  ;;  %v1578_v25 = vmul.f32 %v1520_v53, %v4076_v26  ;;  %v1579_v48 = vmul.f32 %v1561_v43, %v4130_v59  ;;  %3260 = vmatmul.msk.f32.gmra.mxu3 %vm363_vm5, %v4108_v34 }
 0x27e   : > { %v1800_v13 = vadd.f32 %v1799_v14, %v1798_v55  ;;  %v1807_v7 = vadd.f32 %v1806_v50, %v1805_v12  ;;  %v1890_v36 = vsub.f32 1.0, %v1886_v52  ;;  %3241 = vmatmul.msk.f32.gmra.mxu0 %vm363_vm5, %v4123_v31  ;;  %v1888_v52 = vand.u32 2147483647, %v4352_v3 }
 0x27f   : > { %v1622_v32 = vadd.f32 %v1578_v25, %v1576_v45  ;;  %v1629_v23 = vadd.f32 %v1579_v48, %v1577_v15  ;;  %3249 = vmatmul.msk.f32.gmra.mxu1 %vm363_vm5, %v4123_v31  ;;  %v1723_v44 = vpop.f32.mrf.mxu2  ;;  %v1764_v9 = vpop.f32.mrf.mxu3  ;;  %v2822_v26 = vrot.slane %v1642_v40, 2  ;;  %v2829_v24 = vrot.slane %v1643_v58, 2 }
 0x280   : > { %v1801_v59 = vrot.slane %v1800_v13, 2  ;;  %v1808_v57 = vrot.slane %v1807_v7, 2  ;;  %v1786_v34 = vmul.f32 %v1723_v44, %v4278_v10  ;;  %v1787_v2 = vmul.f32 %v1764_v9, %v4283_v28  ;;  %v3326_v9 = vld [vmem:[%s4790_s3] ss:$2 sm:$0x3] }
 0x281   : > { %v1623_v18 = vrot.slane %v1622_v32, 4  ;;  %v1630_v38 = vrot.slane %v1629_v23, 4  ;;  %v4384_v47 = vsel %vm2775_vm10, %v2822_v26, %v4324_v56  ;;  %v4388_v39 = vsel %vm2775_vm10, %v2829_v24, %v4327_v33 }
 0x282   : > { %v1802_v0 = vadd.f32 %v1801_v59, %v1800_v13  ;;  %v1809_v27 = vadd.f32 %v1808_v57, %v1807_v7  ;;  %v4392_v46 = vmax.f32 %v1889_v6, 0.0  ;;  %v4394_v5 = vmax.f32 %v1890_v36, 0.0 }
 0x283   : > { %v1624_v55 = vadd.f32 %v1623_v18, %v1622_v32  ;;  %v1631_v12 = vadd.f32 %v1630_v38, %v1629_v23  ;;  %v1935_v56 = vpop.f32.mrf.mxu0  ;;  %v1976_v45 = vpop.f32.mrf.mxu1  ;;  %v4403_v50 = vperm.slane %v3877_v37, 6  ;;  %v4406_v43 = vperm.slane %v3884_v62, 6 }
 0x284   : > { %v1803_v17 = vrot.slane %v1802_v0, 1  ;;  %v1810_v42 = vrot.slane %v1809_v27, 1  ;;  %3253 = vmatmul.msk.f32.gmra.mxu2 %vm363_vm5, %v4150_v4  ;;  %v2000_v14 = vmul.f32 %v1935_v56, %v4392_v46  ;;  %v2001_v41 = vmul.f32 %v1976_v45, %v4394_v5 }
 0x285   : > { %v1625_v33 = vrot.slane %v1624_v55, 2  ;;  %v1632_v15 = vrot.slane %v1631_v12, 2  ;;  %3261 = vmatmul.msk.f32.gmra.mxu3 %vm363_vm5, %v4150_v4  ;;  %v1891_v13 = vsub.f32 1.0, %v1887_v1  ;;  %v1892_v7 = vsub.f32 1.0, %v1888_v52 }
 0x286   : > { %v1804_v3 = vadd.f32 %v1803_v17, %v1802_v0  ;;  %v1811_v53 = vadd.f32 %v1810_v42, %v1809_v27  ;;  %v4419_v26 = vadd.f32 2.0, %v3326_v9 }
 0x287   : > { %v1626_v40 = vadd.f32 %v1625_v33, %v1624_v55  ;;  %v1633_v58 = vadd.f32 %v1632_v15, %v1631_v12  ;;  %v1726_v25 = vpop.f32.mrf.mxu2  ;;  %v1767_v48 = vpop.f32.mrf.mxu3  ;;  %v4421_v38 = vmax.f32 %v1891_v13, 0.0  ;;  %v4423_v0 = vmax.f32 %v1892_v7, 0.0 }
 0x288   : > { %v4409_v6 = vmul.f32 %v4403_v50, %v1804_v3  ;;  %v4412_v36 = vmul.f32 %v4406_v43, %v1811_v53  ;;  %v1788_v4 = vmul.f32 %v1726_v25, %v4332_v21  ;;  %v1789_v32 = vmul.f32 %v1767_v48, %v4340_v54  ;;  %v577_v12 = vpop.permute.xlu1 %576 }
 0x289   : > { %v1627_v23 = vrot.slane %v1626_v40, 1  ;;  %v1634_v44 = vrot.slane %v1633_v58, 1  ;;  %v625_v56 = vadd.f32 %v3809_v22, %v577_v12  ;;  %v4436_v15 = vadd.f32 %v3707_v61, %v4419_v26 }
 0x28a   : > { %v1812_v24 = vadd.f32 %v1788_v4, %v1786_v34  ;;  %v1819_v59 = vadd.f32 %v1789_v32, %v1787_v2 }
 0x28b   : > { %v1628_v57 = vadd.f32 %v1627_v23, %v1626_v40  ;;  %v1635_v18 = vadd.f32 %v1634_v44, %v1633_v58  ;;  %v1938_v52 = vpop.f32.mrf.mxu0  ;;  %v1979_v55 = vpop.f32.mrf.mxu1  ;;  %v3119_v44 = vmul.f32 -1.442695, %v625_v56 }
 0x28c   : > { %v1813_v27 = vrot.slane %v1812_v24, 4  ;;  %v1820_v1 = vrot.slane %v1819_v59, 4  ;;  %3254 = vmatmul.msk.f32.gmra.mxu2 %vm363_vm5, %v4180_v29  ;;  %v2002_v17 = vmul.f32 %v1938_v52, %v4421_v38  ;;  %v2003_v42 = vmul.f32 %v1979_v55, %v4423_v0 }
 0x28d   : > { %3262 = vmatmul.msk.f32.gmra.mxu3 %vm363_vm5, %v4180_v29  ;;  %v1644_v34 = vmul.f32 %v4233_v63, %v1628_v57  ;;  %v1645_v2 = vmul.f32 %v4236_v35, %v1635_v18  ;;  %3310 = vpow2.f32 %v3119_v44 }
 0x28e   : > { %v1814_v45 = vadd.f32 %v1813_v27, %v1812_v24  ;;  %v1821_v33 = vadd.f32 %v1820_v1, %v1819_v59  ;;  %v2016_v3 = vadd.f32 %v2002_v17, %v2000_v14  ;;  %v2023_v53 = vadd.f32 %v2003_v42, %v2001_v41 }
 0x28f   : > { %v1729_v40 = vpop.f32.mrf.mxu2  ;;  %v1770_v58 = vpop.f32.mrf.mxu3  ;;  %v2824_v25 = vrot.slane %v1644_v34, 1  ;;  %v2831_v48 = vrot.slane %v1645_v2, 1  ;;  %v654_v59 = vadd.f32 %v3815_v60, %v577_v12 }
 0x290   : > { %v1815_v13 = vrot.slane %v1814_v45, 2  ;;  %v1822_v29 = vrot.slane %v1821_v33, 2  ;;  %v1790_v63 = vmul.f32 %v1729_v40, %v4278_v10  ;;  %v1791_v35 = vmul.f32 %v1770_v58, %v4283_v28 }
 0x291   : > { %v2017_v7 = vrot.slane %v2016_v3, 4  ;;  %v2024_v22 = vrot.slane %v2023_v53, 4  ;;  %v2825_v4 = vsel %vm2778_vm11, %v2824_v25, %v4384_v47  ;;  %v2832_v61 = vsel %vm2778_vm11, %v2831_v48, %v4388_v39 }
 0x292   : > { %v1816_v14 = vadd.f32 %v1815_v13, %v1814_v45  ;;  %v1823_v41 = vadd.f32 %v1822_v29, %v1821_v33  ;;  %v4446_v32 = vsel %vm425_vm0, %v4364_v16, %v2825_v4  ;;  %v4450_v23 = vsel %vm425_vm0, %v4368_v51, %v2832_v61 }
 0x293   : > { %v2018_v9 = vadd.f32 %v2017_v7, %v2016_v3  ;;  %v2025_v24 = vadd.f32 %v2024_v22, %v2023_v53  ;;  %v1941_v18 = vpop.f32.mrf.mxu0  ;;  %v1982_v27 = vpop.f32.mrf.mxu1  ;;  %v2096_v39 = vperm.slane %v4436_v15, 0  ;;  %v3120_v3 = vmul.f32 -1.442695, %v654_v59 }
 0x294   : > { %v1817_v57 = vrot.slane %v1816_v14, 1  ;;  %v1824_v47 = vrot.slane %v1823_v41, 1  ;;  %3255 = vmatmul.msk.f32.gmra.mxu2 %vm363_vm5, %v4059_v20  ;;  %v2004_v52 = vmul.f32 %v1941_v18, %v4392_v46  ;;  %v2005_v51 = vmul.f32 %v1982_v27, %v4394_v5 }
 0x295   : > { %v2019_v16 = vrot.slane %v2018_v9, 2  ;;  %v2026_v1 = vrot.slane %v2025_v24, 2  ;;  %3263 = vmatmul.msk.f32.gmra.mxu3 %vm363_vm5, %v4059_v20  ;;  %v2100_v20 = vsub.f32 %v3543_v11, %v2096_v39  ;;  %v4468_v7 = vperm.slane %v3877_v37, 7  ;;  %v3311_v37 = vpop.eup %3310 }
 0x296   : > { %v1818_v55 = vadd.f32 %v1817_v57, %v1816_v14  ;;  %v1825_v60 = vadd.f32 %v1824_v47, %v1823_v41  ;;  %v4471_v4 = vperm.slane %v3884_v62, 7  ;;  %3312 = vpow2.f32 %v3120_v3 }
 0x297   : > { %v2020_v12 = vadd.f32 %v2019_v16, %v2018_v9  ;;  %v2027_v17 = vadd.f32 %v2026_v1, %v2025_v24  ;;  %v1732_v42 = vpop.f32.mrf.mxu2  ;;  %v1773_v34 = vpop.f32.mrf.mxu3 }
 0x298   : > { %v1858_v2 = vmul.f32 %v4403_v50, %v1818_v55  ;;  %v1859_v56 = vmul.f32 %v4406_v43, %v1825_v60  ;;  %v1792_v45 = vmul.f32 %v1732_v42, %v4332_v21  ;;  %v1793_v33 = vmul.f32 %v1773_v34, %v4340_v54 }
 0x299   : > { %v2021_v53 = vrot.slane %v2020_v12, 1  ;;  %v2028_v40 = vrot.slane %v2027_v17, 1 }
 0x29a   : > { %v2843_v58 = vrot.slane %v1858_v2, 7  ;;  %v2849_v25 = vrot.slane %v1859_v56, 7  ;;  %v1826_v48 = vadd.f32 %v1792_v45, %v1790_v63  ;;  %v1833_v13 = vadd.f32 %v1793_v33, %v1791_v35 }
 0x29b   : > { %v2022_v29 = vadd.f32 %v2021_v53, %v2020_v12  ;;  %v2029_v22 = vadd.f32 %v2028_v40, %v2027_v17  ;;  %v1944_v41 = vpop.f32.mrf.mxu0  ;;  %v1985_v44 = vpop.f32.mrf.mxu1  ;;  %v2104_v12 = vand.u32 2147483647, %v2100_v20  ;;  %v4496_v2 = vadd.f32 1.0, %v3311_v37 }
 0x29c   : > { %v1827_v61 = vrot.slane %v1826_v48, 4  ;;  %v1834_v14 = vrot.slane %v1833_v13, 4  ;;  %3256 = vmatmul.msk.f32.gmra.mxu2 %vm363_vm5, %v4093_v49  ;;  %v4477_v9 = vsel %vm2746_vm4, %v2843_v58, %v4409_v6  ;;  %v4481_v63 = vsel %vm2746_vm4, %v2849_v25, %v4412_v36 }
 0x29d   : > { %v4484_v35 = vmul.f32 %v4468_v7, %v2022_v29  ;;  %v4487_v62 = vmul.f32 %v4471_v4, %v2029_v22  ;;  %v2006_v24 = vmul.f32 %v1944_v41, %v4421_v38  ;;  %v2007_v59 = vmul.f32 %v1985_v44, %v4423_v0  ;;  %3264 = vmatmul.msk.f32.gmra.mxu3 %vm363_vm5, %v4093_v49 }
 0x29e   : > { %v1828_v6 = vadd.f32 %v1827_v61, %v1826_v48  ;;  %v1835_v57 = vadd.f32 %v1834_v14, %v1833_v13  ;;  %v2097_v36 = vperm.slane %v4436_v15, 1  ;;  %3314 = vrcp.f32 %v4496_v2 }
 0x29f   : > { %v2030_v47 = vadd.f32 %v2006_v24, %v2004_v52  ;;  %v2037_v18 = vadd.f32 %v2007_v59, %v2005_v51  ;;  %v1735_v27 = vpop.f32.mrf.mxu2  ;;  %v1776_v60 = vpop.f32.mrf.mxu3  ;;  %v2102_v37 = vsub.f32 %v3541_v8, %v2096_v39 }
 0x2a0   : > { %v1829_v16 = vrot.slane %v1828_v6, 2  ;;  %v1836_v1 = vrot.slane %v1835_v57, 2  ;;  %v1794_v55 = vmul.f32 %v1735_v27, %v4278_v10  ;;  %v1795_v34 = vmul.f32 %v1776_v60, %v4283_v28  ;;  %v3313_v51 = vpop.eup %3312 }
 0x2a1   : > { %v2031_v17 = vrot.slane %v2030_v47, 4  ;;  %v2038_v42 = vrot.slane %v2037_v18, 4  ;;  %v2101_v45 = vsub.f32 %v3543_v11, %v2097_v36  ;;  %v2108_v10 = vsub.f32 1.0, %v2104_v12 }
 0x2a2   : > { %v1830_v49 = vadd.f32 %v1829_v16, %v1828_v6  ;;  %v1837_v56 = vadd.f32 %v1836_v1, %v1835_v57  ;;  %v4506_v61 = vadd.f32 1.0, %v3313_v51  ;;  %v2103_v57 = vsub.f32 %v3541_v8, %v2097_v36 }
 0x2a3   : > { %v2032_v33 = vadd.f32 %v2031_v17, %v2030_v47  ;;  %v2039_v52 = vadd.f32 %v2038_v42, %v2037_v18  ;;  %v1947_v40 = vpop.f32.mrf.mxu0  ;;  %v1988_v58 = vpop.f32.mrf.mxu1  ;;  %v2105_v22 = vand.u32 2147483647, %v2101_v45  ;;  %v4516_v16 = vmax.f32 %v2108_v10, 0.0 }
 0x2a4   : > { %v1831_v3 = vrot.slane %v1830_v49, 1  ;;  %v1838_v53 = vrot.slane %v1837_v56, 1  ;;  %3257 = vmatmul.msk.f32.gmra.mxu2 %vm363_vm5, %v4123_v31  ;;  %v2008_v28 = vmul.f32 %v1947_v40, %v4392_v46  ;;  %v2009_v48 = vmul.f32 %v1988_v58, %v4394_v5 }
 0x2a5   : > { %v2033_v20 = vrot.slane %v2032_v33, 2  ;;  %v2040_v25 = vrot.slane %v2039_v52, 2  ;;  %3265 = vmatmul.msk.f32.gmra.mxu3 %vm363_vm5, %v4123_v31  ;;  %v2109_v60 = vsub.f32 1.0, %v2105_v22  ;;  %v2107_v36 = vand.u32 2147483647, %v2103_v57 }
 0x2a6   : > { %v1832_v13 = vadd.f32 %v1831_v3, %v1830_v49  ;;  %v1839_v29 = vadd.f32 %v1838_v53, %v1837_v56  ;;  %v2106_v49 = vand.u32 2147483647, %v2102_v37  ;;  %v4518_v56 = vpop.eup %3314  ;;  %v2865_v53 = vrot.slane %v4484_v35, 4 }
 0x2a7   : > { %v2034_v14 = vadd.f32 %v2033_v20, %v2032_v33  ;;  %v2041_v41 = vadd.f32 %v2040_v25, %v2039_v52  ;;  %v1738_v44 = vpop.f32.mrf.mxu2  ;;  %v1779_v6 = vpop.f32.mrf.mxu3  ;;  %v4533_v10 = vmax.f32 %v2109_v60, 0.0  ;;  %3316 = vrcp.f32 %v4506_v61 }
 0x2a8   : > { %v1860_v24 = vmul.f32 %v4403_v50, %v1832_v13  ;;  %v1861_v59 = vmul.f32 %v4406_v43, %v1839_v29  ;;  %v1796_v31 = vmul.f32 %v1738_v44, %v4332_v21  ;;  %v1797_v27 = vmul.f32 %v1779_v6, %v4340_v54 }
 0x2a9   : > { %v2035_v47 = vrot.slane %v2034_v14, 1  ;;  %v2042_v18 = vrot.slane %v2041_v41, 1  ;;  %v2872_v29 = vrot.slane %v4487_v62, 4  ;;  %v2110_v57 = vsub.f32 1.0, %v2106_v49 }
 0x2aa   : > { %v1840_v1 = vadd.f32 %v1796_v31, %v1794_v55  ;;  %v2845_v15 = vrot.slane %v1860_v24, 6  ;;  %v2851_v12 = vrot.slane %v1861_v59, 6  ;;  %v1847_v42 = vadd.f32 %v1797_v27, %v1795_v34 }
 0x2ab   : > { %v2036_v39 = vadd.f32 %v2035_v47, %v2034_v14  ;;  %v2043_v17 = vadd.f32 %v2042_v18, %v2041_v41  ;;  %v1950_v45 = vpop.f32.mrf.mxu0  ;;  %v4545_v49 = vmax.f32 %v2110_v57, 0.0  ;;  %vm707_vm5 = vweird.f32 %v4496_v2 }
 0x2ac   : > { %v1841_v21 = vrot.slane %v1840_v1, 4  ;;  %v1991_v33 = vpop.f32.mrf.mxu1  ;;  %v4522_v52 = vsel %vm2749_vm6, %v2845_v15, %v4477_v9  ;;  %v4526_v54 = vsel %vm2749_vm6, %v2851_v12, %v4481_v63  ;;  %v1848_v34 = vrot.slane %v1847_v42, 4 }
 0x2ad   : > { %v2076_v55 = vmul.f32 %v4468_v7, %v2036_v39  ;;  %v2077_v51 = vmul.f32 %v4471_v4, %v2043_v17  ;;  %v2010_v3 = vmul.f32 %v1950_v45, %v4421_v38  ;;  %v2011_v58 = vmul.f32 %v1991_v33, %v4423_v0 }
 0x2ae   : > { %v1842_v40 = vadd.f32 %v1841_v21, %v1840_v1  ;;  %v1849_v25 = vadd.f32 %v1848_v34, %v1847_v42  ;;  %vm708_vm12 = vweird.f32 %v4518_v56  ;;  %vm722_vm1 = vweird.f32 %v4506_v61 }
 0x2af   : > { %v2866_v9 = vrot.slane %v2076_v55, 3  ;;  %v2873_v20 = vrot.slane %v2077_v51, 3  ;;  %v2044_v13 = vadd.f32 %v2010_v3, %v2008_v28  ;;  %v2154_v63 = vpop.f32.mrf.mxu2  ;;  %v2051_v14 = vadd.f32 %v2011_v58, %v2009_v48  ;;  %v2195_v44 = vpop.f32.mrf.mxu3  ;;  %vm4599_vm14 = vmor %vm707_vm5, %vm708_vm12 }
 0x2b0   : > { %v1843_v22 = vrot.slane %v1842_v40, 2  ;;  %v2219_v41 = vmul.f32 %v2154_v63, %v4516_v16  ;;  %v1850_v37 = vrot.slane %v1849_v25, 2  ;;  %v2220_v35 = vmul.f32 %v2195_v44, %v4533_v10 }
 0x2b1   : > { %v2045_v24 = vrot.slane %v2044_v13, 4  ;;  %v4539_v59 = vsel %vm2772_vm8, %v2866_v9, %v2865_v53  ;;  %v2052_v6 = vrot.slane %v2051_v14, 4  ;;  %v2874_v28 = vsel %vm2772_vm8, %v2873_v20, %v2872_v29 }
 0x2b2   : > { %v1844_v31 = vadd.f32 %v1843_v22, %v1842_v40  ;;  %v1851_v62 = vadd.f32 %v1850_v37, %v1849_v25  ;;  %v2111_v48 = vsub.f32 1.0, %v2107_v36  ;;  %v4551_v40 = vpop.eup %3316 }
 0x2b3   : > { %v2046_v47 = vadd.f32 %v2045_v24, %v2044_v13  ;;  %v2053_v27 = vadd.f32 %v2052_v6, %v2051_v14  ;;  %v1953_v1 = vpop.f32.mrf.mxu0  ;;  %v703_v13 = vmul.f32 %v4518_v56, %v4496_v2  ;;  %v718_v14 = vmul.f32 %v4551_v40, %v4506_v61 }
 0x2b4   : > { %v1845_v18 = vrot.slane %v1844_v31, 1  ;;  %v1994_v60 = vpop.f32.mrf.mxu1  ;;  %v1852_v15 = vrot.slane %v1851_v62, 1  ;;  %v2012_v39 = vmul.f32 %v1953_v1, %v4392_v46  ;;  %v4547_v51 = vmax.f32 %v2111_v48, 0.0 }
 0x2b5   : > { %v2047_v12 = vrot.slane %v2046_v47, 2  ;;  %v2013_v17 = vmul.f32 %v1994_v60, %v4394_v5  ;;  %v2054_v21 = vrot.slane %v2053_v27, 2  ;;  %v704_v57 = vsub.f32 1.0, %v703_v13 }
 0x2b6   : > { %v1846_v42 = vadd.f32 %v1845_v18, %v1844_v31  ;;  %v1853_v45 = vadd.f32 %v1852_v15, %v1851_v62  ;;  %vm723_vm13 = vweird.f32 %v4551_v40 }
 0x2b7   : > { %v2048_v33 = vadd.f32 %v2047_v12, %v2046_v47  ;;  %v2157_v55 = vpop.f32.mrf.mxu2  ;;  %v2055_v36 = vadd.f32 %v2054_v21, %v2053_v27  ;;  %v2198_v3 = vpop.f32.mrf.mxu3  ;;  %v719_v27 = vsub.f32 1.0, %v718_v14  ;;  %vm4611_vm2 = vmor %vm722_vm1, %vm723_vm13 }
 0x2b8   : > { %v2221_v34 = vmul.f32 %v2157_v55, %v4545_v49  ;;  %v1862_v53 = vmul.f32 %v4403_v50, %v1846_v42  ;;  %v2222_v5 = vmul.f32 %v2198_v3, %v4547_v51  ;;  %v1863_v58 = vmul.f32 %v4406_v43, %v1853_v45 }
 0x2b9   : > { %v2049_v46 = vrot.slane %v2048_v33, 1  ;;  %v2056_v9 = vrot.slane %v2055_v36, 1  ;;  %v720_v45 = vmul.f32 %v4551_v40, %v719_v27 }
 0x2ba   : > { %v2235_v20 = vadd.f32 %v2221_v34, %v2219_v41  ;;  %v2847_v25 = vrot.slane %v1862_v53, 5  ;;  %v2242_v29 = vadd.f32 %v2222_v5, %v2220_v35  ;;  %v2853_v22 = vrot.slane %v1863_v58, 5 }
 0x2bb   : > { %v2050_v63 = vadd.f32 %v2049_v46, %v2048_v33  ;;  %v2057_v50 = vadd.f32 %v2056_v9, %v2055_v36  ;;  %v1956_v44 = vpop.f32.mrf.mxu0  ;;  %v726_v53 = vand.u32 2147483647, %v4506_v61  ;;  %v721_v13 = vadd.f32 %v4551_v40, %v720_v45 }
 0x2bc   : > { %v1997_v37 = vpop.f32.mrf.mxu1  ;;  %v4561_v24 = vsel %vm2752_vm7, %v2847_v25, %v4522_v52  ;;  %v2014_v41 = vmul.f32 %v1956_v44, %v4421_v38  ;;  %v4569_v35 = vsel %vm2752_vm7, %v2853_v22, %v4526_v54  ;;  %v2236_v12 = vrot.slane %v2235_v20, 4 }
 0x2bd   : > { %v2078_v43 = vmul.f32 %v4468_v7, %v2050_v63  ;;  %v2015_v31 = vmul.f32 %v1997_v37, %v4423_v0  ;;  %v2079_v6 = vmul.f32 %v4471_v4, %v2057_v50  ;;  %v2243_v33 = vrot.slane %v2242_v29, 4 }
 0x2be   : > { %v2058_v62 = vadd.f32 %v2014_v41, %v2012_v39  ;;  %v705_v39 = vmul.f32 %v4518_v56, %v704_v57  ;;  %v2237_v46 = vadd.f32 %v2236_v12, %v2235_v20  ;;  %v728_v50 = vand.u32 2147483648, %v4506_v61 }
 0x2bf   : > { %v2065_v47 = vadd.f32 %v2015_v31, %v2013_v17  ;;  %v2160_v48 = vpop.f32.mrf.mxu2  ;;  %v2868_v18 = vrot.slane %v2078_v43, 2  ;;  %v2201_v1 = vpop.f32.mrf.mxu3  ;;  %v2875_v60 = vrot.slane %v2079_v6, 2  ;;  %v2244_v63 = vadd.f32 %v2243_v33, %v2242_v29 }
 0x2c0   : > { %v2223_v52 = vmul.f32 %v2160_v48, %v4516_v16  ;;  %v2059_v15 = vrot.slane %v2058_v62, 4  ;;  %v2224_v0 = vmul.f32 %v2201_v1, %v4533_v10  ;;  %v706_v5 = vadd.f32 %v4518_v56, %v705_v39 }
 0x2c1   : > { %v2066_v38 = vrot.slane %v2065_v47, 4  ;;  %v4575_v42 = vsel %vm2775_vm10, %v2868_v18, %v4539_v59  ;;  %v4578_v54 = vsel %vm2775_vm10, %v2875_v60, %v2874_v28  ;;  %v711_v59 = vand.u32 2147483647, %v4496_v2 }
 0x2c2   : > { %v2060_v17 = vadd.f32 %v2059_v15, %v2058_v62  ;;  %v713_v28 = vand.u32 2147483648, %v4496_v2  ;;  %v2238_v29 = vrot.slane %v2237_v46, 2  ;;  %v710_v6 = vsel %vm4599_vm14, %v4518_v56, %v706_v5 }
 0x2c3   : > { %v2067_v21 = vadd.f32 %v2066_v38, %v2065_v47  ;;  %v4582_v55 = vpop.f32.mrf.mxu0  ;;  %vm4603_vm15 = vcmp.eq.f32.partialorder %v711_v59, 8.507059e+37  ;;  %v725_v18 = vsel %vm4611_vm2, %v4551_v40, %v721_v13  ;;  %v2245_v27 = vrot.slane %v2244_v63, 2 }
 0x2c4   : > { %v4584_v36 = vpop.f32.mrf.mxu1  ;;  %v2061_v34 = vrot.slane %v2060_v17, 2  ;;  %v714_v48 = vor.u32 1.1754944e-38, %v713_v28  ;;  %vm727_vm3 = vcmp.eq.f32.partialorder %v726_v53, 8.507059e+37  ;;  %v729_v56 = vor.u32 1.1754944e-38, %v728_v50 }
 0x2c5   : > { %v2068_v3 = vrot.slane %v2067_v21, 2  ;;  %v2246_v33 = vadd.f32 %v2245_v27, %v2244_v63 }
 0x2c6   : > { %v2062_v58 = vadd.f32 %v2061_v34, %v2060_v17  ;;  %v715_v38 = vsel %vm4603_vm15, %v714_v48, %v710_v6  ;;  %v730_v17 = vsel %vm727_vm3, %v729_v56, %v725_v18 }
 0x2c7   : > { %v2069_v9 = vadd.f32 %v2068_v3, %v2067_v21  ;;  %v2163_v25 = vpop.f32.mrf.mxu2  ;;  %v2204_v14 = vpop.f32.mrf.mxu3  ;;  %v4627_v53 = vmul.f32 2.0, %v715_v38  ;;  %v4636_v63 = vmul.f32 2.0, %v730_v17  ;;  %v2247_v50 = vrot.slane %v2246_v33, 1 }
 0x2c8   : > { %v2225_v22 = vmul.f32 %v2163_v25, %v4545_v49  ;;  %v2063_v44 = vrot.slane %v2062_v58, 1  ;;  %v2226_v20 = vmul.f32 %v2204_v14, %v4547_v51 }
 0x2c9   : > { %v2070_v37 = vrot.slane %v2069_v9, 1 }
 0x2ca   : > { %v2249_v31 = vadd.f32 %v2225_v22, %v2223_v52  ;;  %v2064_v2 = vadd.f32 %v2063_v44, %v2062_v58  ;;  %v2256_v47 = vadd.f32 %v2226_v20, %v2224_v0  ;;  %v2239_v0 = vadd.f32 %v2238_v29, %v2237_v46 }
 0x2cb   : > { %v2071_v62 = vadd.f32 %v2070_v37, %v2069_v9  ;;  %v4618_v1 = vpop.f32.mrf.mxu0  ;;  %v4651_v29 = vperm.slane %v4627_v53, 0 }
 0x2cc   : > { %v2250_v61 = vrot.slane %v2249_v31, 4  ;;  %v4620_v52 = vpop.f32.mrf.mxu1  ;;  %v2257_v60 = vrot.slane %v2256_v47, 4  ;;  %v2080_v15 = vmul.f32 %v4468_v7, %v2064_v2  ;;  %v4810_v7 = vld [vmem:[#allocation3_spill] sm:$0xff]  ;;  %v2240_v9 = vrot.slane %v2239_v0, 1 }
 0x2cd   : > { %v2081_v39 = vmul.f32 %v4471_v4, %v2071_v62  ;;  %v2306_v5 = vadd.f32 %v4810_v7, %v4419_v26  ;;  %v2248_v62 = vadd.f32 %v2247_v50, %v2246_v33 }
 0x2ce   : > { %v2251_v12 = vadd.f32 %v2250_v61, %v2249_v31  ;;  %v2258_v40 = vadd.f32 %v2257_v60, %v2256_v47  ;;  %v2870_v45 = vrot.slane %v2080_v15, 1 }
 0x2cf   : > { %v2166_v21 = vpop.f32.mrf.mxu2  ;;  %v2877_v28 = vrot.slane %v2081_v39, 1  ;;  %v2315_v31 = vperm.slane %v2306_v5, 1 }
 0x2d0   : > { %v2252_v34 = vrot.slane %v2251_v12, 2  ;;  %v2227_v3 = vmul.f32 %v2166_v21, %v4516_v16  ;;  %v2207_v59 = vpop.f32.mrf.mxu3  ;;  %v2259_v58 = vrot.slane %v2258_v40, 2  ;;  %v2871_v25 = vsel %vm2778_vm11, %v2870_v45, %v4575_v42 }
 0x2d1   : > { %v2228_v46 = vmul.f32 %v2207_v59, %v4533_v10  ;;  %v2878_v13 = vsel %vm2778_vm11, %v2877_v28, %v4578_v54  ;;  %v4640_v14 = vsel %vm425_vm0, %v4561_v24, %v2871_v25  ;;  %v2314_v42 = vperm.slane %v2306_v5, 0 }
 0x2d2   : > { %v2253_v4 = vadd.f32 %v2252_v34, %v2251_v12  ;;  %v2260_v22 = vadd.f32 %v2259_v58, %v2258_v40  ;;  %v4648_v43 = vsel %vm425_vm0, %v4569_v35, %v2878_v13  ;;  %v2241_v54 = vadd.f32 %v2240_v9, %v2239_v0 }
 0x2d3   : > { %v4642_v37 = vpop.f32.mrf.mxu0  ;;  %v4654_v24 = vperm.slane %v4636_v63, 0  ;;  %v2318_v18 = vsub.f32 %v3543_v11, %v2314_v42  ;;  %v2320_v61 = vsub.f32 %v3541_v8, %v2314_v42  ;;  %v2321_v38 = vsub.f32 %v3541_v8, %v2315_v31 }
 0x2d4   : > { %v2254_v44 = vrot.slane %v2253_v4, 1  ;;  %v4644_v20 = vpop.f32.mrf.mxu1  ;;  %v2261_v41 = vrot.slane %v2260_v22, 1  ;;  %v2293_v60 = vmul.f32 %v4651_v29, %v2241_v54  ;;  %v2319_v12 = vsub.f32 %v3543_v11, %v2315_v31 }
 0x2d5   : > { %v2294_v40 = vmul.f32 %v4654_v24, %v2248_v62  ;;  %v2324_v59 = vand.u32 2147483647, %v2320_v61  ;;  %v2322_v7 = vand.u32 2147483647, %v2318_v18  ;;  %v2325_v5 = vand.u32 2147483647, %v2321_v38 }
 0x2d6   : > { %v2255_v6 = vadd.f32 %v2254_v44, %v2253_v4  ;;  %v2262_v57 = vadd.f32 %v2261_v41, %v2260_v22  ;;  %v2323_v4 = vand.u32 2147483647, %v2319_v12 }
 0x2d7   : > { %v2169_v2 = vpop.f32.mrf.mxu2  ;;  %v2328_v50 = vsub.f32 1.0, %v2324_v59  ;;  %v2326_v41 = vsub.f32 1.0, %v2322_v7  ;;  %v2329_v54 = vsub.f32 1.0, %v2325_v5 }
 0x2d8   : > { %v2295_v47 = vmul.f32 %v4651_v29, %v2255_v6  ;;  %v2229_v48 = vmul.f32 %v2169_v2, %v4545_v49  ;;  %v2210_v35 = vpop.f32.mrf.mxu3  ;;  %v2296_v27 = vmul.f32 %v4654_v24, %v2262_v57  ;;  %v2327_v6 = vsub.f32 1.0, %v2323_v4 }
 0x2d9   : > { %v2230_v56 = vmul.f32 %v2210_v35, %v4547_v51  ;;  %v4672_v18 = vmax.f32 %v2326_v41, 0.0 }
 0x2da   : > { %v2889_v15 = vrot.slane %v2295_v47, 7  ;;  %v2263_v0 = vadd.f32 %v2229_v48, %v2227_v3  ;;  %v2895_v39 = vrot.slane %v2296_v27, 7  ;;  %v4670_v48 = vmax.f32 %v2328_v50, 0.0 }
 0x2db   : > { %v2270_v17 = vadd.f32 %v2230_v56, %v2228_v46  ;;  %v2381_v45 = vpop.f32.mrf.mxu0  ;;  %v4674_v27 = vmax.f32 %v2329_v54, 0.0  ;;  %v4676_v61 = vmax.f32 %v2327_v6, 0.0  ;;  %v2437_v38 = vmul.f32 %v4582_v55, %v4672_v18 }
 0x2dc   : > { %v2264_v21 = vrot.slane %v2263_v0, 4  ;;  %v2422_v33 = vpop.f32.mrf.mxu1  ;;  %v2890_v34 = vsel %vm2746_vm4, %v2889_v15, %v2293_v60  ;;  %v2896_v9 = vsel %vm2746_vm4, %v2895_v39, %v2294_v40  ;;  %v2443_v60 = vmul.f32 %v2381_v45, %v4670_v48 }
 0x2dd   : > { %v2271_v28 = vrot.slane %v2270_v17, 4  ;;  %v2444_v12 = vmul.f32 %v2422_v33, %v4674_v27  ;;  %v2438_v40 = vmul.f32 %v4584_v36, %v4676_v61  ;;  %v2440_v55 = vmul.f32 %v4620_v52, %v4674_v27 }
 0x2de   : > { %v2265_v58 = vadd.f32 %v2264_v21, %v2263_v0  ;;  %v2442_v59 = vmul.f32 %v4644_v20, %v4676_v61 }
 0x2df   : > { %v2272_v3 = vadd.f32 %v2271_v28, %v2270_v17  ;;  %v2172_v25 = vpop.f32.mrf.mxu2 }
 0x2e0   : > { %v2266_v13 = vrot.slane %v2265_v58, 2  ;;  %v2231_v46 = vmul.f32 %v2172_v25, %v4516_v16  ;;  %v2213_v22 = vpop.f32.mrf.mxu3  ;;  %v2474_v36 = vadd.f32 %v2444_v12, %v2442_v59 }
 0x2e1   : > { %v2273_v44 = vrot.slane %v2272_v3, 2  ;;  %v2232_v42 = vmul.f32 %v2213_v22, %v4533_v10  ;;  %v2439_v10 = vmul.f32 %v4618_v1, %v4670_v48  ;;  %v2441_v1 = vmul.f32 %v4642_v37, %v4672_v18 }
 0x2e2   : > { %v2267_v31 = vadd.f32 %v2266_v13, %v2265_v58 }
 0x2e3   : > { %v2274_v57 = vadd.f32 %v2273_v44, %v2272_v3  ;;  %v2384_v62 = vpop.f32.mrf.mxu0  ;;  %v2467_v7 = vadd.f32 %v2443_v60, %v2441_v1 }
 0x2e4   : > { %v2268_v2 = vrot.slane %v2267_v31, 1  ;;  %v2425_v47 = vpop.f32.mrf.mxu1  ;;  %v2445_v4 = vmul.f32 %v2384_v62, %v4672_v18 }
 0x2e5   : > { %v2275_v35 = vrot.slane %v2274_v57, 1  ;;  %v2446_v13 = vmul.f32 %v2425_v47, %v4676_v61 }
 0x2e6   : > { %v2269_v16 = vadd.f32 %v2268_v2, %v2267_v31 }
 0x2e7   : > { %v2276_v56 = vadd.f32 %v2275_v35, %v2274_v57  ;;  %v2175_v15 = vpop.f32.mrf.mxu2  ;;  %v2475_v57 = vrot.slane %v2474_v36, 4 }
 0x2e8   : > { %v2297_v0 = vmul.f32 %v4651_v29, %v2269_v16  ;;  %v2233_v39 = vmul.f32 %v2175_v15, %v4545_v49  ;;  %v2216_v17 = vpop.f32.mrf.mxu3  ;;  %v2453_v49 = vadd.f32 %v2439_v10, %v2437_v38 }
 0x2e9   : > { %v2298_v21 = vmul.f32 %v4654_v24, %v2276_v56  ;;  %v2234_v45 = vmul.f32 %v2216_v17, %v4547_v51  ;;  %v2476_v38 = vadd.f32 %v2475_v57, %v2474_v36 }
 0x2ea   : > { %v2277_v33 = vadd.f32 %v2233_v39, %v2231_v46  ;;  %v2891_v28 = vrot.slane %v2297_v0, 6  ;;  %v2460_v46 = vadd.f32 %v2440_v55, %v2438_v40  ;;  %v2454_v62 = vrot.slane %v2453_v49, 4 }
 0x2eb   : > { %v2284_v5 = vadd.f32 %v2234_v45, %v2232_v42  ;;  %v2897_v58 = vrot.slane %v2298_v21, 6  ;;  %v2387_v3 = vpop.f32.mrf.mxu0  ;;  %v2468_v42 = vrot.slane %v2467_v7, 4 }
 0x2ec   : > { %v2278_v37 = vrot.slane %v2277_v33, 4  ;;  %v2428_v25 = vpop.f32.mrf.mxu1  ;;  %v2892_v51 = vsel %vm2749_vm6, %v2891_v28, %v2890_v34  ;;  %v2447_v22 = vmul.f32 %v2387_v3, %v4670_v48  ;;  %v2461_v10 = vrot.slane %v2460_v46, 4 }
 0x2ed   : > { %v2285_v52 = vrot.slane %v2284_v5, 4  ;;  %v2448_v20 = vmul.f32 %v2428_v25, %v4674_v27  ;;  %v2898_v44 = vsel %vm2749_vm6, %v2897_v58, %v2896_v9  ;;  %v2469_v60 = vadd.f32 %v2468_v42, %v2467_v7 }
 0x2ee   : > { %v2279_v50 = vadd.f32 %v2278_v37, %v2277_v33  ;;  %v2481_v54 = vadd.f32 %v2447_v22, %v2445_v4  ;;  %v2455_v17 = vadd.f32 %v2454_v62, %v2453_v49  ;;  %v2462_v21 = vadd.f32 %v2461_v10, %v2460_v46 }
 0x2ef   : > { %v2286_v41 = vadd.f32 %v2285_v52, %v2284_v5  ;;  %v2488_v31 = vadd.f32 %v2448_v20, %v2446_v13  ;;  %v4702_v6 = vpop.f32.mrf.mxu2  ;;  %v2470_v55 = vrot.slane %v2469_v60, 2  ;;  %v2477_v28 = vrot.slane %v2476_v38, 2  ;;  %v4811_v52 = vld [vmem:[#allocation2_spill] sm:$0xff] }
 0x2f0   : > { %v2280_v2 = vrot.slane %v2279_v50, 2  ;;  %v4704_v34 = vpop.f32.mrf.mxu3  ;;  %v2482_v35 = vrot.slane %v2481_v54, 4  ;;  %v2456_v36 = vrot.slane %v2455_v17, 2  ;;  %v2463_v3 = vrot.slane %v2462_v21, 2 }
 0x2f1   : > { %v2287_v47 = vrot.slane %v2286_v41, 2  ;;  %v2489_v16 = vrot.slane %v2488_v31, 4  ;;  %v2471_v25 = vadd.f32 %v2470_v55, %v2469_v60  ;;  %v2524_v22 = vadd.f32 %v4811_v52, %v4419_v26 }
 0x2f2   : > { %v2281_v56 = vadd.f32 %v2280_v2, %v2279_v50  ;;  %v2483_v0 = vadd.f32 %v2482_v35, %v2481_v54  ;;  %v2478_v20 = vadd.f32 %v2477_v28, %v2476_v38  ;;  %v2457_v54 = vadd.f32 %v2456_v36, %v2455_v17 }
 0x2f3   : > { %v2288_v15 = vadd.f32 %v2287_v47, %v2286_v41  ;;  %v2390_v12 = vpop.f32.mrf.mxu0  ;;  %v2490_v1 = vadd.f32 %v2489_v16, %v2488_v31  ;;  %v2464_v57 = vadd.f32 %v2463_v3, %v2462_v21  ;;  %v2472_v47 = vrot.slane %v2471_v25, 1 }
 0x2f4   : > { %v2282_v9 = vrot.slane %v2281_v56, 1  ;;  %v2431_v39 = vpop.f32.mrf.mxu1  ;;  %v2484_v5 = vrot.slane %v2483_v0, 2  ;;  %v2449_v31 = vmul.f32 %v2390_v12, %v4672_v18  ;;  %v2479_v10 = vrot.slane %v2478_v20, 1 }
 0x2f5   : > { %v2289_v40 = vrot.slane %v2288_v15, 1  ;;  %v2491_v4 = vrot.slane %v2490_v1, 2  ;;  %v2450_v2 = vmul.f32 %v2431_v39, %v4676_v61  ;;  %v2533_v18 = vperm.slane %v2524_v22, 1 }
 0x2f6   : > { %v2283_v45 = vadd.f32 %v2282_v9, %v2281_v56  ;;  %v2485_v46 = vadd.f32 %v2484_v5, %v2483_v0  ;;  %v2465_v61 = vrot.slane %v2464_v57, 1  ;;  %v2480_v39 = vadd.f32 %v2479_v10, %v2478_v20 }
 0x2f7   : > { %v2290_v59 = vadd.f32 %v2289_v40, %v2288_v15  ;;  %v4706_v33 = vpop.f32.mrf.mxu2  ;;  %v2539_v55 = vsub.f32 %v3541_v8, %v2533_v18  ;;  %v2510_v5 = vperm.slane %v4636_v63, 1 }
 0x2f8   : > { %v4708_v58 = vpop.f32.mrf.mxu3  ;;  %v2299_v7 = vmul.f32 %v4651_v29, %v2283_v45  ;;  %v2492_v29 = vadd.f32 %v2491_v4, %v2490_v1  ;;  %v2486_v56 = vrot.slane %v2485_v46, 1  ;;  %v2466_v28 = vadd.f32 %v2465_v61, %v2464_v57 }
 0x2f9   : > { %v2300_v37 = vmul.f32 %v4654_v24, %v2290_v59 }
 0x2fa   : > { %v2893_v49 = vrot.slane %v2299_v7, 5  ;;  %v2493_v38 = vrot.slane %v2492_v29, 1  ;;  %v2487_v17 = vadd.f32 %v2486_v56, %v2485_v46 }
 0x2fb   : > { %v2899_v13 = vrot.slane %v2300_v37, 5  ;;  %v2393_v50 = vpop.f32.mrf.mxu0  ;;  %v2537_v37 = vsub.f32 %v3543_v11, %v2533_v18 }
 0x2fc   : > { %v2434_v42 = vpop.f32.mrf.mxu1  ;;  %v4715_v41 = vsel %vm2752_vm7, %v2893_v49, %v2892_v51  ;;  %v2451_v24 = vmul.f32 %v2393_v50, %v4670_v48  ;;  %v2532_v51 = vperm.slane %v2524_v22, 0  ;;  %v2458_v48 = vrot.slane %v2457_v54, 1 }
 0x2fd   : > { %v2452_v62 = vmul.f32 %v2434_v42, %v4674_v27  ;;  %v4722_v26 = vsel %vm2752_vm7, %v2899_v13, %v2898_v44  ;;  %v2509_v27 = vperm.slane %v4627_v53, 1  ;;  %v2473_v44 = vadd.f32 %v2472_v47, %v2471_v25 }
 0x2fe   : > { %v2495_v35 = vadd.f32 %v2451_v24, %v2449_v31  ;;  %v2538_v40 = vsub.f32 %v3541_v8, %v2532_v51  ;;  %v2459_v21 = vadd.f32 %v2458_v48, %v2457_v54  ;;  %v2494_v45 = vadd.f32 %v2493_v38, %v2492_v29 }
 0x2ff   : > { %v4724_v16 = vpop.f32.mrf.mxu2  ;;  %v2502_v60 = vadd.f32 %v2452_v62, %v2450_v2  ;;  %v2536_v7 = vsub.f32 %v3543_v11, %v2532_v51  ;;  %v2513_v4 = vmul.f32 %v2509_v27, %v2473_v44  ;;  %v2514_v25 = vmul.f32 %v2510_v5, %v2480_v39 }
 0x300   : > { %v4726_v15 = vpop.f32.mrf.mxu3  ;;  %v2496_v9 = vrot.slane %v2495_v35, 4  ;;  %v2515_v13 = vmul.f32 %v2509_v27, %v2487_v17  ;;  %v2542_v52 = vand.u32 2147483647, %v2538_v40  ;;  %v2511_v46 = vmul.f32 %v2509_v27, %v2459_v21 }
 0x301   : > { %v2503_v0 = vrot.slane %v2502_v60, 4  ;;  %v2516_v50 = vmul.f32 %v2510_v5, %v2494_v45  ;;  %v2543_v8 = vand.u32 2147483647, %v2539_v55  ;;  %v2512_v54 = vmul.f32 %v2510_v5, %v2466_v28 }
 0x302   : > { %v2497_v12 = vadd.f32 %v2496_v9, %v2495_v35  ;;  %v2540_v29 = vand.u32 2147483647, %v2536_v7  ;;  %v2912_v24 = vrot.slane %v2513_v4, 3  ;;  %v2541_v57 = vand.u32 2147483647, %v2537_v37 }
 0x303   : > { %v2504_v1 = vadd.f32 %v2503_v0, %v2502_v60  ;;  %v2919_v62 = vrot.slane %v2514_v25, 3  ;;  %v2546_v47 = vsub.f32 1.0, %v2542_v52  ;;  %v2914_v35 = vrot.slane %v2515_v13, 2 }
 0x304   : > { %v2498_v59 = vrot.slane %v2497_v12, 2  ;;  %v2911_v51 = vrot.slane %v2511_v46, 4  ;;  %v2547_v10 = vsub.f32 1.0, %v2543_v8  ;;  %v2921_v60 = vrot.slane %v2516_v50, 2 }
 0x305   : > { %v2505_v36 = vrot.slane %v2504_v1, 2  ;;  %v2918_v18 = vrot.slane %v2512_v54, 4  ;;  %v2544_v48 = vsub.f32 1.0, %v2540_v29  ;;  %v2545_v9 = vsub.f32 1.0, %v2541_v57 }
 0x306   : > { %v2499_v3 = vadd.f32 %v2498_v59, %v2497_v12  ;;  %v2913_v0 = vsel %vm2772_vm8, %v2912_v24, %v2911_v51  ;;  %v2550_v12 = vmax.f32 %v2546_v47, 0.0  ;;  %v2551_v21 = vmax.f32 %v2547_v10, 0.0 }
 0x307   : > { %v2599_v49 = vpop.f32.mrf.mxu2  ;;  %v2506_v22 = vadd.f32 %v2505_v36, %v2504_v1  ;;  %v2915_v17 = vsel %vm2775_vm10, %v2914_v35, %v2913_v0  ;;  %v2920_v40 = vsel %vm2772_vm8, %v2919_v62, %v2918_v18  ;;  %v2548_v55 = vmax.f32 %v2544_v48, 0.0 }
 0x308   : > { %v2640_v20 = vpop.f32.mrf.mxu3  ;;  %v2500_v42 = vrot.slane %v2499_v3, 1  ;;  %v2661_v59 = vmul.f32 %v2599_v49, %v2550_v12  ;;  %v2549_v7 = vmax.f32 %v2545_v9, 0.0  ;;  %v2657_v49 = vmul.f32 %v4706_v33, %v2550_v12 }
 0x309   : > { %v2507_v31 = vrot.slane %v2506_v22, 1  ;;  %v2662_v36 = vmul.f32 %v2640_v20, %v2551_v21  ;;  %v2659_v37 = vmul.f32 %v4724_v16, %v2548_v55  ;;  %v2658_v50 = vmul.f32 %v4708_v58, %v2551_v21 }
 0x30a   : > { %v2501_v2 = vadd.f32 %v2500_v42, %v2499_v3  ;;  %v2660_v3 = vmul.f32 %v4726_v15, %v2549_v7  ;;  %v2655_v42 = vmul.f32 %v4702_v6, %v2548_v55  ;;  %v2656_v16 = vmul.f32 %v4704_v34, %v2549_v7 }
 0x30b   : > { %v2508_v11 = vadd.f32 %v2507_v31, %v2506_v22  ;;  %v2685_v25 = vadd.f32 %v2661_v59, %v2659_v37 }
 0x30c   : > { %v2517_v56 = vmul.f32 %v2509_v27, %v2501_v2  ;;  %v2922_v27 = vsel %vm2775_vm10, %v2921_v60, %v2920_v40  ;;  %v2692_v13 = vadd.f32 %v2662_v36, %v2660_v3  ;;  %v2671_v31 = vadd.f32 %v2657_v49, %v2655_v42  ;;  %v3327_v36 = vld [vmem:[%s4794_s7] sm:$0xff] }
 0x30d   : > { %v2518_v38 = vmul.f32 %v2510_v5, %v2508_v11  ;;  %v2678_v57 = vadd.f32 %v2658_v50, %v2656_v16  ;;  %v2727_v42 = vperm.slane %v4627_v53, 2 }
 0x30e   : > { %v2916_v44 = vrot.slane %v2517_v56, 1  ;;  %v2693_v29 = vrot.slane %v2692_v13, 4  ;;  %v2672_v35 = vrot.slane %v2671_v31, 4 }
 0x30f   : > { %v2602_v61 = vpop.f32.mrf.mxu2  ;;  %v2923_v1 = vrot.slane %v2518_v38, 1  ;;  %v2679_v10 = vrot.slane %v2678_v57, 4 }
 0x310   : > { %v2643_v39 = vpop.f32.mrf.mxu3  ;;  %v2917_v45 = vsel %vm2778_vm11, %v2916_v44, %v2915_v17  ;;  %v2663_v22 = vmul.f32 %v2602_v61, %v2548_v55  ;;  %v2694_v62 = vadd.f32 %v2693_v29, %v2692_v13  ;;  %v2673_v18 = vadd.f32 %v2672_v35, %v2671_v31 }
 0x311   : > { %v4741_v28 = vsel %vm425_vm0, %v4715_v41, %v2917_v45  ;;  %v2924_v5 = vsel %vm2778_vm11, %v2923_v1, %v2922_v27  ;;  %v2664_v8 = vmul.f32 %v2643_v39, %v2549_v7  ;;  %v2680_v34 = vadd.f32 %v2679_v10, %v2678_v57 }
 0x312   : > { %v4746_v4 = vsel %vm425_vm0, %v4722_v26, %v2924_v5  ;;  %v2686_v26 = vrot.slane %v2685_v25, 4  ;;  %v2695_v6 = vrot.slane %v2694_v62, 2  ;;  %v2674_v44 = vrot.slane %v2673_v18, 2 }
 0x313   : > { %v3345_v45 = vmov 1   ;;  %v2681_v27 = vrot.slane %v2680_v34, 2  ;;  %v2728_v29 = vperm.slane %v4636_v63, 2 }
 0x314   : > { %v2687_v33 = vadd.f32 %v2686_v26, %v2685_v25  ;;  %v2696_v9 = vadd.f32 %v2695_v6, %v2694_v62  ;;  %3300 = vset.pattern.permute.xlu1 %v3345_v45  ;;  %3301 = vset.pattern.permute.xlu0 %v3345_v45  ;;  %v2675_v49 = vadd.f32 %v2674_v44, %v2673_v18 }
 0x315   : > { %3012 = vperm.xlu1 %3300, %v3327_v36  }
 0x316   : > { %v2688_v56 = vrot.slane %v2687_v33, 2  ;;  %v2697_v25 = vrot.slane %v2696_v9, 1 }
 0x317   : > { %v2605_v52 = vpop.f32.mrf.mxu2 }
 0x318   : > { %v2665_v41 = vmul.f32 %v2605_v52, %v2550_v12  ;;  %v2646_v46 = vpop.f32.mrf.mxu3  ;;  %v2689_v38 = vadd.f32 %v2688_v56, %v2687_v33 }
 0x319   : > { %v2666_v20 = vmul.f32 %v2646_v46, %v2551_v21 }
 0x31a   : > { %v2699_v54 = vadd.f32 %v2665_v41, %v2663_v22  ;;  %v2690_v37 = vrot.slane %v2689_v38, 1  ;;  %v2682_v22 = vadd.f32 %v2681_v27, %v2680_v34 }
 0x31b   : > { %v2706_v15 = vadd.f32 %v2666_v20, %v2664_v8  ;;  %v2698_v8 = vadd.f32 %v2697_v25, %v2696_v9  ;;  %v2676_v20 = vrot.slane %v2675_v49, 1 }
 0x31c   : > { %v2700_v24 = vrot.slane %v2699_v54, 4  ;;  %v2691_v46 = vadd.f32 %v2690_v37, %v2689_v38  ;;  %v2683_v16 = vrot.slane %v2682_v22, 1 }
 0x31d   : > { %v2707_v2 = vrot.slane %v2706_v15, 4  ;;  %v2732_v57 = vmul.f32 %v2728_v29, %v2698_v8  ;;  %v2677_v62 = vadd.f32 %v2676_v20, %v2675_v49 }
 0x31e   : > { %v2701_v47 = vadd.f32 %v2700_v24, %v2699_v54  ;;  %v2731_v31 = vmul.f32 %v2727_v42, %v2691_v46  ;;  %v2684_v35 = vadd.f32 %v2683_v16, %v2682_v22 }
 0x31f   : > { %v2608_v11 = vpop.f32.mrf.mxu2  ;;  %v2708_v58 = vadd.f32 %v2707_v2, %v2706_v15  ;;  %v2941_v56 = vrot.slane %v2732_v57, 7 }
 0x320   : > { %v2649_v51 = vpop.f32.mrf.mxu3  ;;  %v2702_v60 = vrot.slane %v2701_v47, 2  ;;  %v2667_v17 = vmul.f32 %v2608_v11, %v2548_v55  ;;  %v2730_v63 = vmul.f32 %v2728_v29, %v2684_v35 }
 0x321   : > { %v2709_v48 = vrot.slane %v2708_v58, 2  ;;  %v2668_v59 = vmul.f32 %v2649_v51, %v2549_v7  ;;  %v2935_v51 = vrot.slane %v2731_v31, 7 }
 0x322   : > { %v2703_v61 = vadd.f32 %v2702_v60, %v2701_v47  ;;  %v2729_v60 = vmul.f32 %v2727_v42, %v2677_v62 }
 0x323   : > { %v2710_v39 = vadd.f32 %v2709_v48, %v2708_v58 }
 0x324   : > { %v2704_v13 = vrot.slane %v2703_v61, 1  ;;  %v2936_v38 = vsel %vm2746_vm4, %v2935_v51, %v2729_v60 }
 0x325   : > { %v2711_v55 = vrot.slane %v2710_v39, 1 }
 0x326   : > { %v2705_v7 = vadd.f32 %v2704_v13, %v2703_v61 }
 0x327   : > { %v2611_v0 = vpop.f32.mrf.mxu2  ;;  %v2712_v26 = vadd.f32 %v2711_v55, %v2710_v39 }
 0x328   : > { %v2669_v40 = vmul.f32 %v2611_v0, %v2550_v12  ;;  %v2652_v1 = vpop.f32.mrf.mxu3  ;;  %v2733_v2 = vmul.f32 %v2727_v42, %v2705_v7  ;;  %v2942_v0 = vsel %vm2746_vm4, %v2941_v56, %v2730_v63 }
 0x329   : > { %v2670_v5 = vmul.f32 %v2652_v1, %v2551_v21  ;;  %v2734_v47 = vmul.f32 %v2728_v29, %v2712_v26  ;;  %v2955_v1 = vld [vmem:[%s4793_s6] sm:$0xff] }
 0x32a   : > { %v2713_v3 = vadd.f32 %v2669_v40, %v2667_v17  ;;  %v2937_v53 = vrot.slane %v2733_v2, 6 }
 0x32b   : > { %v2720_v52 = vadd.f32 %v2670_v5, %v2668_v59  ;;  %v2943_v18 = vrot.slane %v2734_v47, 6 }
 0x32c   : > { %v2714_v12 = vrot.slane %v2713_v3, 4  ;;  %v2938_v61 = vsel %vm2749_vm6, %v2937_v53, %v2936_v38 }
 0x32d   : > { %v2721_v41 = vrot.slane %v2720_v52, 4  ;;  %v2944_v17 = vsel %vm2749_vm6, %v2943_v18, %v2942_v0 }
 0x32e   : > { %v2715_v50 = vadd.f32 %v2714_v12, %v2713_v3 }
 0x32f   : > { %v2722_v21 = vadd.f32 %v2721_v41, %v2720_v52 }
 0x330   : > { %v2716_v54 = vrot.slane %v2715_v50, 2 }
 0x331   : > { %v2723_v15 = vrot.slane %v2722_v21, 2 }
 0x332   : > { %v2717_v24 = vadd.f32 %v2716_v54, %v2715_v50 }
 0x333   : > { %v2724_v33 = vadd.f32 %v2723_v15, %v2722_v21 }
 0x334   : > { %v2718_v11 = vrot.slane %v2717_v24, 1 }
 0x335   : > { %v2725_v58 = vrot.slane %v2724_v33, 1 }
 0x336   : > { %v2719_v10 = vadd.f32 %v2718_v11, %v2717_v24 }
 0x337   : > { %v2726_v6 = vadd.f32 %v2725_v58, %v2724_v33 }
 0x338   : > { %v2735_v48 = vmul.f32 %v2727_v42, %v2719_v10 }
 0x339   : > { %v2736_v34 = vmul.f32 %v2728_v29, %v2726_v6 }
 0x33a   : > { %v2939_v9 = vrot.slane %v2735_v48, 5 }
 0x33b   : > { %v2945_v44 = vrot.slane %v2736_v34, 5 }
 0x33c   : > { %v2940_v39 = vsel %vm2752_vm7, %v2939_v9, %v2938_v61 }
 0x33d   : > { %3266 = vmatpush.msk.msra.mxu0 %vm425_vm0, %v2940_v39  ;;  %v2946_v40 = vsel %vm2752_vm7, %v2945_v44, %v2944_v17 }
 0x33e   : > { %3268 = vmatpush.msk.msra.mxu1 %vm425_vm0, %v2946_v40 }
 0x33f   : > { %2975 = vmatpush.msra.mxu0 %v4741_v28  ;;  %v3007_v28 = vpop.permute.xlu2 %3006 }
 0x340   : > { %2995 = vmatpush.msra.mxu1 %v4746_v4 }
 0x341   : > { %2976 = vmatpush.msra.mxu0 %v4640_v14 }
 0x342   : > { %2996 = vmatpush.msra.mxu1 %v4648_v43 }
 0x343   : > { %2977 = vmatpush.msra.mxu0 %v4446_v32 }
 0x344   : > { %2997 = vmatpush.msra.mxu1 %v4450_v23 }
 0x345   : > { %2978 = vmatpush.msra.mxu0 %v4201_v19 }
 0x346   : > { %2998 = vmatpush.msra.mxu1 %v4205_v30  ;;  %3267 = vmatmul.msk.f32.vlgmr.msra.gmra.mxu0 %vm579_vm9, %v2955_v1 }
 0x347   : > { %3269 = vmatmul.msk.f32.vlgmr.msra.gmra.mxu1 %vm579_vm9, %v2955_v1 }
 0x387   : > { %v3013_v4 = vpop.permute.xlu1 %3012 }
 0x3c3   : > { %v2980_v14 = vpop.f32.mrf.mxu0 }
 0x3c4   : > { %v3009_v43 = vmul.f32 %v3007_v28, %v2980_v14  ;;  %v3000_v45 = vpop.f32.mrf.mxu1 }
 0x3c5   : > { %v3010_v32 = vmul.f32 %v3007_v28, %v3000_v45 }
 0x3c6   : > { %v3015_v27 = vadd.f32 %v3013_v4, %v3009_v43 }
 0x3c7   : > { %v3016_v23 = vadd.f32 %v3013_v4, %v3010_v32 }
 0x3c8   : > { %v3017_v19 = vmax.f32 %v3015_v27, 0.0 }
 0x3c9   : > { %v3018_v59 = vmax.f32 %v3016_v23, 0.0 }
 0x3ca   : > { %3019 = vst [vmem:[%s325_s12] sm:$0xff] %v3017_v19 }
 0x3cb   : > { %3020 = vst [vmem:[%s325_s12 + $0x8] sm:$0xff] %v3018_v59 }
 0x3cc PF: > { %s18_s27 = sadd.s32 1, %s3334_s27  }
 0x3cd   : > { %p15_p4 = scmp.ge.s32.totalorder %s18_s27, 4  }
 0x3cf   :  { %17 = sbr.rel (!%p15_p4) target bundleno = 1 (0x1), region = 109 }

// kernel: _lambda_.3
= control target key start
LH: loop header
LB: loop body
LE: loop exit
PB: predicated region body
PF: predicated region fallthrough
CT: control target
= control target key end

     0   :  { %s5082_s17 = smov 0   ;;  %s8144_s0 = inlined_call_operand.vmem [shape: f32[2,128,16], index: 0, kind: input, shape index: {}]   ;;  %s8145_s1 = inlined_call_operand.vmem [shape: f32[2,8,256], index: 1, kind: input, shape index: {}]   ;;  %s8146_s2 = inlined_call_operand.vmem [shape: f32[9,256], index: 2, kind: input, shape index: {}]   ;;  %s8147_s3 = inlined_call_operand.vmem [shape: f32[2,256], index: 3, kind: input, shape index: {}]   ;;  %s8148_s4 = inlined_call_operand.vmem [shape: f32[27,72], index: 4, kind: input, shape index: {}]   ;;  %s8149_s5 = inlined_call_operand.vmem [shape: f32[27,1], index: 5, kind: input, shape index: {}]   ;;  %s8150_s6 = inlined_call_operand.vmem [shape: f32[8,72], index: 6, kind: input, shape index: {}]   ;;  %s8151_s7 = inlined_call_operand.vmem [shape: f32[8,2], index: 7, kind: input, shape index: {}]   ;;  %s8152_s8 = inlined_call_operand.vmem [shape: f32[2,4,256], index: 8, kind: input, shape index: {}]   ;;  %s8153_s9 = inlined_call_operand.vmem [shape: f32[8,4], index: 9, kind: input, shape index: {}]   ;;  %s8154_s10 = inlined_call_operand.vmem [shape: f32[8,2], index: 10, kind: input, shape index: {}]   ;;  %s8155_s11 = inlined_call_operand.vmem [shape: f32[2,8,256], index: 11, kind: output, shape index: {}]  }
   0x1 LB: > { %s4588_s18 = sadd.s32 4294967295, %s5010_s17   ;;  %p4592_p0 = scmp.ge.s32.totalorder %s5010_s17, 1  ;;  %s5010_s17 = sphi %s5082_s17, %s21_s17  }
   0x2   : > { %p357_p1 = scmp.lt.s32.totalorder %s5010_s17, 3 }
   0x4   : > { %p358_p2 = pnand %p4592_p0, %p357_p1 }
   0x6   : > { %361 = sbr.rel (%p358_p2) target bundleno = 1244 (0x4dc), region = 64 }
   0xb   : > { %p407_p3 = scmp.lt.s32.totalorder %s4588_s18, 1  ;;  %s5012_s23 = smov 112   ;;  %v4608_v6 = vld [vmem:[%s8146_s2 + $0x10] ss:$8 sm:$0x3]  ;;  %vm567_vm0 = vcmask 916480  }
   0xc   : > { %s5013_s24 = smov 111   ;;  %s5014_s25 = smov 113   ;;  %vm585_vm1 = vcmask 908288   ;;  %v4607_v7 = vld [vmem:[%s8146_s2 + $0x7] ss:$8 sm:$0x3] }
   0xd   : > { %s8683_s18 = smov (!%p407_p3, %s4588_s18), 1  ;;  %s5015_s26 = smov 127   ;;  %v593_v8 = vperm.slane %v4608_v6, 0  ;;  %v594_v9 = vperm.slane %v4608_v6, 1  ;;  %v576_v10 = vperm.slane %v4607_v7, 1  ;;  %vm549_vm2 = vcmask 924672  }
   0xe   : > { %s4919_s19 = sshll.u32 %s8683_s18, 4  ;;  %s5016_s27 = smov 1   ;;  %v4606_v11 = vld [vmem:[%s8146_s2 + $0x6] ss:$8 sm:$0x3]  ;;  %v5020_v13 = vmov 0  }
   0xf   : > { %s416_s22 = scalar_lea.vmem %s8145_s1, %s4919_s19  ;;  %s5017_s28 = smov 15   ;;  %4944 = vset.pattern.permute.xlu1 %v5020_v13  ;;  %v603_v14 = vld [vmem:[%s8149_s5] sm:$0xff]  ;;  %4946 = vset.pattern.permute.xlu0 %v5020_v13  ;;  %v575_v18 = vperm.slane %v4607_v7, 0  ;;  %v558_v19 = vperm.slane %v4606_v11, 1  ;;  %v557_v26 = vperm.slane %v4606_v11, 0  ;;  %vm531_vm3 = vcmask 1039360  }
  0x10   : > { %v5098_v0 = vld [vmem:[%s416_s22] sm:$0xff]  ;;  %v5103_v1 = vld [vmem:[%s416_s22 + $0x8] sm:$0xff]  ;;  %s5018_s29 = smov 16   ;;  %s5019_s30 = smov 17   ;;  %4945 = vset.pattern.permute.xlu2 %v5020_v13  ;;  %vm504_vm4 = vcmask 7168   ;;  %vm486_vm5 = vcmask 121856  }
  0x11   : > { %563 = vrot.lane.b32.xlu1 %v5098_v0, %s5012_s23  ;;  %581 = vrot.lane.b32.xlu0 %v5098_v0, %s5013_s24  ;;  %v4605_v28 = vld [vmem:[%s8146_s2 + $0x5] ss:$8 sm:$0x3]  ;;  %v4604_v30 = vld [vmem:[%s8146_s2 + $0x4] ss:$8 sm:$0x3] }
  0x12   : > { %545 = vrot.lane.b32.xlu2 %v5098_v0, %s5014_s25  ;;  %v539_v33 = vperm.slane %v4605_v28, 0  ;;  %v4603_v34 = vld [vmem:[%s8146_s2 + $0x3] ss:$8 sm:$0x3]  ;;  %v540_v36 = vperm.slane %v4605_v28, 1  ;;  %v521_v37 = vperm.slane %v4604_v30, 0 }
  0x13   : > { %v522_v38 = vperm.slane %v4604_v30, 1  ;;  %v606_v39 = vld [vmem:[%s8149_s5 + $0x18] sm:$0x7]  ;;  %v512_v42 = vperm.slane %v4603_v34, 0  ;;  %v513_v53 = vperm.slane %v4603_v34, 1  ;;  %v4489_v56 = vld [vmem:[%s8154_s10] sm:$0xff] }
  0x14   : > { %v525_v49 = vmul.f32 %v521_v37, %v5098_v0  ;;  %v4602_v51 = vld [vmem:[%s8146_s2 + $0x2] ss:$8 sm:$0x3]  ;;  %vm451_vm6 = vcmask 138240   ;;  %vm468_vm7 = vcmask 130048   ;;  %vm627_vm8 = vcmask 588800  }
  0x15   : > { %v526_v50 = vmul.f32 %v522_v38, %v5103_v1  ;;  %v494_v54 = vperm.slane %v4602_v51, 0  ;;  %v495_v55 = vperm.slane %v4602_v51, 1  ;;  %vm790_vm9 = vcmask 1040384   ;;  %s4918_s16 = sshll.u32 %s8683_s18, 7 }
  0x16   : > { %s5231_s22 = scalar_lea.vmem %s8144_s0, %s4918_s16 }
  0x19   : > { %565 = vrot.lane.b32.xlu1 %v5103_v1, %s5012_s23  ;;  %583 = vrot.lane.b32.xlu0 %v5103_v1, %s5013_s24 }
  0x1a   : > { %547 = vrot.lane.b32.xlu2 %v5103_v1, %s5014_s25 }
  0x21   : > { %529 = vrot.lane.b32.xlu1 %v5103_v1, %s5015_s26  ;;  %527 = vrot.lane.b32.xlu0 %v5098_v0, %s5015_s26 }
  0x22   : > { %500 = vrot.lane.b32.xlu2 %v5098_v0, %s5016_s27 }
  0x29   : > { %482 = vrot.lane.b32.xlu1 %v5098_v0, %s5017_s28  ;;  %502 = vrot.lane.b32.xlu0 %v5103_v1, %s5016_s27 }
  0x2a   : > { %484 = vrot.lane.b32.xlu2 %v5103_v1, %s5017_s28 }
  0x31   : > { %466 = vrot.lane.b32.xlu1 %v5103_v1, %s5018_s29  ;;  %464 = vrot.lane.b32.xlu0 %v5098_v0, %s5018_s29  ;;  %s4920_s29 = sshll.u32 %s8683_s18, 3 }
  0x32   : > { %447 = vrot.lane.b32.xlu2 %v5098_v0, %s5019_s30  ;;  %s421_s13 = scalar_lea.vmem %s8152_s8, %s4920_s29  ;;  %s426_s29 = scalar_lea.vmem %s8155_s11, %s4919_s19 }
  0x39   : > { %449 = vrot.lane.b32.xlu0 %v5103_v1, %s5019_s30  ;;  %609 = vperm.xlu1 %4944, %v603_v14   ;;  %v4601_v1 = vld [vmem:[%s8146_s2 + $0x1] ss:$8 sm:$0x3] }
  0x41   : > { %624 = vperm.xlu1 %4944, %v606_v39  }
  0x49   : > { %4492 = vperm.xlu1 %4944, %v4489_v56  }
  0x6c   : > { %v546_v2 = vpop.permute.xlu2 %545 }
  0x74   : > { %v548_v3 = vpop.permute.xlu2 %547 }
  0x75   : > { %v553_v15 = vsel %vm549_vm2, %v548_v3, 0.0  ;;  %v550_v29 = vsel %vm549_vm2, %v546_v2, %v548_v3  ;;  %v456_v2 = vld [vmem:[%s8146_s2] ss:$8 sm:$0x3]  ;;  %vm3972_vm2 = vcmask 1041409  }
  0x76   : > { %v562_v32 = vmul.f32 %v558_v19, %v553_v15  ;;  %v561_v35 = vmul.f32 %v557_v26, %v550_v29  ;;  %v458_v6 = vperm.slane %v456_v2, 0  ;;  %v599_v15 = vld [vmem:[%s8148_s4] sm:$0xff]  ;;  %v781_v29 = vlaneseq }
  0x7c   : > { %v5127_v12 = vpop.permute.xlu2 %500 }
  0x7d   : > { %v508_v45 = vsel %vm504_vm4, 0.0, %v5127_v12 }
  0x7e   : > { %v516_v52 = vmul.f32 %v512_v42, %v508_v45 }
  0x83   : > { %v564_v4 = vpop.permute.xlu1 %563  ;;  %v582_v5 = vpop.permute.xlu0 %581 }
  0x84   : > { %v485_v48 = vpop.permute.xlu2 %484 }
  0x8b   : > { %v566_v16 = vpop.permute.xlu1 %565  ;;  %v584_v17 = vpop.permute.xlu0 %583 }
  0x8c   : > { %v568_v20 = vsel %vm567_vm0, %v564_v4, %v566_v16  ;;  %v571_v21 = vsel %vm567_vm0, %v566_v16, 0.0  ;;  %v586_v22 = vsel %vm585_vm1, %v582_v5, %v584_v17  ;;  %v589_v23 = vsel %vm585_vm1, %v584_v17, 0.0  ;;  %v448_v3 = vpop.permute.xlu2 %447 }
  0x8d   : > { %v597_v24 = vmul.f32 %v593_v8, %v586_v22  ;;  %v598_v25 = vmul.f32 %v594_v9, %v589_v23  ;;  %v580_v27 = vmul.f32 %v576_v10, %v571_v21  ;;  %v579_v31 = vmul.f32 %v575_v18, %v568_v20  ;;  %v600_v20 = vld [vmem:[%s8148_s4 + $0x8] sm:$0xff]  ;;  %v601_v21 = vld [vmem:[%s8148_s4 + $0x10] sm:$0xff]  ;;  %v602_v22 = vld [vmem:[%s8148_s4 + $0x18] sm:$0x7] }
  0x8e   : > { %v476_v4 = vperm.slane %v4601_v1, 0  ;;  %v477_v5 = vperm.slane %v4601_v1, 1  ;;  %v455_v7 = vsel %vm451_vm6, 0.0, %v448_v3  ;;  %v459_v16 = vperm.slane %v456_v2, 1  ;;  %v5258_v2 = vld [vmem:[%s5231_s22 + $0x8] sm:$0xff] }
  0x8f   : > { %647 = vmatpush.msra.mxu0 %v597_v24  ;;  %676 = vmatpush.msra.mxu1 %v598_v25  ;;  %v462_v14 = vmul.f32 %v458_v6, %v455_v7 }
  0x91   : > { %648 = vmatpush.msra.mxu0 %v579_v31  ;;  %677 = vmatpush.msra.mxu1 %v580_v27  ;;  %v605_v27 = vld [vmem:[%s8149_s5 + $0x10] sm:$0xff] }
  0x92   : > { %619 = vperm.xlu0 %4946, %v605_v27   ;;  %v5300_v27 = vld [vmem:[%s5231_s22 + $0x38] sm:$0xff] }
  0x93   : > { %v530_v40 = vpop.permute.xlu1 %529  ;;  %649 = vmatpush.msra.mxu0 %v561_v35  ;;  %v528_v41 = vpop.permute.xlu0 %527  ;;  %678 = vmatpush.msra.mxu1 %v562_v32  ;;  %v782_v32 = vshrl.u32 %v781_v29, 7  ;;  %v5303_v29 = vld [vmem:[%s5231_s22 + $0x18] sm:$0xff] }
  0x94   : > { %v535_v43 = vsel %vm531_vm3, %v530_v40, 0.0  ;;  %v532_v44 = vsel %vm531_vm3, %v528_v41, %v530_v40  ;;  %vm3975_vm3 = vcmask 1042434  }
  0x95   : > { %v543_v46 = vmul.f32 %v539_v33, %v532_v44  ;;  %v544_v47 = vmul.f32 %v540_v36, %v535_v43  ;;  %v5211_v33 = vld [vmem:[%s8147_s3 + $0x1] ss:$2 sm:$0x3]  ;;  %v783_v34 = vadd.s32 8, %v782_v32  ;;  %v5218_v40 = vcvt.s32.f32 %v782_v32 }
  0x97   : > { %650 = vmatpush.msra.mxu0 %v543_v46  ;;  %679 = vmatpush.msra.mxu1 %v544_v47  ;;  %v5216_v37 = vcvt.s32.f32 %v783_v34 }
  0x99   : > { %651 = vmatpush.msra.mxu0 %v525_v49  ;;  %680 = vmatpush.msra.mxu1 %v526_v50 }
  0x9b   : > { %v483_v57 = vpop.permute.xlu1 %482  ;;  %v503_v58 = vpop.permute.xlu0 %502  ;;  %652 = vmatpush.msra.mxu0 %v516_v52 }
  0x9c   : > { %v490_v59 = vsel %vm486_vm5, 0.0, %v483_v57  ;;  %v505_v60 = vsel %vm504_vm4, %v5127_v12, %v503_v58  ;;  %v487_v61 = vsel %vm486_vm5, %v483_v57, %v485_v48  ;;  %v5235_v58 = vld [vmem:[%s5231_s22] sm:$0xff]  ;;  %vm3978_vm4 = vcmask 1043459  }
  0x9d   : > { %v517_v62 = vmul.f32 %v513_v53, %v505_v60  ;;  %v498_v63 = vmul.f32 %v494_v54, %v490_v59  ;;  %v499_v0 = vmul.f32 %v495_v55, %v487_v61  ;;  %v5238_v59 = vld [vmem:[%s5231_s22 + $0x20] sm:$0xff]  ;;  %v5241_v60 = vadd.f32 1.0, %v5211_v33  ;;  %v604_v61 = vld [vmem:[%s8149_s5 + $0x8] sm:$0xff] }
  0x9e   : > { %614 = vperm.xlu2 %4945, %v604_v61   ;;  %vm3981_vm5 = vcmask 1044484  }
  0x9f   : > { %681 = vmatpush.msra.mxu1 %v517_v62  ;;  %653 = vmatpush.msra.mxu0 %v498_v63 }
  0xa1   : > { %682 = vmatpush.msra.mxu1 %v499_v0 }
  0xa3   : > { %v467_v8 = vpop.permute.xlu1 %466  ;;  %v465_v9 = vpop.permute.xlu0 %464 }
  0xa4   : > { %v469_v10 = vsel %vm468_vm7, %v465_v9, %v467_v8  ;;  %v472_v11 = vsel %vm468_vm7, 0.0, %v465_v9 }
  0xa5   : > { %v480_v12 = vmul.f32 %v476_v4, %v472_v11  ;;  %v481_v13 = vmul.f32 %v477_v5, %v469_v10 }
  0xa7   : > { %654 = vmatpush.msra.mxu0 %v480_v12  ;;  %683 = vmatpush.msra.mxu1 %v481_v13 }
  0xa9   : > { %655 = vmatpush.msra.mxu0 %v462_v14 }
  0xaa   : > { %4609 = vmatmul.msk.f32.vlgmr.msra.gmra.mxu0 %vm627_vm8, %v599_v15 }
  0xab   : > { %v450_v17 = vpop.permute.xlu0 %449  ;;  %v610_v23 = vpop.permute.xlu1 %609 }
  0xac   : > { %v452_v18 = vsel %vm451_vm6, %v448_v3, %v450_v17  ;;  %v5261_v3 = vld [vmem:[%s5231_s22 + $0x28] sm:$0xff]  ;;  %vm3984_vm6 = vcmask 1045509  }
  0xad   : > { %v463_v19 = vmul.f32 %v459_v16, %v452_v18 }
  0xaf   : > { %684 = vmatpush.msra.mxu1 %v463_v19  ;;  %v5280_v19 = vld [vmem:[%s5231_s22 + $0x30] sm:$0xff] }
  0xb0   : > { %4613 = vmatmul.msk.f32.vlgmr.msra.gmra.mxu1 %vm627_vm8, %v599_v15 }
  0xb2   : > { %4610 = vmatmul.msk.f32.gmra.mxu0 %vm627_vm8, %v600_v20 }
  0xb8   : > { %4614 = vmatmul.msk.f32.gmra.mxu1 %vm627_vm8, %v600_v20 }
  0xba   : > { %4611 = vmatmul.msk.f32.gmra.mxu0 %vm627_vm8, %v601_v21 }
  0xc0   : > { %4615 = vmatmul.msk.f32.gmra.mxu1 %vm627_vm8, %v601_v21  ;;  %v5283_v21 = vld [vmem:[%s5231_s22 + $0x10] sm:$0xff] }
  0xc2   : > { %4612 = vmatmul.msk.f32.gmra.mxu0 %vm627_vm8, %v602_v22 }
  0xc8   : > { %4616 = vmatmul.msk.f32.gmra.mxu1 %vm627_vm8, %v602_v22 }
 0x127   : > { %v657_v24 = vpop.f32.mrf.mxu0 }
 0x128   : > { %v5194_v25 = vadd.f32 %v657_v24, %v610_v23 }
 0x12a   : > { %795 = vst [vmem:[#allocation1] sm:$0xff] %v5194_v25 }
 0x12d   : > { %v686_v26 = vpop.f32.mrf.mxu1 }
 0x12e   : > { %v5200_v28 = vadd.f32 %v686_v26, %v610_v23  ;;  %v5288_v23 = vadd.f32 2.0, %v5211_v33 }
 0x130   : > { %v789_v30 = vrot.slane %v5200_v28, 7  ;;  %796 = vst [vmem:[#allocation1 + $0x9] sm:$0xff] %v5200_v28 }
 0x132   : > { %v5206_v31 = vsel %vm790_vm9, %v5194_v25, %v789_v30 }
 0x137   : > { %v798_v35 = vld [vmem:[#allocation1 + $0x1] ss:$9 sm:$0xff] }
 0x138   : > { %1183 = vst [vmem:[#allocation1] sm:$0xff] %v5194_v25  ;;  %v800_v36 = vadd.f32 %v5211_v33, %v798_v35 }
 0x139   : > { %1184 = vst [vmem:[#allocation1 + $0x9] sm:$0xff] %v5200_v28 }
 0x13a   : > { %v823_v38 = vperm.slane %v800_v36, 0  ;;  %v824_v39 = vperm.slane %v800_v36, 1 }
 0x13c   : > { %v829_v41 = vsub.f32 %v5216_v37, %v823_v38  ;;  %v830_v42 = vsub.f32 %v5216_v37, %v824_v39  ;;  %v827_v43 = vsub.f32 %v5218_v40, %v823_v38  ;;  %v828_v44 = vsub.f32 %v5218_v40, %v824_v39 }
 0x13e   : > { %v833_v45 = vand.u32 2147483647, %v829_v41  ;;  %v834_v46 = vand.u32 2147483647, %v830_v42  ;;  %v831_v47 = vand.u32 2147483647, %v827_v43 }
 0x13f   : > { %v832_v48 = vand.u32 2147483647, %v828_v44 }
 0x140   : > { %v5225_v49 = vld [vmem:[#allocation1 + $0x2] ss:$9 sm:$0xff]  ;;  %v837_v50 = vsub.f32 1.0, %v833_v45  ;;  %v838_v51 = vsub.f32 1.0, %v834_v46  ;;  %v835_v52 = vsub.f32 1.0, %v831_v47 }
 0x141   : > { %8246 = vst [vmem:[#allocation2_spill] sm:$0xff] %v5225_v49  ;;  %v836_v53 = vsub.f32 1.0, %v832_v48  ;;  %v5321_v48 = vld [vmem:[%s5231_s22 + $0x40] sm:$0xff] }
 0x142   : > { %1190 = vst [vmem:[#allocation1] sm:$0xff] %v5194_v25  ;;  %v841_v54 = vmax.f32 %v837_v50, 0.0  ;;  %v842_v55 = vmax.f32 %v838_v51, 0.0  ;;  %v839_v56 = vmax.f32 %v835_v52, 0.0 }
 0x143   : > { %1191 = vst [vmem:[#allocation1 + $0x9] sm:$0xff] %v5200_v28  ;;  %v840_v57 = vmax.f32 %v836_v53, 0.0 }
 0x144   : > { %905 = vmatpush.msrb.mxu0 %v841_v54  ;;  %4922 = vmatpush.msra.mxu2 %v841_v54 }
 0x145   : > { %970 = vmatpush.msrb.mxu1 %v842_v55  ;;  %4924 = vmatpush.msra.mxu3 %v842_v55 }
 0x146   : > { %906 = vmatpush.msrb.mxu0 %v839_v56  ;;  %4923 = vmatpush.msra.mxu2 %v839_v56 }
 0x147   : > { %971 = vmatpush.msrb.mxu1 %v840_v57  ;;  %4925 = vmatpush.msra.mxu3 %v840_v57 }
 0x148   : > { %4622 = vmatmul.msk.f32.vlgmr.msrb.gmra.mxu0 %vm468_vm7, %v5235_v58  ;;  %4626 = vmatmul.msk.f32.vlgmr.msra.gmra.mxu2 %vm468_vm7, %v5238_v59 }
 0x149   : > { %4638 = vmatmul.msk.f32.vlgmr.msrb.gmra.mxu1 %vm468_vm7, %v5235_v58  ;;  %4642 = vmatmul.msk.f32.vlgmr.msra.gmra.mxu3 %vm468_vm7, %v5238_v59 }
 0x14a   : > { %v1193_v62 = vld [vmem:[#allocation1 + $0x3] ss:$9 sm:$0xff] }
 0x14b   : > { %1530 = vst [vmem:[#allocation1] sm:$0xff] %v5194_v25  ;;  %v1195_v63 = vadd.f32 %v1193_v62, %v5241_v60 }
 0x14c   : > { %1531 = vst [vmem:[#allocation1 + $0x9] sm:$0xff] %v5200_v28 }
 0x14d   : > { %v1218_v0 = vperm.slane %v1195_v63, 0  ;;  %v1219_v1 = vperm.slane %v1195_v63, 1 }
 0x14f   : > { %v1224_v4 = vsub.f32 %v5216_v37, %v1218_v0  ;;  %v1225_v5 = vsub.f32 %v5216_v37, %v1219_v1  ;;  %v1222_v6 = vsub.f32 %v5218_v40, %v1218_v0  ;;  %v1223_v7 = vsub.f32 %v5218_v40, %v1219_v1 }
 0x150   : > { %4623 = vmatmul.msk.f32.gmra.mxu0 %vm468_vm7, %v5258_v2  ;;  %4627 = vmatmul.msk.f32.gmra.mxu2 %vm468_vm7, %v5261_v3 }
 0x151   : > { %v1228_v8 = vand.u32 2147483647, %v1224_v4  ;;  %v1229_v9 = vand.u32 2147483647, %v1225_v5  ;;  %v1226_v10 = vand.u32 2147483647, %v1222_v6  ;;  %4639 = vmatmul.msk.f32.gmra.mxu1 %vm468_vm7, %v5258_v2  ;;  %4643 = vmatmul.msk.f32.gmra.mxu3 %vm468_vm7, %v5261_v3 }
 0x152   : > { %v1227_v11 = vand.u32 2147483647, %v1223_v7  ;;  %v5349_v7 = vld [vmem:[%s5231_s22 + $0x50] sm:$0xff] }
 0x153   : > { %v5275_v12 = vld [vmem:[#allocation1 + $0x4] ss:$9 sm:$0xff]  ;;  %v1232_v13 = vsub.f32 1.0, %v1228_v8  ;;  %v1233_v14 = vsub.f32 1.0, %v1229_v9  ;;  %v1230_v15 = vsub.f32 1.0, %v1226_v10 }
 0x154   : > { %1537 = vst [vmem:[#allocation1] sm:$0xff] %v5194_v25  ;;  %v1231_v18 = vsub.f32 1.0, %v1227_v11 }
 0x155   : > { %1538 = vst [vmem:[#allocation1 + $0x9] sm:$0xff] %v5200_v28  ;;  %v1236_v16 = vmax.f32 %v1232_v13, 0.0  ;;  %v1237_v17 = vmax.f32 %v1233_v14, 0.0  ;;  %v1234_v20 = vmax.f32 %v1230_v15, 0.0 }
 0x156   : > { %v1235_v22 = vmax.f32 %v1231_v18, 0.0  ;;  %v5371_v18 = vld [vmem:[%s5231_s22 + $0x60] sm:$0xff] }
 0x157   : > { %1252 = vmatpush.msra.mxu0 %v1236_v16  ;;  %1317 = vmatpush.msra.mxu1 %v1237_v17  ;;  %v5360_v17 = vld [vmem:[%s5231_s22 + $0x58] sm:$0xff] }
 0x158   : > { %4628 = vmatmul.msk.f32.gmra.mxu2 %vm468_vm7, %v5280_v19  ;;  %4624 = vmatmul.msk.f32.gmra.mxu0 %vm468_vm7, %v5283_v21 }
 0x159   : > { %1253 = vmatpush.msra.mxu0 %v1234_v20  ;;  %1318 = vmatpush.msra.mxu1 %v1235_v22  ;;  %v4420_v20 = vld [vmem:[%s8151_s7] sm:$0xff]  ;;  %v5385_v22 = vld [vmem:[%s5231_s22 + $0x68] sm:$0xff] }
 0x15a   : > { %4640 = vmatmul.msk.f32.gmra.mxu1 %vm468_vm7, %v5283_v21  ;;  %4644 = vmatmul.msk.f32.gmra.mxu3 %vm468_vm7, %v5280_v19 }
 0x15b   : > { %4423 = vperm.xlu2 %4945, %v4420_v20  }
 0x15c   : > { %v1540_v24 = vld [vmem:[#allocation1 + $0x5] ss:$9 sm:$0xff] }
 0x15d   : > { %1878 = vst [vmem:[#allocation1] sm:$0xff] %v5194_v25  ;;  %v1542_v26 = vadd.f32 %v1540_v24, %v5288_v23  ;;  %v5396_v24 = vld [vmem:[%s5231_s22 + $0x70] sm:$0xff] }
 0x15e   : > { %1879 = vst [vmem:[#allocation1 + $0x9] sm:$0xff] %v5200_v28 }
 0x15f   : > { %v1565_v30 = vperm.slane %v1542_v26, 0  ;;  %v1566_v32 = vperm.slane %v1542_v26, 1  ;;  %v5407_v26 = vld [vmem:[%s5231_s22 + $0x78] sm:$0xff] }
 0x160   : > { %4629 = vmatmul.msk.f32.gmra.mxu2 %vm468_vm7, %v5300_v27  ;;  %4625 = vmatmul.msk.f32.gmra.mxu0 %vm468_vm7, %v5303_v29 }
 0x161   : > { %v1571_v34 = vsub.f32 %v5216_v37, %v1565_v30  ;;  %v1572_v35 = vsub.f32 %v5216_v37, %v1566_v32  ;;  %v1569_v36 = vsub.f32 %v5218_v40, %v1565_v30  ;;  %v1570_v38 = vsub.f32 %v5218_v40, %v1566_v32  ;;  %v660_v30 = vpop.f32.mrf.mxu0  ;;  %v689_v32 = vpop.f32.mrf.mxu1 }
 0x162   : > { %4641 = vmatmul.msk.f32.gmra.mxu1 %vm468_vm7, %v5303_v29  ;;  %4645 = vmatmul.msk.f32.gmra.mxu3 %vm468_vm7, %v5300_v27 }
 0x163   : > { %v1575_v39 = vand.u32 2147483647, %v1571_v34  ;;  %v1576_v41 = vand.u32 2147483647, %v1572_v35  ;;  %v1573_v42 = vand.u32 2147483647, %v1569_v36  ;;  %v615_v34 = vpop.permute.xlu2 %614 }
 0x164   : > { %v1574_v44 = vand.u32 2147483647, %v1570_v38  ;;  %v5417_v35 = vadd.f32 %v660_v30, %v615_v34  ;;  %v5419_v36 = vadd.f32 %v689_v32, %v615_v34 }
 0x165   : > { %v5317_v43 = vld [vmem:[#allocation1 + $0x6] ss:$9 sm:$0xff]  ;;  %v1579_v45 = vsub.f32 1.0, %v1575_v39  ;;  %v1580_v46 = vsub.f32 1.0, %v1576_v41  ;;  %v1577_v47 = vsub.f32 1.0, %v1573_v42 }
 0x166   : > { %8247 = vst [vmem:[#allocation3_spill] sm:$0xff] %v5317_v43  ;;  %v1578_v50 = vsub.f32 1.0, %v1574_v44  ;;  %v2226_v38 = vrot.slane %v5419_v36, 7  ;;  %v5451_v44 = vld [vmem:[%s8147_s3] ss:$2 sm:$0x3] }
 0x167   : > { %1884 = vst [vmem:[#allocation1] sm:$0xff] %v5194_v25  ;;  %v1583_v51 = vmax.f32 %v1579_v45, 0.0  ;;  %v1584_v52 = vmax.f32 %v1580_v46, 0.0  ;;  %v1581_v53 = vmax.f32 %v1577_v47, 0.0  ;;  %v793_v46 = vadd.f32 %v5206_v31, %v5451_v44 }
 0x168   : > { %1885 = vst [vmem:[#allocation1 + $0x9] sm:$0xff] %v5200_v28  ;;  %4630 = vmatmul.msk.f32.gmra.mxu2 %vm468_vm7, %v5321_v48  ;;  %v1582_v54 = vmax.f32 %v1578_v50, 0.0  ;;  %4654 = vmatmul.msk.f32.vlgmr.msra.gmra.mxu0 %vm468_vm7, %v5235_v58  ;;  %v5333_v28 = vld [vmem:[%s5231_s22 + $0x48] sm:$0xff]  ;;  %v5440_v41 = vsel %vm790_vm9, %v5417_v35, %v2226_v38 }
 0x169   : > { %1599 = vmatpush.msrb.mxu2 %v1583_v51  ;;  %1664 = vmatpush.msrb.mxu3 %v1584_v52  ;;  %v5442_v42 = vpop.f32.mrf.mxu0  ;;  %v5453_v45 = vpop.f32.mrf.mxu1  ;;  %v802_v50 = vperm.slane %v793_v46, 0  ;;  %v803_v51 = vperm.slane %v793_v46, 1 }
 0x16a   : > { %4646 = vmatmul.msk.f32.gmra.mxu3 %vm468_vm7, %v5321_v48  ;;  %4670 = vmatmul.msk.f32.vlgmr.msra.gmra.mxu1 %vm468_vm7, %v5235_v58 }
 0x16b   : > { %1600 = vmatpush.msrb.mxu2 %v1581_v53  ;;  %1665 = vmatpush.msrb.mxu3 %v1582_v54  ;;  %v806_v53 = vsub.f32 %v5218_v40, %v802_v50  ;;  %v807_v54 = vsub.f32 %v5218_v40, %v803_v51 }
 0x16f   : > { %v1887_v25 = vld [vmem:[#allocation1 + $0x7] ss:$9 sm:$0xff] }
 0x170   : > { %v1889_v55 = vadd.f32 %v5211_v33, %v1887_v25  ;;  %4631 = vmatmul.msk.f32.gmra.mxu2 %vm468_vm7, %v5333_v28  ;;  %4655 = vmatmul.msk.f32.gmra.mxu0 %vm468_vm7, %v5258_v2  ;;  %2230 = vst [vmem:[#allocation1] sm:$0xff] %v5417_v35 }
 0x171   : > { %2231 = vst [vmem:[#allocation1 + $0x9] sm:$0xff] %v5419_v36  ;;  %v5469_v52 = vpop.f32.mrf.mxu0  ;;  %v5473_v31 = vpop.f32.mrf.mxu1 }
 0x172   : > { %v1912_v56 = vperm.slane %v1889_v55, 0  ;;  %v1913_v57 = vperm.slane %v1889_v55, 1  ;;  %4647 = vmatmul.msk.f32.gmra.mxu3 %vm468_vm7, %v5333_v28  ;;  %4671 = vmatmul.msk.f32.gmra.mxu1 %vm468_vm7, %v5258_v2  ;;  %8249 = vst [vmem:[#allocation5_spill] sm:$0xff] %v5469_v52  ;;  %v810_v55 = vand.u32 2147483647, %v806_v53 }
 0x173   : > { %8250 = vst [vmem:[#allocation6_spill] sm:$0xff] %v5473_v31 }
 0x174   : > { %v1918_v61 = vsub.f32 %v5216_v37, %v1912_v56  ;;  %v1919_v62 = vsub.f32 %v5216_v37, %v1913_v57  ;;  %v1916_v63 = vsub.f32 %v5218_v40, %v1912_v56  ;;  %v1917_v0 = vsub.f32 %v5218_v40, %v1913_v57 }
 0x175   : > { %v811_v56 = vand.u32 2147483647, %v807_v54 }
 0x176   : > { %v1922_v1 = vand.u32 2147483647, %v1918_v61  ;;  %v1923_v4 = vand.u32 2147483647, %v1919_v62  ;;  %v1920_v5 = vand.u32 2147483647, %v1916_v63  ;;  %v808_v63 = vsub.f32 %v5216_v37, %v802_v50 }
 0x177   : > { %v1921_v6 = vand.u32 2147483647, %v1917_v0  ;;  %v814_v61 = vsub.f32 1.0, %v810_v55  ;;  %v815_v0 = vsub.f32 1.0, %v811_v56 }
 0x178   : > { %v1926_v8 = vsub.f32 1.0, %v1922_v1  ;;  %v1927_v9 = vsub.f32 1.0, %v1923_v4  ;;  %v1924_v10 = vsub.f32 1.0, %v1920_v5  ;;  %4632 = vmatmul.msk.f32.gmra.mxu2 %vm468_vm7, %v5349_v7  ;;  %4656 = vmatmul.msk.f32.gmra.mxu0 %vm468_vm7, %v5283_v21  ;;  %v5432_v39 = vld [vmem:[#allocation1 + $0x1] ss:$9 sm:$0xff]  ;;  %v809_v1 = vsub.f32 %v5216_v37, %v803_v51 }
 0x179   : > { %v1925_v11 = vsub.f32 1.0, %v1921_v6  ;;  %2570 = vst [vmem:[#allocation1] sm:$0xff] %v5417_v35  ;;  %v5497_v4 = vmax.f32 %v814_v61, 0.0  ;;  %v812_v5 = vand.u32 2147483647, %v808_v63 }
 0x17a   : > { %v1930_v13 = vmax.f32 %v1926_v8, 0.0  ;;  %v1931_v14 = vmax.f32 %v1927_v9, 0.0  ;;  %v1928_v15 = vmax.f32 %v1924_v10, 0.0  ;;  %4648 = vmatmul.msk.f32.gmra.mxu3 %vm468_vm7, %v5349_v7  ;;  %4672 = vmatmul.msk.f32.gmra.mxu1 %vm468_vm7, %v5283_v21  ;;  %2571 = vst [vmem:[#allocation1 + $0x9] sm:$0xff] %v5419_v36  ;;  %v5501_v8 = vmax.f32 %v815_v0, 0.0 }
 0x17b   : > { %v1929_v16 = vmax.f32 %v1925_v11, 0.0  ;;  %v813_v10 = vand.u32 2147483647, %v809_v1 }
 0x17c   : > { %1946 = vmatpush.msrb.mxu0 %v1930_v13  ;;  %2011 = vmatpush.msrb.mxu1 %v1931_v14 }
 0x17d   : > { %v817_v30 = vsub.f32 1.0, %v813_v10 }
 0x17e   : > { %1947 = vmatpush.msrb.mxu0 %v1928_v15  ;;  %2012 = vmatpush.msrb.mxu1 %v1929_v16  ;;  %v816_v16 = vsub.f32 1.0, %v812_v5 }
 0x17f   : > { %v5521_v34 = vmax.f32 %v817_v30, 0.0 }
 0x180   : > { %4633 = vmatmul.msk.f32.gmra.mxu2 %vm468_vm7, %v5360_v17  ;;  %4657 = vmatmul.msk.f32.gmra.mxu0 %vm468_vm7, %v5303_v29  ;;  %v5519_v32 = vmax.f32 %v816_v16, 0.0 }
 0x181   : > { %v5461_v47 = vld [vmem:[#allocation1 + $0x2] ss:$9 sm:$0xff] }
 0x182   : > { %4649 = vmatmul.msk.f32.gmra.mxu3 %vm468_vm7, %v5360_v17  ;;  %4673 = vmatmul.msk.f32.gmra.mxu1 %vm468_vm7, %v5303_v29  ;;  %8248 = vst [vmem:[#allocation4_spill] sm:$0xff] %v5461_v47 }
 0x183   : > { %2576 = vst [vmem:[#allocation1] sm:$0xff] %v5417_v35 }
 0x184   : > { %2577 = vst [vmem:[#allocation1 + $0x9] sm:$0xff] %v5419_v36 }
 0x188   : > { %4634 = vmatmul.msk.f32.gmra.mxu2 %vm468_vm7, %v5371_v18  ;;  %4658 = vmatmul.msk.f32.gmra.mxu0 %vm468_vm7, %v5238_v59 }
 0x18a   : > { %4650 = vmatmul.msk.f32.gmra.mxu3 %vm468_vm7, %v5371_v18  ;;  %4674 = vmatmul.msk.f32.gmra.mxu1 %vm468_vm7, %v5238_v59 }
 0x18b   : > { %v5479_v25 = vld [vmem:[#allocation1 + $0x3] ss:$9 sm:$0xff] }
 0x18c   : > { %2917 = vst [vmem:[#allocation1] sm:$0xff] %v5417_v35  ;;  %v5567_v16 = vadd.f32 %v5479_v25, %v5288_v23 }
 0x18d   : > { %2918 = vst [vmem:[#allocation1 + $0x9] sm:$0xff] %v5419_v36 }
 0x190   : > { %4635 = vmatmul.msk.f32.gmra.mxu2 %vm468_vm7, %v5385_v22  ;;  %4659 = vmatmul.msk.f32.gmra.mxu0 %vm468_vm7, %v5261_v3 }
 0x192   : > { %4651 = vmatmul.msk.f32.gmra.mxu3 %vm468_vm7, %v5385_v22  ;;  %4675 = vmatmul.msk.f32.gmra.mxu1 %vm468_vm7, %v5261_v3 }
 0x194   : > { %v5499_v6 = vld [vmem:[#allocation1 + $0x4] ss:$9 sm:$0xff] }
 0x195   : > { %8251 = vst [vmem:[#allocation7_spill] sm:$0xff] %v5499_v6 }
 0x196   : > { %2923 = vst [vmem:[#allocation1] sm:$0xff] %v5417_v35 }
 0x197   : > { %2924 = vst [vmem:[#allocation1 + $0x9] sm:$0xff] %v5419_v36 }
 0x198   : > { %4636 = vmatmul.msk.f32.gmra.mxu2 %vm468_vm7, %v5396_v24  ;;  %4660 = vmatmul.msk.f32.gmra.mxu0 %vm468_vm7, %v5280_v19 }
 0x19a   : > { %4652 = vmatmul.msk.f32.gmra.mxu3 %vm468_vm7, %v5396_v24  ;;  %4676 = vmatmul.msk.f32.gmra.mxu1 %vm468_vm7, %v5280_v19 }
 0x19e   : > { %v5527_v46 = vld [vmem:[#allocation1 + $0x5] ss:$9 sm:$0xff] }
 0x19f   : > { %3263 = vst [vmem:[#allocation1] sm:$0xff] %v5417_v35 }
 0x1a0   : > { %4637 = vmatmul.msk.f32.gmra.mxu2 %vm468_vm7, %v5407_v26  ;;  %4661 = vmatmul.msk.f32.gmra.mxu0 %vm468_vm7, %v5300_v27  ;;  %3264 = vst [vmem:[#allocation1 + $0x9] sm:$0xff] %v5419_v36 }
 0x1a2   : > { %4653 = vmatmul.msk.f32.gmra.mxu3 %vm468_vm7, %v5407_v26  ;;  %4677 = vmatmul.msk.f32.gmra.mxu1 %vm468_vm7, %v5300_v27 }
 0x1a7   : > { %v5550_v1 = vld [vmem:[#allocation1 + $0x6] ss:$9 sm:$0xff] }
 0x1a8   : > { %4686 = vmatmul.msk.f32.vlgmr.msrb.gmra.mxu2 %vm468_vm7, %v5235_v58  ;;  %4662 = vmatmul.msk.f32.gmra.mxu0 %vm468_vm7, %v5321_v48  ;;  %8252 = vst [vmem:[#allocation8_spill] sm:$0xff] %v5550_v1 }
 0x1a9   : > { %3269 = vst [vmem:[#allocation1] sm:$0xff] %v5417_v35 }
 0x1aa   : > { %4702 = vmatmul.msk.f32.vlgmr.msrb.gmra.mxu3 %vm468_vm7, %v5235_v58  ;;  %4678 = vmatmul.msk.f32.gmra.mxu1 %vm468_vm7, %v5321_v48  ;;  %3270 = vst [vmem:[#allocation1 + $0x9] sm:$0xff] %v5419_v36 }
 0x1b0   : > { %4687 = vmatmul.msk.f32.gmra.mxu2 %vm468_vm7, %v5258_v2  ;;  %4663 = vmatmul.msk.f32.gmra.mxu0 %vm468_vm7, %v5333_v28 }
 0x1b2   : > { %4703 = vmatmul.msk.f32.gmra.mxu3 %vm468_vm7, %v5258_v2  ;;  %4679 = vmatmul.msk.f32.gmra.mxu1 %vm468_vm7, %v5333_v28 }
 0x1b8   : > { %4688 = vmatmul.msk.f32.gmra.mxu2 %vm468_vm7, %v5283_v21  ;;  %4664 = vmatmul.msk.f32.gmra.mxu0 %vm468_vm7, %v5349_v7 }
 0x1ba   : > { %4704 = vmatmul.msk.f32.gmra.mxu3 %vm468_vm7, %v5283_v21  ;;  %4680 = vmatmul.msk.f32.gmra.mxu1 %vm468_vm7, %v5349_v7 }
 0x1c0   : > { %4689 = vmatmul.msk.f32.gmra.mxu2 %vm468_vm7, %v5303_v29  ;;  %4665 = vmatmul.msk.f32.gmra.mxu0 %vm468_vm7, %v5360_v17 }
 0x1c2   : > { %4705 = vmatmul.msk.f32.gmra.mxu3 %vm468_vm7, %v5303_v29  ;;  %4681 = vmatmul.msk.f32.gmra.mxu1 %vm468_vm7, %v5360_v17 }
 0x1c5   : > { %v5489_v57 = vpop.f32.mrf.mxu0 }
 0x1c6   : > { %v5491_v62 = vpop.f32.mrf.mxu1 }
 0x1c8   : > { %4690 = vmatmul.msk.f32.gmra.mxu2 %vm468_vm7, %v5238_v59  ;;  %4666 = vmatmul.msk.f32.gmra.mxu0 %vm468_vm7, %v5371_v18 }
 0x1ca   : > { %4706 = vmatmul.msk.f32.gmra.mxu3 %vm468_vm7, %v5238_v59  ;;  %4682 = vmatmul.msk.f32.gmra.mxu1 %vm468_vm7, %v5371_v18 }
 0x1cb   : > { %v920_v9 = vpop.f32.mrf.mxu2 }
 0x1cc   : > { %v1029_v11 = vmul.f32 %v920_v9, %v5497_v4  ;;  %v985_v13 = vpop.f32.mrf.mxu3 }
 0x1cd   : > { %v1030_v14 = vmul.f32 %v985_v13, %v5501_v8  ;;  %v5513_v15 = vpop.f32.mrf.mxu0  ;;  %v620_v13 = vpop.permute.xlu0 %619 }
 0x1ce   : > { %v5515_v20 = vpop.f32.mrf.mxu1 }
 0x1d0   : > { %4691 = vmatmul.msk.f32.gmra.mxu2 %vm468_vm7, %v5261_v3  ;;  %4667 = vmatmul.msk.f32.gmra.mxu0 %vm468_vm7, %v5385_v22 }
 0x1d2   : > { %4707 = vmatmul.msk.f32.gmra.mxu3 %vm468_vm7, %v5261_v3  ;;  %4683 = vmatmul.msk.f32.gmra.mxu1 %vm468_vm7, %v5385_v22 }
 0x1d3   : > { %v923_v38 = vpop.f32.mrf.mxu2 }
 0x1d4   : > { %v1031_v50 = vmul.f32 %v923_v38, %v5519_v32  ;;  %v988_v51 = vpop.f32.mrf.mxu3  ;;  %v5574_v38 = vadd.f32 %v5442_v42, %v620_v13 }
 0x1d5   : > { %v1032_v53 = vmul.f32 %v988_v51, %v5521_v34  ;;  %v5537_v55 = vpop.f32.mrf.mxu0 }
 0x1d6   : > { %v5535_v54 = vadd.f32 %v1031_v50, %v1029_v11 }
 0x1d7   : > { %v5539_v56 = vadd.f32 %v1032_v53, %v1030_v14  ;;  %v5541_v61 = vpop.f32.mrf.mxu1  ;;  %v2235_v14 = vadd.f32 %v5432_v39, %v5241_v60  ;;  %v2604_v53 = vperm.slane %v5567_v16, 0 }
 0x1d8   : > { %4692 = vmatmul.msk.f32.gmra.mxu2 %vm468_vm7, %v5280_v19  ;;  %4668 = vmatmul.msk.f32.gmra.mxu0 %vm468_vm7, %v5396_v24 }
 0x1d9   : > { %v2258_v36 = vperm.slane %v2235_v14, 0  ;;  %v2259_v30 = vperm.slane %v2235_v14, 1 }
 0x1da   : > { %4708 = vmatmul.msk.f32.gmra.mxu3 %vm468_vm7, %v5280_v19  ;;  %4684 = vmatmul.msk.f32.gmra.mxu1 %vm468_vm7, %v5396_v24 }
 0x1db   : > { %v926_v63 = vpop.f32.mrf.mxu2  ;;  %v2264_v25 = vsub.f32 %v5216_v37, %v2258_v36  ;;  %v2265_v51 = vsub.f32 %v5216_v37, %v2259_v30  ;;  %v2262_v43 = vsub.f32 %v5218_v40, %v2258_v36 }
 0x1dc   : > { %v1033_v0 = vmul.f32 %v926_v63, %v5497_v4  ;;  %v5582_v63 = vld [vmem:[#allocation1 + $0x7] ss:$9 sm:$0xff] }
 0x1dd   : > { %v991_v5 = vpop.f32.mrf.mxu3  ;;  %v5556_v10 = vpop.f32.mrf.mxu0  ;;  %3615 = vst [vmem:[#allocation1] sm:$0xff] %v5574_v38  ;;  %v2268_v1 = vand.u32 2147483647, %v2264_v25  ;;  %v2269_v6 = vand.u32 2147483647, %v2265_v51 }
 0x1de   : > { %v1034_v9 = vmul.f32 %v991_v5, %v5501_v8  ;;  %v5585_v5 = vadd.f32 %v5453_v45, %v620_v13 }
 0x1df   : > { %v5559_v11 = vpop.f32.mrf.mxu1  ;;  %v2273_v13 = vsub.f32 1.0, %v2269_v6 }
 0x1e0   : > { %4693 = vmatmul.msk.f32.gmra.mxu2 %vm468_vm7, %v5300_v27  ;;  %4669 = vmatmul.msk.f32.gmra.mxu0 %vm468_vm7, %v5407_v26  ;;  %3616 = vst [vmem:[#allocation1 + $0x9] sm:$0xff] %v5585_v5 }
 0x1e1   : > { %v2277_v25 = vmax.f32 %v2273_v13, 0.0 }
 0x1e2   : > { %4709 = vmatmul.msk.f32.gmra.mxu3 %vm468_vm7, %v5300_v27  ;;  %4685 = vmatmul.msk.f32.gmra.mxu1 %vm468_vm7, %v5407_v26 }
 0x1e3   : > { %v929_v35 = vpop.f32.mrf.mxu2  ;;  %2357 = vmatpush.msra.mxu3 %v2277_v25 }
 0x1e4   : > { %v1035_v50 = vmul.f32 %v929_v35, %v5519_v32 }
 0x1e5   : > { %v994_v39 = vpop.f32.mrf.mxu3  ;;  %v5592_v35 = vpop.f32.mrf.mxu0 }
 0x1e6   : > { %v5587_v14 = vadd.f32 %v1035_v50, %v1033_v0  ;;  %v1036_v42 = vmul.f32 %v994_v39, %v5521_v34  ;;  %8253 = vst [vmem:[#allocation9_spill] sm:$0xff] %v5592_v35  ;;  %v2272_v0 = vsub.f32 1.0, %v2268_v1  ;;  %v2610_v50 = vsub.f32 %v5216_v37, %v2604_v53  ;;  %v4435_v1 = vld [vmem:[%s421_s13] sm:$0xff] }
 0x1e7   : > { %v5599_v45 = vpop.f32.mrf.mxu1  ;;  %v2605_v35 = vperm.slane %v5567_v16, 1 }
 0x1e8   : > { %v5594_v47 = vadd.f32 %v1036_v42, %v1034_v9  ;;  %4694 = vmatmul.msk.f32.gmra.mxu2 %vm468_vm7, %v5321_v48  ;;  %8254 = vst [vmem:[#allocation10_spill] sm:$0xff] %v5599_v45  ;;  %4718 = vmatmul.msk.f32.vlgmr.msrb.gmra.mxu0 %vm468_vm7, %v5235_v58  ;;  %v2276_v39 = vmax.f32 %v2272_v0, 0.0  ;;  %v2614_v51 = vand.u32 2147483647, %v2610_v50  ;;  %v2266_v50 = vand.u32 2147483647, %v2262_v43 }
 0x1e9   : > { %v2611_v13 = vsub.f32 %v5216_v37, %v2605_v35 }
 0x1ea   : > { %4710 = vmatmul.msk.f32.gmra.mxu3 %vm468_vm7, %v5321_v48  ;;  %4734 = vmatmul.msk.f32.vlgmr.msrb.gmra.mxu1 %vm468_vm7, %v5235_v58  ;;  %v2618_v45 = vsub.f32 1.0, %v2614_v51  ;;  %v2270_v36 = vsub.f32 1.0, %v2266_v50  ;;  %v2263_v51 = vsub.f32 %v5218_v40, %v2259_v30  ;;  %v2608_v30 = vsub.f32 %v5218_v40, %v2604_v53 }
 0x1eb   : > { %v932_v9 = vpop.f32.mrf.mxu2  ;;  %2292 = vmatpush.msra.mxu2 %v2276_v39  ;;  %v2615_v16 = vand.u32 2147483647, %v2611_v13  ;;  %v2928_v53 = vadd.f32 %v5211_v33, %v5527_v46  ;;  %v3274_v33 = vadd.f32 %v5582_v63, %v5241_v60 }
 0x1ec   : > { %v1037_v42 = vmul.f32 %v932_v9, %v5497_v4  ;;  %v2622_v0 = vmax.f32 %v2618_v45, 0.0  ;;  %v5618_v9 = vld [vmem:[#allocation1 + $0x1] ss:$9 sm:$0xff]  ;;  %v2274_v25 = vmax.f32 %v2270_v36, 0.0 }
 0x1ed   : > { %v997_v6 = vpop.f32.mrf.mxu3  ;;  %v5615_v31 = vpop.f32.mrf.mxu0  ;;  %4437 = vst [vmem:[#allocation1] ss:$2 sm:$0xff] %v4435_v1  ;;  %v2619_v45 = vsub.f32 1.0, %v2615_v16  ;;  %v2612_v16 = vand.u32 2147483647, %v2608_v30 }
 0x1ee   : > { %v1038_v49 = vmul.f32 %v997_v6, %v5501_v8  ;;  %8255 = vst [vmem:[#allocation11_spill] sm:$0xff] %v5615_v31  ;;  %2638 = vmatpush.msra.mxu0 %v2622_v0  ;;  %v2267_v6 = vand.u32 2147483647, %v2263_v51  ;;  %2293 = vmatpush.msra.mxu2 %v2274_v25  ;;  %v2609_v51 = vsub.f32 %v5218_v40, %v2605_v35 }
 0x1ef   : > { %v5622_v39 = vpop.f32.mrf.mxu1  ;;  %v2623_v0 = vmax.f32 %v2619_v45, 0.0  ;;  %v2616_v45 = vsub.f32 1.0, %v2612_v16 }
 0x1f0   : > { %4695 = vmatmul.msk.f32.gmra.mxu2 %vm468_vm7, %v5333_v28  ;;  %8256 = vst [vmem:[#allocation12_spill] sm:$0xff] %v5622_v39  ;;  %4719 = vmatmul.msk.f32.gmra.mxu0 %vm468_vm7, %v5258_v2  ;;  %v2271_v13 = vsub.f32 1.0, %v2267_v6 }
 0x1f1   : > { %2703 = vmatpush.msra.mxu1 %v2623_v0  ;;  %v2620_v6 = vmax.f32 %v2616_v45, 0.0 }
 0x1f2   : > { %4711 = vmatmul.msk.f32.gmra.mxu3 %vm468_vm7, %v5333_v28  ;;  %4735 = vmatmul.msk.f32.gmra.mxu1 %vm468_vm7, %v5258_v2  ;;  %v2275_v52 = vmax.f32 %v2271_v13, 0.0 }
 0x1f3   : > { %v935_v43 = vpop.f32.mrf.mxu2  ;;  %2639 = vmatpush.msra.mxu0 %v2620_v6 }
 0x1f4   : > { %v1039_v31 = vmul.f32 %v935_v43, %v5519_v32  ;;  %2358 = vmatpush.msra.mxu3 %v2275_v52  ;;  %v2951_v52 = vperm.slane %v2928_v53, 0 }
 0x1f5   : > { %v1000_v1 = vpop.f32.mrf.mxu3  ;;  %v5636_v36 = vpop.f32.mrf.mxu0 }
 0x1f6   : > { %v5633_v50 = vadd.f32 %v1039_v31, %v1037_v42  ;;  %v1040_v39 = vmul.f32 %v1000_v1, %v5521_v34  ;;  %8257 = vst [vmem:[#allocation13_spill] sm:$0xff] %v5636_v36  ;;  %v2613_v31 = vand.u32 2147483647, %v2609_v51  ;;  %v2957_v13 = vsub.f32 %v5216_v37, %v2951_v52 }
 0x1f7   : > { %v5643_v25 = vpop.f32.mrf.mxu1  ;;  %v3297_v51 = vperm.slane %v3274_v33, 0 }
 0x1f8   : > { %4696 = vmatmul.msk.f32.gmra.mxu2 %vm468_vm7, %v5349_v7  ;;  %v5641_v43 = vadd.f32 %v1040_v39, %v1038_v49  ;;  %8258 = vst [vmem:[#allocation14_spill] sm:$0xff] %v5643_v25  ;;  %4720 = vmatmul.msk.f32.gmra.mxu0 %vm468_vm7, %v5283_v21  ;;  %v2617_v49 = vsub.f32 1.0, %v2613_v31  ;;  %v2952_v39 = vperm.slane %v2928_v53, 1  ;;  %v2961_v45 = vand.u32 2147483647, %v2957_v13 }
 0x1fa   : > { %4712 = vmatmul.msk.f32.gmra.mxu3 %vm468_vm7, %v5349_v7  ;;  %4736 = vmatmul.msk.f32.gmra.mxu1 %vm468_vm7, %v5283_v21  ;;  %v2621_v0 = vmax.f32 %v2617_v49, 0.0  ;;  %v2958_v16 = vsub.f32 %v5216_v37, %v2952_v39  ;;  %v2965_v6 = vsub.f32 1.0, %v2961_v45 }
 0x1fb   : > { %v938_v42 = vpop.f32.mrf.mxu2 }
 0x1fc   : > { %v1041_v35 = vmul.f32 %v938_v42, %v5497_v4  ;;  %2704 = vmatpush.msra.mxu1 %v2621_v0  ;;  %v2962_v53 = vand.u32 2147483647, %v2958_v16  ;;  %v3303_v42 = vsub.f32 %v5216_v37, %v3297_v51  ;;  %v2969_v25 = vmax.f32 %v2965_v6, 0.0 }
 0x1fd   : > { %v1003_v1 = vpop.f32.mrf.mxu3  ;;  %v5658_v30 = vpop.f32.mrf.mxu0 }
 0x1fe   : > { %v1042_v46 = vmul.f32 %v1003_v1, %v5501_v8  ;;  %8259 = vst [vmem:[#allocation15_spill] sm:$0xff] %v5658_v30  ;;  %v2966_v49 = vsub.f32 1.0, %v2962_v53  ;;  %v3298_v1 = vperm.slane %v3274_v33, 1  ;;  %v3307_v0 = vand.u32 2147483647, %v3303_v42  ;;  %2985 = vmatpush.msrb.mxu2 %v2969_v25 }
 0x1ff   : > { %v5663_v31 = vpop.f32.mrf.mxu1  ;;  %v2955_v53 = vsub.f32 %v5218_v40, %v2951_v52 }
 0x200   : > { %4697 = vmatmul.msk.f32.gmra.mxu2 %vm468_vm7, %v5360_v17  ;;  %8260 = vst [vmem:[#allocation16_spill] sm:$0xff] %v5663_v31  ;;  %4721 = vmatmul.msk.f32.gmra.mxu0 %vm468_vm7, %v5303_v29  ;;  %v2970_v31 = vmax.f32 %v2966_v49, 0.0  ;;  %v3311_v45 = vsub.f32 1.0, %v3307_v0  ;;  %v3304_v33 = vsub.f32 %v5216_v37, %v3298_v1  ;;  %v3301_v0 = vsub.f32 %v5218_v40, %v3297_v51 }
 0x201   : > { %v2959_v49 = vand.u32 2147483647, %v2955_v53 }
 0x202   : > { %4713 = vmatmul.msk.f32.gmra.mxu3 %vm468_vm7, %v5360_v17  ;;  %4737 = vmatmul.msk.f32.gmra.mxu1 %vm468_vm7, %v5303_v29  ;;  %v3315_v42 = vmax.f32 %v3311_v45, 0.0  ;;  %v3305_v53 = vand.u32 2147483647, %v3301_v0 }
 0x203   : > { %v941_v60 = vpop.f32.mrf.mxu2  ;;  %3050 = vmatpush.msrb.mxu3 %v2970_v31 }
 0x204   : > { %v1043_v63 = vmul.f32 %v941_v60, %v5519_v32  ;;  %v3308_v60 = vand.u32 2147483647, %v3304_v33  ;;  %3331 = vmatpush.msrb.mxu0 %v3315_v42 }
 0x205   : > { %v1006_v16 = vpop.f32.mrf.mxu3  ;;  %v5676_v30 = vpop.f32.mrf.mxu0 }
 0x206   : > { %v5673_v13 = vadd.f32 %v1043_v63, %v1041_v35  ;;  %v1044_v36 = vmul.f32 %v1006_v16, %v5521_v34  ;;  %v3312_v6 = vsub.f32 1.0, %v3308_v60  ;;  %v3302_v60 = vsub.f32 %v5218_v40, %v3298_v1 }
 0x207   : > { %v5684_v35 = vpop.f32.mrf.mxu1 }
 0x208   : > { %4698 = vmatmul.msk.f32.gmra.mxu2 %vm468_vm7, %v5371_v18  ;;  %v5682_v29 = vadd.f32 %v1044_v36, %v1042_v46  ;;  %8261 = vst [vmem:[#allocation17_spill] sm:$0xff] %v5684_v35  ;;  %4722 = vmatmul.msk.f32.gmra.mxu0 %vm468_vm7, %v5238_v59  ;;  %v2956_v36 = vsub.f32 %v5218_v40, %v2952_v39  ;;  %v3316_v52 = vmax.f32 %v3312_v6, 0.0  ;;  %v2963_v46 = vsub.f32 1.0, %v2959_v49 }
 0x209   : > { %v3309_v39 = vsub.f32 1.0, %v3305_v53 }
 0x20a   : > { %4714 = vmatmul.msk.f32.gmra.mxu3 %vm468_vm7, %v5371_v18  ;;  %4738 = vmatmul.msk.f32.gmra.mxu1 %vm468_vm7, %v5238_v59  ;;  %v2967_v45 = vmax.f32 %v2963_v46, 0.0  ;;  %v2960_v33 = vand.u32 2147483647, %v2956_v36  ;;  %v4617_v36 = vmul.f32 -1.442695, %v5574_v38 }
 0x20b   : > { %v944_v63 = vpop.f32.mrf.mxu2  ;;  %3396 = vmatpush.msrb.mxu1 %v3316_v52  ;;  %v3313_v49 = vmax.f32 %v3309_v39, 0.0 }
 0x20c   : > { %v1045_v31 = vmul.f32 %v944_v63, %v5497_v4  ;;  %2986 = vmatpush.msrb.mxu2 %v2967_v45  ;;  %v2964_v59 = vsub.f32 1.0, %v2960_v33  ;;  %v4618_v45 = vmul.f32 -1.442695, %v5585_v5  ;;  %4949 = vpow2.f32 %v4617_v36 }
 0x20d   : > { %v1009_v25 = vpop.f32.mrf.mxu3  ;;  %v5696_v16 = vpop.f32.mrf.mxu0  ;;  %3332 = vmatpush.msrb.mxu0 %v3313_v49 }
 0x20e   : > { %v1046_v18 = vmul.f32 %v1009_v25, %v5501_v8  ;;  %v2968_v6 = vmax.f32 %v2964_v59, 0.0  ;;  %v3306_v25 = vand.u32 2147483647, %v3302_v60  ;;  %4951 = vpow2.f32 %v4618_v45 }
 0x20f   : > { %v5700_v42 = vpop.f32.mrf.mxu1 }
 0x210   : > { %4699 = vmatmul.msk.f32.gmra.mxu2 %vm468_vm7, %v5385_v22  ;;  %4723 = vmatmul.msk.f32.gmra.mxu0 %vm468_vm7, %v5261_v3  ;;  %v3310_v0 = vsub.f32 1.0, %v3306_v25 }
 0x211   : > { %3051 = vmatpush.msrb.mxu3 %v2968_v6 }
 0x212   : > { %4715 = vmatmul.msk.f32.gmra.mxu3 %vm468_vm7, %v5385_v22  ;;  %4739 = vmatmul.msk.f32.gmra.mxu1 %vm468_vm7, %v5261_v3  ;;  %v3620_v22 = vadd.f32 %v5618_v9, %v5288_v23  ;;  %v3314_v53 = vmax.f32 %v3310_v0, 0.0  ;;  %v4950_v6 = vpop.eup %4949 }
 0x213   : > { %v947_v51 = vpop.f32.mrf.mxu2  ;;  %v5743_v0 = vadd.f32 1.0, %v4950_v6 }
 0x214   : > { %v1047_v63 = vmul.f32 %v947_v51, %v5519_v32  ;;  %v3643_v3 = vperm.slane %v3620_v22, 0  ;;  %v3644_v39 = vperm.slane %v3620_v22, 1  ;;  %3397 = vmatpush.msrb.mxu1 %v3314_v53  ;;  %v1535_v51 = vadd.f32 %v5275_v12, %v5451_v44 }
 0x215   : > { %v1012_v1 = vpop.f32.mrf.mxu3  ;;  %v5717_v33 = vpop.f32.mrf.mxu0  ;;  %4953 = vrcp.f32 %v5743_v0  ;;  %vm719_vm10 = vweird.f32 %v5743_v0 }
 0x216   : > { %v5711_v52 = vadd.f32 %v1047_v63, %v1045_v31  ;;  %v1048_v46 = vmul.f32 %v1012_v1, %v5521_v34  ;;  %8262 = vst [vmem:[#allocation18_spill] sm:$0xff] %v5717_v33  ;;  %v3649_v9 = vsub.f32 %v5216_v37, %v3643_v3  ;;  %v3648_v1 = vsub.f32 %v5218_v40, %v3644_v39 }
 0x217   : > { %v5723_v59 = vpop.f32.mrf.mxu1  ;;  %v1544_v22 = vperm.slane %v1535_v51, 0 }
 0x218   : > { %4700 = vmatmul.msk.f32.gmra.mxu2 %vm468_vm7, %v5396_v24  ;;  %v5721_v31 = vadd.f32 %v1048_v46, %v1046_v18  ;;  %8263 = vst [vmem:[#allocation19_spill] sm:$0xff] %v5723_v59  ;;  %4724 = vmatmul.msk.f32.gmra.mxu0 %vm468_vm7, %v5280_v19  ;;  %v3647_v18 = vsub.f32 %v5218_v40, %v3643_v3  ;;  %v3653_v36 = vand.u32 2147483647, %v3649_v9  ;;  %v4952_v46 = vpop.eup %4951 }
 0x219   : > { %v5752_v9 = vadd.f32 1.0, %v4952_v46 }
 0x21a   : > { %4716 = vmatmul.msk.f32.gmra.mxu3 %vm468_vm7, %v5396_v24  ;;  %4740 = vmatmul.msk.f32.gmra.mxu1 %vm468_vm7, %v5280_v19  ;;  %v3650_v24 = vsub.f32 %v5216_v37, %v3644_v39  ;;  %v3651_v19 = vand.u32 2147483647, %v3647_v18  ;;  %v3657_v3 = vsub.f32 1.0, %v3653_v36  ;;  %v1545_v39 = vperm.slane %v1535_v51, 1 }
 0x21b   : > { %v950_v23 = vpop.f32.mrf.mxu2  ;;  %v1550_v36 = vsub.f32 %v5216_v37, %v1544_v22  ;;  %4955 = vrcp.f32 %v5752_v9  ;;  %vm734_vm12 = vweird.f32 %v5752_v9 }
 0x21c   : > { %v1049_v60 = vmul.f32 %v950_v23, %v5497_v4  ;;  %v3654_v44 = vand.u32 2147483647, %v3650_v24  ;;  %v3652_v23 = vand.u32 2147483647, %v3648_v1  ;;  %v3655_v18 = vsub.f32 1.0, %v3651_v19 }
 0x21d   : > { %v1015_v63 = vpop.f32.mrf.mxu3  ;;  %v5738_v25 = vpop.f32.mrf.mxu0  ;;  %v3661_v1 = vmax.f32 %v3657_v3, 0.0  ;;  %v1549_v19 = vsub.f32 %v5218_v40, %v1545_v39  ;;  %v1551_v46 = vsub.f32 %v5216_v37, %v1545_v39 }
 0x21e   : > { %v1050_v49 = vmul.f32 %v1015_v63, %v5501_v8  ;;  %8264 = vst [vmem:[#allocation20_spill] sm:$0xff] %v5738_v25  ;;  %v1548_v63 = vsub.f32 %v5218_v40, %v1544_v22  ;;  %v3658_v6 = vsub.f32 1.0, %v3654_v44  ;;  %v3659_v44 = vmax.f32 %v3655_v18, 0.0 }
 0x21f   : > { %v5745_v12 = vpop.f32.mrf.mxu1  ;;  %v1553_v39 = vand.u32 2147483647, %v1549_v19  ;;  %v1024_v19 = vmul.f32 %v5515_v20, %v5521_v34  ;;  %v1022_v20 = vmul.f32 %v5491_v62, %v5501_v8 }
 0x220   : > { %4701 = vmatmul.msk.f32.gmra.mxu2 %vm468_vm7, %v5407_v26  ;;  %8265 = vst [vmem:[#allocation21_spill] sm:$0xff] %v5745_v12  ;;  %4725 = vmatmul.msk.f32.gmra.mxu0 %vm468_vm7, %v5300_v27  ;;  %v1552_v22 = vand.u32 2147483647, %v1548_v63  ;;  %v3662_v3 = vmax.f32 %v3658_v6, 0.0  ;;  %v1555_v63 = vand.u32 2147483647, %v1551_v46 }
 0x222   : > { %4717 = vmatmul.msk.f32.gmra.mxu3 %vm468_vm7, %v5407_v26  ;;  %4741 = vmatmul.msk.f32.gmra.mxu1 %vm468_vm7, %v5300_v27  ;;  %v3656_v27 = vsub.f32 1.0, %v3652_v23  ;;  %v1556_v18 = vsub.f32 1.0, %v1552_v22  ;;  %v1559_v22 = vsub.f32 1.0, %v1555_v63 }
 0x223   : > { %v953_v45 = vpop.f32.mrf.mxu2 }
 0x224   : > { %v1051_v53 = vmul.f32 %v953_v45, %v5519_v32  ;;  %v5795_v46 = vmax.f32 %v1556_v18, 0.0  ;;  %v5810_v18 = vld [vmem:[%s5231_s22 + $0x8] sm:$0xff] }
 0x225   : > { %v1018_v24 = vpop.f32.mrf.mxu3  ;;  %v5762_v51 = vpop.f32.mrf.mxu0 }
 0x226   : > { %v5758_v26 = vadd.f32 %v1051_v53, %v1049_v60  ;;  %v1052_v45 = vmul.f32 %v1018_v24, %v5521_v34  ;;  %8266 = vst [vmem:[#allocation22_spill] sm:$0xff] %v5762_v51  ;;  %v1554_v24 = vand.u32 2147483647, %v1550_v36  ;;  %v5775_v51 = vpop.eup %4953 }
 0x227   : > { %v5771_v53 = vpop.f32.mrf.mxu1  ;;  %vm720_vm11 = vweird.f32 %v5775_v51 }
 0x228   : > { %4750 = vmatmul.msk.f32.vlgmr.msra.gmra.mxu2 %vm468_vm7, %v5235_v58  ;;  %v5769_v60 = vadd.f32 %v1052_v45, %v1050_v49  ;;  %8267 = vst [vmem:[#allocation23_spill] sm:$0xff] %v5771_v53  ;;  %4726 = vmatmul.msk.f32.gmra.mxu0 %vm468_vm7, %v5321_v48  ;;  %v3660_v49 = vmax.f32 %v3656_v27, 0.0  ;;  %v1558_v36 = vsub.f32 1.0, %v1554_v24  ;;  %v5781_v45 = vpop.eup %4955  ;;  %v1028_v24 = vmul.f32 %v5559_v11, %v5521_v34  ;;  %vm5861_vm13 = vmor %vm719_vm10, %vm720_vm11 }
 0x229   : > { %3677 = vmatpush.msra.mxu2 %v3661_v1  ;;  %v1023_v1 = vmul.f32 %v5513_v15, %v5519_v32  ;;  %v1027_v15 = vmul.f32 %v5556_v10, %v5519_v32  ;;  %v1025_v32 = vmul.f32 %v5537_v55, %v5497_v4  ;;  %v1026_v34 = vmul.f32 %v5541_v61, %v5501_v8 }
 0x22a   : > { %4766 = vmatmul.msk.f32.vlgmr.msra.gmra.mxu3 %vm468_vm7, %v5235_v58  ;;  %4742 = vmatmul.msk.f32.gmra.mxu1 %vm468_vm7, %v5321_v48  ;;  %v715_v58 = vmul.f32 %v5775_v51, %v5743_v0  ;;  %v1021_v48 = vmul.f32 %v5489_v57, %v5497_v4  ;;  %v1060_v11 = vadd.f32 %v1024_v19, %v1022_v20  ;;  %vm735_vm15 = vweird.f32 %v5781_v45 }
 0x22b   : > { %3678 = vmatpush.msra.mxu2 %v3659_v44  ;;  %v1602_v23 = vpop.f32.mrf.mxu2  ;;  %3742 = vmatpush.msra.mxu3 %v3662_v3  ;;  %v1557_v44 = vsub.f32 1.0, %v1553_v39  ;;  %v730_v3 = vmul.f32 %v5781_v45, %v5752_v9  ;;  %v1067_v4 = vadd.f32 %v1027_v15, %v1025_v32  ;;  %v1074_v55 = vadd.f32 %v1028_v24, %v1026_v34  ;;  %vm5889_vm0 = vmor %vm734_vm12, %vm735_vm15 }
 0x22c   : > { %v716_v57 = vsub.f32 1.0, %v715_v58  ;;  %v1053_v39 = vadd.f32 %v1023_v1, %v1021_v48  ;;  %v1715_v10 = vmul.f32 %v1602_v23, %v5795_v46  ;;  %v5826_v58 = vmax.f32 %v1559_v22, 0.0 }
 0x22d   : > { %3743 = vmatpush.msra.mxu3 %v3660_v49  ;;  %v1667_v6 = vpop.f32.mrf.mxu3  ;;  %v5787_v27 = vpop.f32.mrf.mxu0  ;;  %v731_v1 = vsub.f32 1.0, %v730_v3  ;;  %v1061_v3 = vrot.slane %v1060_v11, 4  ;;  %v1082_v15 = vrot.slane %v5535_v54, 4  ;;  %v1068_v20 = vrot.slane %v1067_v4, 4 }
 0x22e   : > { %8268 = vst [vmem:[#allocation24_spill] sm:$0xff] %v5787_v27  ;;  %v717_v61 = vmul.f32 %v5775_v51, %v716_v57  ;;  %v1054_v23 = vrot.slane %v1053_v39, 4  ;;  %vm3987_vm10 = vcmask 1046534   ;;  %vm3990_vm11 = vcmask 1047559  }
 0x22f   : > { %v5803_v49 = vpop.f32.mrf.mxu1  ;;  %v732_v57 = vmul.f32 %v5781_v45, %v731_v1  ;;  %v1069_v27 = vadd.f32 %v1068_v20, %v1067_v4 }
 0x230   : > { %4751 = vmatmul.msk.f32.gmra.mxu2 %vm468_vm7, %v5258_v2  ;;  %8269 = vst [vmem:[#allocation25_spill] sm:$0xff] %v5803_v49  ;;  %v5805_v2 = vmax.f32 %v1558_v36, 0.0  ;;  %4727 = vmatmul.msk.f32.gmra.mxu0 %vm468_vm7, %v5333_v28  ;;  %v5822_v36 = vmax.f32 %v1557_v44, 0.0  ;;  %v725_v44 = vand.u32 2147483648, %v5743_v0  ;;  %v718_v34 = vadd.f32 %v5775_v51, %v717_v61 }
 0x231   : > { %v738_v61 = vand.u32 2147483647, %v5752_v9  ;;  %v733_v53 = vadd.f32 %v5781_v45, %v732_v57  ;;  %v1070_v20 = vrot.slane %v1069_v27, 2 }
 0x232   : > { %4767 = vmatmul.msk.f32.gmra.mxu3 %vm468_vm7, %v5810_v18  ;;  %4743 = vmatmul.msk.f32.gmra.mxu1 %vm468_vm7, %v5333_v28  ;;  %v1716_v49 = vmul.f32 %v1667_v6, %v5822_v36  ;;  %v723_v28 = vand.u32 2147483647, %v5743_v0  ;;  %v1089_v6 = vrot.slane %v5539_v56, 4  ;;  %v1083_v0 = vadd.f32 %v1082_v15, %v5535_v54 }
 0x233   : > { %v1605_v63 = vpop.f32.mrf.mxu2  ;;  %vm5893_vm1 = vcmp.eq.f32.partialorder %v738_v61, 8.507059e+37 }
 0x234   : > { %v1717_v62 = vmul.f32 %v1605_v63, %v5805_v2  ;;  %v1075_v63 = vrot.slane %v1074_v55, 4  ;;  %vm5865_vm14 = vcmp.eq.f32.partialorder %v723_v28, 8.507059e+37  ;;  %v1110_v28 = vrot.slane %v5633_v50, 4 }
 0x235   : > { %v1670_v8 = vpop.f32.mrf.mxu3  ;;  %v5837_v22 = vpop.f32.mrf.mxu0 }
 0x236   : > { %v5828_v48 = vadd.f32 %v1717_v62, %v1715_v10  ;;  %v1718_v19 = vmul.f32 %v1670_v8, %v5826_v58  ;;  %8270 = vst [vmem:[#allocation26_spill] sm:$0xff] %v5837_v22  ;;  %v1055_v10 = vadd.f32 %v1054_v23, %v1053_v39  ;;  %v1103_v62 = vrot.slane %v5594_v47, 4  ;;  %v5853_v8 = vld [vmem:[%s5231_s22 + $0x10] sm:$0xff] }
 0x237   : > { %v5847_v32 = vpop.f32.mrf.mxu1  ;;  %v740_v23 = vand.u32 2147483648, %v5752_v9  ;;  %v726_v22 = vor.u32 1.1754944e-38, %v725_v44  ;;  %v1076_v59 = vadd.f32 %v1075_v63, %v1074_v55  ;;  %v1117_v55 = vrot.slane %v5641_v43, 4  ;;  %v5901_v44 = vld [vmem:[%s5231_s22 + $0x18] sm:$0xff] }
 0x238   : > { %4752 = vmatmul.msk.f32.gmra.mxu2 %vm468_vm7, %v5283_v21  ;;  %v5843_v24 = vadd.f32 %v1718_v19, %v1716_v49  ;;  %8271 = vst [vmem:[#allocation27_spill] sm:$0xff] %v5847_v32  ;;  %v1096_v21 = vrot.slane %v5587_v14, 4  ;;  %4728 = vmatmul.msk.f32.gmra.mxu0 %vm468_vm7, %v5349_v7  ;;  %v1062_v19 = vadd.f32 %v1061_v3, %v1060_v11  ;;  %v1056_v3 = vrot.slane %v1055_v10, 2 }
 0x239   : > { %v1090_v32 = vadd.f32 %v1089_v6, %v5539_v56  ;;  %v722_v11 = vsel %vm5861_vm13, %v5775_v51, %v718_v34  ;;  %v1104_v56 = vadd.f32 %v1103_v62, %v5594_v47  ;;  %v1111_v15 = vadd.f32 %v1110_v28, %v5633_v50 }
 0x23a   : > { %4768 = vmatmul.msk.f32.gmra.mxu3 %vm468_vm7, %v5853_v8  ;;  %4744 = vmatmul.msk.f32.gmra.mxu1 %vm468_vm7, %v5349_v7  ;;  %v1097_v54 = vadd.f32 %v1096_v21, %v5587_v14  ;;  %v1063_v47 = vrot.slane %v1062_v19, 2  ;;  %v1084_v14 = vrot.slane %v1083_v0, 2  ;;  %v727_v6 = vsel %vm5865_vm14, %v726_v22, %v722_v11 }
 0x23b   : > { %v1608_v49 = vpop.f32.mrf.mxu2  ;;  %v1091_v9 = vrot.slane %v1090_v32, 2  ;;  %v741_v57 = vor.u32 1.1754944e-38, %v740_v23  ;;  %v1077_v63 = vrot.slane %v1076_v59, 2  ;;  %v737_v21 = vsel %vm5889_vm0, %v5781_v45, %v733_v53 }
 0x23c   : > { %v1057_v62 = vadd.f32 %v1056_v3, %v1055_v10  ;;  %v1098_v1 = vrot.slane %v1097_v54, 2  ;;  %v1105_v61 = vrot.slane %v1104_v56, 2  ;;  %v1118_v50 = vadd.f32 %v1117_v55, %v5641_v43 }
 0x23d   : > { %v1673_v12 = vpop.f32.mrf.mxu3  ;;  %v5898_v51 = vpop.f32.mrf.mxu0  ;;  %v1124_v22 = vrot.slane %v5673_v13, 4  ;;  %v1719_v39 = vmul.f32 %v1608_v49, %v5795_v46  ;;  %v1064_v28 = vadd.f32 %v1063_v47, %v1062_v19  ;;  %v1085_v53 = vadd.f32 %v1084_v14, %v1083_v0 }
 0x23e   : > { %8280 = vst [vmem:[#allocation28_spill] sm:$0xff] %v5898_v51  ;;  %v1092_v45 = vadd.f32 %v1091_v9, %v1090_v32  ;;  %v1112_v10 = vrot.slane %v1111_v15, 2  ;;  %v1071_v11 = vadd.f32 %v1070_v20, %v1069_v27  ;;  %v1078_v3 = vadd.f32 %v1077_v63, %v1076_v59  ;;  %v5936_v27 = vld [vmem:[%s5231_s22 + $0x20] sm:$0xff] }
 0x23f   : > { %v5908_v34 = vpop.f32.mrf.mxu1  ;;  %v1131_v43 = vrot.slane %v5682_v29, 4  ;;  %v1099_v55 = vadd.f32 %v1098_v1, %v1097_v54  ;;  %v1720_v33 = vmul.f32 %v1673_v12, %v5822_v36  ;;  %v742_v32 = vsel %vm5893_vm1, %v741_v57, %v737_v21 }
 0x240   : > { %4753 = vmatmul.msk.f32.gmra.mxu2 %vm468_vm7, %v5901_v44  ;;  %8281 = vst [vmem:[#allocation29_spill] sm:$0xff] %v5908_v34  ;;  %4729 = vmatmul.msk.f32.gmra.mxu0 %vm468_vm7, %v5360_v17  ;;  %v1106_v34 = vadd.f32 %v1105_v61, %v1104_v56  ;;  %v5930_v0 = vmul.f32 2.0, %v727_v6  ;;  %v1086_v54 = vrot.slane %v1085_v53, 1  ;;  %v1093_v56 = vrot.slane %v1092_v45, 1 }
 0x241   : > { %v1113_v12 = vadd.f32 %v1112_v10, %v1111_v15  ;;  %v1058_v4 = vrot.slane %v1057_v62, 1  ;;  %v1072_v14 = vrot.slane %v1071_v11, 1  ;;  %v1079_v9 = vrot.slane %v1078_v3, 1 }
 0x242   : > { %4769 = vmatmul.msk.f32.gmra.mxu3 %vm468_vm7, %v5901_v44  ;;  %4745 = vmatmul.msk.f32.gmra.mxu1 %vm468_vm7, %v5360_v17  ;;  %v1125_v17 = vadd.f32 %v1124_v22, %v5673_v13  ;;  %v1132_v6 = vadd.f32 %v1131_v43, %v5682_v29  ;;  %v5945_v13 = vmul.f32 2.0, %v742_v32  ;;  %v1065_v20 = vrot.slane %v1064_v28, 1 }
 0x243   : > { %v1611_v51 = vpop.f32.mrf.mxu2  ;;  %v1100_v63 = vrot.slane %v1099_v55, 1  ;;  %v1107_v21 = vrot.slane %v1106_v34, 1  ;;  %v5955_v29 = vperm.slane %v5930_v0, 2  ;;  %v1087_v22 = vadd.f32 %v1086_v54, %v1085_v53 }
 0x244   : > { %v1721_v23 = vmul.f32 %v1611_v51, %v5805_v2  ;;  %v1119_v51 = vrot.slane %v1118_v50, 2  ;;  %v1126_v15 = vrot.slane %v1125_v17, 2  ;;  %v1059_v10 = vadd.f32 %v1058_v4, %v1057_v62 }
 0x245   : > { %v1676_v49 = vpop.f32.mrf.mxu3  ;;  %v5933_v59 = vpop.f32.mrf.mxu0  ;;  %v1073_v43 = vadd.f32 %v1072_v14, %v1071_v11  ;;  %v5960_v32 = vperm.slane %v5945_v13, 2  ;;  %v1171_v62 = vmul.f32 %v5955_v29, %v1087_v22 }
 0x246   : > { %v5924_v7 = vadd.f32 %v1721_v23, %v1719_v39  ;;  %v1722_v19 = vmul.f32 %v1676_v49, %v5826_v58  ;;  %8282 = vst [vmem:[#allocation30_spill] sm:$0xff] %v5933_v59  ;;  %v1120_v61 = vadd.f32 %v1119_v51, %v1118_v50  ;;  %v1094_v39 = vadd.f32 %v1093_v56, %v1092_v45  ;;  %v5965_v45 = vld [vmem:[%s5231_s22 + $0x28] sm:$0xff] }
 0x247   : > { %v5943_v57 = vpop.f32.mrf.mxu1  ;;  %v1114_v23 = vrot.slane %v1113_v12, 1  ;;  %v1080_v49 = vadd.f32 %v1079_v9, %v1078_v3  ;;  %v1133_v50 = vrot.slane %v1132_v6, 2  ;;  %v1066_v51 = vadd.f32 %v1065_v20, %v1064_v28 }
 0x248   : > { %4754 = vmatmul.msk.f32.gmra.mxu2 %vm468_vm7, %v5936_v27  ;;  %v5940_v47 = vadd.f32 %v1722_v19, %v1720_v33  ;;  %8283 = vst [vmem:[#allocation31_spill] sm:$0xff] %v5943_v57  ;;  %v5950_v33 = vld [vmem:[%s5231_s22 + $0x60] sm:$0xff]  ;;  %v1101_v57 = vadd.f32 %v1100_v63, %v1099_v55  ;;  %v1108_v59 = vadd.f32 %v1107_v21, %v1106_v34  ;;  %v1121_v25 = vrot.slane %v1120_v61, 1 }
 0x249   : > { %4730 = vmatmul.msk.f32.gmra.mxu0 %vm468_vm7, %v5950_v33  ;;  %v1127_v35 = vadd.f32 %v1126_v15, %v1125_v17  ;;  %v1172_v11 = vmul.f32 %v5960_v32, %v1094_v39  ;;  %v1115_v3 = vadd.f32 %v1114_v23, %v1113_v12  ;;  %v1167_v54 = vmul.f32 %v5955_v29, %v1059_v10  ;;  %v5984_v15 = vld [vmem:[%s5231_s22 + $0x68] sm:$0xff] }
 0x24a   : > { %4770 = vmatmul.msk.f32.gmra.mxu3 %vm468_vm7, %v5936_v27  ;;  %4746 = vmatmul.msk.f32.gmra.mxu1 %vm468_vm7, %v5950_v33  ;;  %v1169_v28 = vmul.f32 %v5955_v29, %v1073_v43  ;;  %v1170_v34 = vmul.f32 %v5960_v32, %v1080_v49  ;;  %v1134_v55 = vadd.f32 %v1133_v50, %v1132_v6  ;;  %v1138_v9 = vrot.slane %v5711_v52, 4 }
 0x24b   : > { %v1614_v1 = vpop.f32.mrf.mxu2  ;;  %v1168_v56 = vmul.f32 %v5960_v32, %v1066_v51  ;;  %v1173_v4 = vmul.f32 %v5955_v29, %v1101_v57  ;;  %v1174_v14 = vmul.f32 %v5960_v32, %v1108_v59  ;;  %v1122_v20 = vadd.f32 %v1121_v25, %v1120_v61 }
 0x24c   : > { %v1128_v63 = vrot.slane %v1127_v35, 1  ;;  %v1723_v21 = vmul.f32 %v1614_v1, %v5795_v46  ;;  %v3974_v57 = vrot.slane %v1171_v62, 6  ;;  %v3994_v22 = vrot.slane %v1172_v11, 6 }
 0x24d   : > { %v1679_v19 = vpop.f32.mrf.mxu3  ;;  %v5962_v53 = vpop.f32.mrf.mxu0  ;;  %v1175_v59 = vmul.f32 %v5955_v29, %v1115_v3  ;;  %v1145_v39 = vrot.slane %v5721_v31, 4  ;;  %v3971_v25 = vrot.slane %v1169_v28, 7  ;;  %v3992_v61 = vrot.slane %v1170_v34, 7  ;;  %v6002_v28 = vld [vmem:[%s5231_s22 + $0x30] sm:$0xff] }
 0x24e   : > { %8284 = vst [vmem:[#allocation32_spill] sm:$0xff] %v5962_v53  ;;  %v1135_v1 = vrot.slane %v1134_v55, 1  ;;  %v1139_v43 = vadd.f32 %v1138_v9, %v5711_v52  ;;  %v1724_v49 = vmul.f32 %v1679_v19, %v5822_v36  ;;  %v3977_v51 = vrot.slane %v1173_v4, 5 }
 0x24f   : > { %v5974_v17 = vpop.f32.mrf.mxu1  ;;  %v3996_v62 = vrot.slane %v1174_v14, 5  ;;  %v1176_v11 = vmul.f32 %v5960_v32, %v1122_v20  ;;  %v1129_v3 = vadd.f32 %v1128_v63, %v1127_v35  ;;  %v3980_v34 = vrot.slane %v1175_v59, 4 }
 0x250   : > { %4755 = vmatmul.msk.f32.gmra.mxu2 %vm468_vm7, %v5965_v45  ;;  %8285 = vst [vmem:[#allocation33_spill] sm:$0xff] %v5974_v17  ;;  %v1146_v52 = vadd.f32 %v1145_v39, %v5721_v31  ;;  %v1136_v9 = vadd.f32 %v1135_v1, %v1134_v55  ;;  %v3973_v35 = vsel %vm3972_vm2, %v3971_v25, %v1167_v54  ;;  %v1140_v20 = vrot.slane %v1139_v43, 2  ;;  %v6016_v31 = vld [vmem:[%s5231_s22 + $0x70] sm:$0xff] }
 0x251   : > { %4731 = vmatmul.msk.f32.gmra.mxu0 %vm468_vm7, %v5984_v15  ;;  %v3993_v14 = vsel %vm3972_vm2, %v3992_v61, %v1168_v56  ;;  %v1177_v55 = vmul.f32 %v5955_v29, %v1129_v3 }
 0x252   : > { %4771 = vmatmul.msk.f32.gmra.mxu3 %vm468_vm7, %v5965_v45  ;;  %4747 = vmatmul.msk.f32.gmra.mxu1 %vm468_vm7, %v5984_v15  ;;  %v3995_v54 = vsel %vm3975_vm3, %v3994_v22, %v3993_v14  ;;  %v1147_v56 = vrot.slane %v1146_v52, 2  ;;  %v1178_v61 = vmul.f32 %v5960_v32, %v1136_v9 }
 0x253   : > { %v1617_v12 = vpop.f32.mrf.mxu2  ;;  %v3997_v1 = vsel %vm3978_vm4, %v3996_v62, %v3995_v54  ;;  %v3983_v22 = vrot.slane %v1177_v55, 3 }
 0x254   : > { %v1725_v6 = vmul.f32 %v1617_v12, %v5805_v2 }
 0x255   : > { %v1682_v10 = vpop.f32.mrf.mxu3  ;;  %v5999_v12 = vpop.f32.mrf.mxu0 }
 0x256   : > { %v5993_v23 = vadd.f32 %v1725_v6, %v1723_v21  ;;  %v1726_v50 = vmul.f32 %v1682_v10, %v5826_v58  ;;  %8286 = vst [vmem:[#allocation34_spill] sm:$0xff] %v5999_v12  ;;  %v3998_v21 = vrot.slane %v1176_v11, 4  ;;  %v3976_v6 = vsel %vm3975_vm3, %v3974_v57, %v3973_v35  ;;  %v6032_v57 = vld [vmem:[%s5231_s22 + $0x38] sm:$0xff] }
 0x257   : > { %v6009_v4 = vpop.f32.mrf.mxu1  ;;  %v3979_v59 = vsel %vm3978_vm4, %v3977_v51, %v3976_v6  ;;  %v1141_v10 = vadd.f32 %v1140_v20, %v1139_v43  ;;  %v4000_v51 = vrot.slane %v1178_v61, 3  ;;  %v1148_v11 = vadd.f32 %v1147_v56, %v1146_v52  ;;  %v6046_v20 = vld [vmem:[%s5231_s22 + $0x78] sm:$0xff] }
 0x258   : > { %4756 = vmatmul.msk.f32.gmra.mxu2 %vm468_vm7, %v6002_v28  ;;  %v6007_v19 = vadd.f32 %v1726_v50, %v1724_v49  ;;  %8287 = vst [vmem:[#allocation35_spill] sm:$0xff] %v6009_v4  ;;  %v3982_v25 = vsel %vm3981_vm5, %v3980_v34, %v3979_v59  ;;  %v3999_v50 = vsel %vm3981_vm5, %v3998_v21, %v3997_v1  ;;  %v1152_v35 = vrot.slane %v5758_v26, 4  ;;  %v6062_v1 = vld [vmem:[%s5231_s22 + $0x40] sm:$0xff]  ;;  %v6133_v4 = vld [vmem:[%s5231_s22 + $0x58] sm:$0xff] }
 0x259   : > { %4732 = vmatmul.msk.f32.gmra.mxu0 %vm468_vm7, %v6016_v31  ;;  %v3985_v34 = vsel %vm3984_vm6, %v3983_v22, %v3982_v25  ;;  %v4001_v43 = vsel %vm3984_vm6, %v4000_v51, %v3999_v50  ;;  %v1142_v62 = vrot.slane %v1141_v10, 1  ;;  %v1149_v21 = vrot.slane %v1148_v11, 1  ;;  %8297 = vst [vmem:[#allocation45_spill] sm:$0xff] %v6133_v4 }
 0x25a   : > { %4772 = vmatmul.msk.f32.gmra.mxu3 %vm468_vm7, %v6002_v28  ;;  %4748 = vmatmul.msk.f32.gmra.mxu1 %vm468_vm7, %v6016_v31  ;;  %v1153_v59 = vadd.f32 %v1152_v35, %v5758_v26  ;;  %v1159_v25 = vrot.slane %v5769_v60, 4 }
 0x25b   : > { %v1620_v63 = vpop.f32.mrf.mxu2  ;;  %v1143_v54 = vadd.f32 %v1142_v62, %v1141_v10  ;;  %v1150_v22 = vadd.f32 %v1149_v21, %v1148_v11 }
 0x25c   : > { %v1727_v14 = vmul.f32 %v1620_v63, %v5795_v46  ;;  %v1154_v51 = vrot.slane %v1153_v59, 2  ;;  %v1160_v62 = vadd.f32 %v1159_v25, %v5769_v60 }
 0x25d   : > { %v1685_v39 = vpop.f32.mrf.mxu3  ;;  %v6029_v49 = vpop.f32.mrf.mxu0  ;;  %v1179_v26 = vmul.f32 %v5955_v29, %v1143_v54  ;;  %v1180_v11 = vmul.f32 %v5960_v32, %v1150_v22  ;;  %v6085_v54 = vld [vmem:[%s5231_s22 + $0x48] sm:$0xff] }
 0x25e   : > { %8288 = vst [vmem:[#allocation36_spill] sm:$0xff] %v6029_v49  ;;  %v1728_v56 = vmul.f32 %v1685_v39, %v5822_v36  ;;  %v1161_v21 = vrot.slane %v1160_v62, 2 }
 0x25f   : > { %v6037_v3 = vpop.f32.mrf.mxu1  ;;  %v4002_v60 = vrot.slane %v1180_v11, 2 }
 0x260   : > { %4757 = vmatmul.msk.f32.gmra.mxu2 %vm468_vm7, %v6032_v57  ;;  %8289 = vst [vmem:[#allocation37_spill] sm:$0xff] %v6037_v3 }
 0x261   : > { %4733 = vmatmul.msk.f32.gmra.mxu0 %vm468_vm7, %v6046_v20  ;;  %v4003_v25 = vsel %vm3987_vm10, %v4002_v60, %v4001_v43 }
 0x262   : > { %4773 = vmatmul.msk.f32.gmra.mxu3 %vm468_vm7, %v6032_v57  ;;  %4749 = vmatmul.msk.f32.gmra.mxu1 %vm468_vm7, %v6046_v20 }
 0x263   : > { %v1623_v9 = vpop.f32.mrf.mxu2 }
 0x264   : > { %v1729_v52 = vmul.f32 %v1623_v9, %v5805_v2  ;;  %v6075_v9 = vld [vmem:[%s5231_s22] sm:$0xff] }
 0x265   : > { %v1688_v6 = vpop.f32.mrf.mxu3  ;;  %v6059_v61 = vpop.f32.mrf.mxu0 }
 0x266   : > { %v6053_v55 = vadd.f32 %v1729_v52, %v1727_v14  ;;  %v1730_v63 = vmul.f32 %v1688_v6, %v5826_v58  ;;  %8290 = vst [vmem:[#allocation38_spill] sm:$0xff] %v6059_v61  ;;  %v3986_v14 = vrot.slane %v1179_v26, 2  ;;  %v1155_v52 = vadd.f32 %v1154_v51, %v1153_v59 }
 0x267   : > { %v6068_v10 = vpop.f32.mrf.mxu1  ;;  %v1162_v26 = vadd.f32 %v1161_v21, %v1160_v62  ;;  %v6108_v62 = vld [vmem:[%s5231_s22 + $0x50] sm:$0xff]  ;;  %v1762_v21 = vrot.slane %v5924_v7, 4  ;;  %v1755_v61 = vrot.slane %v5843_v24, 4 }
 0x268   : > { %4758 = vmatmul.msk.f32.gmra.mxu2 %vm468_vm7, %v6062_v1  ;;  %v6066_v50 = vadd.f32 %v1730_v63, %v1728_v56  ;;  %8291 = vst [vmem:[#allocation39_spill] sm:$0xff] %v6068_v10  ;;  %v3988_v56 = vsel %vm3987_vm10, %v3986_v14, %v3985_v34  ;;  %v1156_v22 = vrot.slane %v1155_v52, 1 }
 0x269   : > { %4782 = vmatmul.msk.f32.vlgmr.msra.gmra.mxu0 %vm468_vm7, %v6075_v9  ;;  %v1163_v10 = vrot.slane %v1162_v26, 1 }
 0x26a   : > { %4774 = vmatmul.msk.f32.gmra.mxu3 %vm468_vm7, %v6062_v1  ;;  %4798 = vmatmul.msk.f32.vlgmr.msra.gmra.mxu1 %vm468_vm7, %v6075_v9 }
 0x26b   : > { %v1626_v39 = vpop.f32.mrf.mxu2 }
 0x26c   : > { %v1731_v51 = vmul.f32 %v1626_v39, %v5795_v46  ;;  %v1157_v39 = vadd.f32 %v1156_v22, %v1155_v52  ;;  %v1763_v52 = vadd.f32 %v1762_v21, %v5924_v7  ;;  %v1756_v21 = vadd.f32 %v1755_v61, %v5843_v24 }
 0x26d   : > { %v1691_v35 = vpop.f32.mrf.mxu3  ;;  %v6082_v6 = vpop.f32.mrf.mxu0 }
 0x26e   : > { %8292 = vst [vmem:[#allocation40_spill] sm:$0xff] %v6082_v6  ;;  %v1732_v43 = vmul.f32 %v1691_v35, %v5822_v36  ;;  %v1757_v61 = vrot.slane %v1756_v21, 2 }
 0x26f   : > { %v6090_v63 = vpop.f32.mrf.mxu1 }
 0x270   : > { %4759 = vmatmul.msk.f32.gmra.mxu2 %vm468_vm7, %v6085_v54  ;;  %8293 = vst [vmem:[#allocation41_spill] sm:$0xff] %v6090_v63 }
 0x271   : > { %4783 = vmatmul.msk.f32.gmra.mxu0 %vm468_vm7, %v5810_v18 }
 0x272   : > { %4775 = vmatmul.msk.f32.gmra.mxu3 %vm468_vm7, %v6085_v54  ;;  %4799 = vmatmul.msk.f32.gmra.mxu1 %vm468_vm7, %v5810_v18 }
 0x273   : > { %v1629_v59 = vpop.f32.mrf.mxu2 }
 0x274   : > { %v1733_v11 = vmul.f32 %v1629_v59, %v5805_v2  ;;  %v1769_v59 = vrot.slane %v5940_v47, 4 }
 0x275   : > { %v1694_v14 = vpop.f32.mrf.mxu3  ;;  %v6105_v63 = vpop.f32.mrf.mxu0 }
 0x276   : > { %v6101_v34 = vadd.f32 %v1733_v11, %v1731_v51  ;;  %v1734_v60 = vmul.f32 %v1694_v14, %v5826_v58  ;;  %8294 = vst [vmem:[#allocation42_spill] sm:$0xff] %v6105_v63  ;;  %v1181_v14 = vmul.f32 %v5955_v29, %v1157_v39  ;;  %v1164_v63 = vadd.f32 %v1163_v10, %v1162_v26 }
 0x277   : > { %v6116_v11 = vpop.f32.mrf.mxu1  ;;  %v1770_v22 = vadd.f32 %v1769_v59, %v5940_v47  ;;  %v1764_v29 = vrot.slane %v1763_v52, 2 }
 0x278   : > { %4760 = vmatmul.msk.f32.gmra.mxu2 %vm468_vm7, %v6108_v62  ;;  %v6114_v51 = vadd.f32 %v1734_v60, %v1732_v43  ;;  %8295 = vst [vmem:[#allocation43_spill] sm:$0xff] %v6116_v11  ;;  %v1182_v60 = vmul.f32 %v5960_v32, %v1164_v63  ;;  %v1748_v11 = vrot.slane %v5828_v48, 4  ;;  %v3989_v7 = vrot.slane %v1181_v14, 1 }
 0x279   : > { %4784 = vmatmul.msk.f32.gmra.mxu0 %vm468_vm7, %v5853_v8  ;;  %v1771_v10 = vrot.slane %v1770_v22, 2 }
 0x27a   : > { %4776 = vmatmul.msk.f32.gmra.mxu3 %vm468_vm7, %v6108_v62  ;;  %4800 = vmatmul.msk.f32.gmra.mxu1 %vm468_vm7, %v5853_v8  ;;  %v4004_v47 = vrot.slane %v1182_v60, 1  ;;  %v6140_v32 = vsel %vm3990_vm11, %v3989_v7, %v3988_v56  ;;  %v1749_v39 = vadd.f32 %v1748_v11, %v5828_v48  ;;  %v1765_v56 = vadd.f32 %v1764_v29, %v1763_v52 }
 0x27b   : > { %v1632_v35 = vpop.f32.mrf.mxu2  ;;  %8299 = vst [vmem:[#allocation47_spill] sm:$0xff] %v6140_v32  ;;  %v1772_v7 = vadd.f32 %v1771_v10, %v1770_v22  ;;  %v1783_v29 = vrot.slane %v6007_v19, 4 }
 0x27c   : > { %v6143_v63 = vsel %vm3990_vm11, %v4004_v47, %v4003_v25  ;;  %v1735_v14 = vmul.f32 %v1632_v35, %v5795_v46  ;;  %v1750_v24 = vrot.slane %v1749_v39, 2  ;;  %v1776_v35 = vrot.slane %v5993_v23, 4 }
 0x27d   : > { %v1697_v43 = vpop.f32.mrf.mxu3  ;;  %v6130_v6 = vpop.f32.mrf.mxu0  ;;  %8300 = vst [vmem:[#allocation48_spill] sm:$0xff] %v6143_v63  ;;  %v1766_v52 = vrot.slane %v1765_v56, 1  ;;  %v1773_v22 = vrot.slane %v1772_v7, 1 }
 0x27e   : > { %8296 = vst [vmem:[#allocation44_spill] sm:$0xff] %v6130_v6  ;;  %v1736_v11 = vmul.f32 %v1697_v43, %v5822_v36 }
 0x27f   : > { %v6137_v26 = vpop.f32.mrf.mxu1  ;;  %v1767_v32 = vadd.f32 %v1766_v52, %v1765_v56 }
 0x280   : > { %4761 = vmatmul.msk.f32.gmra.mxu2 %vm468_vm7, %v6133_v4  ;;  %8298 = vst [vmem:[#allocation46_spill] sm:$0xff] %v6137_v26  ;;  %v1784_v26 = vadd.f32 %v1783_v29, %v6007_v19 }
 0x281   : > { %4785 = vmatmul.msk.f32.gmra.mxu0 %vm468_vm7, %v5901_v44 }
 0x282   : > { %4777 = vmatmul.msk.f32.gmra.mxu3 %vm468_vm7, %v6133_v4  ;;  %4801 = vmatmul.msk.f32.gmra.mxu1 %vm468_vm7, %v5901_v44 }
 0x283   : > { %v1635_v59 = vpop.f32.mrf.mxu2 }
 0x284   : > { %v1737_v60 = vmul.f32 %v1635_v59, %v5805_v2 }
 0x285   : > { %v1700_v48 = vpop.f32.mrf.mxu3  ;;  %v6160_v63 = vpop.f32.mrf.mxu0 }
 0x286   : > { %v6155_v25 = vadd.f32 %v1737_v60, %v1735_v14  ;;  %v1738_v47 = vmul.f32 %v1700_v48, %v5826_v58  ;;  %8301 = vst [vmem:[#allocation49_spill] sm:$0xff] %v6160_v63  ;;  %v1751_v14 = vadd.f32 %v1750_v24, %v1749_v39  ;;  %v1758_v60 = vadd.f32 %v1757_v61, %v1756_v21 }
 0x287   : > { %v6167_v59 = vpop.f32.mrf.mxu1  ;;  %v1777_v48 = vadd.f32 %v1776_v35, %v5993_v23  ;;  %v1774_v63 = vadd.f32 %v1773_v22, %v1772_v7  ;;  %v6178_v39 = vperm.slane %v5930_v0, 4  ;;  %v6181_v21 = vperm.slane %v5945_v13, 4 }
 0x288   : > { %4762 = vmatmul.msk.f32.gmra.mxu2 %vm468_vm7, %v5950_v33  ;;  %v6165_v10 = vadd.f32 %v1738_v47, %v1736_v11  ;;  %8302 = vst [vmem:[#allocation50_spill] sm:$0xff] %v6167_v59  ;;  %v1752_v24 = vrot.slane %v1751_v14, 1  ;;  %v1759_v61 = vrot.slane %v1758_v60, 1  ;;  %v1785_v7 = vrot.slane %v1784_v26, 2 }
 0x289   : > { %4786 = vmatmul.msk.f32.gmra.mxu0 %vm468_vm7, %v5936_v27  ;;  %v1778_v23 = vrot.slane %v1777_v48, 2  ;;  %v1863_v19 = vmul.f32 %v6178_v39, %v1767_v32  ;;  %v1864_v56 = vmul.f32 %v6181_v21, %v1774_v63  ;;  %v6196_v59 = vld [vmem:[%s8147_s3] ss:$2 sm:$0x3] }
 0x28a   : > { %4778 = vmatmul.msk.f32.gmra.mxu3 %vm468_vm7, %v5950_v33  ;;  %4802 = vmatmul.msk.f32.gmra.mxu1 %vm468_vm7, %v5936_v27  ;;  %v1753_v52 = vadd.f32 %v1752_v24, %v1751_v14  ;;  %v1760_v22 = vadd.f32 %v1759_v61, %v1758_v60  ;;  %v1786_v61 = vadd.f32 %v1785_v7, %v1784_v26  ;;  %v1790_v26 = vrot.slane %v6053_v55, 4 }
 0x28b   : > { %v1638_v43 = vpop.f32.mrf.mxu2  ;;  %v1779_v32 = vadd.f32 %v1778_v23, %v1777_v48  ;;  %v4070_v60 = vrot.slane %v1863_v19, 7  ;;  %v4084_v24 = vrot.slane %v1864_v56, 7  ;;  %v1797_v56 = vrot.slane %v6066_v50, 4 }
 0x28c   : > { %v1739_v63 = vmul.f32 %v1638_v43, %v5795_v46  ;;  %v1861_v48 = vmul.f32 %v6178_v39, %v1753_v52  ;;  %v1862_v43 = vmul.f32 %v6181_v21, %v1760_v22  ;;  %v1791_v49 = vadd.f32 %v1790_v26, %v6053_v55 }
 0x28d   : > { %v1703_v11 = vpop.f32.mrf.mxu3  ;;  %v6183_v47 = vpop.f32.mrf.mxu0  ;;  %v1780_v19 = vrot.slane %v1779_v32, 1  ;;  %v1798_v17 = vadd.f32 %v1797_v56, %v6066_v50 }
 0x28e   : > { %8303 = vst [vmem:[#allocation51_spill] sm:$0xff] %v6183_v47  ;;  %v6199_v47 = vadd.f32 1.0, %v6196_v59  ;;  %v1740_v23 = vmul.f32 %v1703_v11, %v5822_v36  ;;  %v4071_v52 = vsel %vm3972_vm2, %v4070_v60, %v1861_v48  ;;  %v4085_v22 = vsel %vm3972_vm2, %v4084_v24, %v1862_v43 }
 0x28f   : > { %v6189_v35 = vpop.f32.mrf.mxu1  ;;  %v1792_v48 = vrot.slane %v1791_v49, 2  ;;  %v1799_v43 = vrot.slane %v1798_v17, 2 }
 0x290   : > { %4763 = vmatmul.msk.f32.gmra.mxu2 %vm468_vm7, %v5984_v15  ;;  %8304 = vst [vmem:[#allocation52_spill] sm:$0xff] %v6189_v35  ;;  %v2229_v35 = vadd.f32 %v5440_v41, %v6199_v47  ;;  %v1787_v41 = vrot.slane %v1786_v61, 1 }
 0x291   : > { %4787 = vmatmul.msk.f32.gmra.mxu0 %vm468_vm7, %v5965_v45 }
 0x292   : > { %4779 = vmatmul.msk.f32.gmra.mxu3 %vm468_vm7, %v5984_v15  ;;  %4803 = vmatmul.msk.f32.gmra.mxu1 %vm468_vm7, %v5965_v45  ;;  %v2237_v11 = vperm.slane %v2229_v35, 0 }
 0x293   : > { %v1641_v29 = vpop.f32.mrf.mxu2 }
 0x294   : > { %v1741_v14 = vmul.f32 %v1641_v29, %v5805_v2  ;;  %v2241_v24 = vsub.f32 %v5218_v40, %v2237_v11 }
 0x295   : > { %v1706_v3 = vpop.f32.mrf.mxu3 }
 0x296   : > { %v6209_v6 = vadd.f32 %v1741_v14, %v1739_v63  ;;  %v1742_v29 = vmul.f32 %v1706_v3, %v5826_v58  ;;  %v6221_v63 = vpop.f32.mrf.mxu0  ;;  %v2238_v3 = vperm.slane %v2229_v35, 1 }
 0x297   : > { %8305 = vst [vmem:[#allocation53_spill] sm:$0xff] %v6221_v63  ;;  %v6225_v14 = vpop.f32.mrf.mxu1 }
 0x298   : > { %4764 = vmatmul.msk.f32.gmra.mxu2 %vm468_vm7, %v6016_v31  ;;  %v6219_v7 = vadd.f32 %v1742_v29, %v1740_v23  ;;  %8306 = vst [vmem:[#allocation54_spill] sm:$0xff] %v6225_v14  ;;  %v1781_v23 = vadd.f32 %v1780_v19, %v1779_v32  ;;  %v1788_v29 = vadd.f32 %v1787_v41, %v1786_v61  ;;  %v2245_v61 = vand.u32 2147483647, %v2241_v24 }
 0x299   : > { %4788 = vmatmul.msk.f32.gmra.mxu0 %vm468_vm7, %v6002_v28  ;;  %v2242_v35 = vsub.f32 %v5218_v40, %v2238_v3  ;;  %v1793_v41 = vadd.f32 %v1792_v48, %v1791_v49  ;;  %v1800_v14 = vadd.f32 %v1799_v43, %v1798_v17 }
 0x29a   : > { %4780 = vmatmul.msk.f32.gmra.mxu3 %vm468_vm7, %v6016_v31  ;;  %4804 = vmatmul.msk.f32.gmra.mxu1 %vm468_vm7, %v6002_v28  ;;  %v1865_v55 = vmul.f32 %v6178_v39, %v1781_v23  ;;  %v1866_v50 = vmul.f32 %v6181_v21, %v1788_v29 }
 0x29b   : > { %v1644_v12 = vpop.f32.mrf.mxu2  ;;  %v2246_v56 = vand.u32 2147483647, %v2242_v35  ;;  %v2243_v35 = vsub.f32 %v5216_v37, %v2237_v11  ;;  %v1794_v49 = vrot.slane %v1793_v41, 1  ;;  %v1801_v48 = vrot.slane %v1800_v14, 1 }
 0x29c   : > { %v1743_v63 = vmul.f32 %v1644_v12, %v5795_v46  ;;  %v4072_v29 = vrot.slane %v1865_v55, 6  ;;  %v4086_v53 = vrot.slane %v1866_v50, 6  ;;  %v2244_v12 = vsub.f32 %v5216_v37, %v2238_v3  ;;  %v8310_v3 = vld [vmem:[#allocation5_spill] sm:$0xff] }
 0x29d   : > { %v1709_v60 = vpop.f32.mrf.mxu3  ;;  %v2250_v43 = vsub.f32 1.0, %v2246_v56  ;;  %v1811_v55 = vrot.slane %v6114_v51, 4 }
 0x29e   : > { %v6241_v26 = vpop.f32.mrf.mxu0  ;;  %v1744_v17 = vmul.f32 %v1709_v60, %v5822_v36  ;;  %v4073_v36 = vsel %vm3975_vm3, %v4072_v29, %v4071_v52  ;;  %v2248_v29 = vand.u32 2147483647, %v2244_v12 }
 0x29f   : > { %8307 = vst [vmem:[#allocation55_spill] sm:$0xff] %v6241_v26  ;;  %v6243_v32 = vpop.f32.mrf.mxu1  ;;  %v2249_v26 = vsub.f32 1.0, %v2245_v61 }
 0x2a0   : > { %4765 = vmatmul.msk.f32.gmra.mxu2 %vm468_vm7, %v6046_v20  ;;  %8308 = vst [vmem:[#allocation56_spill] sm:$0xff] %v6243_v32 }
 0x2a1   : > { %4789 = vmatmul.msk.f32.gmra.mxu0 %vm468_vm7, %v6032_v57  ;;  %v6272_v61 = vmax.f32 %v2249_v26, 0.0  ;;  %v6283_v26 = vmax.f32 %v2250_v43, 0.0 }
 0x2a2   : > { %4781 = vmatmul.msk.f32.gmra.mxu3 %vm468_vm7, %v6046_v20  ;;  %4805 = vmatmul.msk.f32.gmra.mxu1 %vm468_vm7, %v6032_v57 }
 0x2a3   : > { %v1647_v19 = vpop.f32.mrf.mxu2 }
 0x2a4   : > { %v1745_v23 = vmul.f32 %v1647_v19, %v5805_v2  ;;  %v1804_v2 = vrot.slane %v6101_v34, 4  ;;  %v2247_v19 = vand.u32 2147483647, %v2243_v35 }
 0x2a5   : > { %v1712_v32 = vpop.f32.mrf.mxu3 }
 0x2a6   : > { %v6253_v24 = vadd.f32 %v1745_v23, %v1743_v63  ;;  %v1746_v46 = vmul.f32 %v1712_v32, %v5826_v58  ;;  %v625_v63 = vpop.permute.xlu1 %624  ;;  %v6265_v11 = vpop.f32.mrf.mxu0  ;;  %v4087_v58 = vsel %vm3975_vm3, %v4086_v53, %v4085_v22  ;;  %v1805_v23 = vadd.f32 %v1804_v2, %v6101_v34  ;;  %v8312_v2 = vld [vmem:[#allocation6_spill] sm:$0xff] }
 0x2a7   : > { %8309 = vst [vmem:[#allocation57_spill] sm:$0xff] %v6265_v11  ;;  %v667_v60 = vadd.f32 %v8310_v3, %v625_v63  ;;  %v6270_v32 = vpop.f32.mrf.mxu1  ;;  %v1795_v53 = vadd.f32 %v1794_v49, %v1793_v41  ;;  %v1802_v22 = vadd.f32 %v1801_v48, %v1800_v14  ;;  %v2251_v3 = vsub.f32 1.0, %v2247_v19 }
 0x2a8   : > { %4814 = vmatmul.msk.f32.vlgmr.msrb.gmra.mxu2 %vm468_vm7, %v6075_v9  ;;  %v6263_v50 = vadd.f32 %v1746_v46, %v1744_v17  ;;  %8311 = vst [vmem:[#allocation5_spill] sm:$0xff] %v6270_v32  ;;  %v1812_v17 = vadd.f32 %v1811_v55, %v6114_v51  ;;  %v696_v32 = vadd.f32 %v8312_v2, %v625_v63  ;;  %v1806_v11 = vrot.slane %v1805_v23, 2 }
 0x2a9   : > { %4790 = vmatmul.msk.f32.gmra.mxu0 %vm468_vm7, %v6062_v1  ;;  %v4619_v35 = vmul.f32 -1.442695, %v667_v60  ;;  %v1867_v14 = vmul.f32 %v6178_v39, %v1795_v53  ;;  %v1868_v51 = vmul.f32 %v6181_v21, %v1802_v22  ;;  %v2252_v49 = vsub.f32 1.0, %v2248_v29 }
 0x2aa   : > { %4830 = vmatmul.msk.f32.vlgmr.msrb.gmra.mxu3 %vm468_vm7, %v6075_v9  ;;  %4806 = vmatmul.msk.f32.gmra.mxu1 %vm468_vm7, %v6062_v1  ;;  %v1813_v41 = vrot.slane %v1812_v17, 2  ;;  %v6295_v43 = vmax.f32 %v2251_v3, 0.0  ;;  %v4620_v55 = vmul.f32 -1.442695, %v696_v32  ;;  %v1807_v60 = vadd.f32 %v1806_v11, %v1805_v23 }
 0x2ab   : > { %v2295_v56 = vpop.f32.mrf.mxu2  ;;  %4957 = vpow2.f32 %v4619_v35  ;;  %v4088_v53 = vrot.slane %v1868_v51, 5  ;;  %v6304_v29 = vmax.f32 %v2252_v49, 0.0  ;;  %v1818_v49 = vrot.slane %v6155_v25, 4 }
 0x2ac   : > { %v2408_v52 = vmul.f32 %v2295_v56, %v6272_v61  ;;  %v4074_v56 = vrot.slane %v1867_v14, 5  ;;  %v1814_v22 = vadd.f32 %v1813_v41, %v1812_v17  ;;  %4959 = vpow2.f32 %v4620_v55 }
 0x2ad   : > { %v2360_v46 = vpop.f32.mrf.mxu3  ;;  %v1808_v11 = vrot.slane %v1807_v60, 1  ;;  %v4089_v14 = vsel %vm3978_vm4, %v4088_v53, %v4087_v58 }
 0x2ae   : > { %v2409_v34 = vmul.f32 %v2360_v46, %v6283_v26  ;;  %v6291_v12 = vpop.f32.mrf.mxu0  ;;  %v1815_v23 = vrot.slane %v1814_v22, 1  ;;  %v4075_v2 = vsel %vm3978_vm4, %v4074_v56, %v4073_v36  ;;  %v1825_v36 = vrot.slane %v6165_v10, 4 }
 0x2af   : > { %8313 = vst [vmem:[#allocation6_spill] sm:$0xff] %v6291_v12  ;;  %v6293_v48 = vpop.f32.mrf.mxu1  ;;  %v1819_v56 = vadd.f32 %v1818_v49, %v6155_v25 }
 0x2b0   : > { %4815 = vmatmul.msk.f32.gmra.mxu2 %vm468_vm7, %v5810_v18  ;;  %8314 = vst [vmem:[#allocation58_spill] sm:$0xff] %v6293_v48  ;;  %v1816_v55 = vadd.f32 %v1815_v23, %v1814_v22  ;;  %v1826_v22 = vadd.f32 %v1825_v36, %v6165_v10  ;;  %v8321_v36 = vld [vmem:[#allocation2_spill] sm:$0xff] }
 0x2b1   : > { %4791 = vmatmul.msk.f32.gmra.mxu0 %vm468_vm7, %v6085_v54  ;;  %v4958_v32 = vpop.eup %4957  ;;  %v1820_v25 = vrot.slane %v1819_v56, 2 }
 0x2b2   : > { %4831 = vmatmul.msk.f32.gmra.mxu3 %vm468_vm7, %v5810_v18  ;;  %4807 = vmatmul.msk.f32.gmra.mxu1 %vm468_vm7, %v6085_v54  ;;  %v6319_v51 = vadd.f32 1.0, %v4958_v32  ;;  %v4960_v58 = vpop.eup %4959 }
 0x2b3   : > { %v2298_v63 = vpop.f32.mrf.mxu2 }
 0x2b4   : > { %v2410_v19 = vmul.f32 %v2298_v63, %v6295_v43  ;;  %v1809_v63 = vadd.f32 %v1808_v11, %v1807_v60  ;;  %4961 = vrcp.f32 %v6319_v51  ;;  %v1870_v60 = vmul.f32 %v6181_v21, %v1816_v55 }
 0x2b5   : > { %v2363_v46 = vpop.f32.mrf.mxu3  ;;  %vm749_vm13 = vweird.f32 %v6319_v51 }
 0x2b6   : > { %v6306_v35 = vadd.f32 %v2410_v19, %v2408_v52  ;;  %v2411_v18 = vmul.f32 %v2363_v46, %v6304_v29  ;;  %v6313_v17 = vpop.f32.mrf.mxu0  ;;  %v1869_v53 = vmul.f32 %v6178_v39, %v1809_v63  ;;  %v4090_v10 = vrot.slane %v1870_v60, 4 }
 0x2b7   : > { %8317 = vst [vmem:[#allocation61_spill] sm:$0xff] %v6313_v17  ;;  %v6317_v52 = vpop.f32.mrf.mxu1  ;;  %v1827_v63 = vrot.slane %v1826_v22, 2 }
 0x2b8   : > { %8315 = vst [vmem:[#allocation59_spill] sm:$0xff] %v6306_v35  ;;  %4816 = vmatmul.msk.f32.gmra.mxu2 %vm468_vm7, %v5853_v8  ;;  %v6311_v3 = vadd.f32 %v2411_v18, %v2409_v34  ;;  %v6340_v18 = vadd.f32 1.0, %v4960_v58  ;;  %v4076_v49 = vrot.slane %v1869_v53, 4  ;;  %v1188_v58 = vadd.f32 %v6196_v59, %v8321_v36 }
 0x2b9   : > { %8318 = vst [vmem:[#allocation62_spill] sm:$0xff] %v6317_v52  ;;  %4792 = vmatmul.msk.f32.gmra.mxu0 %vm468_vm7, %v6108_v62  ;;  %v1821_v52 = vadd.f32 %v1820_v25, %v1819_v56  ;;  %v1828_v53 = vadd.f32 %v1827_v63, %v1826_v22 }
 0x2ba   : > { %8316 = vst [vmem:[#allocation60_spill] sm:$0xff] %v6311_v3  ;;  %4832 = vmatmul.msk.f32.gmra.mxu3 %vm468_vm7, %v5853_v8  ;;  %4808 = vmatmul.msk.f32.gmra.mxu1 %vm468_vm7, %v6108_v62  ;;  %4963 = vrcp.f32 %v6340_v18  ;;  %vm764_vm1 = vweird.f32 %v6340_v18 }
 0x2bb   : > { %v2301_v41 = vpop.f32.mrf.mxu2  ;;  %v1822_v22 = vrot.slane %v1821_v52, 1 }
 0x2bc   : > { %v2412_v34 = vmul.f32 %v2301_v41, %v6272_v61  ;;  %v6349_v41 = vpop.eup %4961 }
 0x2bd   : > { %v2366_v19 = vpop.f32.mrf.mxu3  ;;  %vm750_vm12 = vweird.f32 %v6349_v41 }
 0x2be   : > { %v2413_v8 = vmul.f32 %v2366_v19, %v6283_v26  ;;  %v6338_v46 = vpop.f32.mrf.mxu0  ;;  %vm6418_vm14 = vmor %vm749_vm13, %vm750_vm12 }
 0x2bf   : > { %8319 = vst [vmem:[#allocation63_spill] sm:$0xff] %v6338_v46  ;;  %v6342_v32 = vpop.f32.mrf.mxu1 }
 0x2c0   : > { %4817 = vmatmul.msk.f32.gmra.mxu2 %vm468_vm7, %v5901_v44  ;;  %8320 = vst [vmem:[#allocation64_spill] sm:$0xff] %v6342_v32  ;;  %v1198_v32 = vperm.slane %v1188_v58, 1  ;;  %v6377_v25 = vpop.eup %4963 }
 0x2c1   : > { %4793 = vmatmul.msk.f32.gmra.mxu0 %vm468_vm7, %v6133_v4  ;;  %vm765_vm0 = vweird.f32 %v6377_v25 }
 0x2c2   : > { %4833 = vmatmul.msk.f32.gmra.mxu3 %vm468_vm7, %v5901_v44  ;;  %4809 = vmatmul.msk.f32.gmra.mxu1 %vm468_vm7, %v6133_v4  ;;  %vm6465_vm12 = vmor %vm764_vm1, %vm765_vm0 }
 0x2c3   : > { %v2304_v11 = vpop.f32.mrf.mxu2 }
 0x2c4   : > { %v2414_v23 = vmul.f32 %v2304_v11, %v6295_v43  ;;  %v745_v11 = vmul.f32 %v6349_v41, %v6319_v51 }
 0x2c5   : > { %v2369_v44 = vpop.f32.mrf.mxu3 }
 0x2c6   : > { %v6354_v55 = vadd.f32 %v2414_v23, %v2412_v34  ;;  %v2415_v19 = vmul.f32 %v2369_v44, %v6304_v29  ;;  %v6365_v17 = vpop.f32.mrf.mxu0  ;;  %v6368_v34 = vsel %vm3981_vm5, %v4076_v49, %v4075_v2  ;;  %v6371_v23 = vsel %vm3981_vm5, %v4090_v10, %v4089_v14 }
 0x2c7   : > { %8322 = vst [vmem:[#allocation2_spill] sm:$0xff] %v6365_v17  ;;  %v6373_v36 = vpop.f32.mrf.mxu1  ;;  %v1197_v44 = vperm.slane %v1188_v58, 0  ;;  %v1829_v49 = vrot.slane %v1828_v53, 1  ;;  %v1832_v14 = vrot.slane %v6209_v6, 4  ;;  %v1839_v10 = vrot.slane %v6219_v7, 4 }
 0x2c8   : > { %4818 = vmatmul.msk.f32.gmra.mxu2 %vm468_vm7, %v5936_v27  ;;  %v6363_v60 = vadd.f32 %v2415_v19, %v2413_v8  ;;  %8323 = vst [vmem:[#allocation65_spill] sm:$0xff] %v6373_v36  ;;  %v746_v8 = vsub.f32 1.0, %v745_v11  ;;  %v1202_v19 = vsub.f32 %v5218_v40, %v1198_v32  ;;  %v1823_v36 = vadd.f32 %v1822_v22, %v1821_v52 }
 0x2c9   : > { %4794 = vmatmul.msk.f32.gmra.mxu0 %vm468_vm7, %v5950_v33  ;;  %v1201_v58 = vsub.f32 %v5218_v40, %v1197_v44  ;;  %v1830_v17 = vadd.f32 %v1829_v49, %v1828_v53  ;;  %v1833_v46 = vadd.f32 %v1832_v14, %v6209_v6  ;;  %v1203_v12 = vsub.f32 %v5216_v37, %v1197_v44 }
 0x2ca   : > { %4834 = vmatmul.msk.f32.gmra.mxu3 %vm468_vm7, %v5936_v27  ;;  %4810 = vmatmul.msk.f32.gmra.mxu1 %vm468_vm7, %v5950_v33  ;;  %v760_v27 = vmul.f32 %v6377_v25, %v6340_v18  ;;  %v1840_v33 = vadd.f32 %v1839_v10, %v6219_v7  ;;  %v755_v6 = vand.u32 2147483648, %v6319_v51  ;;  %v753_v49 = vand.u32 2147483647, %v6319_v51 }
 0x2cb   : > { %v2307_v56 = vpop.f32.mrf.mxu2  ;;  %v1205_v35 = vand.u32 2147483647, %v1201_v58  ;;  %v1834_v44 = vrot.slane %v1833_v46, 2  ;;  %v1207_v14 = vand.u32 2147483647, %v1203_v12  ;;  %v3611_v12 = vrot.slane %v5585_v5, 7 }
 0x2cc   : > { %v2416_v2 = vmul.f32 %v2307_v56, %v6272_v61  ;;  %v747_v56 = vmul.f32 %v6349_v41, %v746_v8  ;;  %v761_v3 = vsub.f32 1.0, %v760_v27  ;;  %v1204_v8 = vsub.f32 %v5216_v37, %v1198_v32 }
 0x2cd   : > { %v2372_v63 = vpop.f32.mrf.mxu3  ;;  %v1841_v22 = vrot.slane %v1840_v33, 2  ;;  %v1871_v32 = vmul.f32 %v6178_v39, %v1823_v36  ;;  %vm754_vm15 = vcmp.eq.f32.partialorder %v753_v49, 8.507059e+37 }
 0x2ce   : > { %v2417_v11 = vmul.f32 %v2372_v63, %v6283_v26  ;;  %v6396_v48 = vpop.f32.mrf.mxu0  ;;  %v1206_v63 = vand.u32 2147483647, %v1202_v19  ;;  %v748_v53 = vadd.f32 %v6349_v41, %v747_v56  ;;  %v762_v19 = vmul.f32 %v6377_v25, %v761_v3 }
 0x2cf   : > { %8324 = vst [vmem:[#allocation66_spill] sm:$0xff] %v6396_v48  ;;  %v6399_v4 = vpop.f32.mrf.mxu1  ;;  %v1208_v56 = vand.u32 2147483647, %v1204_v8  ;;  %v4078_v36 = vrot.slane %v1871_v32, 3 }
 0x2d0   : > { %4819 = vmatmul.msk.f32.gmra.mxu2 %vm468_vm7, %v5965_v45  ;;  %8325 = vst [vmem:[#allocation67_spill] sm:$0xff] %v6399_v4 }
 0x2d1   : > { %4795 = vmatmul.msk.f32.gmra.mxu0 %vm468_vm7, %v5984_v15  ;;  %v6436_v8 = vsel %vm3984_vm6, %v4078_v36, %v6368_v34 }
 0x2d2   : > { %4835 = vmatmul.msk.f32.gmra.mxu3 %vm468_vm7, %v5965_v45  ;;  %4811 = vmatmul.msk.f32.gmra.mxu1 %vm468_vm7, %v5984_v15  ;;  %v1872_v45 = vmul.f32 %v6181_v21, %v1830_v17  ;;  %v752_v17 = vsel %vm6418_vm14, %v6349_v41, %v748_v53  ;;  %v1209_v41 = vsub.f32 1.0, %v1205_v35  ;;  %v770_v35 = vand.u32 2147483648, %v6340_v18 }
 0x2d3   : > { %v2310_v52 = vpop.f32.mrf.mxu2 }
 0x2d4   : > { %v2418_v7 = vmul.f32 %v2310_v52, %v6295_v43  ;;  %v756_v52 = vor.u32 1.1754944e-38, %v755_v6  ;;  %v4092_v51 = vrot.slane %v1872_v45, 3  ;;  %v8330_v6 = vld [vmem:[#allocation3_spill] sm:$0xff] }
 0x2d5   : > { %v2375_v27 = vpop.f32.mrf.mxu3  ;;  %v1883_v34 = vadd.f32 %v8330_v6, %v6199_v47 }
 0x2d6   : > { %v6416_v10 = vadd.f32 %v2418_v7, %v2416_v2  ;;  %v2419_v15 = vmul.f32 %v2375_v27, %v6304_v29  ;;  %v1835_v2 = vadd.f32 %v1834_v44, %v1833_v46  ;;  %v1842_v7 = vadd.f32 %v1841_v22, %v1840_v33  ;;  %v6432_v3 = vpop.f32.mrf.mxu0 }
 0x2d7   : > { %8328 = vst [vmem:[#allocation68_spill] sm:$0xff] %v6432_v3  ;;  %v6439_v53 = vpop.f32.mrf.mxu1  ;;  %v6443_v5 = vsel %vm3984_vm6, %v4092_v51, %v6371_v23  ;;  %v757_v46 = vsel %vm754_vm15, %v756_v52, %v752_v17  ;;  %v6447_v33 = vadd.f32 2.0, %v6196_v59  ;;  %v3612_v22 = vsel %vm790_vm9, %v5574_v38, %v3611_v12 }
 0x2d8   : > { %4820 = vmatmul.msk.f32.gmra.mxu2 %vm468_vm7, %v6002_v28  ;;  %v6430_v4 = vadd.f32 %v2419_v15, %v2417_v11  ;;  %8329 = vst [vmem:[#allocation69_spill] sm:$0xff] %v6439_v53  ;;  %v763_v11 = vadd.f32 %v6377_v25, %v762_v19  ;;  %v1210_v23 = vsub.f32 1.0, %v1206_v63  ;;  %v768_v59 = vand.u32 2147483647, %v6340_v18 }
 0x2d9   : > { %4796 = vmatmul.msk.f32.gmra.mxu0 %vm468_vm7, %v6016_v31  ;;  %v1836_v45 = vrot.slane %v1835_v2, 1  ;;  %v1843_v49 = vrot.slane %v1842_v7, 1  ;;  %v1211_v63 = vsub.f32 1.0, %v1207_v14  ;;  %v1212_v27 = vsub.f32 1.0, %v1208_v56 }
 0x2da   : > { %4836 = vmatmul.msk.f32.gmra.mxu3 %vm468_vm7, %v6002_v28  ;;  %4812 = vmatmul.msk.f32.gmra.mxu1 %vm468_vm7, %v6016_v31  ;;  %v776_v28 = vmul.f32 2.0, %v757_v46  ;;  %v767_v19 = vsel %vm6465_vm12, %v6377_v25, %v763_v11  ;;  %v3614_v18 = vadd.f32 %v3612_v22, %v6447_v33  ;;  %v1891_v15 = vperm.slane %v1883_v34, 0 }
 0x2db   : > { %v2313_v44 = vpop.f32.mrf.mxu2  ;;  %v771_v31 = vor.u32 1.1754944e-38, %v770_v35  ;;  %v6474_v17 = vmax.f32 %v1209_v41, 0.0  ;;  %v6476_v52 = vmax.f32 %v1210_v23, 0.0  ;;  %v1846_v12 = vrot.slane %v6253_v24, 4 }
 0x2dc   : > { %v2420_v32 = vmul.f32 %v2313_v44, %v6272_v61  ;;  %vm769_vm9 = vcmp.eq.f32.partialorder %v768_v59, 8.507059e+37  ;;  %v1837_v14 = vadd.f32 %v1836_v45, %v1835_v2  ;;  %v1844_v56 = vadd.f32 %v1843_v49, %v1842_v7 }
 0x2dd   : > { %v2378_v58 = vpop.f32.mrf.mxu3  ;;  %v1853_v25 = vrot.slane %v6263_v50, 4  ;;  %v772_v46 = vsel %vm769_vm9, %v771_v31, %v767_v19  ;;  %v6484_v11 = vmax.f32 %v1211_v63, 0.0  ;;  %v6486_v6 = vmax.f32 %v1212_v27, 0.0 }
 0x2de   : > { %v2421_v36 = vmul.f32 %v2378_v58, %v6283_v26  ;;  %v6482_v51 = vpop.f32.mrf.mxu0  ;;  %v1892_v41 = vperm.slane %v1883_v34, 1  ;;  %v6490_v35 = vperm.slane %v776_v28, 0  ;;  %v6492_v22 = vperm.slane %v776_v28, 1 }
 0x2df   : > { %8333 = vst [vmem:[#allocation3_spill] sm:$0xff] %v6482_v51  ;;  %v6488_v44 = vpop.f32.mrf.mxu1  ;;  %v3622_v23 = vperm.slane %v3614_v18, 0  ;;  %v1895_v2 = vsub.f32 %v5218_v40, %v1891_v15  ;;  %v6497_v59 = vperm.slane %v776_v28, 2  ;;  %v3623_v45 = vperm.slane %v3614_v18, 1  ;;  %v8345_v51 = vld [vmem:[#allocation15_spill] sm:$0xff] }
 0x2e0   : > { %4821 = vmatmul.msk.f32.gmra.mxu2 %vm468_vm7, %v6032_v57  ;;  %8334 = vst [vmem:[#allocation70_spill] sm:$0xff] %v6488_v44  ;;  %v1847_v49 = vadd.f32 %v1846_v12, %v6253_v24  ;;  %v777_v38 = vmul.f32 2.0, %v772_v46  ;;  %v1854_v63 = vadd.f32 %v1853_v25, %v6263_v50  ;;  %v1873_v27 = vmul.f32 %v6178_v39, %v1837_v14  ;;  %v8338_v46 = vld [vmem:[#allocation11_spill] sm:$0xff] }
 0x2e1   : > { %8335 = vst [vmem:[#allocation71_spill] sm:$0xff] %v6490_v35  ;;  %4797 = vmatmul.msk.f32.gmra.mxu0 %vm468_vm7, %v6046_v20  ;;  %v1896_v28 = vsub.f32 %v5218_v40, %v1892_v41  ;;  %v1897_v58 = vsub.f32 %v5216_v37, %v1891_v15  ;;  %v1898_v24 = vsub.f32 %v5216_v37, %v1892_v41  ;;  %v1899_v12 = vand.u32 2147483647, %v1895_v2 }
 0x2e2   : > { %8336 = vst [vmem:[#allocation72_spill] sm:$0xff] %v6492_v22  ;;  %4837 = vmatmul.msk.f32.gmra.mxu3 %vm468_vm7, %v6032_v57  ;;  %4813 = vmatmul.msk.f32.gmra.mxu1 %vm468_vm7, %v6046_v20  ;;  %v1874_v57 = vmul.f32 %v6181_v21, %v1844_v56  ;;  %v3626_v31 = vsub.f32 %v5218_v40, %v3622_v23  ;;  %v4080_v25 = vrot.slane %v1873_v27, 2  ;;  %v1848_v56 = vrot.slane %v1847_v49, 2 }
 0x2e3   : > { %v2316_v7 = vpop.f32.mrf.mxu2  ;;  %8337 = vst [vmem:[#allocation73_spill] sm:$0xff] %v6497_v59  ;;  %v3627_v20 = vsub.f32 %v5218_v40, %v3623_v45  ;;  %v3628_v14 = vsub.f32 %v5216_v37, %v3622_v23  ;;  %v1855_v41 = vrot.slane %v1854_v63, 2  ;;  %v1900_v27 = vand.u32 2147483647, %v1896_v28 }
 0x2e4   : > { %v2422_v34 = vmul.f32 %v2316_v7, %v6295_v43  ;;  %v4094_v15 = vrot.slane %v1874_v57, 2  ;;  %v6527_v2 = vsel %vm3987_vm10, %v4080_v25, %v6436_v8  ;;  %v1902_v23 = vand.u32 2147483647, %v1898_v24 }
 0x2e5   : > { %v2381_v18 = vpop.f32.mrf.mxu3  ;;  %v3630_v3 = vand.u32 2147483647, %v3626_v31  ;;  %v1903_v44 = vsub.f32 1.0, %v1899_v12  ;;  %v3631_v28 = vand.u32 2147483647, %v3627_v20  ;;  %v1849_v24 = vadd.f32 %v1848_v56, %v1847_v49 }
 0x2e6   : > { %v6511_v19 = vadd.f32 %v2422_v34, %v2420_v32  ;;  %v2423_v50 = vmul.f32 %v2381_v18, %v6304_v29  ;;  %v1370_v32 = vmul.f32 %v8338_v46, %v6484_v11  ;;  %v6523_v34 = vpop.f32.mrf.mxu0  ;;  %v1901_v18 = vand.u32 2147483647, %v1897_v58 }
 0x2e7   : > { %8339 = vst [vmem:[#allocation11_spill] sm:$0xff] %v6523_v34  ;;  %v6529_v53 = vpop.f32.mrf.mxu1  ;;  %v6533_v57 = vsel %vm3987_vm10, %v4094_v15, %v6443_v5  ;;  %v3629_v46 = vsub.f32 %v5216_v37, %v3623_v45  ;;  %v3632_v58 = vand.u32 2147483647, %v3628_v14  ;;  %v6543_v25 = vperm.slane %v777_v38, 0 }
 0x2e8   : > { %4822 = vmatmul.msk.f32.gmra.mxu2 %vm468_vm7, %v6062_v1  ;;  %v6521_v7 = vadd.f32 %v2423_v50, %v2421_v36  ;;  %8340 = vst [vmem:[#allocation74_spill] sm:$0xff] %v6529_v53  ;;  %v8341_v36 = vld [vmem:[#allocation9_spill] sm:$0xff]  ;;  %v6545_v45 = vperm.slane %v777_v38, 1  ;;  %v1856_v15 = vadd.f32 %v1855_v41, %v1854_v63  ;;  %v6549_v12 = vperm.slane %v777_v38, 2  ;;  %v8347_v38 = vld [vmem:[#allocation12_spill] sm:$0xff] }
 0x2e9   : > { %v1368_v50 = vmul.f32 %v8341_v36, %v6474_v17  ;;  %4846 = vmatmul.msk.f32.vlgmr.msrb.gmra.mxu0 %vm468_vm7, %v6075_v9  ;;  %8342 = vst [vmem:[#allocation9_spill] sm:$0xff] %v6543_v25  ;;  %v1905_v20 = vsub.f32 1.0, %v1901_v18  ;;  %v1906_v14 = vsub.f32 1.0, %v1902_v23  ;;  %v3633_v56 = vand.u32 2147483647, %v3629_v46  ;;  %v8350_v23 = vld [vmem:[#allocation16_spill] sm:$0xff] }
 0x2ea   : > { %4838 = vmatmul.msk.f32.gmra.mxu3 %vm468_vm7, %v6062_v1  ;;  %8343 = vst [vmem:[#allocation75_spill] sm:$0xff] %v6545_v45  ;;  %4862 = vmatmul.msk.f32.vlgmr.msrb.gmra.mxu1 %vm468_vm7, %v6075_v9  ;;  %v1904_v1 = vsub.f32 1.0, %v1900_v27  ;;  %v3634_v36 = vsub.f32 1.0, %v3630_v3  ;;  %v3635_v59 = vsub.f32 1.0, %v3631_v28  ;;  %v3636_v45 = vsub.f32 1.0, %v3632_v58  ;;  %v8348_v27 = vld [vmem:[#allocation13_spill] sm:$0xff] }
 0x2eb   : > { %v2319_v8 = vpop.f32.mrf.mxu2  ;;  %v1400_v31 = vadd.f32 %v1370_v32, %v1368_v50  ;;  %8344 = vst [vmem:[#allocation76_spill] sm:$0xff] %v6549_v12  ;;  %v6554_v32 = vmax.f32 %v1903_v44, 0.0  ;;  %v1850_v63 = vrot.slane %v1849_v24, 1  ;;  %v1371_v41 = vmul.f32 %v8347_v38, %v6486_v6 }
 0x2ec   : > { %v2424_v5 = vmul.f32 %v2319_v8, %v6272_v61  ;;  %v1374_v8 = vmul.f32 %v8345_v51, %v6484_v11  ;;  %v1372_v3 = vmul.f32 %v8348_v27, %v6474_v17  ;;  %v1857_v18 = vrot.slane %v1856_v15, 1  ;;  %v8356_v27 = vld [vmem:[#allocation10_spill] sm:$0xff] }
 0x2ed   : > { %v2384_v49 = vpop.f32.mrf.mxu3  ;;  %8346 = vst [vmem:[#allocation15_spill] sm:$0xff] %v6554_v32  ;;  %v1401_v9 = vrot.slane %v1400_v31, 4  ;;  %v1375_v46 = vmul.f32 %v8350_v23, %v6486_v6  ;;  %v6566_v44 = vmax.f32 %v1904_v1, 0.0  ;;  %v6568_v50 = vmax.f32 %v1905_v20, 0.0  ;;  %v8358_v1 = vld [vmem:[#allocation14_spill] sm:$0xff] }
 0x2ee   : > { %v2425_v48 = vmul.f32 %v2384_v49, %v6283_v26  ;;  %v6562_v51 = vpop.f32.mrf.mxu0  ;;  %v6570_v28 = vmax.f32 %v1906_v14, 0.0  ;;  %v3637_v49 = vsub.f32 1.0, %v3633_v56  ;;  %v6574_v38 = vmax.f32 %v3634_v36, 0.0  ;;  %v6585_v14 = vld [vmem:[%s5231_s22 + $0x8] sm:$0xff] }
 0x2ef   : > { %8349 = vst [vmem:[#allocation12_spill] sm:$0xff] %v6562_v51  ;;  %v6572_v58 = vpop.f32.mrf.mxu1  ;;  %v1369_v12 = vmul.f32 %v8356_v27, %v6476_v52  ;;  %v1414_v22 = vadd.f32 %v1374_v8, %v1372_v3  ;;  %v6580_v23 = vmax.f32 %v3635_v59, 0.0  ;;  %v1373_v20 = vmul.f32 %v8358_v1, %v6476_v52 }
 0x2f0   : > { %4823 = vmatmul.msk.f32.gmra.mxu2 %vm468_vm7, %v6085_v54  ;;  %8351 = vst [vmem:[#allocation13_spill] sm:$0xff] %v6566_v44  ;;  %v1851_v36 = vadd.f32 %v1850_v63, %v1849_v24  ;;  %v1402_v8 = vadd.f32 %v1401_v9, %v1400_v31  ;;  %v1378_v27 = vmul.f32 %v5696_v16, %v6484_v11  ;;  %v8361_v16 = vld [vmem:[#allocation20_spill] sm:$0xff]  ;;  %v2455_v63 = vrot.slane %v6354_v55, 4 }
 0x2f1   : > { %8352 = vst [vmem:[#allocation16_spill] sm:$0xff] %v6568_v50  ;;  %4847 = vmatmul.msk.f32.gmra.mxu0 %vm468_vm7, %v6585_v14  ;;  %v1407_v3 = vadd.f32 %v1371_v41, %v1369_v12  ;;  %v1421_v59 = vadd.f32 %v1375_v46, %v1373_v20  ;;  %v1415_v53 = vrot.slane %v1414_v22, 4  ;;  %v1379_v24 = vmul.f32 %v5700_v42, %v6486_v6  ;;  %v8363_v46 = vld [vmem:[#allocation18_spill] sm:$0xff] }
 0x2f2   : > { %8353 = vst [vmem:[#allocation77_spill] sm:$0xff] %v6570_v28  ;;  %4839 = vmatmul.msk.f32.gmra.mxu3 %vm468_vm7, %v6085_v54  ;;  %4863 = vmatmul.msk.f32.gmra.mxu1 %vm468_vm7, %v6585_v14  ;;  %v1858_v54 = vadd.f32 %v1857_v18, %v1856_v15  ;;  %v1875_v35 = vmul.f32 %v6178_v39, %v1851_v36  ;;  %v8360_v15 = vld [vmem:[#allocation17_spill] sm:$0xff]  ;;  %v2462_v42 = vrot.slane %v6363_v60, 4  ;;  %v6679_v28 = vld [vmem:[%s5231_s22 + $0x18] sm:$0xff] }
 0x2f3   : > { %8354 = vst [vmem:[#allocation78_spill] sm:$0xff] %v6572_v58  ;;  %v2322_v25 = vpop.f32.mrf.mxu2  ;;  %v1376_v31 = vmul.f32 %v5676_v30, %v6474_v17  ;;  %v1377_v12 = vmul.f32 %v8360_v15, %v6476_v52  ;;  %v1422_v41 = vrot.slane %v1421_v59, 4  ;;  %v6637_v15 = vld [vmem:[%s5231_s22 + $0x10] sm:$0xff]  ;;  %v6672_v58 = vperm.slane %v5945_v13, 6 }
 0x2f4   : > { %8355 = vst [vmem:[#allocation79_spill] sm:$0xff] %v6574_v38  ;;  %v2426_v56 = vmul.f32 %v2322_v25, %v6295_v43  ;;  %v6590_v38 = vmax.f32 %v3636_v45, 0.0  ;;  %v1876_v45 = vmul.f32 %v6181_v21, %v1858_v54  ;;  %v4082_v39 = vrot.slane %v1875_v35, 1 }
 0x2f5   : > { %8357 = vst [vmem:[#allocation10_spill] sm:$0xff] %v6580_v23  ;;  %v2387_v23 = vpop.f32.mrf.mxu3  ;;  %v1428_v18 = vadd.f32 %v1378_v27, %v1376_v31  ;;  %v1435_v36 = vadd.f32 %v1379_v24, %v1377_v12  ;;  %v1403_v24 = vrot.slane %v1402_v8, 2  ;;  %v2463_v12 = vadd.f32 %v2462_v42, %v6363_v60  ;;  %v8374_v42 = vld [vmem:[#allocation19_spill] sm:$0xff] }
 0x2f6   : > { %8359 = vst [vmem:[#allocation14_spill] sm:$0xff] %v6590_v38  ;;  %v6596_v1 = vadd.f32 %v2426_v56, %v2424_v5  ;;  %v2427_v25 = vmul.f32 %v2387_v23, %v6304_v29  ;;  %v1382_v5 = vmul.f32 %v8361_v16, %v6484_v11  ;;  %v6615_v21 = vpop.f32.mrf.mxu0  ;;  %v4096_v30 = vrot.slane %v1876_v45, 1  ;;  %v8371_v16 = vld [vmem:[#allocation21_spill] sm:$0xff] }
 0x2f7   : > { %8362 = vst [vmem:[#allocation17_spill] sm:$0xff] %v6615_v21  ;;  %v1380_v23 = vmul.f32 %v8363_v46, %v6474_v17  ;;  %v6619_v20 = vpop.f32.mrf.mxu1  ;;  %v6623_v35 = vsel %vm3990_vm11, %v4082_v39, %v6527_v2  ;;  %v6626_v56 = vperm.slane %v5930_v0, 3  ;;  %v1416_v45 = vadd.f32 %v1415_v53, %v1414_v22  ;;  %v8372_v46 = vld [vmem:[#allocation59_spill] sm:$0xff]  ;;  %v8375_v38 = vld [vmem:[#allocation45_spill] sm:$0xff] }
 0x2f8   : > { %4824 = vmatmul.msk.f32.gmra.mxu2 %vm468_vm7, %v6108_v62  ;;  %v6613_v9 = vadd.f32 %v2427_v25, %v2425_v48  ;;  %8364 = vst [vmem:[#allocation20_spill] sm:$0xff] %v6619_v20  ;;  %v6628_v48 = vmax.f32 %v3637_v49, 0.0  ;;  %v6634_v27 = vsel %vm3990_vm11, %v4096_v30, %v6533_v57  ;;  %v1408_v25 = vrot.slane %v1407_v3, 4 }
 0x2f9   : > { %8365 = vst [vmem:[#allocation18_spill] sm:$0xff] %v6623_v35  ;;  %v1442_v31 = vadd.f32 %v1382_v5, %v1380_v23  ;;  %4848 = vmatmul.msk.f32.gmra.mxu0 %vm468_vm7, %v6637_v15  ;;  %v6643_v49 = vperm.slane %v5930_v0, 5  ;;  %v6650_v53 = vperm.slane %v5945_v13, 3  ;;  %v1423_v22 = vadd.f32 %v1422_v41, %v1421_v59 }
 0x2fa   : > { %8366 = vst [vmem:[#allocation80_spill] sm:$0xff] %v6626_v56  ;;  %4840 = vmatmul.msk.f32.gmra.mxu3 %vm468_vm7, %v6108_v62  ;;  %v2456_v62 = vadd.f32 %v2455_v63, %v6354_v55  ;;  %4864 = vmatmul.msk.f32.gmra.mxu1 %vm468_vm7, %v6637_v15  ;;  %v1429_v57 = vrot.slane %v1428_v18, 4  ;;  %v1383_v5 = vmul.f32 %v8371_v16, %v6486_v6  ;;  %v1436_v30 = vrot.slane %v1435_v36, 4 }
 0x2fb   : > { %8367 = vst [vmem:[#allocation81_spill] sm:$0xff] %v6628_v48  ;;  %v2325_v54 = vpop.f32.mrf.mxu2  ;;  %v2441_v23 = vrot.slane %v8372_v46, 4  ;;  %v1409_v60 = vadd.f32 %v1408_v25, %v1407_v3  ;;  %v1417_v63 = vrot.slane %v1416_v45, 2  ;;  %v1381_v35 = vmul.f32 %v8374_v42, %v6476_v52 }
 0x2fc   : > { %8368 = vst [vmem:[#allocation82_spill] sm:$0xff] %v6634_v27  ;;  %v2428_v2 = vmul.f32 %v2325_v54, %v6272_v61  ;;  %v8373_v54 = vld [vmem:[#allocation60_spill] sm:$0xff]  ;;  %v1443_v48 = vrot.slane %v1442_v31, 4  ;;  %v6662_v59 = vperm.slane %v5945_v13, 5  ;;  %v1404_v41 = vadd.f32 %v1403_v24, %v1402_v8 }
 0x2fd   : > { %8369 = vst [vmem:[#allocation83_spill] sm:$0xff] %v6643_v49  ;;  %v2390_v39 = vpop.f32.mrf.mxu3  ;;  %v2448_v27 = vrot.slane %v8373_v54, 4  ;;  %v2457_v16 = vrot.slane %v2456_v62, 2  ;;  %v2464_v49 = vrot.slane %v2463_v12, 2  ;;  %v1424_v3 = vrot.slane %v1423_v22, 2 }
 0x2fe   : > { %8370 = vst [vmem:[#allocation84_spill] sm:$0xff] %v6650_v53  ;;  %v2429_v55 = vmul.f32 %v2390_v39, %v6283_v26  ;;  %v6664_v20 = vpop.f32.mrf.mxu0  ;;  %v6667_v39 = vperm.slane %v5930_v0, 6  ;;  %v1430_v25 = vadd.f32 %v1429_v57, %v1428_v18  ;;  %v1449_v21 = vadd.f32 %v1383_v5, %v1381_v35 }
 0x2ff   : > { %8376 = vst [vmem:[#allocation21_spill] sm:$0xff] %v6662_v59  ;;  %v6669_v42 = vpop.f32.mrf.mxu1  ;;  %v1437_v34 = vadd.f32 %v1436_v30, %v1435_v36  ;;  %v2442_v59 = vadd.f32 %v2441_v23, %v8372_v46  ;;  %v2449_v8 = vadd.f32 %v2448_v27, %v8373_v54  ;;  %v1418_v51 = vadd.f32 %v1417_v63, %v1416_v45 }
 0x300   : > { %4825 = vmatmul.msk.f32.gmra.mxu2 %vm468_vm7, %v8375_v38  ;;  %8377 = vst [vmem:[#allocation59_spill] sm:$0xff] %v6664_v20  ;;  %v1410_v20 = vrot.slane %v1409_v60, 2  ;;  %v1444_v44 = vadd.f32 %v1443_v48, %v1442_v31  ;;  %v6685_v35 = vperm.slane %v5930_v0, 7  ;;  %v1405_v36 = vrot.slane %v1404_v41, 1 }
 0x301   : > { %8378 = vst [vmem:[#allocation60_spill] sm:$0xff] %v6669_v42  ;;  %4849 = vmatmul.msk.f32.gmra.mxu0 %vm468_vm7, %v6679_v28  ;;  %v2458_v57 = vadd.f32 %v2457_v16, %v2456_v62  ;;  %v2465_v27 = vadd.f32 %v2464_v49, %v2463_v12  ;;  %v1431_v45 = vrot.slane %v1430_v25, 2  ;;  %v1450_v48 = vrot.slane %v1449_v21, 4  ;;  %v6694_v49 = vld [vmem:[%s5231_s22 + $0x60] sm:$0xff] }
 0x302   : > { %4841 = vmatmul.msk.f32.gmra.mxu3 %vm468_vm7, %v8375_v38  ;;  %8379 = vst [vmem:[#allocation19_spill] sm:$0xff] %v6679_v28  ;;  %4865 = vmatmul.msk.f32.gmra.mxu1 %vm468_vm7, %v6679_v28  ;;  %v1425_v38 = vadd.f32 %v1424_v3, %v1423_v22  ;;  %v1438_v30 = vrot.slane %v1437_v34, 2  ;;  %v2443_v46 = vrot.slane %v2442_v59, 2  ;;  %v2450_v23 = vrot.slane %v2449_v8, 2 }
 0x303   : > { %v2328_v24 = vpop.f32.mrf.mxu2  ;;  %8380 = vst [vmem:[#allocation45_spill] sm:$0xff] %v6685_v35  ;;  %v1411_v0 = vadd.f32 %v1410_v20, %v1409_v60  ;;  %v1419_v63 = vrot.slane %v1418_v51, 1  ;;  %v2469_v62 = vrot.slane %v6416_v10, 4  ;;  %v2459_v12 = vrot.slane %v2458_v57, 1 }
 0x304   : > { %v2430_v18 = vmul.f32 %v2328_v24, %v6295_v43  ;;  %v1445_v24 = vrot.slane %v1444_v44, 2  ;;  %v2466_v22 = vrot.slane %v2465_v27, 1  ;;  %v1426_v20 = vrot.slane %v1425_v38, 1 }
 0x305   : > { %v2393_v5 = vpop.f32.mrf.mxu3  ;;  %v1432_v60 = vadd.f32 %v1431_v45, %v1430_v25  ;;  %v6706_v42 = vperm.slane %v5945_v13, 7  ;;  %v1439_v32 = vadd.f32 %v1438_v30, %v1437_v34  ;;  %v2444_v50 = vadd.f32 %v2443_v46, %v2442_v59 }
 0x306   : > { %v6689_v31 = vadd.f32 %v2430_v18, %v2428_v2  ;;  %v2431_v54 = vmul.f32 %v2393_v5, %v6304_v29  ;;  %v2476_v2 = vrot.slane %v6430_v4, 4  ;;  %v6701_v3 = vpop.f32.mrf.mxu0  ;;  %v1406_v18 = vadd.f32 %v1405_v36, %v1404_v41  ;;  %v6712_v41 = vld [vmem:[%s5231_s22 + $0x20] sm:$0xff] }
 0x307   : > { %8382 = vst [vmem:[#allocation86_spill] sm:$0xff] %v6701_v3  ;;  %v1451_v5 = vadd.f32 %v1450_v48, %v1449_v21  ;;  %v6703_v35 = vpop.f32.mrf.mxu1  ;;  %v2451_v28 = vadd.f32 %v2450_v23, %v2449_v8  ;;  %v2470_v3 = vadd.f32 %v2469_v62, %v6416_v10  ;;  %v1446_v13 = vadd.f32 %v1445_v24, %v1444_v44  ;;  %v6730_v24 = vld [vmem:[%s5231_s22 + $0x68] sm:$0xff] }
 0x308   : > { %4826 = vmatmul.msk.f32.gmra.mxu2 %vm468_vm7, %v6694_v49  ;;  %v6699_v16 = vadd.f32 %v2431_v54, %v2429_v55  ;;  %8383 = vst [vmem:[#allocation87_spill] sm:$0xff] %v6703_v35  ;;  %v1412_v54 = vrot.slane %v1411_v0, 1  ;;  %v2460_v25 = vadd.f32 %v2459_v12, %v2458_v57  ;;  %v2467_v34 = vadd.f32 %v2466_v22, %v2465_v27 }
 0x309   : > { %8384 = vst [vmem:[#allocation88_spill] sm:$0xff] %v6706_v42  ;;  %4850 = vmatmul.msk.f32.gmra.mxu0 %vm468_vm7, %v6712_v41  ;;  %v2477_v59 = vadd.f32 %v2476_v2, %v6430_v4  ;;  %v1427_v10 = vadd.f32 %v1426_v20, %v1425_v38  ;;  %v1433_v8 = vrot.slane %v1432_v60, 1  ;;  %v1452_v36 = vrot.slane %v1451_v5, 2  ;;  %v8385_v4 = vld [vmem:[#allocation24_spill] sm:$0xff] }
 0x30a   : > { %8381 = vst [vmem:[#allocation85_spill] sm:$0xff] %v6699_v16  ;;  %4842 = vmatmul.msk.f32.gmra.mxu3 %vm468_vm7, %v6694_v49  ;;  %v1420_v16 = vadd.f32 %v1419_v63, %v1418_v51  ;;  %4866 = vmatmul.msk.f32.gmra.mxu1 %vm468_vm7, %v6712_v41  ;;  %v6721_v51 = vmul.f32 %v6626_v56, %v1406_v18  ;;  %v1440_v48 = vrot.slane %v1439_v32, 1  ;;  %v2445_v30 = vrot.slane %v2444_v50, 1  ;;  %v8388_v18 = vld [vmem:[#allocation22_spill] sm:$0xff] }
 0x30b   : > { %v2331_v55 = vpop.f32.mrf.mxu2  ;;  %v2452_v46 = vrot.slane %v2451_v28, 1  ;;  %v1413_v57 = vadd.f32 %v1412_v54, %v1411_v0  ;;  %v1386_v23 = vmul.f32 %v8385_v4, %v6484_v11  ;;  %v2471_v63 = vrot.slane %v2470_v3, 2 }
 0x30c   : > { %v2432_v21 = vmul.f32 %v2331_v55, %v6272_v61  ;;  %v6725_v27 = vmul.f32 %v6626_v56, %v1420_v16  ;;  %v1447_v38 = vrot.slane %v1446_v13, 1  ;;  %v2556_v62 = vmul.f32 %v6667_v39, %v2460_v25  ;;  %v8389_v55 = vld [vmem:[#allocation4_spill] sm:$0xff] }
 0x30d   : > { %v2396_v45 = vpop.f32.mrf.mxu3  ;;  %v2557_v12 = vmul.f32 %v6672_v58, %v2467_v34  ;;  %v2478_v22 = vrot.slane %v2477_v59, 2  ;;  %v6739_v2 = vmul.f32 %v6650_v53, %v1427_v10  ;;  %v1453_v16 = vadd.f32 %v1452_v36, %v1451_v5  ;;  %v8391_v10 = vld [vmem:[#allocation23_spill] sm:$0xff] }
 0x30e   : > { %v2433_v44 = vmul.f32 %v2396_v45, %v6283_v26  ;;  %v6736_v0 = vpop.f32.mrf.mxu0  ;;  %v1384_v20 = vmul.f32 %v8388_v18, %v6474_v17  ;;  %v6745_v54 = vadd.f32 %v8389_v55, %v6199_v47  ;;  %v1434_v25 = vadd.f32 %v1433_v8, %v1432_v60  ;;  %v6754_v18 = vld [vmem:[%s5231_s22 + $0x28] sm:$0xff] }
 0x30f   : > { %8386 = vst [vmem:[#allocation24_spill] sm:$0xff] %v6736_v0  ;;  %v6747_v45 = vpop.f32.mrf.mxu1  ;;  %v1441_v4 = vadd.f32 %v1440_v48, %v1439_v32  ;;  %v2446_v34 = vadd.f32 %v2445_v30, %v2444_v50  ;;  %v2453_v42 = vadd.f32 %v2452_v46, %v2451_v28  ;;  %v1385_v5 = vmul.f32 %v8391_v10, %v6476_v52  ;;  %v8392_v48 = vld [vmem:[#allocation25_spill] sm:$0xff] }
 0x310   : > { %4827 = vmatmul.msk.f32.gmra.mxu2 %vm468_vm7, %v6730_v24  ;;  %8387 = vst [vmem:[#allocation89_spill] sm:$0xff] %v6739_v2  ;;  %v1456_v36 = vadd.f32 %v1386_v23, %v1384_v20  ;;  %v2472_v0 = vadd.f32 %v2471_v63, %v2470_v3  ;;  %v1448_v60 = vadd.f32 %v1447_v38, %v1446_v13  ;;  %v4162_v32 = vrot.slane %v2556_v62, 7  ;;  %v6773_v20 = vld [vmem:[%s5231_s22 + $0x70] sm:$0xff]  ;;  %v8404_v2 = vld [vmem:[#allocation28_spill] sm:$0xff] }
 0x311   : > { %8390 = vst [vmem:[#allocation22_spill] sm:$0xff] %v6747_v45  ;;  %4851 = vmatmul.msk.f32.gmra.mxu0 %vm468_vm7, %v6754_v18  ;;  %v4176_v50 = vrot.slane %v2557_v12, 7  ;;  %v2479_v28 = vadd.f32 %v2478_v22, %v2477_v59  ;;  %v1454_v8 = vrot.slane %v1453_v16, 1  ;;  %v1387_v30 = vmul.f32 %v8392_v48, %v6486_v6 }
 0x312   : > { %4843 = vmatmul.msk.f32.gmra.mxu3 %vm468_vm7, %v6730_v24  ;;  %4867 = vmatmul.msk.f32.gmra.mxu1 %vm468_vm7, %v6754_v18  ;;  %v2583_v3 = vperm.slane %v6745_v54, 0  ;;  %v2554_v63 = vmul.f32 %v6667_v39, %v2446_v34  ;;  %v2584_v13 = vperm.slane %v6745_v54, 1  ;;  %v1457_v38 = vrot.slane %v1456_v36, 4 }
 0x313   : > { %v2334_v35 = vpop.f32.mrf.mxu2  ;;  %v2473_v62 = vrot.slane %v2472_v0, 1  ;;  %v2483_v12 = vrot.slane %v6511_v19, 4  ;;  %v2490_v22 = vrot.slane %v6521_v7, 4  ;;  %v6788_v10 = vmul.f32 %v6650_v53, %v1413_v57 }
 0x314   : > { %v2434_v47 = vmul.f32 %v2334_v35, %v6295_v43  ;;  %v2555_v35 = vmul.f32 %v6672_v58, %v2453_v42  ;;  %v6782_v42 = vsel %vm3972_vm2, %v4162_v32, %v2554_v63  ;;  %v1455_v48 = vadd.f32 %v1454_v8, %v1453_v16  ;;  %v6809_v8 = vld [vmem:[%s5231_s22 + $0x30] sm:$0xff] }
 0x315   : > { %v2399_v23 = vpop.f32.mrf.mxu3  ;;  %8394 = vst [vmem:[#allocation23_spill] sm:$0xff] %v6788_v10  ;;  %v6798_v32 = vmul.f32 %v6650_v53, %v1441_v4  ;;  %v6804_v63 = vmul.f32 %v6626_v56, %v1448_v60  ;;  %v2484_v16 = vadd.f32 %v2483_v12, %v6511_v19  ;;  %v1458_v4 = vadd.f32 %v1457_v38, %v1456_v36 }
 0x316   : > { %v6764_v46 = vadd.f32 %v2434_v47, %v2432_v21  ;;  %v2435_v59 = vmul.f32 %v2399_v23, %v6304_v29  ;;  %v2480_v21 = vrot.slane %v2479_v28, 1  ;;  %v6779_v34 = vpop.f32.mrf.mxu0  ;;  %v6785_v54 = vsel %vm3972_vm2, %v4176_v50, %v2555_v35 }
 0x317   : > { %8393 = vst [vmem:[#allocation4_spill] sm:$0xff] %v6779_v34  ;;  %v1463_v23 = vadd.f32 %v1387_v30, %v1385_v5  ;;  %v6791_v45 = vpop.f32.mrf.mxu1  ;;  %v2587_v50 = vsub.f32 %v5218_v40, %v2583_v3  ;;  %v2491_v5 = vadd.f32 %v2490_v22, %v6521_v7  ;;  %v2474_v30 = vadd.f32 %v2473_v62, %v2472_v0 }
 0x318   : > { %4828 = vmatmul.msk.f32.gmra.mxu2 %vm468_vm7, %v6773_v20  ;;  %v6777_v55 = vadd.f32 %v2435_v59, %v2433_v44  ;;  %8395 = vst [vmem:[#allocation25_spill] sm:$0xff] %v6791_v45  ;;  %v6795_v59 = vmul.f32 %v6626_v56, %v1434_v25  ;;  %v2481_v35 = vadd.f32 %v2480_v21, %v2479_v28  ;;  %v8405_v45 = vld [vmem:[#allocation26_spill] sm:$0xff] }
 0x319   : > { %8397 = vst [vmem:[#allocation91_spill] sm:$0xff] %v6798_v32  ;;  %4852 = vmatmul.msk.f32.gmra.mxu0 %vm468_vm7, %v6809_v8  ;;  %v6815_v44 = vsub.f32 %v5218_v40, %v2584_v13  ;;  %v6820_v19 = vmul.f32 %v6650_v53, %v1455_v48  ;;  %v1464_v7 = vrot.slane %v1463_v23, 4  ;;  %v6823_v60 = vsub.f32 %v5216_v37, %v2583_v3  ;;  %v6835_v3 = vld [vmem:[%s5231_s22 + $0x78] sm:$0xff] }
 0x31a   : > { %8396 = vst [vmem:[#allocation90_spill] sm:$0xff] %v6795_v59  ;;  %4844 = vmatmul.msk.f32.gmra.mxu3 %vm468_vm7, %v6773_v20  ;;  %4868 = vmatmul.msk.f32.gmra.mxu1 %vm468_vm7, %v6809_v8  ;;  %v2591_v28 = vand.u32 2147483647, %v2587_v50  ;;  %v6829_v38 = vsub.f32 %v5216_v37, %v2584_v13  ;;  %v2485_v48 = vrot.slane %v2484_v16, 2  ;;  %v2558_v0 = vmul.f32 %v6667_v39, %v2474_v30 }
 0x31b   : > { %v2337_v57 = vpop.f32.mrf.mxu2  ;;  %8398 = vst [vmem:[#allocation92_spill] sm:$0xff] %v6804_v63  ;;  %v2559_v50 = vmul.f32 %v6672_v58, %v2481_v35  ;;  %v2592_v13 = vand.u32 2147483647, %v6815_v44  ;;  %v1465_v22 = vadd.f32 %v1464_v7, %v1463_v23  ;;  %v2593_v21 = vand.u32 2147483647, %v6823_v60  ;;  %v6856_v60 = vld [vmem:[%s5231_s22 + $0x38] sm:$0xff] }
 0x31c   : > { %v2436_v25 = vmul.f32 %v2337_v57, %v6272_v61  ;;  %8399 = vst [vmem:[#allocation93_spill] sm:$0xff] %v6820_v19  ;;  %v8400_v61 = vld [vmem:[#allocation7_spill] sm:$0xff]  ;;  %v2492_v57 = vrot.slane %v2491_v5, 2  ;;  %v1390_v10 = vmul.f32 %v8404_v2, %v6484_v11  ;;  %v2595_v63 = vsub.f32 1.0, %v2591_v28 }
 0x31d   : > { %v2402_v12 = vpop.f32.mrf.mxu3  ;;  %v2922_v36 = vadd.f32 %v8400_v61, %v6447_v33  ;;  %8401 = vst [vmem:[#allocation7_spill] sm:$0xff] %v6835_v3  ;;  %v1459_v61 = vrot.slane %v1458_v4, 2  ;;  %v2594_v30 = vand.u32 2147483647, %v6829_v38  ;;  %v2486_v23 = vadd.f32 %v2485_v48, %v2484_v16  ;;  %v8407_v38 = vld [vmem:[#allocation27_spill] sm:$0xff] }
 0x31e   : > { %v2437_v62 = vmul.f32 %v2402_v12, %v6283_v26  ;;  %v6842_v26 = vpop.f32.mrf.mxu0  ;;  %v1388_v12 = vmul.f32 %v8405_v45, %v6474_v17  ;;  %v2493_v7 = vadd.f32 %v2492_v57, %v2491_v5  ;;  %8406 = vst [vmem:[#allocation28_spill] sm:$0xff] %v6856_v60  ;;  %v1389_v19 = vmul.f32 %v8407_v38, %v6476_v52 }
 0x31f   : > { %8402 = vst [vmem:[#allocation94_spill] sm:$0xff] %v6842_v26  ;;  %v6846_v47 = vpop.f32.mrf.mxu1  ;;  %v2930_v32 = vperm.slane %v2922_v36, 0  ;;  %v2931_v35 = vperm.slane %v2922_v36, 1  ;;  %v1460_v28 = vadd.f32 %v1459_v61, %v1458_v4  ;;  %v4178_v34 = vrot.slane %v2559_v50, 6  ;;  %v4993_v26 = vld [vmem:[%s5231_s22] sm:$0xff] }
 0x320   : > { %4829 = vmatmul.msk.f32.gmra.mxu2 %vm468_vm7, %v6835_v3  ;;  %8403 = vst [vmem:[#allocation95_spill] sm:$0xff] %v6846_v47  ;;  %v4164_v47 = vrot.slane %v2558_v0, 6  ;;  %v1466_v45 = vrot.slane %v1465_v22, 2  ;;  %v1470_v57 = vadd.f32 %v1390_v10, %v1388_v12  ;;  %v2487_v50 = vrot.slane %v2486_v23, 1 }
 0x321   : > { %4853 = vmatmul.msk.f32.gmra.mxu0 %vm468_vm7, %v6856_v60  ;;  %v2934_v36 = vsub.f32 %v5218_v40, %v2930_v32  ;;  %v2936_v48 = vsub.f32 %v5216_v37, %v2930_v32  ;;  %v2935_v0 = vsub.f32 %v5218_v40, %v2931_v35  ;;  %v2497_v38 = vrot.slane %v6596_v1, 4 }
 0x322   : > { %4845 = vmatmul.msk.f32.gmra.mxu3 %vm468_vm7, %v6835_v3  ;;  %4869 = vmatmul.msk.f32.gmra.mxu1 %vm468_vm7, %v6856_v60  ;;  %v6888_v12 = vsel %vm3975_vm3, %v4178_v34, %v6785_v54  ;;  %v2598_v59 = vsub.f32 1.0, %v2594_v30  ;;  %v6897_v54 = vld [vmem:[%s5231_s22 + $0x40] sm:$0xff]  ;;  %v8413_v30 = vld [vmem:[#allocation8_spill] sm:$0xff] }
 0x323   : > { %v2340_v44 = vpop.f32.mrf.mxu2  ;;  %v2940_v60 = vand.u32 2147483647, %v2936_v48  ;;  %v2498_v34 = vadd.f32 %v2497_v38, %v6596_v1  ;;  %v6906_v1 = vadd.f32 %v8413_v30, %v6447_v33 }
 0x324   : > { %v2438_v2 = vmul.f32 %v2340_v44, %v6295_v43  ;;  %v8409_v43 = vld [vmem:[#allocation29_spill] sm:$0xff]  ;;  %v2494_v44 = vrot.slane %v2493_v7, 1 }
 0x325   : > { %v2405_v5 = vpop.f32.mrf.mxu3  ;;  %v1391_v4 = vmul.f32 %v8409_v43, %v6486_v6  ;;  %v2596_v43 = vsub.f32 1.0, %v2592_v13 }
 0x326   : > { %v6865_v16 = vadd.f32 %v2438_v2, %v2436_v25  ;;  %v2439_v61 = vmul.f32 %v2405_v5, %v6304_v29  ;;  %v2937_v25 = vsub.f32 %v5216_v37, %v2931_v35  ;;  %v2504_v2 = vrot.slane %v6613_v9, 4  ;;  %v6880_v10 = vpop.f32.mrf.mxu0 }
 0x327   : > { %8411 = vst [vmem:[#allocation29_spill] sm:$0xff] %v6880_v10  ;;  %v6884_v29 = vsel %vm3975_vm3, %v4164_v47, %v6782_v42  ;;  %v1467_v5 = vadd.f32 %v1466_v45, %v1465_v22  ;;  %v6890_v3 = vpop.f32.mrf.mxu1  ;;  %v2938_v35 = vand.u32 2147483647, %v2934_v36  ;;  %v1461_v42 = vrot.slane %v1460_v28, 1 }
 0x328   : > { %8408 = vst [vmem:[#allocation26_spill] sm:$0xff] %v6865_v16  ;;  %4878 = vmatmul.msk.f32.vlgmr.msra.gmra.mxu2 %vm468_vm7, %v4993_v26  ;;  %v6878_v32 = vadd.f32 %v2439_v61, %v2437_v62  ;;  %v1471_v16 = vrot.slane %v1470_v57, 4  ;;  %v1477_v62 = vadd.f32 %v1391_v4, %v1389_v19  ;;  %v2597_v61 = vsub.f32 1.0, %v2593_v21 }
 0x329   : > { %8412 = vst [vmem:[#allocation96_spill] sm:$0xff] %v6890_v3  ;;  %v6893_v47 = vmax.f32 %v2595_v63, 0.0  ;;  %4854 = vmatmul.msk.f32.gmra.mxu0 %vm468_vm7, %v6897_v54  ;;  %v2488_v22 = vadd.f32 %v2487_v50, %v2486_v23  ;;  %v2495_v13 = vadd.f32 %v2494_v44, %v2493_v7  ;;  %v2505_v19 = vadd.f32 %v2504_v2, %v6613_v9 }
 0x32a   : > { %8410 = vst [vmem:[#allocation27_spill] sm:$0xff] %v6878_v32  ;;  %4894 = vmatmul.msk.f32.vlgmr.msra.gmra.mxu3 %vm468_vm7, %v4993_v26  ;;  %v2939_v32 = vand.u32 2147483647, %v2935_v0  ;;  %4870 = vmatmul.msk.f32.gmra.mxu1 %vm468_vm7, %v6897_v54  ;;  %v2941_v21 = vand.u32 2147483647, %v2937_v25  ;;  %v1468_v26 = vrot.slane %v1467_v5, 1  ;;  %v1472_v48 = vadd.f32 %v1471_v16, %v1470_v57 }
 0x32b   : > { %v2988_v10 = vpop.f32.mrf.mxu2  ;;  %v2942_v45 = vsub.f32 1.0, %v2938_v35  ;;  %v2944_v36 = vsub.f32 1.0, %v2940_v60  ;;  %v1478_v4 = vrot.slane %v1477_v62, 4  ;;  %v6908_v0 = vmax.f32 %v2596_v43, 0.0 }
 0x32c   : > { %v2943_v23 = vsub.f32 1.0, %v2939_v32  ;;  %v1462_v7 = vadd.f32 %v1461_v42, %v1460_v28  ;;  %v6910_v50 = vmax.f32 %v2597_v61, 0.0  ;;  %v6912_v9 = vmax.f32 %v2598_v59, 0.0 }
 0x32d   : > { %v3053_v63 = vpop.f32.mrf.mxu3  ;;  %v2499_v44 = vrot.slane %v2498_v34, 2  ;;  %v2560_v60 = vmul.f32 %v6667_v39, %v2488_v22  ;;  %v2561_v38 = vmul.f32 %v6672_v58, %v2495_v13  ;;  %v2506_v33 = vrot.slane %v2505_v19, 2 }
 0x32e   : > { %v6918_v25 = vpop.f32.mrf.mxu0  ;;  %v2945_v16 = vsub.f32 1.0, %v2941_v21  ;;  %v1469_v57 = vadd.f32 %v1468_v26, %v1467_v5  ;;  %v6920_v2 = vmax.f32 %v2942_v45, 0.0  ;;  %v6924_v59 = vmax.f32 %v2944_v36, 0.0  ;;  %v8415_v5 = vld [vmem:[#allocation32_spill] sm:$0xff]  ;;  %v6936_v45 = vld [vmem:[%s5231_s22 + $0x48] sm:$0xff] }
 0x32f   : > { %v6922_v28 = vpop.f32.mrf.mxu1  ;;  %v3276_v32 = vperm.slane %v6906_v1, 0  ;;  %v1473_v43 = vrot.slane %v1472_v48, 2  ;;  %v1479_v35 = vadd.f32 %v1478_v4, %v1477_v62  ;;  %v6927_v61 = vmax.f32 %v2943_v23, 0.0  ;;  %8416 = vst [vmem:[#allocation32_spill] sm:$0xff] %v6936_v45 }
 0x330   : > { %4879 = vmatmul.msk.f32.gmra.mxu2 %vm468_vm7, %v6585_v14  ;;  %8414 = vst [vmem:[#allocation8_spill] sm:$0xff] %v6922_v28  ;;  %v3277_v22 = vperm.slane %v6906_v1, 1  ;;  %v1394_v13 = vmul.f32 %v8415_v5, %v6484_v11  ;;  %v2500_v21 = vadd.f32 %v2499_v44, %v2498_v34  ;;  %v3101_v26 = vmul.f32 %v2988_v10, %v6920_v2  ;;  %v8417_v1 = vld [vmem:[#allocation30_spill] sm:$0xff]  ;;  %v8418_v10 = vld [vmem:[#allocation33_spill] sm:$0xff] }
 0x331   : > { %4855 = vmatmul.msk.f32.gmra.mxu0 %vm468_vm7, %v6936_v45  ;;  %v4166_v36 = vrot.slane %v2560_v60, 5  ;;  %v4180_v30 = vrot.slane %v2561_v38, 5  ;;  %v2507_v4 = vadd.f32 %v2506_v33, %v2505_v19  ;;  %v1392_v34 = vmul.f32 %v8417_v1, %v6474_v17 }
 0x332   : > { %4895 = vmatmul.msk.f32.gmra.mxu3 %vm468_vm7, %v6585_v14  ;;  %4871 = vmatmul.msk.f32.gmra.mxu1 %vm468_vm7, %v6936_v45  ;;  %v6943_v14 = vmax.f32 %v2945_v16, 0.0  ;;  %v1395_v23 = vmul.f32 %v8418_v10, %v6486_v6  ;;  %v3280_v3 = vsub.f32 %v5218_v40, %v3276_v32  ;;  %v3102_v60 = vmul.f32 %v3053_v63, %v6927_v61  ;;  %v8421_v16 = vld [vmem:[#allocation31_spill] sm:$0xff] }
 0x333   : > { %v2991_v42 = vpop.f32.mrf.mxu2  ;;  %v3281_v38 = vsub.f32 %v5218_v40, %v3277_v22  ;;  %v6956_v33 = vmul.f32 %v6626_v56, %v1462_v7  ;;  %v1393_v1 = vmul.f32 %v8421_v16, %v6476_v52  ;;  %v1484_v45 = vadd.f32 %v1394_v13, %v1392_v34  ;;  %v8424_v34 = vld [vmem:[#allocation36_spill] sm:$0xff] }
 0x334   : > { %v3103_v62 = vmul.f32 %v2991_v42, %v6924_v59  ;;  %v1474_v42 = vadd.f32 %v1473_v43, %v1472_v48  ;;  %v2501_v10 = vrot.slane %v2500_v21, 1  ;;  %v6966_v63 = vsel %vm3978_vm4, %v4166_v36, %v6884_v29 }
 0x335   : > { %v3056_v5 = vpop.f32.mrf.mxu3  ;;  %8420 = vst [vmem:[#allocation33_spill] sm:$0xff] %v6956_v33  ;;  %v6970_v40 = vsel %vm3978_vm4, %v4180_v30, %v6888_v12  ;;  %v6973_v7 = vmul.f32 %v6650_v53, %v1469_v57  ;;  %v1480_v43 = vrot.slane %v1479_v35, 2  ;;  %v1491_v13 = vadd.f32 %v1395_v23, %v1393_v1  ;;  %v8425_v57 = vld [vmem:[#allocation34_spill] sm:$0xff]  ;;  %v6986_v1 = vld [vmem:[%s5231_s22 + $0x50] sm:$0xff] }
 0x336   : > { %v6949_v44 = vadd.f32 %v3103_v62, %v3101_v26  ;;  %v3104_v19 = vmul.f32 %v3056_v5, %v6943_v14  ;;  %v2508_v26 = vrot.slane %v2507_v4, 1  ;;  %v2671_v48 = vpop.f32.mrf.mxu0  ;;  %v1398_v5 = vmul.f32 %v8424_v34, %v6484_v11  ;;  %8426 = vst [vmem:[#allocation36_spill] sm:$0xff] %v6986_v1 }
 0x337   : > { %8423 = vst [vmem:[#allocation97_spill] sm:$0xff] %v6973_v7  ;;  %v3284_v36 = vand.u32 2147483647, %v3280_v3  ;;  %v3285_v16 = vand.u32 2147483647, %v3281_v38  ;;  %v6980_v56 = vsub.f32 %v5216_v37, %v3276_v32  ;;  %v1485_v12 = vrot.slane %v1484_v45, 4 }
 0x338   : > { %8419 = vst [vmem:[#allocation30_spill] sm:$0xff] %v6949_v44  ;;  %4880 = vmatmul.msk.f32.gmra.mxu2 %vm468_vm7, %v6637_v15  ;;  %v6962_v62 = vadd.f32 %v3104_v19, %v3102_v60  ;;  %v2736_v60 = vpop.f32.mrf.mxu1  ;;  %v1475_v19 = vrot.slane %v1474_v42, 1  ;;  %v1396_v30 = vmul.f32 %v8425_v57, %v6474_v17  ;;  %v2511_v23 = vrot.slane %v6689_v31, 4  ;;  %v8427_v32 = vld [vmem:[#allocation85_spill] sm:$0xff] }
 0x339   : > { %4856 = vmatmul.msk.f32.gmra.mxu0 %vm468_vm7, %v6986_v1  ;;  %v6991_v11 = vsub.f32 %v5216_v37, %v3277_v22  ;;  %v2502_v3 = vadd.f32 %v2501_v10, %v2500_v21  ;;  %v2509_v38 = vadd.f32 %v2508_v26, %v2507_v4  ;;  %v2518_v34 = vrot.slane %v8427_v32, 4  ;;  %v8429_v37 = vld [vmem:[#allocation37_spill] sm:$0xff]  ;;  %v8430_v26 = vld [vmem:[#allocation19_spill] sm:$0xff] }
 0x33a   : > { %8422 = vst [vmem:[#allocation31_spill] sm:$0xff] %v6962_v62  ;;  %4896 = vmatmul.msk.f32.gmra.mxu3 %vm468_vm7, %v6637_v15  ;;  %4872 = vmatmul.msk.f32.gmra.mxu1 %vm468_vm7, %v6986_v1  ;;  %v6998_v57 = vadd.f32 %v1480_v43, %v1479_v35  ;;  %v1492_v53 = vrot.slane %v1491_v13, 4  ;;  %v1498_v62 = vadd.f32 %v1398_v5, %v1396_v30  ;;  %v3288_v15 = vsub.f32 1.0, %v3284_v36  ;;  %v8431_v5 = vld [vmem:[#allocation35_spill] sm:$0xff] }
 0x33b   : > { %v2994_v29 = vpop.f32.mrf.mxu2  ;;  %v7000_v28 = vadd.f32 %v1475_v19, %v1474_v42  ;;  %v1399_v22 = vmul.f32 %v8429_v37, %v6486_v6  ;;  %v7004_v21 = vsub.f32 1.0, %v3285_v16  ;;  %v1486_v4 = vadd.f32 %v1485_v12, %v1484_v45  ;;  %v8433_v37 = vld [vmem:[#allocation40_spill] sm:$0xff] }
 0x33c   : > { %v2512_v10 = vadd.f32 %v2511_v23, %v6689_v31  ;;  %v3286_v35 = vand.u32 2147483647, %v6980_v56  ;;  %v3287_v43 = vand.u32 2147483647, %v6991_v11  ;;  %v1397_v42 = vmul.f32 %v8431_v5, %v6476_v52  ;;  %v8432_v11 = vld [vmem:[#allocation16_spill] sm:$0xff] }
 0x33d   : > { %v3059_v44 = vpop.f32.mrf.mxu3  ;;  %8428 = vst [vmem:[#allocation34_spill] sm:$0xff] %v7000_v28  ;;  %v2562_v19 = vmul.f32 %v6667_v39, %v2502_v3  ;;  %v2563_v6 = vmul.f32 %v6672_v58, %v2509_v38  ;;  %v2519_v36 = vadd.f32 %v2518_v34, %v8427_v32  ;;  %v1493_v16 = vadd.f32 %v1492_v53, %v1491_v13  ;;  %v8441_v28 = vld [vmem:[#allocation41_spill] sm:$0xff] }
 0x33e   : > { %v2674_v45 = vpop.f32.mrf.mxu0  ;;  %v1499_v31 = vrot.slane %v1498_v62, 4  ;;  %v2774_v12 = vmul.f32 %v2671_v48, %v6893_v47  ;;  %v1505_v23 = vadd.f32 %v1399_v22, %v1397_v42  ;;  %v2064_v17 = vmul.f32 %v8433_v37, %v8432_v11  ;;  %v7028_v48 = vld [vmem:[%s5231_s22 + $0x58] sm:$0xff] }
 0x33f   : > { %v2776_v30 = vmul.f32 %v2674_v45, %v6910_v50  ;;  %v2775_v52 = vmul.f32 %v2736_v60, %v6908_v0  ;;  %v2513_v32 = vrot.slane %v2512_v10, 2  ;;  %v3105_v53 = vmul.f32 %v2994_v29, %v6920_v2  ;;  %8435 = vst [vmem:[#allocation37_spill] sm:$0xff] %v7028_v48  ;;  %v8437_v29 = vld [vmem:[#allocation15_spill] sm:$0xff] }
 0x340   : > { %4881 = vmatmul.msk.f32.gmra.mxu2 %vm468_vm7, %v8430_v26  ;;  %v2739_v56 = vpop.f32.mrf.mxu1  ;;  %v4168_v22 = vrot.slane %v2562_v19, 4  ;;  %v4182_v60 = vrot.slane %v2563_v6, 4  ;;  %v2520_v5 = vrot.slane %v2519_v36, 2  ;;  %v1494_v45 = vrot.slane %v1493_v16, 2 }
 0x341   : > { %v2777_v3 = vmul.f32 %v2739_v56, %v6912_v9  ;;  %v7025_v13 = vadd.f32 %v2776_v30, %v2774_v12  ;;  %4857 = vmatmul.msk.f32.gmra.mxu0 %vm468_vm7, %v7028_v48  ;;  %v8438_v12 = vld [vmem:[#allocation38_spill] sm:$0xff]  ;;  %v1500_v7 = vadd.f32 %v1499_v31, %v1498_v62  ;;  %v1506_v33 = vrot.slane %v1505_v23, 4  ;;  %v8443_v31 = vld [vmem:[#allocation13_spill] sm:$0xff] }
 0x342   : > { %4897 = vmatmul.msk.f32.gmra.mxu3 %vm468_vm7, %v8430_v26  ;;  %4873 = vmatmul.msk.f32.gmra.mxu1 %vm468_vm7, %v7028_v48  ;;  %v1487_v26 = vrot.slane %v1486_v4, 2  ;;  %v2062_v30 = vmul.f32 %v8438_v12, %v8437_v29  ;;  %v1482_v6 = vrot.slane %v6998_v57, 1  ;;  %v2514_v48 = vadd.f32 %v2513_v32, %v2512_v10 }
 0x343   : > { %v2997_v38 = vpop.f32.mrf.mxu2  ;;  %8434 = vst [vmem:[#allocation85_spill] sm:$0xff] %v7025_v13  ;;  %v7033_v42 = vadd.f32 %v2777_v3, %v2775_v52  ;;  %v8440_v3 = vld [vmem:[#allocation77_spill] sm:$0xff]  ;;  %v2521_v12 = vadd.f32 %v2520_v5, %v2519_v36  ;;  %v7052_v62 = vsel %vm3981_vm5, %v4168_v22, %v6966_v63  ;;  %v7062_v36 = vadd.f32 %v1494_v45, %v1493_v16 }
 0x344   : > { %v3107_v34 = vmul.f32 %v2997_v38, %v6924_v59  ;;  %v3106_v38 = vmul.f32 %v3059_v44, %v6927_v61  ;;  %v2094_v52 = vadd.f32 %v2064_v17, %v2062_v30  ;;  %v7056_v44 = vsel %vm3981_vm5, %v4182_v60, %v6970_v40 }
 0x345   : > { %8436 = vst [vmem:[#allocation19_spill] sm:$0xff] %v7033_v42  ;;  %v3062_v37 = vpop.f32.mrf.mxu3  ;;  %v2065_v42 = vmul.f32 %v8441_v28, %v8440_v3  ;;  %v7058_v17 = vadd.f32 %v1487_v26, %v1486_v4  ;;  %v8444_v28 = vld [vmem:[#allocation39_spill] sm:$0xff]  ;;  %v3290_v30 = vsub.f32 1.0, %v3286_v35  ;;  %v1501_v5 = vrot.slane %v1500_v7, 2 }
 0x346   : > { %v7039_v56 = vadd.f32 %v3107_v34, %v3105_v53  ;;  %v3108_v19 = vmul.f32 %v3062_v37, %v6943_v14  ;;  %v2677_v34 = vpop.f32.mrf.mxu0  ;;  %v2063_v10 = vmul.f32 %v8444_v28, %v8443_v31  ;;  %v3291_v37 = vsub.f32 1.0, %v3287_v43 }
 0x347   : > { %v7068_v22 = vmax.f32 %v3288_v15, 0.0  ;;  %v2095_v40 = vrot.slane %v2094_v52, 4  ;;  %v2525_v60 = vrot.slane %v6764_v46, 4  ;;  %v7076_v35 = vmax.f32 %v7004_v21, 0.0 }
 0x348   : > { %8439 = vst [vmem:[#allocation35_spill] sm:$0xff] %v7039_v56  ;;  %4882 = vmatmul.msk.f32.gmra.mxu2 %vm468_vm7, %v6712_v41  ;;  %v7048_v53 = vadd.f32 %v3108_v19, %v3106_v38  ;;  %v2742_v32 = vpop.f32.mrf.mxu1  ;;  %v7064_v38 = vadd.f32 %v1506_v33, %v1505_v23  ;;  %v7070_v4 = vadd.f32 %v2065_v42, %v2063_v10  ;;  %v8446_v33 = vld [vmem:[#allocation12_spill] sm:$0xff]  ;;  %v2515_v16 = vrot.slane %v2514_v48, 1 }
 0x349   : > { %4858 = vmatmul.msk.f32.gmra.mxu0 %vm468_vm7, %v6694_v49  ;;  %8445 = vst [vmem:[#allocation38_spill] sm:$0xff] %v7076_v35  ;;  %v2756_v43 = vmul.f32 %v8446_v33, %v6910_v50  ;;  %v2522_v23 = vrot.slane %v2521_v12, 1  ;;  %v7084_v15 = vadd.f32 %v1482_v6, %v6998_v57  ;;  %v7087_v45 = vmax.f32 %v3290_v30, 0.0  ;;  %v8450_v33 = vld [vmem:[#allocation11_spill] sm:$0xff]  ;;  %v8451_v6 = vld [vmem:[#allocation78_spill] sm:$0xff] }
 0x34a   : > { %8442 = vst [vmem:[#allocation40_spill] sm:$0xff] %v7048_v53  ;;  %4898 = vmatmul.msk.f32.gmra.mxu3 %vm468_vm7, %v6712_v41  ;;  %v2532_v41 = vrot.slane %v6777_v55, 4  ;;  %4874 = vmatmul.msk.f32.gmra.mxu1 %vm468_vm7, %v6694_v49  ;;  %v7089_v21 = vmax.f32 %v3291_v37, 0.0  ;;  %v1496_v19 = vrot.slane %v7062_v36, 1  ;;  %v7092_v28 = vadd.f32 %v1501_v5, %v1500_v7 }
 0x34b   : > { %v3000_v63 = vpop.f32.mrf.mxu2  ;;  %8447 = vst [vmem:[#allocation41_spill] sm:$0xff] %v7084_v15  ;;  %v2754_v13 = vmul.f32 %v8450_v33, %v6893_v47  ;;  %v7097_v49 = vadd.f32 %v2095_v40, %v2094_v52  ;;  %v2102_v57 = vrot.slane %v7070_v4, 4  ;;  %v2757_v42 = vmul.f32 %v8451_v6, %v6912_v9  ;;  %v8452_v33 = vld [vmem:[#allocation59_spill] sm:$0xff]  ;;  %v8453_v40 = vld [vmem:[#allocation60_spill] sm:$0xff] }
 0x34c   : > { %8448 = vst [vmem:[#allocation39_spill] sm:$0xff] %v7089_v21  ;;  %v2526_v30 = vadd.f32 %v2525_v60, %v6764_v46  ;;  %v2516_v7 = vadd.f32 %v2515_v16, %v2514_v48  ;;  %v2523_v5 = vadd.f32 %v2522_v23, %v2521_v12  ;;  %v2533_v10 = vadd.f32 %v2532_v41, %v6777_v55  ;;  %v8454_v60 = vld [vmem:[#allocation17_spill] sm:$0xff] }
 0x34d   : > { %v3065_v26 = vpop.f32.mrf.mxu3  ;;  %8449 = vst [vmem:[#allocation12_spill] sm:$0xff] %v7092_v28  ;;  %v2786_v37 = vadd.f32 %v2756_v43, %v2754_v13  ;;  %v2760_v52 = vmul.f32 %v8452_v33, %v6910_v50  ;;  %v2761_v53 = vmul.f32 %v8453_v40, %v6912_v9  ;;  %v2778_v56 = vmul.f32 %v2677_v34, %v6893_v47  ;;  %v8455_v13 = vld [vmem:[#allocation20_spill] sm:$0xff]  ;;  %v8458_v40 = vld [vmem:[#allocation74_spill] sm:$0xff] }
 0x34e   : > { %v2680_v15 = vpop.f32.mrf.mxu0  ;;  %v2758_v1 = vmul.f32 %v8454_v60, %v6893_v47  ;;  %v2759_v48 = vmul.f32 %v8455_v13, %v6908_v0  ;;  %v2779_v55 = vmul.f32 %v2742_v32, %v6908_v0  ;;  %v2527_v16 = vrot.slane %v2526_v30, 2  ;;  %v8459_v13 = vld [vmem:[#allocation44_spill] sm:$0xff] }
 0x34f   : > { %v2780_v6 = vmul.f32 %v2680_v15, %v6910_v50  ;;  %v3109_v34 = vmul.f32 %v3000_v63, %v6920_v2  ;;  %v2534_v15 = vrot.slane %v2533_v10, 2  ;;  %v2564_v32 = vmul.f32 %v6667_v39, %v2516_v7  ;;  %v8460_v7 = vld [vmem:[#allocation42_spill] sm:$0xff] }
 0x350   : > { %4883 = vmatmul.msk.f32.gmra.mxu2 %vm468_vm7, %v6754_v18  ;;  %v2745_v46 = vpop.f32.mrf.mxu1  ;;  %v2755_v63 = vmul.f32 %v8458_v40, %v6908_v0 }
 0x351   : > { %v2781_v12 = vmul.f32 %v2745_v46, %v6912_v9  ;;  %v7121_v23 = vadd.f32 %v2780_v6, %v2778_v56  ;;  %4859 = vmatmul.msk.f32.gmra.mxu0 %vm468_vm7, %v6730_v24  ;;  %v2800_v56 = vadd.f32 %v2760_v52, %v2758_v1  ;;  %v2807_v6 = vadd.f32 %v2761_v53, %v2759_v48 }
 0x352   : > { %4899 = vmatmul.msk.f32.gmra.mxu3 %vm468_vm7, %v6754_v18  ;;  %4875 = vmatmul.msk.f32.gmra.mxu1 %vm468_vm7, %v6730_v24  ;;  %v2565_v18 = vmul.f32 %v6672_v58, %v2523_v5  ;;  %v4170_v24 = vrot.slane %v2564_v32, 3  ;;  %v2787_v5 = vrot.slane %v2786_v37, 4  ;;  %v2528_v53 = vadd.f32 %v2527_v16, %v2526_v30 }
 0x353   : > { %v3003_v43 = vpop.f32.mrf.mxu2  ;;  %8456 = vst [vmem:[#allocation11_spill] sm:$0xff] %v7121_v23  ;;  %v7126_v33 = vadd.f32 %v2781_v12, %v2779_v55  ;;  %v3110_v55 = vmul.f32 %v3065_v26, %v6927_v61  ;;  %v2793_v23 = vadd.f32 %v2757_v42, %v2755_v63  ;;  %v2535_v52 = vadd.f32 %v2534_v15, %v2533_v10 }
 0x354   : > { %v3111_v41 = vmul.f32 %v3003_v43, %v6924_v59  ;;  %v2068_v43 = vmul.f32 %v8459_v13, %v8432_v11  ;;  %v4184_v1 = vrot.slane %v2565_v18, 3  ;;  %v7148_v26 = vsel %vm3984_vm6, %v4170_v24, %v7052_v62 }
 0x355   : > { %8457 = vst [vmem:[#allocation78_spill] sm:$0xff] %v7126_v33  ;;  %v3068_v60 = vpop.f32.mrf.mxu3  ;;  %v2066_v33 = vmul.f32 %v8460_v7, %v8437_v29  ;;  %v2801_v32 = vrot.slane %v2800_v56, 4  ;;  %v2808_v40 = vrot.slane %v2807_v6, 4  ;;  %v8461_v10 = vrot.slane %v7058_v17, 1 }
 0x356   : > { %v7134_v46 = vadd.f32 %v3111_v41, %v3109_v34  ;;  %v3112_v12 = vmul.f32 %v3068_v60, %v6943_v14  ;;  %v2683_v34 = vpop.f32.mrf.mxu0  ;;  %v7151_v41 = vadd.f32 %v2102_v57, %v7070_v4  ;;  %v7155_v42 = vsel %vm3984_vm6, %v4184_v1, %v7056_v44 }
 0x357   : > { %v7160_v30 = vadd.f32 %v8461_v10, %v7058_v17  ;;  %v7163_v16 = vadd.f32 %v1496_v19, %v7062_v36  ;;  %v7165_v62 = vadd.f32 %v2068_v43, %v2066_v33  ;;  %v8464_v57 = vrot.slane %v6725_v27, 7  ;;  %v8465_v36 = vld [vmem:[#allocation90_spill] sm:$0xff]  ;;  %v8470_v43 = vld [vmem:[#allocation43_spill] sm:$0xff]  ;;  %v8472_v10 = vld [vmem:[#allocation24_spill] sm:$0xff] }
 0x358   : > { %4884 = vmatmul.msk.f32.gmra.mxu2 %vm468_vm7, %v6809_v8  ;;  %v7144_v48 = vadd.f32 %v3112_v12, %v3110_v55  ;;  %v2748_v60 = vpop.f32.mrf.mxu1  ;;  %v7174_v18 = vadd.f32 %v2787_v5, %v2786_v37  ;;  %v2794_v17 = vrot.slane %v2793_v23, 4  ;;  %v8466_v19 = vrot.slane %v8465_v36, 6 }
 0x359   : > { %8462 = vst [vmem:[#allocation59_spill] sm:$0xff] %v7160_v30  ;;  %v4025_v44 = vsel %vm3972_vm2, %v8464_v57, %v6721_v51  ;;  %4860 = vmatmul.msk.f32.gmra.mxu0 %vm468_vm7, %v6773_v20  ;;  %v2529_v27 = vrot.slane %v2528_v53, 1  ;;  %v2536_v13 = vrot.slane %v2535_v52, 1  ;;  %v2067_v55 = vmul.f32 %v8470_v43, %v8443_v31 }
 0x35a   : > { %8463 = vst [vmem:[#allocation60_spill] sm:$0xff] %v7163_v16  ;;  %4900 = vmatmul.msk.f32.gmra.mxu3 %vm468_vm7, %v6809_v8  ;;  %v7181_v33 = vsel %vm3975_vm3, %v8466_v19, %v4025_v44  ;;  %v8468_v8 = vrot.slane %v7064_v38, 2  ;;  %4876 = vmatmul.msk.f32.gmra.mxu1 %vm468_vm7, %v6773_v20  ;;  %v2802_v12 = vadd.f32 %v2801_v32, %v2800_v56  ;;  %v2109_v5 = vrot.slane %v7165_v62, 4  ;;  %v8473_v44 = vld [vmem:[#allocation22_spill] sm:$0xff]  ;;  %v8476_v32 = vld [vmem:[#allocation28_spill] sm:$0xff] }
 0x35b   : > { %v3006_v4 = vpop.f32.mrf.mxu2  ;;  %8467 = vst [vmem:[#allocation17_spill] sm:$0xff] %v7181_v33  ;;  %v2809_v24 = vadd.f32 %v2808_v40, %v2807_v6  ;;  %v2764_v57 = vmul.f32 %v8472_v10, %v6910_v50  ;;  %v2765_v36 = vmul.f32 %v8473_v44, %v6912_v9  ;;  %v2789_v20 = vrot.slane %v7174_v18, 2  ;;  %v8475_v56 = vld [vmem:[#allocation26_spill] sm:$0xff]  ;;  %v8477_v40 = vld [vmem:[#allocation87_spill] sm:$0xff] }
 0x35c   : > { %v7186_v63 = vadd.f32 %v8468_v8, %v7064_v38  ;;  %v8471_v38 = vld [vmem:[#allocation46_spill] sm:$0xff]  ;;  %v2795_v19 = vadd.f32 %v2794_v17, %v2793_v23  ;;  %v2539_v6 = vrot.slane %v8475_v56, 4  ;;  %v2530_v15 = vadd.f32 %v2529_v27, %v2528_v53  ;;  %v8478_v10 = vld [vmem:[#allocation27_spill] sm:$0xff] }
 0x35d   : > { %v3071_v7 = vpop.f32.mrf.mxu3  ;;  %v2069_v1 = vmul.f32 %v8471_v38, %v8440_v3  ;;  %v8474_v8 = vld [vmem:[#allocation86_spill] sm:$0xff]  ;;  %v2763_v38 = vmul.f32 %v8477_v40, %v6908_v0  ;;  %v2537_v37 = vadd.f32 %v2536_v13, %v2535_v52  ;;  %v2546_v51 = vrot.slane %v8478_v10, 4 }
 0x35e   : > { %8469 = vst [vmem:[#allocation20_spill] sm:$0xff] %v7186_v63  ;;  %v2762_v43 = vmul.f32 %v8474_v8, %v6893_v47  ;;  %v2686_v33 = vpop.f32.mrf.mxu0  ;;  %v2803_v44 = vrot.slane %v2802_v12, 2  ;;  %v2810_v16 = vrot.slane %v2809_v24, 2  ;;  %v2782_v23 = vmul.f32 %v2683_v34, %v6893_v47  ;;  %v8479_v34 = vld [vmem:[#allocation7_spill] sm:$0xff] }
 0x35f   : > { %v2784_v17 = vmul.f32 %v2686_v33, %v6910_v50  ;;  %v2821_v30 = vadd.f32 %v2765_v36, %v2763_v38  ;;  %v2783_v63 = vmul.f32 %v2748_v60, %v6908_v0  ;;  %v2540_v52 = vadd.f32 %v2539_v6, %v8475_v56  ;;  %v8480_v38 = vld [vmem:[#allocation94_spill] sm:$0xff] }
 0x360   : > { %4885 = vmatmul.msk.f32.gmra.mxu2 %vm468_vm7, %v8476_v32  ;;  %v2751_v8 = vpop.f32.mrf.mxu1  ;;  %v2814_v28 = vadd.f32 %v2764_v57, %v2762_v43  ;;  %v3113_v27 = vmul.f32 %v3006_v4, %v6920_v2  ;;  %v2547_v57 = vadd.f32 %v2546_v51, %v8478_v10  ;;  %v2566_v36 = vmul.f32 %v6667_v39, %v2530_v15 }
 0x361   : > { %v2785_v31 = vmul.f32 %v2751_v8, %v6912_v9  ;;  %v7218_v13 = vadd.f32 %v2784_v17, %v2782_v23  ;;  %4861 = vmatmul.msk.f32.gmra.mxu0 %vm468_vm7, %v8479_v34  ;;  %v2567_v43 = vmul.f32 %v6672_v58, %v2537_v37  ;;  %v2796_v56 = vrot.slane %v2795_v19, 2 }
 0x362   : > { %4901 = vmatmul.msk.f32.gmra.mxu3 %vm468_vm7, %v8476_v32  ;;  %4877 = vmatmul.msk.f32.gmra.mxu1 %vm468_vm7, %v8479_v34  ;;  %v2804_v4 = vadd.f32 %v2803_v44, %v2802_v12  ;;  %v2811_v6 = vadd.f32 %v2810_v16, %v2809_v24  ;;  %v2768_v23 = vmul.f32 %v8480_v38, %v6910_v50  ;;  %v2815_v10 = vrot.slane %v2814_v28, 4  ;;  %v8481_v16 = vld [vmem:[#allocation4_spill] sm:$0xff]  ;;  %v8484_v34 = vld [vmem:[#allocation95_spill] sm:$0xff] }
 0x363   : > { %v3009_v53 = vpop.f32.mrf.mxu2  ;;  %v7224_v60 = vadd.f32 %v2785_v31, %v2783_v63  ;;  %v3114_v51 = vmul.f32 %v3071_v7, %v6927_v61  ;;  %v4172_v63 = vrot.slane %v2566_v36, 2  ;;  %v2822_v17 = vrot.slane %v2821_v30, 4 }
 0x364   : > { %v3115_v33 = vmul.f32 %v3009_v53, %v6924_v59  ;;  %v2541_v8 = vrot.slane %v2540_v52, 2  ;;  %v4186_v15 = vrot.slane %v2567_v43, 2  ;;  %v2766_v37 = vmul.f32 %v8481_v16, %v6893_v47 }
 0x365   : > { %v3074_v40 = vpop.f32.mrf.mxu3  ;;  %v2548_v12 = vrot.slane %v2547_v57, 2  ;;  %v7244_v7 = vsel %vm3987_vm10, %v4172_v63, %v7148_v26  ;;  %v7247_v53 = vadd.f32 %v2109_v5, %v7165_v62  ;;  %v7263_v26 = vadd.f32 %v2789_v20, %v7174_v18 }
 0x366   : > { %v7230_v32 = vadd.f32 %v3115_v33, %v3113_v27  ;;  %v3116_v31 = vmul.f32 %v3074_v40, %v6943_v14  ;;  %v3334_v44 = vpop.f32.mrf.mxu0  ;;  %v7249_v27 = vadd.f32 %v2069_v1, %v2067_v55  ;;  %v2769_v33 = vmul.f32 %v8484_v34, %v6912_v9 }
 0x367   : > { %8482 = vst [vmem:[#allocation74_spill] sm:$0xff] %v7247_v53  ;;  %v7255_v43 = vsel %vm3987_vm10, %v4186_v15, %v7155_v42  ;;  %v8485_v40 = vrot.slane %v7097_v49, 2  ;;  %v7265_v62 = vadd.f32 %v2796_v56, %v2795_v19  ;;  %v2828_v55 = vadd.f32 %v2768_v23, %v2766_v37  ;;  %v8486_v42 = vld [vmem:[#allocation25_spill] sm:$0xff] }
 0x368   : > { %4886 = vmatmul.msk.f32.gmra.mxu2 %vm468_vm7, %v6897_v54  ;;  %v7240_v24 = vadd.f32 %v3116_v31, %v3114_v51  ;;  %8483 = vst [vmem:[#allocation44_spill] sm:$0xff] %v7249_v27  ;;  %v3399_v36 = vpop.f32.mrf.mxu1  ;;  %v2805_v1 = vrot.slane %v2804_v4, 1  ;;  %v2812_v51 = vrot.slane %v2811_v6, 1  ;;  %v2767_v31 = vmul.f32 %v8486_v42, %v6908_v0  ;;  %v8492_v42 = vld [vmem:[#allocation96_spill] sm:$0xff] }
 0x369   : > { %v7260_v38 = vadd.f32 %v8485_v40, %v7097_v49  ;;  %v2542_v63 = vadd.f32 %v2541_v8, %v2540_v52  ;;  %v8487_v49 = vrot.slane %v7151_v41, 2  ;;  %v2816_v18 = vadd.f32 %v2815_v10, %v2814_v28  ;;  %v8490_v10 = vld [vmem:[#allocation29_spill] sm:$0xff] }
 0x36a   : > { %4902 = vmatmul.msk.f32.gmra.mxu3 %vm468_vm7, %v6897_v54  ;;  %v2823_v20 = vadd.f32 %v2822_v17, %v2821_v30  ;;  %v2549_v19 = vadd.f32 %v2548_v12, %v2547_v57  ;;  %v2835_v54 = vadd.f32 %v2769_v33, %v2767_v31  ;;  %v2772_v16 = vmul.f32 %v6918_v25, %v6910_v50  ;;  %v8491_v12 = vld [vmem:[#allocation32_spill] sm:$0xff] }
 0x36b   : > { %v3012_v5 = vpop.f32.mrf.mxu2  ;;  %v7274_v15 = vadd.f32 %v8487_v49, %v7151_v41  ;;  %v2791_v34 = vrot.slane %v7263_v26, 1  ;;  %v2798_v52 = vrot.slane %v7265_v62, 1  ;;  %v2829_v8 = vrot.slane %v2828_v55, 4  ;;  %v8489_v41 = vld [vmem:[#allocation8_spill] sm:$0xff] }
 0x36c   : > { %v2773_v40 = vmul.f32 %v8489_v41, %v6912_v9  ;;  %v2806_v28 = vadd.f32 %v2805_v1, %v2804_v4  ;;  %v2813_v30 = vadd.f32 %v2812_v51, %v2811_v6  ;;  %v2543_v57 = vrot.slane %v2542_v63, 1 }
 0x36d   : > { %8488 = vst [vmem:[#allocation42_spill] sm:$0xff] %v7274_v15  ;;  %v3077_v37 = vpop.f32.mrf.mxu3  ;;  %v2770_v17 = vmul.f32 %v8490_v10, %v6893_v47  ;;  %v2817_v33 = vrot.slane %v2816_v18, 2  ;;  %v2824_v50 = vrot.slane %v2823_v20, 2  ;;  %v2550_v25 = vrot.slane %v2549_v19, 1 }
 0x36e   : > { %v2771_v31 = vmul.f32 %v8492_v42, %v6908_v0  ;;  %v3337_v49 = vpop.f32.mrf.mxu0  ;;  %v2836_v23 = vrot.slane %v2835_v54, 4  ;;  %v3447_v9 = vmul.f32 %v3334_v44, %v7068_v22  ;;  %v2830_v1 = vadd.f32 %v2829_v8, %v2828_v55 }
 0x36f   : > { %v2842_v56 = vadd.f32 %v2772_v16, %v2770_v17  ;;  %v3449_v4 = vmul.f32 %v3337_v49, %v7087_v45  ;;  %v3448_v47 = vmul.f32 %v3399_v36, %v7076_v35  ;;  %v3117_v0 = vmul.f32 %v3012_v5, %v6920_v2 }
 0x370   : > { %4887 = vmatmul.msk.f32.gmra.mxu2 %vm468_vm7, %v8491_v12  ;;  %v3402_v6 = vpop.f32.mrf.mxu1  ;;  %v2849_v51 = vadd.f32 %v2773_v40, %v2771_v31  ;;  %v2544_v44 = vadd.f32 %v2543_v57, %v2542_v63  ;;  %v2818_v17 = vadd.f32 %v2817_v33, %v2816_v18  ;;  %v2825_v49 = vadd.f32 %v2824_v50, %v2823_v20  ;;  %v8497_v57 = vld [vmem:[#allocation31_spill] sm:$0xff] }
 0x371   : > { %v3450_v41 = vmul.f32 %v3402_v6, %v7089_v21  ;;  %v7297_v42 = vadd.f32 %v3449_v4, %v3447_v9  ;;  %v2551_v55 = vadd.f32 %v2550_v25, %v2549_v19  ;;  %v2837_v8 = vadd.f32 %v2836_v23, %v2835_v54  ;;  %v8496_v6 = vld [vmem:[#allocation30_spill] sm:$0xff]  ;;  %v8498_v19 = vld [vmem:[#allocation36_spill] sm:$0xff]  ;;  %v8499_v54 = vld [vmem:[#allocation35_spill] sm:$0xff] }
 0x372   : > { %4903 = vmatmul.msk.f32.gmra.mxu3 %vm468_vm7, %v8491_v12  ;;  %v2843_v36 = vrot.slane %v2842_v56, 4  ;;  %v2568_v12 = vmul.f32 %v6667_v39, %v2544_v44  ;;  %v3134_v27 = vrot.slane %v8496_v6, 4  ;;  %v3118_v5 = vmul.f32 %v3077_v37, %v6927_v61  ;;  %v8500_v25 = vld [vmem:[#allocation40_spill] sm:$0xff]  ;;  %v8503_v44 = vld [vmem:[#allocation45_spill] sm:$0xff] }
 0x373   : > { %v3015_v10 = vpop.f32.mrf.mxu2  ;;  %8493 = vst [vmem:[#allocation90_spill] sm:$0xff] %v7297_v42  ;;  %v7300_v3 = vadd.f32 %v3450_v41, %v3448_v47  ;;  %v2569_v63 = vmul.f32 %v6672_v58, %v2551_v55  ;;  %v2831_v18 = vrot.slane %v2830_v1, 2  ;;  %v2850_v20 = vrot.slane %v2849_v51, 4 }
 0x374   : > { %v3119_v16 = vmul.f32 %v3015_v10, %v6924_v59  ;;  %v3141_v33 = vrot.slane %v8497_v57, 4  ;;  %v4174_v23 = vrot.slane %v2568_v12, 1  ;;  %v3148_v50 = vrot.slane %v8499_v54, 4 }
 0x375   : > { %8494 = vst [vmem:[#allocation43_spill] sm:$0xff] %v7300_v3  ;;  %v3080_v31 = vpop.f32.mrf.mxu3  ;;  %v3155_v39 = vrot.slane %v8500_v25, 4  ;;  %v4188_v37 = vrot.slane %v2569_v63, 1  ;;  %v2792_v41 = vadd.f32 %v2791_v34, %v7263_v26  ;;  %v2799_v58 = vadd.f32 %v2798_v52, %v7265_v62 }
 0x376   : > { %v7302_v40 = vadd.f32 %v3119_v16, %v3117_v0  ;;  %v3120_v9 = vmul.f32 %v3080_v31, %v6943_v14  ;;  %v3340_v47 = vpop.f32.mrf.mxu0  ;;  %v2844_v10 = vadd.f32 %v2843_v36, %v2842_v56  ;;  %v7320_v16 = vsel %vm3990_vm11, %v4174_v23, %v7244_v7  ;;  %v8504_v31 = vld [vmem:[#allocation88_spill] sm:$0xff] }
 0x377   : > { %8502 = vst [vmem:[#allocation22_spill] sm:$0xff] %v7320_v16  ;;  %v7323_v55 = vmul.f32 %v8503_v44, %v2806_v28  ;;  %v7326_v12 = vmul.f32 %v8504_v31, %v2813_v30  ;;  %v7333_v62 = vsel %vm3990_vm11, %v4188_v37, %v7255_v43  ;;  %v2819_v56 = vrot.slane %v2818_v17, 1 }
 0x378   : > { %8495 = vst [vmem:[#allocation46_spill] sm:$0xff] %v7302_v40  ;;  %4888 = vmatmul.msk.f32.gmra.mxu2 %vm468_vm7, %v8498_v19  ;;  %v7314_v4 = vadd.f32 %v3120_v9, %v3118_v5  ;;  %v3405_v0 = vpop.f32.mrf.mxu1  ;;  %v3135_v5 = vadd.f32 %v3134_v27, %v8496_v6  ;;  %v2826_v34 = vrot.slane %v2825_v49, 1  ;;  %v2838_v7 = vrot.slane %v2837_v8, 2  ;;  %v8506_v6 = vld [vmem:[#allocation51_spill] sm:$0xff] }
 0x379   : > { %8505 = vst [vmem:[#allocation86_spill] sm:$0xff] %v7333_v62  ;;  %v3142_v52 = vadd.f32 %v3141_v33, %v8497_v57  ;;  %v7336_v28 = vadd.f32 %v2831_v18, %v2830_v1  ;;  %v2851_v36 = vadd.f32 %v2850_v20, %v2849_v51  ;;  %v3149_v30 = vadd.f32 %v3148_v50, %v8499_v54  ;;  %v8508_v20 = vld [vmem:[#allocation85_spill] sm:$0xff]  ;;  %v8510_v1 = vld [vmem:[#allocation19_spill] sm:$0xff] }
 0x37a   : > { %8501 = vst [vmem:[#allocation24_spill] sm:$0xff] %v7314_v4  ;;  %4904 = vmatmul.msk.f32.gmra.mxu3 %vm468_vm7, %v8498_v19  ;;  %v3156_v27 = vadd.f32 %v3155_v39, %v8500_v25  ;;  %v7342_v9 = vmul.f32 %v8506_v6, %v8432_v11  ;;  %v7345_v63 = vmul.f32 %v8503_v44, %v2792_v41  ;;  %v2845_v19 = vrot.slane %v2844_v10, 2  ;;  %v8509_v39 = vld [vmem:[#allocation37_spill] sm:$0xff] }
 0x37b   : > { %v3018_v26 = vpop.f32.mrf.mxu2  ;;  %v7348_v43 = vmul.f32 %v8504_v31, %v2799_v58  ;;  %v3136_v18 = vrot.slane %v3135_v5, 2  ;;  %v2857_v57 = vrot.slane %v8508_v20, 4  ;;  %v2820_v33 = vadd.f32 %v2819_v56, %v2818_v17 }
 0x37c   : > { %8507 = vst [vmem:[#allocation26_spill] sm:$0xff] %v7342_v9  ;;  %v2827_v54 = vadd.f32 %v2826_v34, %v2825_v49  ;;  %v2839_v50 = vadd.f32 %v2838_v7, %v2837_v8  ;;  %v3143_v25 = vrot.slane %v3142_v52, 2  ;;  %v2833_v37 = vrot.slane %v7336_v28, 1 }
 0x37d   : > { %v3083_v23 = vpop.f32.mrf.mxu3  ;;  %v2852_v41 = vrot.slane %v2851_v36, 2  ;;  %v3150_v58 = vrot.slane %v3149_v30, 2  ;;  %v3157_v6 = vrot.slane %v3156_v27, 2  ;;  %v2846_v16 = vadd.f32 %v2845_v19, %v2844_v10 }
 0x37e   : > { %v3343_v62 = vpop.f32.mrf.mxu0  ;;  %v2864_v11 = vrot.slane %v8510_v1, 4  ;;  %v3451_v51 = vmul.f32 %v3340_v47, %v7068_v22  ;;  %v3137_v49 = vadd.f32 %v3136_v18, %v3135_v5  ;;  %v2858_v8 = vadd.f32 %v2857_v57, %v8508_v20  ;;  %v8513_v57 = vld [vmem:[#allocation11_spill] sm:$0xff] }
 0x37f   : > { %v3453_v3 = vmul.f32 %v3343_v62, %v7087_v45  ;;  %v3452_v56 = vmul.f32 %v3405_v0, %v7076_v35  ;;  %v3144_v42 = vadd.f32 %v3143_v25, %v3142_v52  ;;  %v3121_v10 = vmul.f32 %v3018_v26, %v6920_v2  ;;  %v8515_v26 = vld [vmem:[#allocation78_spill] sm:$0xff] }
 0x380   : > { %4889 = vmatmul.msk.f32.gmra.mxu2 %vm468_vm7, %v8509_v39  ;;  %v3408_v17 = vpop.f32.mrf.mxu1  ;;  %v2840_v62 = vrot.slane %v2839_v50, 1  ;;  %v3151_v4 = vadd.f32 %v3150_v58, %v3149_v30  ;;  %v3158_v5 = vadd.f32 %v3157_v6, %v3156_v27  ;;  %v2853_v0 = vadd.f32 %v2852_v41, %v2851_v36  ;;  %v4998_v36 = vld [vmem:[%s5231_s22 + $0x60] sm:$0xff] }
 0x381   : > { %v3454_v34 = vmul.f32 %v3408_v17, %v7089_v21  ;;  %v7365_v19 = vadd.f32 %v3453_v3, %v3451_v51  ;;  %v2865_v20 = vadd.f32 %v2864_v11, %v8510_v1  ;;  %v2871_v17 = vrot.slane %v8513_v57, 4 }
 0x382   : > { %4905 = vmatmul.msk.f32.gmra.mxu3 %vm468_vm7, %v8509_v39  ;;  %v2859_v25 = vrot.slane %v2858_v8, 2  ;;  %v2878_v3 = vrot.slane %v8515_v26, 4  ;;  %v3122_v51 = vmul.f32 %v3083_v23, %v6927_v61  ;;  %v2847_v30 = vrot.slane %v2846_v16, 1 }
 0x383   : > { %v3021_v7 = vpop.f32.mrf.mxu2  ;;  %8511 = vst [vmem:[#allocation28_spill] sm:$0xff] %v7365_v19  ;;  %v7368_v18 = vadd.f32 %v3454_v34, %v3452_v56  ;;  %v3138_v58 = vrot.slane %v3137_v49, 1  ;;  %v3145_v27 = vrot.slane %v3144_v42, 1  ;;  %v3162_v6 = vrot.slane %v7134_v46, 4 }
 0x384   : > { %v3123_v47 = vmul.f32 %v3021_v7, %v6924_v59  ;;  %v3152_v11 = vrot.slane %v3151_v4, 1  ;;  %v3159_v1 = vrot.slane %v3158_v5, 1  ;;  %v3169_v41 = vrot.slane %v7144_v48, 4 }
 0x385   : > { %8512 = vst [vmem:[#allocation87_spill] sm:$0xff] %v7368_v18  ;;  %v3086_v52 = vpop.f32.mrf.mxu3  ;;  %v7387_v23 = vmul.f32 %v8504_v31, %v2827_v54  ;;  %v2834_v18 = vadd.f32 %v2833_v37, %v7336_v28  ;;  %v2841_v19 = vadd.f32 %v2840_v62, %v2839_v50  ;;  %v2860_v40 = vadd.f32 %v2859_v25, %v2858_v8 }
 0x386   : > { %v7372_v39 = vadd.f32 %v3123_v47, %v3121_v10  ;;  %v3124_v7 = vmul.f32 %v3086_v52, %v6943_v14  ;;  %v3346_v34 = vpop.f32.mrf.mxu0  ;;  %v7384_v10 = vmul.f32 %v8503_v44, %v2820_v33  ;;  %v2866_v47 = vrot.slane %v2865_v20, 2 }
 0x387   : > { %v2872_v52 = vadd.f32 %v2871_v17, %v8513_v57  ;;  %v2879_v9 = vadd.f32 %v2878_v3, %v8515_v26  ;;  %v3139_v33 = vadd.f32 %v3138_v58, %v3137_v49  ;;  %v3163_v53 = vadd.f32 %v3162_v6, %v7134_v46  ;;  %v4999_v26 = vld [vmem:[%s5231_s22 + $0x68] sm:$0xff] }
 0x388   : > { %8514 = vst [vmem:[#allocation27_spill] sm:$0xff] %v7372_v39  ;;  %4890 = vmatmul.msk.f32.gmra.mxu2 %vm468_vm7, %v4998_v36  ;;  %v7381_v56 = vadd.f32 %v3124_v7, %v3122_v51  ;;  %v3411_v39 = vpop.f32.mrf.mxu1  ;;  %v2848_v7 = vadd.f32 %v2847_v30, %v2846_v16  ;;  %v3146_v54 = vadd.f32 %v3145_v27, %v3144_v42  ;;  %v4210_v28 = vrot.slane %v7384_v10, 6 }
 0x389   : > { %v3153_v15 = vadd.f32 %v3152_v11, %v3151_v4  ;;  %v3160_v29 = vadd.f32 %v3159_v1, %v3158_v5  ;;  %v3170_v57 = vadd.f32 %v3169_v41, %v7144_v48  ;;  %v4224_v50 = vrot.slane %v7387_v23, 6  ;;  %v8517_v48 = vld [vmem:[#allocation71_spill] sm:$0xff] }
 0x38a   : > { %8516 = vst [vmem:[#allocation7_spill] sm:$0xff] %v7381_v56  ;;  %4906 = vmatmul.msk.f32.gmra.mxu3 %vm468_vm7, %v4998_v36  ;;  %v2854_v56 = vrot.slane %v2853_v0, 1  ;;  %v2867_v37 = vadd.f32 %v2866_v47, %v2865_v20  ;;  %v2873_v8 = vrot.slane %v2872_v52, 2  ;;  %v7398_v17 = vmul.f32 %v8503_v44, %v2834_v18  ;;  %v8518_v20 = vld [vmem:[#allocation9_spill] sm:$0xff] }
 0x38b   : > { %v3024_v51 = vpop.f32.mrf.mxu2  ;;  %v7401_v16 = vmul.f32 %v8504_v31, %v2841_v19  ;;  %v2861_v46 = vrot.slane %v2860_v40, 1  ;;  %v2880_v42 = vrot.slane %v2879_v9, 2  ;;  %v7404_v4 = vmul.f32 %v8503_v44, %v2848_v7 }
 0x38c   : > { %v2855_v49 = vadd.f32 %v2854_v56, %v2853_v0  ;;  %v3247_v5 = vmul.f32 %v8517_v48, %v3139_v33  ;;  %v3164_v25 = vrot.slane %v3163_v53, 2  ;;  %v3248_v3 = vmul.f32 %v8518_v20, %v3146_v54 }
 0x38d   : > { %v3089_v62 = vpop.f32.mrf.mxu3  ;;  %v3249_v18 = vmul.f32 %v8517_v48, %v3153_v15  ;;  %v3250_v30 = vmul.f32 %v8518_v20, %v3160_v29  ;;  %v3171_v19 = vrot.slane %v3170_v57, 2  ;;  %v2868_v27 = vrot.slane %v2867_v37, 1 }
 0x38e   : > { %v3349_v58 = vpop.f32.mrf.mxu0  ;;  %v2874_v6 = vadd.f32 %v2873_v8, %v2872_v52  ;;  %v3455_v36 = vmul.f32 %v3346_v34, %v7068_v22  ;;  %v2862_v1 = vadd.f32 %v2861_v46, %v2860_v40  ;;  %v2881_v41 = vadd.f32 %v2880_v42, %v2879_v9 }
 0x38f   : > { %v3457_v0 = vmul.f32 %v3349_v58, %v7087_v45  ;;  %v3456_v56 = vmul.f32 %v3411_v39, %v7076_v35  ;;  %v3165_v7 = vadd.f32 %v3164_v25, %v3163_v53  ;;  %v3125_v29 = vmul.f32 %v3024_v51, %v6920_v2  ;;  %v5000_v58 = vld [vmem:[%s5231_s22 + $0x70] sm:$0xff] }
 0x390   : > { %4891 = vmatmul.msk.f32.gmra.mxu2 %vm468_vm7, %v4999_v26  ;;  %v3414_v11 = vpop.f32.mrf.mxu1  ;;  %v4254_v34 = vrot.slane %v3249_v18, 7  ;;  %v4268_v54 = vrot.slane %v3250_v30, 7  ;;  %v3172_v8 = vadd.f32 %v3171_v19, %v3170_v57  ;;  %v2869_v9 = vadd.f32 %v2868_v27, %v2867_v37 }
 0x391   : > { %v3458_v47 = vmul.f32 %v3414_v11, %v7089_v21  ;;  %v7418_v33 = vadd.f32 %v3457_v0, %v3455_v36  ;;  %v2875_v39 = vrot.slane %v2874_v6, 1  ;;  %v2885_v46 = vrot.slane %v7218_v13, 4 }
 0x392   : > { %4907 = vmatmul.msk.f32.gmra.mxu3 %vm468_vm7, %v4999_v26  ;;  %v2892_v53 = vrot.slane %v7224_v60, 4  ;;  %v3176_v51 = vrot.slane %v7230_v32, 4  ;;  %v3126_v25 = vmul.f32 %v3089_v62, %v6927_v61  ;;  %v2909_v30 = vmul.f32 %v8504_v31, %v2855_v49 }
 0x393   : > { %v3027_v15 = vpop.f32.mrf.mxu2  ;;  %v7421_v40 = vadd.f32 %v3458_v47, %v3456_v56  ;;  %v2882_v57 = vrot.slane %v2881_v41, 1  ;;  %v3166_v19 = vrot.slane %v3165_v7, 1  ;;  %v3183_v37 = vrot.slane %v7240_v24, 4 }
 0x394   : > { %v3127_v52 = vmul.f32 %v3027_v15, %v6924_v59  ;;  %v3173_v27 = vrot.slane %v3172_v8, 1  ;;  %v7437_v0 = vsel %vm3972_vm2, %v4254_v34, %v3247_v5  ;;  %v7440_v11 = vsel %vm3972_vm2, %v4268_v54, %v3248_v3 }
 0x395   : > { %v3092_v26 = vpop.f32.mrf.mxu3  ;;  %v4212_v62 = vrot.slane %v7398_v17, 5  ;;  %v4226_v49 = vrot.slane %v7401_v16, 5  ;;  %v2910_v56 = vmul.f32 %v8503_v44, %v2862_v1  ;;  %v2886_v47 = vadd.f32 %v2885_v46, %v7218_v13 }
 0x396   : > { %v7424_v42 = vadd.f32 %v3127_v52, %v3125_v29  ;;  %v3128_v18 = vmul.f32 %v3092_v26, %v6943_v14  ;;  %v2911_v15 = vmul.f32 %v8504_v31, %v2869_v9  ;;  %v2876_v29 = vadd.f32 %v2875_v39, %v2874_v6 }
 0x397   : > { %v2893_v52 = vadd.f32 %v2892_v53, %v7224_v60  ;;  %v3177_v26 = vadd.f32 %v3176_v51, %v7230_v32  ;;  %v4214_v3 = vrot.slane %v7404_v4, 4  ;;  %v2883_v34 = vadd.f32 %v2882_v57, %v2881_v41 }
 0x398   : > { %4892 = vmatmul.msk.f32.gmra.mxu2 %vm468_vm7, %v5000_v58  ;;  %v7434_v36 = vadd.f32 %v3128_v18, %v3126_v25  ;;  %v3167_v17 = vadd.f32 %v3166_v19, %v3165_v7  ;;  %v3184_v16 = vadd.f32 %v3183_v37, %v7240_v24  ;;  %v4228_v1 = vrot.slane %v2909_v30, 4 }
 0x399   : > { %v3174_v54 = vadd.f32 %v3173_v27, %v3172_v8  ;;  %v8519_v13 = vrot.slane %v7323_v55, 7  ;;  %v8520_v60 = vrot.slane %v7326_v12, 7  ;;  %v2887_v9 = vrot.slane %v2886_v47, 2 }
 0x39a   : > { %4908 = vmatmul.msk.f32.gmra.mxu3 %vm468_vm7, %v5000_v58  ;;  %v4216_v24 = vrot.slane %v2910_v56, 3  ;;  %v2894_v7 = vrot.slane %v2893_v52, 2  ;;  %v3178_v55 = vrot.slane %v3177_v26, 2  ;;  %v4230_v8 = vrot.slane %v2911_v15, 3 }
 0x39b   : > { %v3030_v5 = vpop.f32.mrf.mxu2  ;;  %v4209_v6 = vsel %vm3972_vm2, %v8519_v13, %v7345_v63  ;;  %v4223_v32 = vsel %vm3972_vm2, %v8520_v60, %v7348_v43  ;;  %v2912_v63 = vmul.f32 %v8503_v44, %v2876_v29  ;;  %v3251_v12 = vmul.f32 %v8517_v48, %v3167_v17  ;;  %v5001_v43 = vld [vmem:[%s5231_s22 + $0x78] sm:$0xff]  ;;  %v8524_v13 = vld [vmem:[#allocation74_spill] sm:$0xff] }
 0x39c   : > { %v4211_v4 = vsel %vm3975_vm3, %v4210_v28, %v4209_v6  ;;  %v4225_v41 = vsel %vm3975_vm3, %v4224_v50, %v4223_v32  ;;  %v3185_v46 = vrot.slane %v3184_v16, 2  ;;  %v2913_v28 = vmul.f32 %v8504_v31, %v2883_v34  ;;  %v8526_v60 = vld [vmem:[#allocation44_spill] sm:$0xff] }
 0x39d   : > { %v3095_v39 = vpop.f32.mrf.mxu3  ;;  %v4213_v10 = vsel %vm3978_vm4, %v4212_v62, %v4211_v4  ;;  %v3252_v53 = vmul.f32 %v8518_v20, %v3174_v54  ;;  %v4218_v50 = vrot.slane %v2912_v63, 2  ;;  %v4227_v51 = vsel %vm3978_vm4, %v4226_v49, %v4225_v41 }
 0x39e   : > { %v4215_v23 = vsel %vm3981_vm5, %v4214_v3, %v4213_v10  ;;  %v2888_v25 = vadd.f32 %v2887_v9, %v2886_v47  ;;  %v4229_v30 = vsel %vm3981_vm5, %v4228_v1, %v4227_v51  ;;  %v4232_v57 = vrot.slane %v2913_v28, 2  ;;  %v8523_v1 = vld [vmem:[#allocation42_spill] sm:$0xff]  ;;  %v8532_v51 = vld [vmem:[#allocation52_spill] sm:$0xff] }
 0x39f   : > { %v4217_v18 = vsel %vm3984_vm6, %v4216_v24, %v4215_v23  ;;  %v2895_v19 = vadd.f32 %v2894_v7, %v2893_v52  ;;  %v3179_v37 = vadd.f32 %v3178_v55, %v3177_v26  ;;  %v4231_v62 = vsel %vm3984_vm6, %v4230_v8, %v4229_v30  ;;  %v8521_v52 = vld [vmem:[#allocation15_spill] sm:$0xff]  ;;  %v8522_v26 = vld [vmem:[#allocation49_spill] sm:$0xff]  ;;  %v8528_v9 = vld [vmem:[#allocation26_spill] sm:$0xff] }
 0x3a0   : > { %4893 = vmatmul.msk.f32.gmra.mxu2 %vm468_vm7, %v5001_v43  ;;  %v7479_v27 = vsel %vm3987_vm10, %v4218_v50, %v4217_v18  ;;  %v3186_v56 = vadd.f32 %v3185_v46, %v3184_v16  ;;  %v3129_v15 = vmul.f32 %v3030_v5, %v6920_v2  ;;  %v7485_v47 = vsel %vm3987_vm10, %v4232_v57, %v4231_v62  ;;  %v8531_v50 = vld [vmem:[#allocation77_spill] sm:$0xff]  ;;  %v8534_v57 = vld [vmem:[#allocation50_spill] sm:$0xff] }
 0x3a1   : > { %v2099_v29 = vrot.slane %v7260_v38, 1  ;;  %v2070_v3 = vmul.f32 %v8522_v26, %v8521_v52  ;;  %v4256_v34 = vrot.slane %v3251_v12, 6  ;;  %v4270_v17 = vrot.slane %v3252_v53, 6  ;;  %v8529_v12 = vld [vmem:[#allocation46_spill] sm:$0xff]  ;;  %v8533_v30 = vld [vmem:[#allocation13_spill] sm:$0xff] }
 0x3a2   : > { %4909 = vmatmul.msk.f32.gmra.mxu3 %vm468_vm7, %v5001_v43  ;;  %v2106_v54 = vrot.slane %v8523_v1, 1  ;;  %v8525_v6 = vrot.slane %v8524_v13, 2  ;;  %v8527_v2 = vrot.slane %v8526_v60, 4  ;;  %v2889_v24 = vrot.slane %v2888_v25, 1  ;;  %v8530_v43 = vld [vmem:[#allocation24_spill] sm:$0xff] }
 0x3a3   : > { %v3033_v58 = vpop.f32.mrf.mxu2  ;;  %v2122_v4 = vadd.f32 %v8528_v9, %v2070_v3  ;;  %v3130_v41 = vmul.f32 %v3095_v39, %v6927_v61  ;;  %v2896_v55 = vrot.slane %v2895_v19, 1  ;;  %v3180_v63 = vrot.slane %v3179_v37, 1 }
 0x3a4   : > { %v3131_v49 = vmul.f32 %v3033_v58, %v6924_v59  ;;  %v2112_v16 = vadd.f32 %v8525_v6, %v8524_v13  ;;  %v2117_v59 = vadd.f32 %v8527_v2, %v8526_v60  ;;  %v3187_v8 = vrot.slane %v3186_v56, 1  ;;  %v8538_v60 = vld [vmem:[#allocation83_spill] sm:$0xff] }
 0x3a5   : > { %v3098_v32 = vpop.f32.mrf.mxu3  ;;  %v3190_v46 = vrot.slane %v8529_v12, 4  ;;  %v3197_v10 = vrot.slane %v8530_v43, 4  ;;  %v7508_v53 = vsel %vm3975_vm3, %v4256_v34, %v7437_v0  ;;  %v7512_v23 = vsel %vm3975_vm3, %v4270_v17, %v7440_v11  ;;  %v8536_v0 = vld [vmem:[#allocation43_spill] sm:$0xff] }
 0x3a6   : > { %v7497_v5 = vadd.f32 %v3131_v49, %v3129_v15  ;;  %v3132_v7 = vmul.f32 %v3098_v32, %v6943_v14  ;;  %v2100_v61 = vadd.f32 %v2099_v29, %v7260_v38  ;;  %v2107_v14 = vadd.f32 %v2106_v54, %v8523_v1  ;;  %v8535_v15 = vld [vmem:[#allocation90_spill] sm:$0xff] }
 0x3a7   : > { %v2118_v39 = vrot.slane %v2117_v59, 2  ;;  %v2073_v18 = vmul.f32 %v8532_v51, %v8531_v50  ;;  %v2071_v58 = vmul.f32 %v8534_v57, %v8533_v30  ;;  %v2890_v62 = vadd.f32 %v2889_v24, %v2888_v25  ;;  %v8540_v25 = vld [vmem:[#allocation21_spill] sm:$0xff]  ;;  %v8542_v24 = vld [vmem:[#allocation28_spill] sm:$0xff] }
 0x3a8   : > { %v7504_v28 = vadd.f32 %v3132_v7, %v3130_v41  ;;  %v3480_v49 = vrot.slane %v8535_v15, 4  ;;  %v3487_v26 = vrot.slane %v8536_v0, 4  ;;  %v2113_v34 = vrot.slane %v2112_v16, 1 }
 0x3a9   : > { %v2123_v11 = vrot.slane %v2122_v4, 4  ;;  %v2897_v17 = vadd.f32 %v2896_v55, %v2895_v19  ;;  %v3191_v38 = vadd.f32 %v3190_v46, %v8529_v12  ;;  %v3181_v54 = vadd.f32 %v3180_v63, %v3179_v37 }
 0x3aa   : > { %v3188_v13 = vadd.f32 %v3187_v8, %v3186_v56  ;;  %v3198_v6 = vadd.f32 %v3197_v10, %v8530_v43  ;;  %v7526_v2 = vmul.f32 %v8538_v60, %v2100_v61  ;;  %v7529_v32 = vmul.f32 %v8540_v25, %v2107_v14 }
 0x3ab   : > { %v3680_v3 = vpop.f32.mrf.mxu2  ;;  %v2129_v9 = vadd.f32 %v2073_v18, %v2071_v58  ;;  %v3494_v41 = vrot.slane %v8542_v24, 4  ;;  %v2119_v51 = vadd.f32 %v2118_v39, %v2117_v59  ;;  %v3481_v19 = vadd.f32 %v3480_v49, %v8535_v15  ;;  %v8543_v39 = vld [vmem:[#allocation87_spill] sm:$0xff]  ;;  %v7547_v49 = vpop.f32.mrf.mxu0 }
 0x3ac   : > { %8539 = vst [vmem:[#allocation94_spill] sm:$0xff] %v7526_v2  ;;  %v3488_v55 = vadd.f32 %v3487_v26, %v8536_v0  ;;  %v2914_v37 = vmul.f32 %v8503_v44, %v2890_v62  ;;  %v7535_v56 = vadd.f32 %v2113_v34, %v2112_v16  ;;  %v2124_v63 = vadd.f32 %v2123_v11, %v2122_v4  ;;  %v8544_v16 = vld [vmem:[#allocation27_spill] sm:$0xff]  ;;  %v8547_v34 = vld [vmem:[#allocation14_spill] sm:$0xff] }
 0x3ad   : > { %8541 = vst [vmem:[#allocation4_spill] sm:$0xff] %v7529_v32  ;;  %v3745_v7 = vpop.f32.mrf.mxu3  ;;  %v3192_v8 = vrot.slane %v3191_v38, 2  ;;  %v2915_v12 = vmul.f32 %v8504_v31, %v2897_v17  ;;  %v3253_v46 = vmul.f32 %v8517_v48, %v3181_v54  ;;  %v3254_v43 = vmul.f32 %v8518_v20, %v3188_v13  ;;  %v8546_v0 = vld [vmem:[#allocation79_spill] sm:$0xff] }
 0x3ae   : > { %v3199_v10 = vrot.slane %v3198_v6, 2  ;;  %v4220_v61 = vrot.slane %v2914_v37, 1  ;;  %v2130_v14 = vrot.slane %v2129_v9, 4  ;;  %v3495_v59 = vadd.f32 %v3494_v41, %v8542_v24 }
 0x3af   : > { %v3501_v18 = vrot.slane %v8543_v39, 4  ;;  %v4234_v57 = vrot.slane %v2915_v12, 1  ;;  %v3482_v58 = vrot.slane %v3481_v19, 2  ;;  %v3489_v44 = vrot.slane %v3488_v55, 2 }
 0x3b0   : > { %v3204_v62 = vrot.slane %v8544_v16, 4  ;;  %v7545_v31 = vsel %vm3990_vm11, %v4220_v61, %v7479_v27  ;;  %v3193_v15 = vadd.f32 %v3192_v8, %v3191_v38  ;;  %v3793_v26 = vmul.f32 %v3680_v3, %v8546_v0  ;;  %v8549_v3 = vld [vmem:[#allocation10_spill] sm:$0xff] }
 0x3b1   : > { %8545 = vst [vmem:[#allocation95_spill] sm:$0xff] %v7545_v31  ;;  %v7553_v17 = vsel %vm3990_vm11, %v4234_v57, %v7485_v47  ;;  %v2120_v54 = vrot.slane %v2119_v51, 1  ;;  %v4258_v13 = vrot.slane %v3253_v46, 5  ;;  %v4272_v24 = vrot.slane %v3254_v43, 5  ;;  %v7560_v43 = vpop.f32.mrf.mxu1 }
 0x3b2   : > { %8548 = vst [vmem:[#allocation25_spill] sm:$0xff] %v7553_v17  ;;  %v3200_v41 = vadd.f32 %v3199_v10, %v3198_v6  ;;  %v2125_v37 = vrot.slane %v2124_v63, 2  ;;  %v3496_v12 = vrot.slane %v3495_v59, 2  ;;  %v3502_v27 = vadd.f32 %v3501_v18, %v8543_v39  ;;  %v8551_v17 = vld [vmem:[#allocation7_spill] sm:$0xff] }
 0x3b3   : > { %v3683_v4 = vpop.f32.mrf.mxu2  ;;  %v3483_v8 = vadd.f32 %v3482_v58, %v3481_v19  ;;  %v3205_v1 = vadd.f32 %v3204_v62, %v8544_v16  ;;  %v3794_v32 = vmul.f32 %v3745_v7, %v8549_v3  ;;  %v2131_v2 = vadd.f32 %v2130_v14, %v2129_v9  ;;  %v8552_v58 = vld [vmem:[#allocation34_spill] sm:$0xff]  ;;  %v8553_v9 = vld [vmem:[#allocation80_spill] sm:$0xff]  ;;  %v8555_v14 = vld [vmem:[#allocation41_spill] sm:$0xff] }
 0x3b4   : > { %v3795_v11 = vmul.f32 %v3683_v4, %v8547_v34  ;;  %v8550_v4 = vld [vmem:[#allocation81_spill] sm:$0xff]  ;;  %v3490_v47 = vadd.f32 %v3489_v44, %v3488_v55  ;;  %v3194_v57 = vrot.slane %v3193_v15, 1  ;;  %v3211_v46 = vrot.slane %v8551_v17, 4  ;;  %v8556_v44 = vld [vmem:[#allocation84_spill] sm:$0xff] }
 0x3b5   : > { %v3748_v38 = vpop.f32.mrf.mxu3  ;;  %v3201_v6 = vrot.slane %v3200_v41, 1  ;;  %v7564_v39 = vsel %vm3978_vm4, %v4258_v13, %v7508_v53  ;;  %v7568_v19 = vsel %vm3978_vm4, %v4272_v24, %v7512_v23  ;;  %v3497_v7 = vadd.f32 %v3496_v12, %v3495_v59  ;;  %v8561_v24 = vld [vmem:[#allocation53_spill] sm:$0xff] }
 0x3b6   : > { %v3825_v61 = vadd.f32 %v3795_v11, %v3793_v26  ;;  %v3796_v31 = vmul.f32 %v3748_v38, %v8550_v4  ;;  %v3503_v18 = vrot.slane %v3502_v27, 2  ;;  %v7572_v55 = vmul.f32 %v8553_v9, %v8552_v58  ;;  %v8562_v58 = vld [vmem:[#allocation54_spill] sm:$0xff] }
 0x3b7   : > { %v7576_v16 = vmul.f32 %v8556_v44, %v8555_v14  ;;  %v7578_v62 = vadd.f32 %v2120_v54, %v2119_v51  ;;  %v3484_v26 = vrot.slane %v3483_v8, 1  ;;  %v3206_v11 = vrot.slane %v3205_v1, 2  ;;  %v8563_v44 = vld [vmem:[#allocation56_spill] sm:$0xff] }
 0x3b8   : > { %v3832_v10 = vadd.f32 %v3796_v31, %v3794_v32  ;;  %8554 = vst [vmem:[#allocation8_spill] sm:$0xff] %v7572_v55  ;;  %v8559_v32 = vld [vmem:[#allocation16_spill] sm:$0xff]  ;;  %v8560_v31 = vld [vmem:[#allocation55_spill] sm:$0xff]  ;;  %v7582_v23 = vadd.f32 %v2125_v37, %v2124_v63  ;;  %v2132_v59 = vrot.slane %v2131_v2, 2  ;;  %v2074_v12 = vmul.f32 %v8561_v24, %v8521_v52 }
 0x3b9   : > { %8557 = vst [vmem:[#allocation29_spill] sm:$0xff] %v7576_v16  ;;  %v2076_v53 = vmul.f32 %v8560_v31, %v8559_v32  ;;  %v3212_v38 = vadd.f32 %v3211_v46, %v8551_v17  ;;  %v2075_v14 = vmul.f32 %v8562_v58, %v8533_v30  ;;  %v3491_v16 = vrot.slane %v3490_v47, 1  ;;  %v3355_v32 = vpop.f32.mrf.mxu0 }
 0x3ba   : > { %8558 = vst [vmem:[#allocation32_spill] sm:$0xff] %v7578_v62  ;;  %v3195_v51 = vadd.f32 %v3194_v57, %v3193_v15  ;;  %v3202_v54 = vadd.f32 %v3201_v6, %v3200_v41  ;;  %v2077_v31 = vmul.f32 %v8563_v44, %v8531_v50  ;;  %v3498_v29 = vrot.slane %v3497_v7, 1 }
 0x3bb   : > { %v3686_v13 = vpop.f32.mrf.mxu2  ;;  %v3504_v9 = vadd.f32 %v3503_v18, %v3502_v27  ;;  %v3826_v63 = vrot.slane %v3825_v61, 4  ;;  %v7591_v25 = vadd.f32 %v2076_v53, %v2074_v12  ;;  %v3485_v62 = vadd.f32 %v3484_v26, %v3483_v8  ;;  %v8564_v12 = vld [vmem:[#allocation72_spill] sm:$0xff] }
 0x3bc   : > { %v3207_v24 = vadd.f32 %v3206_v11, %v3205_v1  ;;  %v3508_v17 = vrot.slane %v7418_v33, 4  ;;  %v7595_v58 = vadd.f32 %v2132_v59, %v2131_v2  ;;  %v3213_v15 = vrot.slane %v3212_v38, 2  ;;  %v3420_v1 = vpop.f32.mrf.mxu1 }
 0x3bd   : > { %v3751_v37 = vpop.f32.mrf.mxu3  ;;  %v3515_v41 = vrot.slane %v7421_v40, 4  ;;  %v3492_v57 = vadd.f32 %v3491_v16, %v3490_v47  ;;  %v3255_v6 = vmul.f32 %v8517_v48, %v3195_v51  ;;  %v3256_v27 = vmul.f32 %v8518_v20, %v3202_v54 }
 0x3be   : > { %v3833_v18 = vrot.slane %v3832_v10, 4  ;;  %v7600_v44 = vadd.f32 %v2077_v31, %v2075_v14  ;;  %v3499_v53 = vadd.f32 %v3498_v29, %v3497_v7  ;;  %v3505_v8 = vrot.slane %v3504_v9, 1  ;;  %v8565_v29 = vld [vmem:[#allocation75_spill] sm:$0xff] }
 0x3bf   : > { %v3827_v26 = vadd.f32 %v3826_v63, %v3825_v61  ;;  %v7604_v2 = vmul.f32 %v8564_v12, %v3485_v62  ;;  %v3208_v59 = vrot.slane %v3207_v24, 1  ;;  %v3509_v46 = vadd.f32 %v3508_v17, %v7418_v33 }
 0x3c0   : > { %v3214_v16 = vadd.f32 %v3213_v15, %v3212_v38  ;;  %v3516_v51 = vadd.f32 %v3515_v41, %v7421_v40  ;;  %v3797_v54 = vmul.f32 %v3686_v13, %v8546_v0  ;;  %v7611_v7 = vmul.f32 %v8565_v29, %v3492_v57 }
 0x3c1   : > { %v4260_v61 = vrot.slane %v3255_v6, 4  ;;  %v4274_v31 = vrot.slane %v3256_v27, 4  ;;  %v3834_v63 = vadd.f32 %v3833_v18, %v3832_v10  ;;  %v7614_v62 = vmul.f32 %v8564_v12, %v3499_v53  ;;  %v7619_v6 = vpop.f32.mrf.mxu0 }
 0x3c2   : > { %v3506_v11 = vadd.f32 %v3505_v8, %v3504_v9  ;;  %v3828_v30 = vrot.slane %v3827_v26, 2  ;;  %v3209_v38 = vadd.f32 %v3208_v59, %v3207_v24  ;;  %v3510_v15 = vrot.slane %v3509_v46, 2  ;;  %8566 = vst [vmem:[#allocation96_spill] sm:$0xff] %v7619_v6 }
 0x3c3   : > { %v3689_v47 = vpop.f32.mrf.mxu2  ;;  %v3798_v40 = vmul.f32 %v3751_v37, %v8549_v3  ;;  %v3215_v41 = vrot.slane %v3214_v16, 1  ;;  %v3461_v57 = vmul.f32 %v3355_v32, %v7087_v45  ;;  %v3835_v27 = vrot.slane %v3834_v63, 2 }
 0x3c4   : > { %v3799_v14 = vmul.f32 %v3689_v47, %v8547_v34  ;;  %v3517_v47 = vrot.slane %v3516_v51, 2  ;;  %v7623_v9 = vsel %vm3981_vm5, %v4260_v61, %v7564_v39  ;;  %v7627_v24 = vsel %vm3981_vm5, %v4274_v31, %v7568_v19  ;;  %v7637_v31 = vpop.f32.mrf.mxu1 }
 0x3c5   : > { %v3754_v17 = vpop.f32.mrf.mxu3  ;;  %v3218_v37 = vrot.slane %v7424_v42, 4  ;;  %v3462_v53 = vmul.f32 %v3420_v1, %v7089_v21  ;;  %v3829_v8 = vadd.f32 %v3828_v30, %v3827_v26  ;;  %v3511_v32 = vadd.f32 %v3510_v15, %v3509_v46  ;;  %8567 = vst [vmem:[#allocation30_spill] sm:$0xff] %v7637_v31 }
 0x3c6   : > { %v3839_v33 = vadd.f32 %v3799_v14, %v3797_v54  ;;  %v3800_v13 = vmul.f32 %v3754_v17, %v8550_v4  ;;  %v3225_v54 = vrot.slane %v7434_v36, 4  ;;  %v3459_v14 = vmul.f32 %v7547_v49, %v7068_v22 }
 0x3c7   : > { %v3596_v39 = vmul.f32 %v8565_v29, %v3506_v11  ;;  %v3216_v61 = vadd.f32 %v3215_v41, %v3214_v16  ;;  %v3460_v19 = vmul.f32 %v7560_v43, %v7076_v35  ;;  %v3518_v1 = vadd.f32 %v3517_v47, %v3516_v51 }
 0x3c8   : > { %v3840_v10 = vrot.slane %v3839_v33, 4  ;;  %v3846_v18 = vadd.f32 %v3800_v13, %v3798_v40  ;;  %v3521_v30 = vadd.f32 %v3461_v57, %v3459_v14  ;;  %v3836_v26 = vadd.f32 %v3835_v27, %v3834_v63 }
 0x3c9   : > { %v3528_v15 = vadd.f32 %v3462_v53, %v3460_v19  ;;  %v4300_v6 = vrot.slane %v7614_v62, 7  ;;  %v3512_v11 = vrot.slane %v3511_v32, 1  ;;  %v3226_v16 = vadd.f32 %v3225_v54, %v7434_v36  ;;  %v7644_v53 = vpop.f32.mrf.mxu0 }
 0x3ca   : > { %v3841_v59 = vadd.f32 %v3840_v10, %v3839_v33  ;;  %v3847_v17 = vrot.slane %v3846_v18, 4  ;;  %v3219_v33 = vadd.f32 %v3218_v37, %v7424_v42  ;;  %v3830_v10 = vrot.slane %v3829_v8, 1 }
 0x3cb   : > { %v3692_v40 = vpop.f32.mrf.mxu2  ;;  %v4314_v43 = vrot.slane %v3596_v39, 7  ;;  %v3257_v31 = vmul.f32 %v8517_v48, %v3209_v38  ;;  %v3258_v51 = vmul.f32 %v8518_v20, %v3216_v61  ;;  %v3519_v63 = vrot.slane %v3518_v1, 1  ;;  %v8568_v39 = vld [vmem:[#allocation73_spill] sm:$0xff] }
 0x3cc   : > { %v3842_v13 = vrot.slane %v3841_v59, 2  ;;  %v3848_v46 = vadd.f32 %v3847_v17, %v3846_v18  ;;  %v3522_v57 = vrot.slane %v3521_v30, 4  ;;  %v3837_v27 = vrot.slane %v3836_v26, 1 }
 0x3cd   : > { %v3757_v21 = vpop.f32.mrf.mxu3  ;;  %v3220_v18 = vrot.slane %v3219_v33, 2  ;;  %v3529_v37 = vrot.slane %v3528_v15, 4  ;;  %v3513_v14 = vadd.f32 %v3512_v11, %v3511_v32  ;;  %v3227_v17 = vrot.slane %v3226_v16, 2 }
 0x3ce   : > { %v3843_v49 = vadd.f32 %v3842_v13, %v3841_v59  ;;  %v3849_v41 = vrot.slane %v3848_v46, 2  ;;  %v3831_v59 = vadd.f32 %v3830_v10, %v3829_v8  ;;  %v7648_v38 = vsel %vm3972_vm2, %v4300_v6, %v7604_v2 }
 0x3cf   : > { %v3801_v19 = vmul.f32 %v3692_v40, %v8546_v0  ;;  %v3520_v8 = vadd.f32 %v3519_v63, %v3518_v1  ;;  %v3523_v10 = vadd.f32 %v3522_v57, %v3521_v30  ;;  %v3838_v32 = vadd.f32 %v3837_v27, %v3836_v26  ;;  %v8569_v40 = vld [vmem:[#allocation76_spill] sm:$0xff] }
 0x3d0   : > { %v3844_v47 = vrot.slane %v3843_v49, 1  ;;  %v3850_v42 = vadd.f32 %v3849_v41, %v3848_v46  ;;  %v7655_v46 = vsel %vm3972_vm2, %v4314_v43, %v7611_v7  ;;  %v3530_v11 = vadd.f32 %v3529_v37, %v3528_v15  ;;  %v7657_v41 = vpop.f32.mrf.mxu1 }
 0x3d1   : > { %v3939_v2 = vmul.f32 %v8568_v39, %v3831_v59  ;;  %v4262_v43 = vrot.slane %v3257_v31, 3  ;;  %v3221_v1 = vadd.f32 %v3220_v18, %v3219_v33  ;;  %v3228_v30 = vadd.f32 %v3227_v17, %v3226_v16 }
 0x3d2   : > { %v3845_v62 = vadd.f32 %v3844_v47, %v3843_v49  ;;  %v3851_v36 = vrot.slane %v3850_v42, 1  ;;  %v4276_v15 = vrot.slane %v3258_v51, 3  ;;  %v3940_v63 = vmul.f32 %v8569_v40, %v3838_v32 }
 0x3d3   : > { %v3695_v54 = vpop.f32.mrf.mxu2  ;;  %v2144_v37 = vrot.slane %v7600_v44, 4  ;;  %v3597_v31 = vmul.f32 %v8564_v12, %v3513_v14  ;;  %v3598_v16 = vmul.f32 %v8565_v29, %v3520_v8  ;;  %v3524_v51 = vrot.slane %v3523_v10, 2 }
 0x3d4   : > { %v3941_v61 = vmul.f32 %v8568_v39, %v3845_v62  ;;  %v3803_v13 = vmul.f32 %v3695_v54, %v8547_v34  ;;  %v3852_v49 = vadd.f32 %v3851_v36, %v3850_v42  ;;  %v3802_v54 = vmul.f32 %v3757_v21, %v8549_v3 }
 0x3d5   : > { %v3760_v62 = vpop.f32.mrf.mxu3  ;;  %v7673_v42 = vsel %vm3984_vm6, %v4262_v43, %v7623_v9  ;;  %v2134_v21 = vrot.slane %v7595_v58, 1  ;;  %v7680_v33 = vsel %vm3984_vm6, %v4276_v15, %v7627_v24  ;;  %v7690_v9 = vmul.f32 %v8538_v60, %v7535_v56  ;;  %v8575_v56 = vld [vmem:[#allocation32_spill] sm:$0xff] }
 0x3d6   : > { %v4346_v6 = vrot.slane %v3941_v61, 7  ;;  %v7660_v47 = vadd.f32 %v3803_v13, %v3801_v19  ;;  %v3942_v35 = vmul.f32 %v8569_v40, %v3852_v49  ;;  %v3804_v7 = vmul.f32 %v3760_v62, %v8550_v4  ;;  %v7698_v61 = vpop.f32.mrf.mxu0 }
 0x3d7   : > { %8572 = vst [vmem:[#allocation35_spill] sm:$0xff] %v7690_v9  ;;  %v8573_v14 = vrot.slane %v7582_v23, 1  ;;  %v8574_v24 = vrot.slane %v7591_v25, 4  ;;  %v3222_v13 = vrot.slane %v3221_v1, 1  ;;  %v3229_v8 = vrot.slane %v3228_v30, 1 }
 0x3d8   : > { %v7666_v26 = vsel %vm3972_vm2, %v4346_v6, %v3939_v2  ;;  %v4360_v57 = vrot.slane %v3942_v35, 7  ;;  %v7669_v27 = vadd.f32 %v3804_v7, %v3802_v54  ;;  %v3531_v35 = vrot.slane %v3530_v11, 2  ;;  %v8576_v2 = vld [vmem:[#allocation21_spill] sm:$0xff]  ;;  %v8578_v54 = vld [vmem:[#allocation16_spill] sm:$0xff] }
 0x3d9   : > { %8570 = vst [vmem:[#allocation31_spill] sm:$0xff] %v7666_v26  ;;  %v2128_v17 = vadd.f32 %v8573_v14, %v7582_v23  ;;  %v2138_v36 = vadd.f32 %v8574_v24, %v7591_v25  ;;  %v3232_v32 = vrot.slane %v7497_v5, 4  ;;  %v3239_v49 = vrot.slane %v7504_v28, 4  ;;  %v8579_v25 = vld [vmem:[#allocation6_spill] sm:$0xff] }
 0x3da   : > { %v7684_v18 = vsel %vm3972_vm2, %v4360_v57, %v3940_v63  ;;  %v7705_v6 = vmul.f32 %v8576_v2, %v8575_v56  ;;  %v2135_v23 = vadd.f32 %v2134_v21, %v7595_v58  ;;  %v2145_v62 = vadd.f32 %v2144_v37, %v7600_v44  ;;  %v8581_v56 = vld [vmem:[#allocation57_spill] sm:$0xff]  ;;  %v8582_v58 = vld [vmem:[#allocation58_spill] sm:$0xff]  ;;  %v7720_v44 = vpop.f32.mrf.mxu1 }
 0x3db   : > { %8571 = vst [vmem:[#allocation36_spill] sm:$0xff] %v7684_v18  ;;  %v7686_v59 = vpop.f32.mrf.mxu2  ;;  %v2080_v7 = vmul.f32 %v8579_v25, %v8578_v54  ;;  %v4302_v15 = vrot.slane %v3597_v31, 6  ;;  %v4316_v63 = vrot.slane %v3598_v16, 6  ;;  %v3525_v57 = vadd.f32 %v3524_v51, %v3523_v10  ;;  %v8584_v16 = vld [vmem:[#allocation13_spill] sm:$0xff] }
 0x3dc   : > { %8577 = vst [vmem:[#allocation40_spill] sm:$0xff] %v7705_v6  ;;  %v3532_v14 = vadd.f32 %v3531_v35, %v3530_v11  ;;  %v7714_v24 = vmul.f32 %v8538_v60, %v2128_v17  ;;  %v2139_v19 = vrot.slane %v2138_v36, 2  ;;  %v2078_v55 = vmul.f32 %v8581_v56, %v8521_v52  ;;  %v8585_v51 = vld [vmem:[#allocation5_spill] sm:$0xff] }
 0x3dd   : > { %v7711_v43 = vpop.f32.mrf.mxu3  ;;  %v2081_v21 = vmul.f32 %v8582_v58, %v8531_v50  ;;  %v3223_v37 = vadd.f32 %v3222_v13, %v3221_v1  ;;  %v3230_v25 = vadd.f32 %v3229_v8, %v3228_v30  ;;  %v3233_v18 = vadd.f32 %v3232_v32, %v7497_v5 }
 0x3de   : > { %8580 = vst [vmem:[#allocation45_spill] sm:$0xff] %v7714_v24  ;;  %v3240_v31 = vadd.f32 %v3239_v49, %v7504_v28  ;;  %v7725_v10 = vmul.f32 %v8576_v2, %v2135_v23  ;;  %v2146_v11 = vrot.slane %v2145_v62, 2  ;;  %v2079_v35 = vmul.f32 %v8585_v51, %v8584_v16  ;;  %v8587_v51 = vld [vmem:[#allocation80_spill] sm:$0xff] }
 0x3df   : > { %v2150_v17 = vadd.f32 %v2080_v7, %v2078_v55  ;;  %v3526_v56 = vrot.slane %v3525_v57, 1  ;;  %v3533_v26 = vrot.slane %v3532_v14, 1  ;;  %v7731_v58 = vsel %vm3975_vm3, %v4302_v15, %v7648_v38  ;;  %v7742_v15 = vpop.f32.mrf.mxu0 }
 0x3e0   : > { %8583 = vst [vmem:[#allocation88_spill] sm:$0xff] %v7725_v10  ;;  %v7735_v5 = vsel %vm3975_vm3, %v4316_v63, %v7655_v46  ;;  %v2140_v30 = vadd.f32 %v2139_v19, %v2138_v36  ;;  %v2157_v13 = vadd.f32 %v2081_v21, %v2079_v35  ;;  %v3234_v8 = vrot.slane %v3233_v18, 2  ;;  %v8586_v63 = vld [vmem:[#allocation59_spill] sm:$0xff] }
 0x3e1   : > { %v3241_v32 = vrot.slane %v3240_v31, 2  ;;  %v3259_v55 = vmul.f32 %v8517_v48, %v3223_v37  ;;  %v3260_v49 = vmul.f32 %v8518_v20, %v3230_v25  ;;  %v2147_v38 = vadd.f32 %v2146_v11, %v2145_v62  ;;  %v8589_v25 = vld [vmem:[#allocation63_spill] sm:$0xff]  ;;  %v8590_v62 = vld [vmem:[#allocation64_spill] sm:$0xff] }
 0x3e2   : > { %v2151_v7 = vrot.slane %v2150_v17, 4  ;;  %v7746_v28 = vmul.f32 %v8587_v51, %v8586_v63  ;;  %v3527_v19 = vadd.f32 %v3526_v56, %v3525_v57  ;;  %v3534_v21 = vadd.f32 %v3533_v26, %v3532_v14  ;;  %v8591_v26 = vld [vmem:[#allocation61_spill] sm:$0xff]  ;;  %v7761_v14 = vpop.f32.mrf.mxu1 }
 0x3e3   : > { %v3701_v40 = vpop.f32.mrf.mxu2  ;;  %v4264_v35 = vrot.slane %v3259_v55, 2  ;;  %v2141_v1 = vrot.slane %v2140_v30, 1  ;;  %v2158_v37 = vrot.slane %v2157_v13, 4  ;;  %v2084_v6 = vmul.f32 %v8589_v25, %v8578_v54  ;;  %v8592_v55 = vld [vmem:[#allocation62_spill] sm:$0xff] }
 0x3e4   : > { %8588 = vst [vmem:[#allocation51_spill] sm:$0xff] %v7746_v28  ;;  %v4278_v23 = vrot.slane %v3260_v49, 2  ;;  %v2085_v11 = vmul.f32 %v8590_v62, %v8531_v50  ;;  %v3235_v24 = vadd.f32 %v3234_v8, %v3233_v18  ;;  %v3242_v9 = vadd.f32 %v3241_v32, %v3240_v31  ;;  %v8593_v31 = vld [vmem:[#allocation66_spill] sm:$0xff] }
 0x3e5   : > { %v3766_v46 = vpop.f32.mrf.mxu3  ;;  %v7755_v63 = vsel %vm3987_vm10, %v4264_v35, %v7673_v42  ;;  %v2148_v28 = vrot.slane %v2147_v38, 1  ;;  %v7757_v36 = vadd.f32 %v2151_v7, %v2150_v17  ;;  %v2082_v57 = vmul.f32 %v8591_v26, %v8521_v52  ;;  %v8594_v35 = vld [vmem:[#allocation12_spill] sm:$0xff] }
 0x3e6   : > { %v7765_v56 = vsel %vm3987_vm10, %v4278_v23, %v7680_v33  ;;  %v2083_v18 = vmul.f32 %v8592_v55, %v8584_v16  ;;  %v2088_v8 = vmul.f32 %v8593_v31, %v8578_v54  ;;  %v3599_v42 = vmul.f32 %v8564_v12, %v3527_v19  ;;  %v8597_v23 = vld [vmem:[#allocation20_spill] sm:$0xff]  ;;  %v8600_v19 = vld [vmem:[#allocation2_spill] sm:$0xff]  ;;  %v8605_v12 = vld [vmem:[#allocation3_spill] sm:$0xff] }
 0x3e7   : > { %v3600_v17 = vmul.f32 %v8565_v29, %v3534_v21  ;;  %v7775_v49 = vadd.f32 %v2158_v37, %v2157_v13  ;;  %v2164_v7 = vadd.f32 %v2084_v6, %v2082_v57  ;;  %v8595_v25 = vrot.slane %v8594_v35, 1  ;;  %v8601_v6 = vld [vmem:[#allocation67_spill] sm:$0xff] }
 0x3e8   : > { %v8598_v62 = vrot.slane %v8597_v23, 1  ;;  %v2171_v55 = vadd.f32 %v2085_v11, %v2083_v18  ;;  %v2086_v31 = vmul.f32 %v8600_v19, %v8521_v52  ;;  %v3236_v21 = vrot.slane %v3235_v24, 1  ;;  %v8603_v19 = vld [vmem:[#allocation65_spill] sm:$0xff] }
 0x3e9   : > { %v7780_v33 = vadd.f32 %v8595_v25, %v8594_v35  ;;  %v3243_v10 = vrot.slane %v3242_v9, 1  ;;  %v7789_v51 = vadd.f32 %v2141_v1, %v2140_v30  ;;  %v7791_v13 = vadd.f32 %v2148_v28, %v2147_v38  ;;  %v7804_v30 = vpop.f32.mrf.mxu0 }
 0x3ea   : > { %v7785_v26 = vadd.f32 %v8598_v62, %v8597_v23  ;;  %v2089_v37 = vmul.f32 %v8601_v6, %v8531_v50  ;;  %v3807_v57 = vmul.f32 %v3701_v40, %v8547_v34  ;;  %v2153_v25 = vrot.slane %v7757_v36, 2 }
 0x3eb   : > { %v7773_v32 = vpop.f32.mrf.mxu2  ;;  %8596 = vst [vmem:[#allocation85_spill] sm:$0xff] %v7780_v33  ;;  %v2178_v23 = vadd.f32 %v2088_v8, %v2086_v31  ;;  %v4304_v11 = vrot.slane %v3599_v42, 5  ;;  %v4318_v18 = vrot.slane %v3600_v17, 5  ;;  %v2160_v62 = vrot.slane %v7775_v49, 2  ;;  %v8604_v42 = vld [vmem:[#allocation96_spill] sm:$0xff] }
 0x3ec   : > { %8599 = vst [vmem:[#allocation37_spill] sm:$0xff] %v7785_v26  ;;  %v2087_v1 = vmul.f32 %v8603_v19, %v8584_v16  ;;  %v3465_v28 = vmul.f32 %v7644_v53, %v7087_v45  ;;  %v3805_v40 = vmul.f32 %v7686_v59, %v8546_v0  ;;  %v2165_v38 = vrot.slane %v2164_v7, 4 }
 0x3ed   : > { %v7796_v35 = vpop.f32.mrf.mxu3  ;;  %v2172_v6 = vrot.slane %v2171_v55, 4  ;;  %v3237_v26 = vadd.f32 %v3236_v21, %v3235_v24  ;;  %v3244_v33 = vadd.f32 %v3243_v10, %v3242_v9  ;;  %v3463_v17 = vmul.f32 %v8604_v42, %v7068_v22  ;;  %v8608_v24 = vld [vmem:[#allocation70_spill] sm:$0xff] }
 0x3ee   : > { %8602 = vst [vmem:[#allocation19_spill] sm:$0xff] %v7796_v35  ;;  %v2185_v8 = vadd.f32 %v2089_v37, %v2087_v1  ;;  %v3867_v31 = vadd.f32 %v3807_v57, %v3805_v40  ;;  %v3808_v29 = vmul.f32 %v3766_v46, %v8550_v4  ;;  %v2179_v19 = vrot.slane %v2178_v23, 4  ;;  %v8609_v37 = vld [vmem:[#allocation39_spill] sm:$0xff]  ;;  %v7827_v57 = vpop.f32.mrf.mxu1  ;;  %v8614_v40 = vld [vmem:[#allocation30_spill] sm:$0xff] }
 0x3ef   : > { %v2092_v53 = vmul.f32 %v8605_v12, %v8578_v54  ;;  %v7817_v59 = vsel %vm3978_vm4, %v4304_v11, %v7731_v58  ;;  %v7821_v9 = vsel %vm3978_vm4, %v4318_v18, %v7735_v5  ;;  %v2093_v10 = vmul.f32 %v8608_v24, %v8531_v50  ;;  %8610 = vst [vmem:[#allocation71_spill] sm:$0xff] %v7827_v57  ;;  %v8611_v54 = vld [vmem:[#allocation68_spill] sm:$0xff]  ;;  %v8612_v50 = vld [vmem:[#allocation69_spill] sm:$0xff] }
 0x3f0   : > { %8606 = vst [vmem:[#allocation11_spill] sm:$0xff] %v7817_v59  ;;  %v3535_v21 = vadd.f32 %v3465_v28, %v3463_v17  ;;  %v3466_v46 = vmul.f32 %v7657_v41, %v8609_v37  ;;  %v3806_v12 = vmul.f32 %v7711_v43, %v8549_v3  ;;  %v2090_v58 = vmul.f32 %v8611_v54, %v8521_v52  ;;  %v8613_v28 = vld [vmem:[#allocation38_spill] sm:$0xff] }
 0x3f1   : > { %8607 = vst [vmem:[#allocation78_spill] sm:$0xff] %v7821_v9  ;;  %v3854_v11 = vrot.slane %v7660_v47, 4  ;;  %v3261_v5 = vmul.f32 %v8517_v48, %v3237_v26  ;;  %v3262_v18 = vmul.f32 %v8518_v20, %v3244_v33  ;;  %v2091_v1 = vmul.f32 %v8612_v50, %v8584_v16 }
 0x3f2   : > { %v3464_v41 = vmul.f32 %v8614_v40, %v8613_v28  ;;  %v3868_v42 = vrot.slane %v3867_v31, 4  ;;  %v3874_v17 = vadd.f32 %v3808_v29, %v3806_v12  ;;  %v2186_v43 = vrot.slane %v2185_v8, 4  ;;  %v7852_v12 = vpop.f32.mrf.mxu0 }
 0x3f3   : > { %v7813_v35 = vpop.f32.mrf.mxu2  ;;  %v2192_v9 = vadd.f32 %v2092_v53, %v2090_v58  ;;  %v4266_v59 = vrot.slane %v3261_v5, 1  ;;  %v4280_v52 = vrot.slane %v3262_v18, 1  ;;  %v2166_v54 = vadd.f32 %v2165_v38, %v2164_v7 }
 0x3f4   : > { %v2199_v3 = vadd.f32 %v2093_v10, %v2091_v1  ;;  %v3536_v57 = vrot.slane %v3535_v21, 4  ;;  %v3542_v48 = vadd.f32 %v3466_v46, %v3464_v41  ;;  %v3855_v20 = vadd.f32 %v3854_v11, %v7660_v47 }
 0x3f5   : > { %v7840_v24 = vpop.f32.mrf.mxu3  ;;  %v3861_v33 = vrot.slane %v7669_v27, 4  ;;  %v7846_v16 = vsel %vm3990_vm11, %v4266_v59, %v7755_v63  ;;  %v7850_v29 = vsel %vm3990_vm11, %v4280_v52, %v7765_v56  ;;  %v2173_v26 = vadd.f32 %v2172_v6, %v2171_v55 }
 0x3f6   : > { %8615 = vst [vmem:[#allocation9_spill] sm:$0xff] %v7840_v24  ;;  %v2180_v53 = vadd.f32 %v2179_v19, %v2178_v23  ;;  %v3869_v7 = vadd.f32 %v3868_v42, %v3867_v31  ;;  %v3875_v38 = vrot.slane %v3874_v17, 4  ;;  %v2154_v10 = vadd.f32 %v2153_v25, %v7757_v36 }
 0x3f7   : > { %8616 = vst [vmem:[#allocation15_spill] sm:$0xff] %v7846_v16  ;;  %v2161_v47 = vadd.f32 %v2160_v62, %v7775_v49  ;;  %v2187_v46 = vadd.f32 %v2186_v43, %v2185_v8  ;;  %v2193_v58 = vrot.slane %v2192_v9, 4  ;;  %v2167_v63 = vrot.slane %v2166_v54, 2  ;;  %v7867_v62 = vpop.f32.mrf.mxu1 }
 0x3f8   : > { %8617 = vst [vmem:[#allocation49_spill] sm:$0xff] %v7850_v29  ;;  %v2200_v59 = vrot.slane %v2199_v3, 4  ;;  %v3537_v5 = vadd.f32 %v3536_v57, %v3535_v21  ;;  %v3543_v18 = vrot.slane %v3542_v48, 4  ;;  %v7860_v56 = vmul.f32 %v8538_v60, %v7789_v51 }
 0x3f9   : > { %v7864_v55 = vmul.f32 %v8576_v2, %v7791_v13  ;;  %v3856_v23 = vrot.slane %v3855_v20, 2  ;;  %v3862_v36 = vadd.f32 %v3861_v33, %v7669_v27  ;;  %v2174_v49 = vrot.slane %v2173_v26, 2 }
 0x3fa   : > { %v2181_v25 = vrot.slane %v2180_v53, 2  ;;  %v3870_v6 = vrot.slane %v3869_v7, 2  ;;  %v3876_v8 = vadd.f32 %v3875_v38, %v3874_v17  ;;  %v2155_v19 = vrot.slane %v2154_v10, 1 }
 0x3fb   : > { %v7856_v11 = vpop.f32.mrf.mxu2  ;;  %v2162_v21 = vrot.slane %v2161_v47, 1  ;;  %v2188_v57 = vrot.slane %v2187_v46, 2  ;;  %v2194_v51 = vadd.f32 %v2193_v58, %v2192_v9  ;;  %v2168_v50 = vadd.f32 %v2167_v63, %v2166_v54 }
 0x3fc   : > { %8618 = vst [vmem:[#allocation42_spill] sm:$0xff] %v7856_v11  ;;  %v2201_v1 = vadd.f32 %v2200_v59, %v2199_v3  ;;  %v3538_v40 = vrot.slane %v3537_v5, 2  ;;  %v3544_v13 = vadd.f32 %v3543_v18, %v3542_v48  ;;  %v3857_v42 = vadd.f32 %v3856_v23, %v3855_v20  ;;  %v7873_v48 = vpop.f32.mrf.mxu0 }
 0x3fd   : > { %v7869_v31 = vpop.f32.mrf.mxu3  ;;  %v3863_v43 = vrot.slane %v3862_v36, 2  ;;  %v2175_v52 = vadd.f32 %v2174_v49, %v2173_v26  ;;  %v2182_v33 = vadd.f32 %v2181_v25, %v2180_v53  ;;  %v3871_v29 = vadd.f32 %v3870_v6, %v3869_v7 }
 0x3fe   : > { %8619 = vst [vmem:[#allocation74_spill] sm:$0xff] %v7869_v31  ;;  %v3877_v17 = vrot.slane %v3876_v8, 2  ;;  %v2156_v38 = vadd.f32 %v2155_v19, %v2154_v10  ;;  %v2163_v16 = vadd.f32 %v2162_v21, %v2161_v47  ;;  %v2189_v31 = vadd.f32 %v2188_v57, %v2187_v46 }
 0x3ff   : > { %v2195_v11 = vrot.slane %v2194_v51, 2  ;;  %v2169_v9 = vrot.slane %v2168_v50, 1  ;;  %v2202_v54 = vrot.slane %v2201_v1, 2  ;;  %v3539_v3 = vadd.f32 %v3538_v40, %v3537_v5  ;;  %v7892_v6 = vpop.f32.mrf.mxu1 }
 0x400   : > { %v3545_v58 = vrot.slane %v3544_v13, 2  ;;  %v3469_v63 = vmul.f32 %v7742_v15, %v7087_v45  ;;  %v3470_v20 = vmul.f32 %v7761_v14, %v8609_v37  ;;  %v3858_v26 = vrot.slane %v3857_v42, 1 }
 0x401   : > { %v3864_v53 = vadd.f32 %v3863_v43, %v3862_v36  ;;  %v2176_v7 = vrot.slane %v2175_v52, 1  ;;  %v2183_v10 = vrot.slane %v2182_v33, 1  ;;  %v3872_v47 = vrot.slane %v3871_v29, 1  ;;  %v8627_v43 = vld [vmem:[#allocation31_spill] sm:$0xff] }
 0x402   : > { %v3878_v46 = vadd.f32 %v3877_v17, %v3876_v8  ;;  %v2190_v18 = vrot.slane %v2189_v31, 1  ;;  %v7879_v23 = vadd.f32 %v2195_v11, %v2194_v51  ;;  %v3467_v5 = vmul.f32 %v7698_v61, %v7068_v22 }
 0x403   : > { %v3713_v24 = vpop.f32.mrf.mxu2  ;;  %v3468_v49 = vmul.f32 %v7720_v44, %v8613_v28  ;;  %v7886_v15 = vmul.f32 %v8538_v60, %v2156_v38  ;;  %v7888_v14 = vadd.f32 %v2202_v54, %v2201_v1  ;;  %v3540_v36 = vrot.slane %v3539_v3, 1 }
 0x404   : > { %v7890_v25 = vadd.f32 %v3545_v58, %v3544_v13  ;;  %v7894_v8 = vadd.f32 %v3469_v63, %v3467_v5  ;;  %v3859_v19 = vadd.f32 %v3858_v26, %v3857_v42  ;;  %v3865_v21 = vrot.slane %v3864_v53, 1 }
 0x405   : > { %v3778_v59 = vpop.f32.mrf.mxu3  ;;  %v7896_v11 = vadd.f32 %v3470_v20, %v3468_v49  ;;  %v7899_v61 = vmul.f32 %v8576_v2, %v2163_v16  ;;  %v7901_v44 = vadd.f32 %v2169_v9, %v2168_v50  ;;  %v3873_v57 = vadd.f32 %v3872_v47, %v3871_v29  ;;  %v3379_v9 = vpop.f32.mrf.mxu0  ;;  %v8621_v47 = vld [vmem:[#allocation71_spill] sm:$0xff] }
 0x406   : > { %v3879_v51 = vrot.slane %v3878_v46, 1  ;;  %v7903_v1 = vadd.f32 %v2176_v7, %v2175_v52  ;;  %v7905_v40 = vadd.f32 %v2183_v10, %v2182_v33  ;;  %v7907_v13 = vadd.f32 %v2190_v18, %v2189_v31 }
 0x407   : > { %v7911_v42 = vadd.f32 %v3540_v36, %v3539_v3  ;;  %v3547_v16 = vrot.slane %v7890_v25, 1  ;;  %v3811_v50 = vmul.f32 %v7813_v35, %v8547_v34  ;;  %v3550_v29 = vrot.slane %v7894_v8, 4 }
 0x408   : > { %v3557_v52 = vrot.slane %v7896_v11, 4  ;;  %v3943_v33 = vmul.f32 %v8568_v39, %v3859_v19  ;;  %v3866_v31 = vadd.f32 %v3865_v21, %v3864_v53  ;;  %v3945_v54 = vmul.f32 %v8568_v39, %v3873_v57  ;;  %v8620_v53 = vld [vmem:[#allocation9_spill] sm:$0xff]  ;;  %v8624_v19 = vld [vmem:[#allocation10_spill] sm:$0xff]  ;;  %v8625_v21 = vld [vmem:[#allocation19_spill] sm:$0xff]  ;;  %v3444_v57 = vpop.f32.mrf.mxu1 }
 0x409   : > { %v3880_v58 = vadd.f32 %v3879_v51, %v3878_v46  ;;  %v3809_v3 = vmul.f32 %v7773_v32, %v8546_v0  ;;  %v3815_v63 = vmul.f32 %v3713_v24, %v8547_v34  ;;  %v3471_v35 = vmul.f32 %v7804_v30, %v7068_v22  ;;  %v8622_v32 = vld [vmem:[#allocation42_spill] sm:$0xff]  ;;  %v8623_v30 = vld [vmem:[#allocation76_spill] sm:$0xff] }
 0x40a   : > { %v3473_v26 = vmul.f32 %v7852_v12, %v7087_v45  ;;  %v3474_v7 = vmul.f32 %v7867_v62, %v8609_v37  ;;  %v3812_v10 = vmul.f32 %v8620_v53, %v8550_v4  ;;  %v3472_v46 = vmul.f32 %v8621_v47, %v8613_v28  ;;  %v8626_v47 = vld [vmem:[#allocation74_spill] sm:$0xff] }
 0x40b   : > { %v3716_v17 = vpop.f32.mrf.mxu2  ;;  %v3881_v18 = vadd.f32 %v3811_v50, %v3809_v3  ;;  %v3813_v24 = vmul.f32 %v8622_v32, %v8546_v0  ;;  %v3816_v5 = vmul.f32 %v3778_v59, %v8550_v4  ;;  %v4348_v49 = vrot.slane %v3943_v33, 6 }
 0x40c   : > { %v3944_v36 = vmul.f32 %v8623_v30, %v3866_v31  ;;  %v3477_v12 = vmul.f32 %v3379_v9, %v7087_v45  ;;  %v3810_v62 = vmul.f32 %v8625_v21, %v8624_v19  ;;  %v4350_v51 = vrot.slane %v3945_v54, 5 }
 0x40d   : > { %v3781_v20 = vpop.f32.mrf.mxu3  ;;  %v3946_v53 = vmul.f32 %v8623_v30, %v3880_v58  ;;  %v3814_v50 = vmul.f32 %v8626_v47, %v8624_v19  ;;  %v3895_v3 = vadd.f32 %v3815_v63, %v3813_v24  ;;  %v3563_v27 = vadd.f32 %v3473_v26, %v3471_v35 }
 0x40e   : > { %v3570_v32 = vadd.f32 %v3474_v7, %v3472_v46  ;;  %v3475_v59 = vmul.f32 %v7873_v48, %v7068_v22  ;;  %v3888_v33 = vadd.f32 %v3812_v10, %v3810_v62  ;;  %v3882_v41 = vrot.slane %v3881_v18, 4 }
 0x40f   : > { %v3902_v45 = vadd.f32 %v3816_v5, %v3814_v50  ;;  %v3817_v9 = vmul.f32 %v3716_v17, %v8546_v0  ;;  %v4362_v54 = vrot.slane %v3944_v36, 6  ;;  %v3478_v58 = vmul.f32 %v3444_v57, %v8609_v37  ;;  %v8628_v57 = vld [vmem:[#allocation36_spill] sm:$0xff] }
 0x410   : > { %v3577_v38 = vadd.f32 %v3477_v12, %v3475_v59  ;;  %v4349_v63 = vsel %vm3975_vm3, %v4348_v49, %v8627_v43  ;;  %v4364_v35 = vrot.slane %v3946_v53, 5  ;;  %v3896_v26 = vrot.slane %v3895_v3, 4 }
 0x411   : > { %v7951_v22 = vsel %vm3978_vm4, %v4350_v51, %v4349_v63  ;;  %v3476_v48 = vmul.f32 %v7892_v6, %v8613_v28  ;;  %v3889_v17 = vrot.slane %v3888_v33, 4  ;;  %v3818_v10 = vmul.f32 %v3781_v20, %v8624_v19 }
 0x412   : > { %v3551_v37 = vadd.f32 %v3550_v29, %v7894_v8  ;;  %v3883_v5 = vadd.f32 %v3882_v41, %v3881_v18  ;;  %v3903_v36 = vrot.slane %v3902_v45, 4  ;;  %v3564_v49 = vrot.slane %v3563_v27, 4 }
 0x413   : > { %v3719_v31 = vpop.f32.mrf.mxu2  ;;  %v3584_v12 = vadd.f32 %v3478_v58, %v3476_v48  ;;  %v4363_v51 = vsel %vm3975_vm3, %v4362_v54, %v8628_v57  ;;  %v3548_v53 = vadd.f32 %v3547_v16, %v7890_v25  ;;  %v3578_v47 = vrot.slane %v3577_v38, 4 }
 0x414   : > { %v3819_v21 = vmul.f32 %v3719_v31, %v8547_v34  ;;  %v3897_v28 = vadd.f32 %v3896_v26, %v3895_v3  ;;  %v7962_v6 = vsel %vm3978_vm4, %v4364_v35, %v4363_v51  ;;  %v3571_v20 = vrot.slane %v3570_v32, 4  ;;  %v8630_v35 = vld [vmem:[#allocation75_spill] sm:$0xff] }
 0x415   : > { %v3784_v46 = vpop.f32.mrf.mxu3  ;;  %v3890_v50 = vadd.f32 %v3889_v17, %v3888_v33  ;;  %v3884_v29 = vrot.slane %v3883_v5, 2  ;;  %v3904_v18 = vadd.f32 %v3903_v36, %v3902_v45  ;;  %v7966_v31 = vmul.f32 %v8538_v60, %v7901_v44 }
 0x416   : > { %v3909_v7 = vadd.f32 %v3819_v21, %v3817_v9  ;;  %v3820_v24 = vmul.f32 %v3784_v46, %v8550_v4  ;;  %v7970_v9 = vmul.f32 %v8538_v60, %v7905_v40  ;;  %v3552_v25 = vrot.slane %v3551_v37, 2  ;;  %v8629_v21 = vld [vmem:[#allocation72_spill] sm:$0xff] }
 0x417   : > { %v3558_v16 = vadd.f32 %v3557_v52, %v7896_v11  ;;  %v3565_v3 = vadd.f32 %v3564_v49, %v3563_v27  ;;  %v3585_v33 = vrot.slane %v3584_v12, 4  ;;  %v7977_v54 = vmul.f32 %v8629_v21, %v7911_v42 }
 0x418   : > { %v3910_v43 = vrot.slane %v3909_v7, 4  ;;  %v3916_v62 = vadd.f32 %v3820_v24, %v3818_v10  ;;  %v3579_v45 = vadd.f32 %v3578_v47, %v3577_v38  ;;  %v3898_v58 = vrot.slane %v3897_v28, 2 }
 0x419   : > { %v7980_v26 = vmul.f32 %v8630_v35, %v3548_v53  ;;  %v3572_v40 = vadd.f32 %v3571_v20, %v3570_v32  ;;  %v3885_v48 = vadd.f32 %v3884_v29, %v3883_v5  ;;  %v3905_v17 = vrot.slane %v3904_v18, 2 }
 0x41a   : > { %v3911_v59 = vadd.f32 %v3910_v43, %v3909_v7  ;;  %v3917_v8 = vrot.slane %v3916_v62, 4  ;;  %v3891_v7 = vrot.slane %v3890_v50, 2  ;;  %v8631_v27 = vrot.slane %v7879_v23, 1 }
 0x41b   : > { %v3722_v41 = vpop.f32.mrf.mxu2  ;;  %v8632_v42 = vrot.slane %v7888_v14, 1  ;;  %v3553_v52 = vadd.f32 %v3552_v25, %v3551_v37  ;;  %v3559_v10 = vrot.slane %v3558_v16, 2  ;;  %v3566_v24 = vrot.slane %v3565_v3, 2 }
 0x41c   : > { %v3918_v63 = vadd.f32 %v3917_v8, %v3916_v62  ;;  %v3912_v46 = vrot.slane %v3911_v59, 2  ;;  %v7985_v11 = vadd.f32 %v8631_v27, %v7879_v23  ;;  %v3586_v36 = vadd.f32 %v3585_v33, %v3584_v12 }
 0x41d   : > { %v3787_v44 = vpop.f32.mrf.mxu3  ;;  %v7990_v38 = vadd.f32 %v8632_v42, %v7888_v14  ;;  %v3580_v43 = vrot.slane %v3579_v45, 2  ;;  %v3899_v49 = vadd.f32 %v3898_v58, %v3897_v28  ;;  %v3573_v57 = vrot.slane %v3572_v40, 2 }
 0x41e   : > { %v3919_v5 = vrot.slane %v3918_v63, 2  ;;  %v3892_v51 = vadd.f32 %v3891_v7, %v3890_v50  ;;  %v3913_v23 = vadd.f32 %v3912_v46, %v3911_v59  ;;  %v3886_v47 = vrot.slane %v3885_v48, 1 }
 0x41f   : > { %v3906_v20 = vadd.f32 %v3905_v17, %v3904_v18  ;;  %v3821_v14 = vmul.f32 %v3722_v41, %v8546_v0  ;;  %v3554_v8 = vrot.slane %v3553_v52, 1  ;;  %v3560_v29 = vadd.f32 %v3559_v10, %v3558_v16 }
 0x420   : > { %v3567_v12 = vadd.f32 %v3566_v24, %v3565_v3  ;;  %v3587_v25 = vrot.slane %v3586_v36, 2  ;;  %v3581_v33 = vadd.f32 %v3580_v43, %v3579_v45  ;;  %v3900_v27 = vrot.slane %v3899_v49, 1 }
 0x421   : > { %v3920_v28 = vadd.f32 %v3919_v5, %v3918_v63  ;;  %v3893_v62 = vrot.slane %v3892_v51, 1  ;;  %v3914_v32 = vrot.slane %v3913_v23, 1  ;;  %v3822_v50 = vmul.f32 %v3787_v44, %v8624_v19 }
 0x422   : > { %v3574_v18 = vadd.f32 %v3573_v57, %v3572_v40  ;;  %v3887_v7 = vadd.f32 %v3886_v47, %v3885_v48  ;;  %v3907_v0 = vrot.slane %v3906_v20, 1  ;;  %v3568_v46 = vrot.slane %v3567_v12, 1 }
 0x423   : > { %v3725_v53 = vpop.f32.mrf.mxu2  ;;  %v3588_v16 = vadd.f32 %v3587_v25, %v3586_v36  ;;  %v3582_v17 = vrot.slane %v3581_v33, 1  ;;  %v3901_v45 = vadd.f32 %v3900_v27, %v3899_v49  ;;  %v3921_v10 = vrot.slane %v3920_v28, 1 }
 0x424   : > { %v3823_v37 = vmul.f32 %v3725_v53, %v8547_v34  ;;  %v3561_v34 = vrot.slane %v3560_v29, 1  ;;  %v3555_v24 = vadd.f32 %v3554_v8, %v3553_v52  ;;  %v3894_v43 = vadd.f32 %v3893_v62, %v3892_v51 }
 0x425   : > { %v3790_v42 = vpop.f32.mrf.mxu3  ;;  %v3915_v5 = vadd.f32 %v3914_v32, %v3913_v23  ;;  %v3947_v19 = vmul.f32 %v8568_v39, %v3887_v7  ;;  %v3569_v48 = vadd.f32 %v3568_v46, %v3567_v12  ;;  %v3589_v57 = vrot.slane %v3588_v16, 1 }
 0x426   : > { %v3923_v58 = vadd.f32 %v3823_v37, %v3821_v14  ;;  %v3824_v59 = vmul.f32 %v3790_v42, %v8550_v4  ;;  %v3575_v14 = vrot.slane %v3574_v18, 1  ;;  %v3908_v4 = vadd.f32 %v3907_v0, %v3906_v20 }
 0x427   : > { %v3562_v40 = vadd.f32 %v3561_v34, %v3560_v29  ;;  %v3583_v37 = vadd.f32 %v3582_v17, %v3581_v33  ;;  %v3949_v36 = vmul.f32 %v8568_v39, %v3901_v45  ;;  %v3922_v25 = vadd.f32 %v3921_v10, %v3920_v28 }
 0x428   : > { %v3924_v41 = vrot.slane %v3923_v58, 4  ;;  %v3930_v3 = vadd.f32 %v3824_v59, %v3822_v50  ;;  %v3603_v27 = vmul.f32 %v8629_v21, %v3555_v24  ;;  %v3948_v52 = vmul.f32 %v8623_v30, %v3894_v43 }
 0x429   : > { %v3951_v32 = vmul.f32 %v8568_v39, %v3915_v5  ;;  %v3576_v51 = vadd.f32 %v3575_v14, %v3574_v18  ;;  %v4352_v23 = vrot.slane %v3947_v19, 4  ;;  %v3950_v20 = vmul.f32 %v8623_v30, %v3908_v4  ;;  %v8633_v14 = vld [vmem:[#allocation11_spill] sm:$0xff] }
 0x42a   : > { %v3925_v63 = vadd.f32 %v3924_v41, %v3923_v58  ;;  %v3931_v53 = vrot.slane %v3930_v3, 4  ;;  %v3604_v29 = vmul.f32 %v8630_v35, %v3562_v40  ;;  %v3590_v12 = vadd.f32 %v3589_v57, %v3588_v16 }
 0x42b   : > { %v3605_v58 = vmul.f32 %v8629_v21, %v3569_v48  ;;  %v4354_v28 = vrot.slane %v3949_v36, 3  ;;  %v3952_v42 = vmul.f32 %v8623_v30, %v3922_v25  ;;  %v3607_v59 = vmul.f32 %v8629_v21, %v3583_v37 }
 0x42c   : > { %v3926_v44 = vrot.slane %v3925_v63, 2  ;;  %v3932_v47 = vadd.f32 %v3931_v53, %v3930_v3  ;;  %v4366_v7 = vrot.slane %v3948_v52, 4  ;;  %v4356_v41 = vrot.slane %v3951_v32, 2 }
 0x42d   : > { %v4308_v18 = vrot.slane %v3603_v27, 3  ;;  %v4368_v34 = vrot.slane %v3950_v20, 3  ;;  %v4353_v3 = vsel %vm3981_vm5, %v4352_v23, %v7951_v22  ;;  %v3606_v16 = vmul.f32 %v8630_v35, %v3576_v51  ;;  %v8635_v27 = vld [vmem:[#allocation78_spill] sm:$0xff] }
 0x42e   : > { %v3927_v49 = vadd.f32 %v3926_v44, %v3925_v63  ;;  %v3933_v62 = vrot.slane %v3932_v47, 2  ;;  %v4310_v45 = vrot.slane %v3605_v58, 2  ;;  %v3608_v10 = vmul.f32 %v8630_v35, %v3590_v12  ;;  %v5002_v35 = vld [vmem:[%s8154_s10] sm:$0xff]  ;;  %v8640_v58 = vld [vmem:[#allocation15_spill] sm:$0xff] }
 0x42f   : > { %v4355_v63 = vsel %vm3984_vm6, %v4354_v28, %v4353_v3  ;;  %v4370_v21 = vrot.slane %v3952_v42, 2  ;;  %v4312_v43 = vrot.slane %v3607_v59, 1  ;;  %v5021_v5 = vmov 1   ;;  %v5003_v44 = vld [vmem:[%s8151_s7] sm:$0xff] }
 0x430   : > { %v3928_v8 = vrot.slane %v3927_v49, 1  ;;  %v3934_v33 = vadd.f32 %v3933_v62, %v3932_v47  ;;  %4948 = vset.pattern.permute.xlu0 %v5021_v5  ;;  %4947 = vset.pattern.permute.xlu2 %v5021_v5  ;;  %v4357_v53 = vsel %vm3987_vm10, %v4356_v41, %v4355_v63  ;;  %v8634_v22 = vrot.slane %v7977_v54, 4  ;;  %v8641_v28 = vld [vmem:[#allocation45_spill] sm:$0xff] }
 0x431   : > { %v4322_v4 = vrot.slane %v3604_v29, 3  ;;  %4498 = vperm.xlu0 %4948, %v5002_v35   ;;  %4429 = vperm.xlu2 %4947, %v5003_v44   ;;  %v4324_v48 = vrot.slane %v3606_v16, 2  ;;  %v4326_v36 = vrot.slane %v3608_v10, 1  ;;  %v8636_v52 = vrot.slane %v7980_v26, 4  ;;  %v8637_v29 = vld [vmem:[#allocation94_spill] sm:$0xff]  ;;  %v8638_v26 = vld [vmem:[#allocation35_spill] sm:$0xff] }
 0x432   : > { %v3929_v50 = vadd.f32 %v3928_v8, %v3927_v49  ;;  %v3935_v0 = vrot.slane %v3934_v33, 1  ;;  %v4307_v19 = vsel %vm3981_vm5, %v8634_v22, %v8633_v14  ;;  %v4122_v62 = vrot.slane %v7886_v15, 4  ;;  %v8644_v41 = vld [vmem:[#allocation85_spill] sm:$0xff]  ;;  %v8647_v16 = vld [vmem:[#allocation4_spill] sm:$0xff]  ;;  %v8656_v14 = vld [vmem:[#allocation22_spill] sm:$0xff] }
 0x433   : > { %v4309_v54 = vsel %vm3984_vm6, %v4308_v18, %v4307_v19  ;;  %v4321_v32 = vsel %vm3981_vm5, %v8636_v52, %v8635_v27  ;;  %v2219_v20 = vmul.f32 %v8576_v2, %v7903_v1  ;;  %v8639_v12 = vrot.slane %v8638_v26, 7  ;;  %v8645_v18 = vld [vmem:[#allocation80_spill] sm:$0xff]  ;;  %v8658_v44 = vld [vmem:[#allocation37_spill] sm:$0xff] }
 0x434   : > { %v3953_v46 = vmul.f32 %v8568_v39, %v3929_v50  ;;  %v3936_v17 = vadd.f32 %v3935_v0, %v3934_v33  ;;  %v4311_v37 = vsel %vm3987_vm10, %v4310_v45, %v4309_v54  ;;  %v4323_v23 = vsel %vm3984_vm6, %v4322_v4, %v4321_v32  ;;  %v8651_v45 = vld [vmem:[#allocation84_spill] sm:$0xff]  ;;  %v8665_v32 = vld [vmem:[#allocation23_spill] sm:$0xff] }
 0x435   : > { %v4313_v49 = vsel %vm3990_vm11, %v4312_v43, %v4311_v37  ;;  %v4325_v8 = vsel %vm3987_vm10, %v4324_v48, %v4323_v23  ;;  %v4117_v33 = vsel %vm3972_vm2, %v8639_v12, %v8637_v29  ;;  %v2221_v15 = vmul.f32 %v8576_v2, %v7907_v13  ;;  %v8668_v23 = vld [vmem:[#allocation29_spill] sm:$0xff]  ;;  %v8670_v26 = vld [vmem:[#allocation8_spill] sm:$0xff] }
 0x436   : > { %v4358_v24 = vrot.slane %v3953_v46, 1  ;;  %v3954_v39 = vmul.f32 %v8623_v30, %v3936_v17  ;;  %v4367_v30 = vsel %vm3981_vm5, %v4366_v7, %v7962_v6  ;;  %v2222_v6 = vmul.f32 %v8538_v60, %v7985_v11  ;;  %v8646_v46 = vld [vmem:[#allocation95_spill] sm:$0xff] }
 0x437   : > { %v4369_v57 = vsel %vm3984_vm6, %v4368_v34, %v4367_v30  ;;  %v4124_v60 = vrot.slane %v7966_v31, 3  ;;  %v4327_v11 = vsel %vm3990_vm11, %v4326_v36, %v4325_v8  ;;  %v8642_v42 = vrot.slane %v8641_v28, 6  ;;  %v8659_v30 = vld [vmem:[#allocation25_spill] sm:$0xff]  ;;  %v8669_v8 = vld [vmem:[#allocation86_spill] sm:$0xff] }
 0x438   : > { %v4359_v40 = vsel %vm3990_vm11, %v4358_v24, %v4357_v53  ;;  %v4372_v47 = vrot.slane %v3954_v39, 1  ;;  %v4371_v25 = vsel %vm3987_vm10, %v4370_v21, %v4369_v57  ;;  %v4126_v50 = vrot.slane %v7970_v9, 2  ;;  %v8648_v9 = vld [vmem:[#allocation40_spill] sm:$0xff]  ;;  %v8655_v53 = vld [vmem:[#allocation51_spill] sm:$0xff]  ;;  %v8660_v57 = vld [vmem:[#allocation17_spill] sm:$0xff] }
 0x439   : > { %4387 = vmatpush.msra.mxu0 %v4359_v40  ;;  %v4119_v1 = vsel %vm3975_vm3, %v8642_v42, %v4117_v33  ;;  %v2223_v59 = vmul.f32 %v8576_v2, %v7990_v38  ;;  %v4136_v7 = vrot.slane %v7899_v61, 4  ;;  %v8643_v31 = vrot.slane %v7860_v56, 5  ;;  %v8650_v61 = vld [vmem:[#allocation60_spill] sm:$0xff]  ;;  %v8652_v56 = vld [vmem:[#allocation49_spill] sm:$0xff]  ;;  %v8674_v42 = vld [vmem:[#allocation18_spill] sm:$0xff] }
 0x43a   : > { %v4373_v51 = vsel %vm3990_vm11, %v4372_v47, %v4371_v25  ;;  %v4128_v0 = vrot.slane %v2222_v6, 1  ;;  %v1528_v34 = vmul.f32 %v8645_v18, %v8644_v41  ;;  %v8649_v17 = vrot.slane %v8648_v9, 7  ;;  %v8653_v24 = vld [vmem:[#allocation88_spill] sm:$0xff]  ;;  %v8666_v6 = vld [vmem:[#allocation89_spill] sm:$0xff] }
 0x43b   : > { %4388 = vmatpush.msra.mxu0 %v4313_v49  ;;  %4407 = vmatpush.msra.mxu1 %v4373_v51  ;;  %v4121_v13 = vsel %vm3978_vm4, %v8643_v31, %v4119_v1  ;;  %v4138_v38 = vrot.slane %v2219_v20, 3  ;;  %v1527_v10 = vmul.f32 %v8651_v45, %v8650_v61  ;;  %v8654_v21 = vrot.slane %v8653_v24, 6  ;;  %v8661_v47 = vld [vmem:[#allocation92_spill] sm:$0xff]  ;;  %v8663_v49 = vld [vmem:[#allocation33_spill] sm:$0xff]  ;;  %v4493_v24 = vpop.permute.xlu1 %4492 }
 0x43c   : > { %v4123_v3 = vsel %vm3981_vm5, %v4122_v62, %v4121_v13  ;;  %v4131_v2 = vsel %vm3972_vm2, %v8649_v17, %v8647_v16  ;;  %v4140_v5 = vrot.slane %v2221_v15, 2  ;;  %v4034_v39 = vrot.slane %v8655_v53, 2  ;;  %v8680_v17 = vld [vmem:[#allocation47_spill] sm:$0xff]  ;;  %v4439_v61 = vld.sshfl [vmem:[#allocation1 + $0x8] sm:$0xff pattern:$0x75316420] }
 0x43d   : > { %4389 = vmatpush.msra.mxu0 %v8640_v58  ;;  %4408 = vmatpush.msra.mxu1 %v4327_v11  ;;  %v4125_v63 = vsel %vm3984_vm6, %v4124_v60, %v4123_v3  ;;  %v4133_v43 = vsel %vm3975_vm3, %v8654_v21, %v4131_v2  ;;  %v8657_v19 = vrot.slane %v7864_v55, 5  ;;  %v4142_v35 = vrot.slane %v2223_v59, 1  ;;  %v8672_v60 = vld [vmem:[#allocation91_spill] sm:$0xff]  ;;  %v8679_v3 = vld [vmem:[#allocation82_spill] sm:$0xff] }
 0x43e   : > { %v4127_v22 = vsel %vm3987_vm10, %v4126_v50, %v4125_v63  ;;  %v1529_v40 = vmul.f32 %v8651_v45, %v8658_v44  ;;  %v8662_v37 = vrot.slane %v8661_v47, 5  ;;  %v4036_v25 = vrot.slane %v1528_v34, 1  ;;  %v8675_v50 = vld [vmem:[#allocation93_spill] sm:$0xff] }
 0x43f   : > { %4390 = vmatpush.msra.mxu0 %v8646_v46  ;;  %4409 = vmatpush.msra.mxu1 %v8652_v56  ;;  %v4135_v4 = vsel %vm3978_vm4, %v8657_v19, %v4133_v43  ;;  %v4129_v54 = vsel %vm3990_vm11, %v4128_v0, %v4127_v22  ;;  %v8664_v27 = vrot.slane %v8663_v49, 4  ;;  %v8667_v62 = vrot.slane %v8666_v6, 7  ;;  %v8677_v0 = vld [vmem:[#allocation97_spill] sm:$0xff] }
 0x440   : > { %v4137_v48 = vsel %vm3981_vm5, %v4136_v7, %v4135_v4  ;;  %v4029_v36 = vsel %vm3978_vm4, %v8662_v37, %v8660_v57  ;;  %v4046_v20 = vrot.slane %v8668_v23, 3  ;;  %v8671_v12 = vrot.slane %v8670_v26, 3  ;;  %v4376_v46 = vld [vmem:[%s8150_s6] sm:$0xff] }
 0x441   : > { %4391 = vmatpush.msra.mxu0 %v8656_v14  ;;  %4410 = vmatpush.msra.mxu1 %v8659_v30  ;;  %v4139_v55 = vsel %vm3984_vm6, %v4138_v38, %v4137_v48  ;;  %v4031_v52 = vsel %vm3981_vm5, %v8664_v27, %v4029_v36  ;;  %v4039_v51 = vsel %vm3972_vm2, %v8667_v62, %v8665_v32  ;;  %v8673_v15 = vrot.slane %v8672_v60, 6  ;;  %v4438_v2 = vld.sshfl [vmem:[#allocation1] sm:$0xff pattern:$0x75316420]  ;;  %v8681_v38 = vld [vmem:[#allocation48_spill] sm:$0xff] }
 0x442   : > { %v4141_v29 = vsel %vm3987_vm10, %v4140_v5, %v4139_v55  ;;  %v4033_v33 = vsel %vm3984_vm6, %v8671_v12, %v4031_v52  ;;  %v4048_v58 = vrot.slane %v1527_v10, 2  ;;  %v8676_v59 = vrot.slane %v8675_v50, 5  ;;  %v4434_v45 = vld [vmem:[%s8153_s9] sm:$0xff]  ;;  %v4424_v10 = vpop.permute.xlu2 %4423 }
 0x443   : > { %4392 = vmatpush.msra.mxu0 %v4129_v54  ;;  %4411 = vmatpush.msra.mxu1 %v8669_v8  ;;  %v4041_v11 = vsel %vm3975_vm3, %v8673_v15, %v4039_v51  ;;  %v4143_v28 = vsel %vm3990_vm11, %v4142_v35, %v4141_v29  ;;  %v4035_v1 = vsel %vm3987_vm10, %v4034_v39, %v4033_v33  ;;  %v4050_v31 = vrot.slane %v1529_v40, 1 }
 0x444   : > { %v4043_v7 = vsel %vm3978_vm4, %v8676_v59, %v4041_v11  ;;  %v4037_v13 = vsel %vm3990_vm11, %v4036_v25, %v4035_v1  ;;  %v8678_v41 = vrot.slane %v8677_v0, 4  ;;  %vm4444_vm7 = vcmask 1043456  }
 0x445   : > { %4393 = vmatpush.msra.mxu0 %v8674_v42  ;;  %4412 = vmatpush.msra.mxu1 %v4143_v28  ;;  %vm4440_vm2 = vcmask 31744  }
 0x446   : > { %v4045_v18 = vsel %vm3981_vm5, %v8678_v41, %v4043_v7 }
 0x447   : > { %4394 = vmatpush.msra.mxu0 %v4037_v13  ;;  %v4047_v34 = vsel %vm3984_vm6, %v4046_v20, %v4045_v18  ;;  %4413 = vmatpush.msra.mxu1 %v8679_v3 }
 0x448   : > { %v4049_v16 = vsel %vm3987_vm10, %v4048_v58, %v4047_v34 }
 0x449   : > { %v4051_v9 = vsel %vm3990_vm11, %v4050_v31, %v4049_v16  ;;  %4395 = vmatpush.msra.mxu0 %v8680_v17 }
 0x44a   : > { %4414 = vmatpush.msra.mxu1 %v4051_v9  ;;  %4910 = vmatmul.msk.f32.vlgmr.msra.gmra.mxu0 %vm627_vm8, %v4376_v46 }
 0x44b   : > { %4912 = vmatpush.msk.msrb.mxu0 %vm4444_vm7, %v4438_v2 }
 0x44c   : > { %4415 = vmatpush.msra.mxu1 %v8681_v38 }
 0x44d   : > { %4911 = vmatmul.msk.f32.vlgmr.msra.gmra.mxu1 %vm627_vm8, %v4376_v46 }
 0x44e   : > { %4914 = vmatpush.msk.msrb.mxu1 %vm4444_vm7, %v4439_v61 }
 0x452   : > { %4913 = vmatmul.msk.f32.vlgmr.msrb.gmra.mxu0 %vm4440_vm2, %v4434_v45 }
 0x455   : > { %4915 = vmatmul.msk.f32.vlgmr.msrb.gmra.mxu1 %vm4440_vm2, %v4434_v45 }
 0x48b   : > { %v4430_v43 = vpop.permute.xlu2 %4429 }
 0x4a3   : > { %v4499_v53 = vpop.permute.xlu0 %4498 }
 0x4c7   : > { %v4397_v56 = vpop.f32.mrf.mxu0 }
 0x4c8   : > { %v4426_v21 = vmul.f32 %v4424_v10, %v4397_v56 }
 0x4ca   : > { %v4417_v63 = vpop.f32.mrf.mxu1  ;;  %v4432_v22 = vadd.f32 %v4430_v43, %v4426_v21 }
 0x4cb   : > { %v4427_v14 = vmul.f32 %v4424_v10, %v4417_v63 }
 0x4cd   : > { %v4433_v40 = vadd.f32 %v4430_v43, %v4427_v14 }
 0x4cf   : > { %v4466_v5 = vpop.f32.mrf.mxu0 }
 0x4d0   : > { %v4495_v39 = vmul.f32 %v4493_v24, %v4466_v5 }
 0x4d2   : > { %v4486_v19 = vpop.f32.mrf.mxu1  ;;  %v4501_v4 = vadd.f32 %v4499_v53, %v4495_v39 }
 0x4d3   : > { %v4496_v35 = vmul.f32 %v4493_v24, %v4486_v19 }
 0x4d4   : > { %v4503_v44 = vadd.f32 %v4501_v4, %v4432_v22 }
 0x4d5   : > { %v4502_v30 = vadd.f32 %v4499_v53, %v4496_v35 }
 0x4d6   : > { %v4505_v54 = vmax.f32 %v4503_v44, 0.0 }
 0x4d7   : > { %v4504_v48 = vadd.f32 %v4502_v30, %v4433_v40 }
 0x4d8   : > { %4507 = vst [vmem:[%s426_s29] sm:$0xff] %v4505_v54 }
 0x4d9   : > { %v4506_v57 = vmax.f32 %v4504_v48, 0.0 }
 0x4db   : > { %4508 = vst [vmem:[%s426_s29 + $0x8] sm:$0xff] %v4506_v57 }
 0x4dc PF: > { %s21_s17 = sadd.s32 1, %s5010_s17  }
 0x4dd   : > { %p18_p4 = scmp.ge.s32.totalorder %s21_s17, 4  }
 0x4df   :  { %20 = sbr.rel (!%p18_p4) target bundleno = 1 (0x1), region = 124 }

</bundles_post_ra>
